<compile_context>
chip_gen: v5e
topology: v5e:2x2
jax: 0.10.0
libtpu: 0.0.40
codegen_flags: <defaults>
</compile_context>

<pallas_src>
import functools

import numpy as np

import jax
import jax.numpy as jnp
from jax import lax
from jax.experimental import pallas as pl
from jax.experimental.pallas import tpu as pltpu


# ----------------------------------------------------------------------------
# helpers
# ----------------------------------------------------------------------------
def _round_up(x, m):
    return (x + m - 1) // m * m


# ----------------------------------------------------------------------------
# Fused kernel: conv1/bn/relu -> pool -> conv2/bn/relu -> pool -> fc1 -> fc2
#               -> log_softmax, one (batch-tile) grid step at a time.
#
# Data layouts inside the kernel (per image):
#   conv1 input : four refs holding input rows grouped by (row mod 4), (7, 28)
#   conv1 out   : 4 arrays (6, 2*half1), rows = oh mod 4, lane = (ow%2, c, ow//2)
#   pool1 out   : p_even/p_odd (6, half1), rows = pooled row (even/odd), lane=(c, w)
#   conv2 out   : 2 arrays (4, 2*half2), rows = oh2 mod 2, lane = (ow2%2, co, ow2//2)
#   pool2 out   : (4, half2), rows = pooled row, lane = (co, w)
#   fc1         : sum over the 4 pooled rows of (1, half2) @ (half2, H1p)
# ----------------------------------------------------------------------------
def _fused_cnn_kernel(
        xm0_ref, xm1_ref, xm2_ref, xm3_ref,
        w1_ref, s1_ref, b1_ref,
        w2_ref, s2_ref, b2_ref,
        wf1_ref, bf1_ref, wf2_ref, bf2_ref,
        o_ref,
        *, n_valid, half1, half2, bt):
    cdt = w1_ref.dtype                      # MXU input dtype (bf16 or f32)
    s1 = s1_ref[...]
    b1 = b1_ref[...]
    s2 = s2_ref[...]
    b2 = b2_ref[...]
    bf1 = bf1_ref[...]
    bf2 = bf2_ref[...]
    xrefs = (xm0_ref, xm1_ref, xm2_ref, xm3_ref)

    for img in range(bt):                   # static unroll over the batch tile
        xrows = [r[img] for r in xrefs]     # 4 x (7, 28) f32

        # ---- conv1 + BN + ReLU, output rows grouped by (oh mod 4) ----------
        ys = []
        for t in range(4):
            acc = None
            for kh in range(5):
                q = t + kh                  # needed input row = 4*(m + q//4) + q%4
                a_rows = xrows[q % 4][q // 4:q // 4 + 6, :].astype(cdt)
                part = jnp.dot(a_rows, w1_ref[kh],
                               preferred_element_type=jnp.float32)
                acc = part if acc is None else acc + part
            ys.append(jnp.maximum(acc * s1 + b1, 0.0))

        # ---- maxpool 2x2 #1: horizontal = aligned lane halves,
        #                      vertical   = row-class pairs ------------------
        p_even = jnp.maximum(jnp.maximum(ys[0][:, :half1], ys[0][:, half1:]),
                             jnp.maximum(ys[1][:, :half1], ys[1][:, half1:]))
        p_odd = jnp.maximum(jnp.maximum(ys[2][:, :half1], ys[2][:, half1:]),
                            jnp.maximum(ys[3][:, :half1], ys[3][:, half1:]))

        # ---- conv2 + BN + ReLU, output rows grouped by (oh2 mod 2) ---------
        rows2 = []
        for r2 in range(2):
            acc = None
            for kh in range(5):
                q = r2 + kh                 # needed pooled row = 2*(i2 + q//2) + q%2
                src = p_even if (q % 2 == 0) else p_odd
                a_rows = src[q // 2:q // 2 + 4, :].astype(cdt)
                part = jnp.dot(a_rows, w2_ref[kh],
                               preferred_element_type=jnp.float32)
                acc = part if acc is None else acc + part
            rows2.append(jnp.maximum(acc * s2 + b2, 0.0))

        # ---- maxpool 2x2 #2 -------------------------------------------------
        p2 = jnp.maximum(jnp.maximum(rows2[0][:, :half2], rows2[0][:, half2:]),
                         jnp.maximum(rows2[1][:, :half2], rows2[1][:, half2:]))

        # ---- fc1 + ReLU (sum of 4 row matmuls == NCHW-flatten matmul) -------
        hidden = None
        for h in range(4):
            part = jnp.dot(p2[h:h + 1, :].astype(cdt), wf1_ref[h],
                           preferred_element_type=jnp.float32)
            hidden = part if hidden is None else hidden + part
        hidden = jnp.maximum(hidden + bf1, 0.0)

        # ---- fc2 + masked log_softmax ---------------------------------------
        logits = jnp.dot(hidden.astype(cdt), wf2_ref[...],
                         preferred_element_type=jnp.float32) + bf2
        col = lax.broadcasted_iota(jnp.int32, logits.shape, 1)
        logits = jnp.where(col < n_valid, logits, -1e30)   # mask padded classes
        m = jnp.max(logits, axis=-1, keepdims=True)
        shifted = logits - m
        lse = jnp.log(jnp.sum(jnp.exp(shifted), axis=-1, keepdims=True))
        o_ref[img] = (shifted - lse).astype(o_ref.dtype)


# ----------------------------------------------------------------------------
# Forward wrapper
# ----------------------------------------------------------------------------
def cnn_3l_bn_forward(x_nchw, prep, *, n_classes=10, batch_tile=1):
    B, cin, H, W = x_nchw.shape
    assert cin == 1 and H == 28 and W == 28, "cnn_3l_bn expects 1x28x28 inputs"

    bt = max(1, min(batch_tile, B))
    Bp = _round_up(B, bt)
    x2 = x_nchw[:, 0].astype(jnp.float32)                    # (B, 28, 28)
    if Bp != B:
        x2 = jnp.pad(x2, ((0, Bp - B), (0, 0), (0, 0)))
    # Split input rows by (row mod 4) on the host (tiny, 3 KB/img) so the
    # kernel never needs strided slices for the conv/pool row parities.
    xm = [x2[:, s::4, :] for s in range(4)]                  # 4 x (Bp, 7, 28)

    half1 = prep["w1"].shape[-1] // 2
    half2 = prep["w2"].shape[-1] // 2
    cp = prep["wf2"].shape[-1]
    assert n_classes <= cp

    weights = [prep[k] for k in
               ("w1", "s1", "b1", "w2", "s2", "b2", "wf1", "bf1", "wf2", "bf2")]

    def const_spec(a):
        nd = a.ndim
        return pl.BlockSpec(a.shape, lambda i, _nd=nd: (0,) * _nd)

    x_spec = pl.BlockSpec((bt, 7, 28), lambda i: (i, 0, 0))

    flops = 2 * Bp * (4 * 5 * 6 * 28 * prep["w1"].shape[-1]
                      + 2 * 5 * 4 * prep["w2"].shape[-2] * prep["w2"].shape[-1]
                      + 4 * prep["wf1"].shape[-2] * prep["wf1"].shape[-1]
                      + prep["wf2"].shape[-2] * cp)
    bytes_accessed = (sum(a.size * a.dtype.itemsize for a in weights)
                      + Bp * (4 * 7 * 28 * 4 + cp * 4))

    out = pl.pallas_call(
        functools.partial(_fused_cnn_kernel, n_valid=n_classes,
                          half1=half1, half2=half2, bt=bt),
        out_shape=jax.ShapeDtypeStruct((Bp, 1, cp), jnp.float32),
        grid=(Bp // bt,),
        in_specs=[x_spec] * 4 + [const_spec(a) for a in weights],
        out_specs=pl.BlockSpec((bt, 1, cp), lambda i: (i, 0, 0)),
        compiler_params=pltpu.CompilerParams(dimension_semantics=("parallel",)),
        cost_estimate=pl.CostEstimate(flops=flops, transcendentals=Bp * cp,
                                      bytes_accessed=bytes_accessed),
    )(xm[0], xm[1], xm[2], xm[3], *weights)

    return out.reshape(Bp, cp)[:B, :n_classes]


# ----------------------------------------------------------------------------
# Parameter prep: fold BN, build banded conv matrices whose output-lane order
# encodes the 2x2 pooling, permute/pad fc weights.  All done ONCE, host-side.
# ----------------------------------------------------------------------------
def prepare_params(p, *, eps=1e-5, n_classes=10, compute_dtype=jnp.bfloat16):
    f32 = jnp.float32
    w1 = p["conv1_w"].astype(f32)            # (C1, 1, 5, 5)
    w2 = p["conv2_w"].astype(f32)            # (C2, C1, 5, 5)
    C1, C2 = w1.shape[0], w2.shape[0]
    OW1, PW1 = 24, 12                        # conv1 out width / pooled width
    OW2, PW2 = 8, 4                          # conv2 out width / pooled width
    HALF1 = _round_up(PW1 * C1, 128)
    HALF2 = _round_up(PW2 * C2, 128)
    L1, L2 = 2 * HALF1, 2 * HALF2

    # fold eval-mode BN (+ conv bias) into per-channel scale / bias
    sc1 = p["bn1_gamma"] / jnp.sqrt(p["bn1_var"] + eps)
    bi1 = (p["conv1_b"] - p["bn1_mean"]) * sc1 + p["bn1_beta"]
    sc2 = p["bn2_gamma"] / jnp.sqrt(p["bn2_var"] + eps)
    bi2 = (p["conv2_b"] - p["bn2_mean"]) * sc2 + p["bn2_beta"]

    # --- conv1 banded matrices: B1[kh][w_in, (ow%2)*HALF1 + c*12 + ow//2] ----
    ci, owi, kwi = np.meshgrid(np.arange(C1), np.arange(OW1), np.arange(5),
                               indexing="ij")
    rows1 = (owi + kwi).reshape(-1)
    cols1 = ((owi % 2) * HALF1 + ci * PW1 + owi // 2).reshape(-1)
    b1_list = []
    for kh in range(5):
        vals = w1[ci.reshape(-1), 0, kh, kwi.reshape(-1)]
        b1_list.append(jnp.zeros((28, L1), f32).at[rows1, cols1].set(vals))
    w1_band = jnp.stack(b1_list, axis=0).astype(compute_dtype)     # (5, 28, L1)

    t1s, t1b = jnp.repeat(sc1, PW1), jnp.repeat(bi1, PW1)
    s1L = (jnp.zeros((L1,), f32).at[:C1 * PW1].set(t1s)
           .at[HALF1:HALF1 + C1 * PW1].set(t1s)).reshape(1, L1)
    b1L = (jnp.zeros((L1,), f32).at[:C1 * PW1].set(t1b)
           .at[HALF1:HALF1 + C1 * PW1].set(t1b)).reshape(1, L1)

    # --- conv2 banded matrices: B2[kh][ci*12+w_in, (ow2%2)*HALF2 + co*4 + ow2//2]
    coi, cii, ow2i, kw2i = np.meshgrid(np.arange(C2), np.arange(C1),
                                       np.arange(OW2), np.arange(5),
                                       indexing="ij")
    rows2 = (cii * PW1 + ow2i + kw2i).reshape(-1)
    cols2 = ((ow2i % 2) * HALF2 + coi * PW2 + ow2i // 2).reshape(-1)
    b2_list = []
    for kh in range(5):
        vals = w2[coi.reshape(-1), cii.reshape(-1), kh, kw2i.reshape(-1)]
        b2_list.append(jnp.zeros((HALF1, L2), f32).at[rows2, cols2].set(vals))
    w2_band = jnp.stack(b2_list, axis=0).astype(compute_dtype)  # (5, HALF1, L2)

    t2s, t2b = jnp.repeat(sc2, PW2), jnp.repeat(bi2, PW2)
    s2L = (jnp.zeros((L2,), f32).at[:C2 * PW2].set(t2s)
           .at[HALF2:HALF2 + C2 * PW2].set(t2s)).reshape(1, L2)
    b2L = (jnp.zeros((L2,), f32).at[:C2 * PW2].set(t2b)
           .at[HALF2:HALF2 + C2 * PW2].set(t2b)).reshape(1, L2)

    # --- fc1: reorder torch NCHW-flatten columns to (h, co*4 + w), pad --------
    fc1_w = p["fc1_w"].astype(f32)           # (H1, 16*C2), col = co*16 + h*4 + w
    H1 = fc1_w.shape[0]
    H1p = _round_up(H1, 128)
    wf1 = fc1_w.T.reshape(C2, PW2, PW2, H1)              # (co, h, w, n)
    wf1 = jnp.transpose(wf1, (1, 0, 2, 3)).reshape(PW2, C2 * PW2, H1)
    wf1_p = (jnp.zeros((PW2, HALF2, H1p), f32)
             .at[:, :C2 * PW2, :H1].set(wf1).astype(compute_dtype))
    bf1 = jnp.zeros((1, H1p), f32).at[0, :H1].set(p["fc1_b"])

    # --- fc2: pre-transpose, pad classes to a lane-dense 128 ------------------
    fc2_w = p["fc2_w"].astype(f32)           # (n_classes, H1)
    Cp = _round_up(max(n_classes, 1), 128)
    wf2 = (jnp.zeros((H1p, Cp), f32)
           .at[:H1, :n_classes].set(fc2_w.T).astype(compute_dtype))
    bf2 = jnp.zeros((1, Cp), f32).at[0, :n_classes].set(p["fc2_b"])

    return dict(w1=w1_band, s1=s1L, b1=b1L,
                w2=w2_band, s2=s2L, b2=b2L,
                wf1=wf1_p, bf1=bf1, wf2=wf2, bf2=bf2)


# ----------------------------------------------------------------------------
# Deterministic parameter init (same shapes as the PyTorch module)
# ----------------------------------------------------------------------------
def init_params(key, n_classes=10, conv_expand=1, fc_expand=1):
    c1, c2, h1 = 20 * conv_expand, 50 * conv_expand, 500 * fc_expand
    ks = jax.random.split(key, 12)
    f32 = jnp.float32
    return {
        "conv1_w": 0.2 * jax.random.normal(ks[0], (c1, 1, 5, 5), f32),
        "conv1_b": 0.1 * jax.random.normal(ks[1], (c1,), f32),
        "bn1_gamma": 1.0 + 0.1 * jax.random.normal(ks[2], (c1,), f32),
        "bn1_beta": 0.1 * jax.random.normal(ks[3], (c1,), f32),
        "bn1_mean": 0.05 * jax.random.normal(ks[4], (c1,), f32),
        "bn1_var": 1.0 + 0.1 * jax.random.uniform(ks[5], (c1,), f32),
        "conv2_w": 0.08 * jax.random.normal(ks[6], (c2, c1, 5, 5), f32),
        "conv2_b": 0.05 * jax.random.normal(ks[7], (c2,), f32),
        "bn2_gamma": 1.0 + 0.1 * jax.random.normal(ks[8], (c2,), f32),
        "bn2_beta": 0.1 * jax.random.normal(ks[9], (c2,), f32),
        "bn2_mean": 0.05 * jax.random.normal(ks[10], (c2,), f32),
        "bn2_var": 1.0 + 0.1 * jax.random.uniform(ks[11], (c2,), f32),
        "fc1_w": 0.04 * jax.random.normal(jax.random.fold_in(key, 100),
                                          (h1, 4 * 4 * c2), f32),
        "fc1_b": 0.02 * jax.random.normal(jax.random.fold_in(key, 101), (h1,), f32),
        "fc2_w": 0.15 * jax.random.normal(jax.random.fold_in(key, 102),
                                          (n_classes, h1), f32),
        "fc2_b": 0.05 * jax.random.normal(jax.random.fold_in(key, 103),
                                          (n_classes,), f32),
    }


# ----------------------------------------------------------------------------
# Pure-JAX (XLA) reference of the PyTorch module, eval-mode BN
# ----------------------------------------------------------------------------
def reference_forward(x, p, eps=1e-5):
    def bn(z, g, b, mu, var):
        g, b, mu, var = (t[None, :, None, None] for t in (g, b, mu, var))
        return g * (z - mu) / jnp.sqrt(var + eps) + b

    z = lax.conv_general_dilated(x, p["conv1_w"], (1, 1), "VALID",
                                 dimension_numbers=("NCHW", "OIHW", "NCHW"))
    z = z + p["conv1_b"][None, :, None, None]
    z = jax.nn.relu(bn(z, p["bn1_gamma"], p["bn1_beta"], p["bn1_mean"], p["bn1_var"]))
    z = lax.reduce_window(z, -jnp.inf, lax.max, (1, 1, 2, 2), (1, 1, 2, 2), "VALID")
    z = lax.conv_general_dilated(z, p["conv2_w"], (1, 1), "VALID",
                                 dimension_numbers=("NCHW", "OIHW", "NCHW"))
    z = z + p["conv2_b"][None, :, None, None]
    z = jax.nn.relu(bn(z, p["bn2_gamma"], p["bn2_beta"], p["bn2_mean"], p["bn2_var"]))
    z = lax.reduce_window(z, -jnp.inf, lax.max, (1, 1, 2, 2), (1, 1, 2, 2), "VALID")
    z = z.reshape(z.shape[0], -1)
    z = jax.nn.relu(z @ p["fc1_w"].T + p["fc1_b"])
    z = z @ p["fc2_w"].T + p["fc2_b"]
    return jax.nn.log_softmax(z, axis=-1)


if __name__ == "__main__":
    key = jax.random.PRNGKey(0)
    # The module's 4*4*50 flatten fixes the input at 1x28x28 (MNIST); batch = 2.
    x = jax.random.normal(jax.random.fold_in(key, 999), (2, 1, 28, 28), jnp.float32)
    params = init_params(key)
    prep = prepare_params(params)                      # bf16 MXU weights

    fwd = jax.jit(functools.partial(cnn_3l_bn_forward, n_classes=10))
    out = jax.block_until_ready(fwd(x, prep))

    assert out.shape == (2, 10)
    assert bool(jnp.all(jnp.isfinite(out)))
    # log_softmax rows exp-sum to 1
    assert jnp.allclose(jnp.sum(jnp.exp(out), axis=1), 1.0, atol=1e-4)
    # parity vs an XLA f32 reference (loose tolerance: bf16 MXU inputs)
    ref = reference_forward(x, params)
    err = float(jnp.max(jnp.abs(out - ref)))
    assert err < 0.2, f"mismatch vs reference: {err}"
    print("KERNEL_OK")
</pallas_src>

<mosaic_0001>
module attributes {stable_mosaic.version = 11 : i64} {
  func.func @_fused_cnn_kernel(%arg0: i32, %arg1: memref<1x7x28xf32, #tpu.memory_space<vmem>>, %arg2: memref<1x7x28xf32, #tpu.memory_space<vmem>>, %arg3: memref<1x7x28xf32, #tpu.memory_space<vmem>>, %arg4: memref<1x7x28xf32, #tpu.memory_space<vmem>>, %arg5: memref<5x28x512xbf16, #tpu.memory_space<vmem>>, %arg6: memref<1x512xf32, #tpu.memory_space<vmem>>, %arg7: memref<1x512xf32, #tpu.memory_space<vmem>>, %arg8: memref<5x256x512xbf16, #tpu.memory_space<vmem>>, %arg9: memref<1x512xf32, #tpu.memory_space<vmem>>, %arg10: memref<1x512xf32, #tpu.memory_space<vmem>>, %arg11: memref<4x256x512xbf16, #tpu.memory_space<vmem>>, %arg12: memref<1x512xf32, #tpu.memory_space<vmem>>, %arg13: memref<512x128xbf16, #tpu.memory_space<vmem>>, %arg14: memref<1x128xf32, #tpu.memory_space<vmem>>, %arg15: memref<1x1x128xf32, #tpu.memory_space<vmem>>) attributes {dimension_semantics = [#tpu.dimension_semantics<parallel>], iteration_bounds = array<i64: 2>, scalar_prefetch = 0 : i64, scratch_operands = 0 : i64, tpu.core_type = #tpu.core_type<tc>, window_params = [{transform_indices = @transform_0, window_bounds = array<i64: 1, 7, 28>}, {transform_indices = @transform_1, window_bounds = array<i64: 1, 7, 28>}, {transform_indices = @transform_2, window_bounds = array<i64: 1, 7, 28>}, {transform_indices = @transform_3, window_bounds = array<i64: 1, 7, 28>}, {pipeline_mode = #tpu.pipeline_mode<synchronous>, transform_indices = @transform_4, window_bounds = array<i64: 5, 28, 512>}, {pipeline_mode = #tpu.pipeline_mode<synchronous>, transform_indices = @transform_5, window_bounds = array<i64: 1, 512>}, {pipeline_mode = #tpu.pipeline_mode<synchronous>, transform_indices = @transform_6, window_bounds = array<i64: 1, 512>}, {pipeline_mode = #tpu.pipeline_mode<synchronous>, transform_indices = @transform_7, window_bounds = array<i64: 5, 256, 512>}, {pipeline_mode = #tpu.pipeline_mode<synchronous>, transform_indices = @transform_8, window_bounds = array<i64: 1, 512>}, {pipeline_mode = #tpu.pipeline_mode<synchronous>, transform_indices = @transform_9, window_bounds = array<i64: 1, 512>}, {pipeline_mode = #tpu.pipeline_mode<synchronous>, transform_indices = @transform_10, window_bounds = array<i64: 4, 256, 512>}, {pipeline_mode = #tpu.pipeline_mode<synchronous>, transform_indices = @transform_11, window_bounds = array<i64: 1, 512>}, {pipeline_mode = #tpu.pipeline_mode<synchronous>, transform_indices = @transform_12, window_bounds = array<i64: 512, 128>}, {pipeline_mode = #tpu.pipeline_mode<synchronous>, transform_indices = @transform_13, window_bounds = array<i64: 1, 128>}, {transform_indices = @transform_14, window_bounds = array<i64: 1, 1, 128>}]} {
    %c0 = arith.constant 0 : index
    %c0_0 = arith.constant 0 : index
    %0 = vector.load %arg6[%c0, %c0_0] : memref<1x512xf32, #tpu.memory_space<vmem>>, vector<1x512xf32>
    %c0_1 = arith.constant 0 : index
    %c0_2 = arith.constant 0 : index
    %1 = vector.load %arg7[%c0_1, %c0_2] : memref<1x512xf32, #tpu.memory_space<vmem>>, vector<1x512xf32>
    %c0_3 = arith.constant 0 : index
    %c0_4 = arith.constant 0 : index
    %2 = vector.load %arg9[%c0_3, %c0_4] : memref<1x512xf32, #tpu.memory_space<vmem>>, vector<1x512xf32>
    %c0_5 = arith.constant 0 : index
    %c0_6 = arith.constant 0 : index
    %3 = vector.load %arg10[%c0_5, %c0_6] : memref<1x512xf32, #tpu.memory_space<vmem>>, vector<1x512xf32>
    %c0_7 = arith.constant 0 : index
    %c0_8 = arith.constant 0 : index
    %4 = vector.load %arg12[%c0_7, %c0_8] : memref<1x512xf32, #tpu.memory_space<vmem>>, vector<1x512xf32>
    %c0_9 = arith.constant 0 : index
    %c0_10 = arith.constant 0 : index
    %5 = vector.load %arg14[%c0_9, %c0_10] : memref<1x128xf32, #tpu.memory_space<vmem>>, vector<1x128xf32>
    %c0_11 = arith.constant 0 : index
    %c0_12 = arith.constant 0 : index
    %c0_13 = arith.constant 0 : index
    %6 = vector.load %arg1[%c0_11, %c0_12, %c0_13] : memref<1x7x28xf32, #tpu.memory_space<vmem>>, vector<1x7x28xf32>
    %7 = vector.shape_cast %6 : vector<1x7x28xf32> to vector<7x28xf32>
    %c0_14 = arith.constant 0 : index
    %c0_15 = arith.constant 0 : index
    %c0_16 = arith.constant 0 : index
    %8 = vector.load %arg2[%c0_14, %c0_15, %c0_16] : memref<1x7x28xf32, #tpu.memory_space<vmem>>, vector<1x7x28xf32>
    %9 = vector.shape_cast %8 : vector<1x7x28xf32> to vector<7x28xf32>
    %c0_17 = arith.constant 0 : index
    %c0_18 = arith.constant 0 : index
    %c0_19 = arith.constant 0 : index
    %10 = vector.load %arg3[%c0_17, %c0_18, %c0_19] : memref<1x7x28xf32, #tpu.memory_space<vmem>>, vector<1x7x28xf32>
    %11 = vector.shape_cast %10 : vector<1x7x28xf32> to vector<7x28xf32>
    %c0_20 = arith.constant 0 : index
    %c0_21 = arith.constant 0 : index
    %c0_22 = arith.constant 0 : index
    %12 = vector.load %arg4[%c0_20, %c0_21, %c0_22] : memref<1x7x28xf32, #tpu.memory_space<vmem>>, vector<1x7x28xf32>
    %13 = vector.shape_cast %12 : vector<1x7x28xf32> to vector<7x28xf32>
    %14 = vector.extract_strided_slice %7 {offsets = [0, 0], sizes = [6, 28], strides = [1, 1]} : vector<7x28xf32> to vector<6x28xf32>
    %15 = arith.truncf %14 : vector<6x28xf32> to vector<6x28xbf16>
    %c0_23 = arith.constant 0 : index
    %c0_24 = arith.constant 0 : index
    %c0_25 = arith.constant 0 : index
    %16 = vector.load %arg5[%c0_23, %c0_24, %c0_25] : memref<5x28x512xbf16, #tpu.memory_space<vmem>>, vector<1x28x512xbf16>
    %17 = vector.shape_cast %16 : vector<1x28x512xbf16> to vector<28x512xbf16>
    %cst = arith.constant dense<0.000000e+00> : vector<6x512xf32>
    %18 = tpu.matmul %15, %17, %cst {dimension_numbers = #tpu.dot_dimension_numbers<[1], [0], [0], [1], [0, 0, 1, 1], [], []>} : vector<6x28xbf16>, vector<28x512xbf16>, vector<6x512xf32> -> vector<6x512xf32>
    %19 = vector.extract_strided_slice %9 {offsets = [0, 0], sizes = [6, 28], strides = [1, 1]} : vector<7x28xf32> to vector<6x28xf32>
    %20 = arith.truncf %19 : vector<6x28xf32> to vector<6x28xbf16>
    %c1 = arith.constant 1 : index
    %c0_26 = arith.constant 0 : index
    %c0_27 = arith.constant 0 : index
    %21 = vector.load %arg5[%c1, %c0_26, %c0_27] : memref<5x28x512xbf16, #tpu.memory_space<vmem>>, vector<1x28x512xbf16>
    %22 = vector.shape_cast %21 : vector<1x28x512xbf16> to vector<28x512xbf16>
    %cst_28 = arith.constant dense<0.000000e+00> : vector<6x512xf32>
    %23 = tpu.matmul %20, %22, %cst_28 {dimension_numbers = #tpu.dot_dimension_numbers<[1], [0], [0], [1], [0, 0, 1, 1], [], []>} : vector<6x28xbf16>, vector<28x512xbf16>, vector<6x512xf32> -> vector<6x512xf32>
    %24 = arith.addf %18, %23 : vector<6x512xf32>
    %25 = vector.extract_strided_slice %11 {offsets = [0, 0], sizes = [6, 28], strides = [1, 1]} : vector<7x28xf32> to vector<6x28xf32>
    %26 = arith.truncf %25 : vector<6x28xf32> to vector<6x28xbf16>
    %c2 = arith.constant 2 : index
    %c0_29 = arith.constant 0 : index
    %c0_30 = arith.constant 0 : index
    %27 = vector.load %arg5[%c2, %c0_29, %c0_30] : memref<5x28x512xbf16, #tpu.memory_space<vmem>>, vector<1x28x512xbf16>
    %28 = vector.shape_cast %27 : vector<1x28x512xbf16> to vector<28x512xbf16>
    %cst_31 = arith.constant dense<0.000000e+00> : vector<6x512xf32>
    %29 = tpu.matmul %26, %28, %cst_31 {dimension_numbers = #tpu.dot_dimension_numbers<[1], [0], [0], [1], [0, 0, 1, 1], [], []>} : vector<6x28xbf16>, vector<28x512xbf16>, vector<6x512xf32> -> vector<6x512xf32>
    %30 = arith.addf %24, %29 : vector<6x512xf32>
    %31 = vector.extract_strided_slice %13 {offsets = [0, 0], sizes = [6, 28], strides = [1, 1]} : vector<7x28xf32> to vector<6x28xf32>
    %32 = arith.truncf %31 : vector<6x28xf32> to vector<6x28xbf16>
    %c3 = arith.constant 3 : index
    %c0_32 = arith.constant 0 : index
    %c0_33 = arith.constant 0 : index
    %33 = vector.load %arg5[%c3, %c0_32, %c0_33] : memref<5x28x512xbf16, #tpu.memory_space<vmem>>, vector<1x28x512xbf16>
    %34 = vector.shape_cast %33 : vector<1x28x512xbf16> to vector<28x512xbf16>
    %cst_34 = arith.constant dense<0.000000e+00> : vector<6x512xf32>
    %35 = tpu.matmul %32, %34, %cst_34 {dimension_numbers = #tpu.dot_dimension_numbers<[1], [0], [0], [1], [0, 0, 1, 1], [], []>} : vector<6x28xbf16>, vector<28x512xbf16>, vector<6x512xf32> -> vector<6x512xf32>
    %36 = arith.addf %30, %35 : vector<6x512xf32>
    %37 = vector.extract_strided_slice %7 {offsets = [1, 0], sizes = [6, 28], strides = [1, 1]} : vector<7x28xf32> to vector<6x28xf32>
    %38 = arith.truncf %37 : vector<6x28xf32> to vector<6x28xbf16>
    %c4 = arith.constant 4 : index
    %c0_35 = arith.constant 0 : index
    %c0_36 = arith.constant 0 : index
    %39 = vector.load %arg5[%c4, %c0_35, %c0_36] : memref<5x28x512xbf16, #tpu.memory_space<vmem>>, vector<1x28x512xbf16>
    %40 = vector.shape_cast %39 : vector<1x28x512xbf16> to vector<28x512xbf16>
    %cst_37 = arith.constant dense<0.000000e+00> : vector<6x512xf32>
    %41 = tpu.matmul %38, %40, %cst_37 {dimension_numbers = #tpu.dot_dimension_numbers<[1], [0], [0], [1], [0, 0, 1, 1], [], []>} : vector<6x28xbf16>, vector<28x512xbf16>, vector<6x512xf32> -> vector<6x512xf32>
    %42 = arith.addf %36, %41 : vector<6x512xf32>
    %43 = vector.broadcast %0 : vector<1x512xf32> to vector<6x512xf32>
    %44 = arith.mulf %42, %43 : vector<6x512xf32>
    %45 = vector.broadcast %1 : vector<1x512xf32> to vector<6x512xf32>
    %46 = arith.addf %44, %45 : vector<6x512xf32>
    %cst_38 = arith.constant 0.000000e+00 : f32
    %47 = vector.broadcast %cst_38 : f32 to vector<6x512xf32>
    %48 = arith.maximumf %46, %47 : vector<6x512xf32>
    %49 = vector.extract_strided_slice %9 {offsets = [0, 0], sizes = [6, 28], strides = [1, 1]} : vector<7x28xf32> to vector<6x28xf32>
    %50 = arith.truncf %49 : vector<6x28xf32> to vector<6x28xbf16>
    %c0_39 = arith.constant 0 : index
    %c0_40 = arith.constant 0 : index
    %c0_41 = arith.constant 0 : index
    %51 = vector.load %arg5[%c0_39, %c0_40, %c0_41] : memref<5x28x512xbf16, #tpu.memory_space<vmem>>, vector<1x28x512xbf16>
    %52 = vector.shape_cast %51 : vector<1x28x512xbf16> to vector<28x512xbf16>
    %cst_42 = arith.constant dense<0.000000e+00> : vector<6x512xf32>
    %53 = tpu.matmul %50, %52, %cst_42 {dimension_numbers = #tpu.dot_dimension_numbers<[1], [0], [0], [1], [0, 0, 1, 1], [], []>} : vector<6x28xbf16>, vector<28x512xbf16>, vector<6x512xf32> -> vector<6x512xf32>
    %54 = vector.extract_strided_slice %11 {offsets = [0, 0], sizes = [6, 28], strides = [1, 1]} : vector<7x28xf32> to vector<6x28xf32>
    %55 = arith.truncf %54 : vector<6x28xf32> to vector<6x28xbf16>
    %c1_43 = arith.constant 1 : index
    %c0_44 = arith.constant 0 : index
    %c0_45 = arith.constant 0 : index
    %56 = vector.load %arg5[%c1_43, %c0_44, %c0_45] : memref<5x28x512xbf16, #tpu.memory_space<vmem>>, vector<1x28x512xbf16>
    %57 = vector.shape_cast %56 : vector<1x28x512xbf16> to vector<28x512xbf16>
    %cst_46 = arith.constant dense<0.000000e+00> : vector<6x512xf32>
    %58 = tpu.matmul %55, %57, %cst_46 {dimension_numbers = #tpu.dot_dimension_numbers<[1], [0], [0], [1], [0, 0, 1, 1], [], []>} : vector<6x28xbf16>, vector<28x512xbf16>, vector<6x512xf32> -> vector<6x512xf32>
    %59 = arith.addf %53, %58 : vector<6x512xf32>
    %60 = vector.extract_strided_slice %13 {offsets = [0, 0], sizes = [6, 28], strides = [1, 1]} : vector<7x28xf32> to vector<6x28xf32>
    %61 = arith.truncf %60 : vector<6x28xf32> to vector<6x28xbf16>
    %c2_47 = arith.constant 2 : index
    %c0_48 = arith.constant 0 : index
    %c0_49 = arith.constant 0 : index
    %62 = vector.load %arg5[%c2_47, %c0_48, %c0_49] : memref<5x28x512xbf16, #tpu.memory_space<vmem>>, vector<1x28x512xbf16>
    %63 = vector.shape_cast %62 : vector<1x28x512xbf16> to vector<28x512xbf16>
    %cst_50 = arith.constant dense<0.000000e+00> : vector<6x512xf32>
    %64 = tpu.matmul %61, %63, %cst_50 {dimension_numbers = #tpu.dot_dimension_numbers<[1], [0], [0], [1], [0, 0, 1, 1], [], []>} : vector<6x28xbf16>, vector<28x512xbf16>, vector<6x512xf32> -> vector<6x512xf32>
    %65 = arith.addf %59, %64 : vector<6x512xf32>
    %66 = vector.extract_strided_slice %7 {offsets = [1, 0], sizes = [6, 28], strides = [1, 1]} : vector<7x28xf32> to vector<6x28xf32>
    %67 = arith.truncf %66 : vector<6x28xf32> to vector<6x28xbf16>
    %c3_51 = arith.constant 3 : index
    %c0_52 = arith.constant 0 : index
    %c0_53 = arith.constant 0 : index
    %68 = vector.load %arg5[%c3_51, %c0_52, %c0_53] : memref<5x28x512xbf16, #tpu.memory_space<vmem>>, vector<1x28x512xbf16>
    %69 = vector.shape_cast %68 : vector<1x28x512xbf16> to vector<28x512xbf16>
    %cst_54 = arith.constant dense<0.000000e+00> : vector<6x512xf32>
    %70 = tpu.matmul %67, %69, %cst_54 {dimension_numbers = #tpu.dot_dimension_numbers<[1], [0], [0], [1], [0, 0, 1, 1], [], []>} : vector<6x28xbf16>, vector<28x512xbf16>, vector<6x512xf32> -> vector<6x512xf32>
    %71 = arith.addf %65, %70 : vector<6x512xf32>
    %72 = vector.extract_strided_slice %9 {offsets = [1, 0], sizes = [6, 28], strides = [1, 1]} : vector<7x28xf32> to vector<6x28xf32>
    %73 = arith.truncf %72 : vector<6x28xf32> to vector<6x28xbf16>
    %c4_55 = arith.constant 4 : index
    %c0_56 = arith.constant 0 : index
    %c0_57 = arith.constant 0 : index
    %74 = vector.load %arg5[%c4_55, %c0_56, %c0_57] : memref<5x28x512xbf16, #tpu.memory_space<vmem>>, vector<1x28x512xbf16>
    %75 = vector.shape_cast %74 : vector<1x28x512xbf16> to vector<28x512xbf16>
    %cst_58 = arith.constant dense<0.000000e+00> : vector<6x512xf32>
    %76 = tpu.matmul %73, %75, %cst_58 {dimension_numbers = #tpu.dot_dimension_numbers<[1], [0], [0], [1], [0, 0, 1, 1], [], []>} : vector<6x28xbf16>, vector<28x512xbf16>, vector<6x512xf32> -> vector<6x512xf32>
    %77 = arith.addf %71, %76 : vector<6x512xf32>
    %78 = vector.broadcast %0 : vector<1x512xf32> to vector<6x512xf32>
    %79 = arith.mulf %77, %78 : vector<6x512xf32>
    %80 = vector.broadcast %1 : vector<1x512xf32> to vector<6x512xf32>
    %81 = arith.addf %79, %80 : vector<6x512xf32>
    %cst_59 = arith.constant 0.000000e+00 : f32
    %82 = vector.broadcast %cst_59 : f32 to vector<6x512xf32>
    %83 = arith.maximumf %81, %82 : vector<6x512xf32>
    %84 = vector.extract_strided_slice %11 {offsets = [0, 0], sizes = [6, 28], strides = [1, 1]} : vector<7x28xf32> to vector<6x28xf32>
    %85 = arith.truncf %84 : vector<6x28xf32> to vector<6x28xbf16>
    %c0_60 = arith.constant 0 : index
    %c0_61 = arith.constant 0 : index
    %c0_62 = arith.constant 0 : index
    %86 = vector.load %arg5[%c0_60, %c0_61, %c0_62] : memref<5x28x512xbf16, #tpu.memory_space<vmem>>, vector<1x28x512xbf16>
    %87 = vector.shape_cast %86 : vector<1x28x512xbf16> to vector<28x512xbf16>
    %cst_63 = arith.constant dense<0.000000e+00> : vector<6x512xf32>
    %88 = tpu.matmul %85, %87, %cst_63 {dimension_numbers = #tpu.dot_dimension_numbers<[1], [0], [0], [1], [0, 0, 1, 1], [], []>} : vector<6x28xbf16>, vector<28x512xbf16>, vector<6x512xf32> -> vector<6x512xf32>
    %89 = vector.extract_strided_slice %13 {offsets = [0, 0], sizes = [6, 28], strides = [1, 1]} : vector<7x28xf32> to vector<6x28xf32>
    %90 = arith.truncf %89 : vector<6x28xf32> to vector<6x28xbf16>
    %c1_64 = arith.constant 1 : index
    %c0_65 = arith.constant 0 : index
    %c0_66 = arith.constant 0 : index
    %91 = vector.load %arg5[%c1_64, %c0_65, %c0_66] : memref<5x28x512xbf16, #tpu.memory_space<vmem>>, vector<1x28x512xbf16>
    %92 = vector.shape_cast %91 : vector<1x28x512xbf16> to vector<28x512xbf16>
    %cst_67 = arith.constant dense<0.000000e+00> : vector<6x512xf32>
    %93 = tpu.matmul %90, %92, %cst_67 {dimension_numbers = #tpu.dot_dimension_numbers<[1], [0], [0], [1], [0, 0, 1, 1], [], []>} : vector<6x28xbf16>, vector<28x512xbf16>, vector<6x512xf32> -> vector<6x512xf32>
    %94 = arith.addf %88, %93 : vector<6x512xf32>
    %95 = vector.extract_strided_slice %7 {offsets = [1, 0], sizes = [6, 28], strides = [1, 1]} : vector<7x28xf32> to vector<6x28xf32>
    %96 = arith.truncf %95 : vector<6x28xf32> to vector<6x28xbf16>
    %c2_68 = arith.constant 2 : index
    %c0_69 = arith.constant 0 : index
    %c0_70 = arith.constant 0 : index
    %97 = vector.load %arg5[%c2_68, %c0_69, %c0_70] : memref<5x28x512xbf16, #tpu.memory_space<vmem>>, vector<1x28x512xbf16>
    %98 = vector.shape_cast %97 : vector<1x28x512xbf16> to vector<28x512xbf16>
    %cst_71 = arith.constant dense<0.000000e+00> : vector<6x512xf32>
    %99 = tpu.matmul %96, %98, %cst_71 {dimension_numbers = #tpu.dot_dimension_numbers<[1], [0], [0], [1], [0, 0, 1, 1], [], []>} : vector<6x28xbf16>, vector<28x512xbf16>, vector<6x512xf32> -> vector<6x512xf32>
    %100 = arith.addf %94, %99 : vector<6x512xf32>
    %101 = vector.extract_strided_slice %9 {offsets = [1, 0], sizes = [6, 28], strides = [1, 1]} : vector<7x28xf32> to vector<6x28xf32>
    %102 = arith.truncf %101 : vector<6x28xf32> to vector<6x28xbf16>
    %c3_72 = arith.constant 3 : index
    %c0_73 = arith.constant 0 : index
    %c0_74 = arith.constant 0 : index
    %103 = vector.load %arg5[%c3_72, %c0_73, %c0_74] : memref<5x28x512xbf16, #tpu.memory_space<vmem>>, vector<1x28x512xbf16>
    %104 = vector.shape_cast %103 : vector<1x28x512xbf16> to vector<28x512xbf16>
    %cst_75 = arith.constant dense<0.000000e+00> : vector<6x512xf32>
    %105 = tpu.matmul %102, %104, %cst_75 {dimension_numbers = #tpu.dot_dimension_numbers<[1], [0], [0], [1], [0, 0, 1, 1], [], []>} : vector<6x28xbf16>, vector<28x512xbf16>, vector<6x512xf32> -> vector<6x512xf32>
    %106 = arith.addf %100, %105 : vector<6x512xf32>
    %107 = vector.extract_strided_slice %11 {offsets = [1, 0], sizes = [6, 28], strides = [1, 1]} : vector<7x28xf32> to vector<6x28xf32>
    %108 = arith.truncf %107 : vector<6x28xf32> to vector<6x28xbf16>
    %c4_76 = arith.constant 4 : index
    %c0_77 = arith.constant 0 : index
    %c0_78 = arith.constant 0 : index
    %109 = vector.load %arg5[%c4_76, %c0_77, %c0_78] : memref<5x28x512xbf16, #tpu.memory_space<vmem>>, vector<1x28x512xbf16>
    %110 = vector.shape_cast %109 : vector<1x28x512xbf16> to vector<28x512xbf16>
    %cst_79 = arith.constant dense<0.000000e+00> : vector<6x512xf32>
    %111 = tpu.matmul %108, %110, %cst_79 {dimension_numbers = #tpu.dot_dimension_numbers<[1], [0], [0], [1], [0, 0, 1, 1], [], []>} : vector<6x28xbf16>, vector<28x512xbf16>, vector<6x512xf32> -> vector<6x512xf32>
    %112 = arith.addf %106, %111 : vector<6x512xf32>
    %113 = vector.broadcast %0 : vector<1x512xf32> to vector<6x512xf32>
    %114 = arith.mulf %112, %113 : vector<6x512xf32>
    %115 = vector.broadcast %1 : vector<1x512xf32> to vector<6x512xf32>
    %116 = arith.addf %114, %115 : vector<6x512xf32>
    %cst_80 = arith.constant 0.000000e+00 : f32
    %117 = vector.broadcast %cst_80 : f32 to vector<6x512xf32>
    %118 = arith.maximumf %116, %117 : vector<6x512xf32>
    %119 = vector.extract_strided_slice %13 {offsets = [0, 0], sizes = [6, 28], strides = [1, 1]} : vector<7x28xf32> to vector<6x28xf32>
    %120 = arith.truncf %119 : vector<6x28xf32> to vector<6x28xbf16>
    %c0_81 = arith.constant 0 : index
    %c0_82 = arith.constant 0 : index
    %c0_83 = arith.constant 0 : index
    %121 = vector.load %arg5[%c0_81, %c0_82, %c0_83] : memref<5x28x512xbf16, #tpu.memory_space<vmem>>, vector<1x28x512xbf16>
    %122 = vector.shape_cast %121 : vector<1x28x512xbf16> to vector<28x512xbf16>
    %cst_84 = arith.constant dense<0.000000e+00> : vector<6x512xf32>
    %123 = tpu.matmul %120, %122, %cst_84 {dimension_numbers = #tpu.dot_dimension_numbers<[1], [0], [0], [1], [0, 0, 1, 1], [], []>} : vector<6x28xbf16>, vector<28x512xbf16>, vector<6x512xf32> -> vector<6x512xf32>
    %124 = vector.extract_strided_slice %7 {offsets = [1, 0], sizes = [6, 28], strides = [1, 1]} : vector<7x28xf32> to vector<6x28xf32>
    %125 = arith.truncf %124 : vector<6x28xf32> to vector<6x28xbf16>
    %c1_85 = arith.constant 1 : index
    %c0_86 = arith.constant 0 : index
    %c0_87 = arith.constant 0 : index
    %126 = vector.load %arg5[%c1_85, %c0_86, %c0_87] : memref<5x28x512xbf16, #tpu.memory_space<vmem>>, vector<1x28x512xbf16>
    %127 = vector.shape_cast %126 : vector<1x28x512xbf16> to vector<28x512xbf16>
    %cst_88 = arith.constant dense<0.000000e+00> : vector<6x512xf32>
    %128 = tpu.matmul %125, %127, %cst_88 {dimension_numbers = #tpu.dot_dimension_numbers<[1], [0], [0], [1], [0, 0, 1, 1], [], []>} : vector<6x28xbf16>, vector<28x512xbf16>, vector<6x512xf32> -> vector<6x512xf32>
    %129 = arith.addf %123, %128 : vector<6x512xf32>
    %130 = vector.extract_strided_slice %9 {offsets = [1, 0], sizes = [6, 28], strides = [1, 1]} : vector<7x28xf32> to vector<6x28xf32>
    %131 = arith.truncf %130 : vector<6x28xf32> to vector<6x28xbf16>
    %c2_89 = arith.constant 2 : index
    %c0_90 = arith.constant 0 : index
    %c0_91 = arith.constant 0 : index
    %132 = vector.load %arg5[%c2_89, %c0_90, %c0_91] : memref<5x28x512xbf16, #tpu.memory_space<vmem>>, vector<1x28x512xbf16>
    %133 = vector.shape_cast %132 : vector<1x28x512xbf16> to vector<28x512xbf16>
    %cst_92 = arith.constant dense<0.000000e+00> : vector<6x512xf32>
    %134 = tpu.matmul %131, %133, %cst_92 {dimension_numbers = #tpu.dot_dimension_numbers<[1], [0], [0], [1], [0, 0, 1, 1], [], []>} : vector<6x28xbf16>, vector<28x512xbf16>, vector<6x512xf32> -> vector<6x512xf32>
    %135 = arith.addf %129, %134 : vector<6x512xf32>
    %136 = vector.extract_strided_slice %11 {offsets = [1, 0], sizes = [6, 28], strides = [1, 1]} : vector<7x28xf32> to vector<6x28xf32>
    %137 = arith.truncf %136 : vector<6x28xf32> to vector<6x28xbf16>
    %c3_93 = arith.constant 3 : index
    %c0_94 = arith.constant 0 : index
    %c0_95 = arith.constant 0 : index
    %138 = vector.load %arg5[%c3_93, %c0_94, %c0_95] : memref<5x28x512xbf16, #tpu.memory_space<vmem>>, vector<1x28x512xbf16>
    %139 = vector.shape_cast %138 : vector<1x28x512xbf16> to vector<28x512xbf16>
    %cst_96 = arith.constant dense<0.000000e+00> : vector<6x512xf32>
    %140 = tpu.matmul %137, %139, %cst_96 {dimension_numbers = #tpu.dot_dimension_numbers<[1], [0], [0], [1], [0, 0, 1, 1], [], []>} : vector<6x28xbf16>, vector<28x512xbf16>, vector<6x512xf32> -> vector<6x512xf32>
    %141 = arith.addf %135, %140 : vector<6x512xf32>
    %142 = vector.extract_strided_slice %13 {offsets = [1, 0], sizes = [6, 28], strides = [1, 1]} : vector<7x28xf32> to vector<6x28xf32>
    %143 = arith.truncf %142 : vector<6x28xf32> to vector<6x28xbf16>
    %c4_97 = arith.constant 4 : index
    %c0_98 = arith.constant 0 : index
    %c0_99 = arith.constant 0 : index
    %144 = vector.load %arg5[%c4_97, %c0_98, %c0_99] : memref<5x28x512xbf16, #tpu.memory_space<vmem>>, vector<1x28x512xbf16>
    %145 = vector.shape_cast %144 : vector<1x28x512xbf16> to vector<28x512xbf16>
    %cst_100 = arith.constant dense<0.000000e+00> : vector<6x512xf32>
    %146 = tpu.matmul %143, %145, %cst_100 {dimension_numbers = #tpu.dot_dimension_numbers<[1], [0], [0], [1], [0, 0, 1, 1], [], []>} : vector<6x28xbf16>, vector<28x512xbf16>, vector<6x512xf32> -> vector<6x512xf32>
    %147 = arith.addf %141, %146 : vector<6x512xf32>
    %148 = vector.broadcast %0 : vector<1x512xf32> to vector<6x512xf32>
    %149 = arith.mulf %147, %148 : vector<6x512xf32>
    %150 = vector.broadcast %1 : vector<1x512xf32> to vector<6x512xf32>
    %151 = arith.addf %149, %150 : vector<6x512xf32>
    %cst_101 = arith.constant 0.000000e+00 : f32
    %152 = vector.broadcast %cst_101 : f32 to vector<6x512xf32>
    %153 = arith.maximumf %151, %152 : vector<6x512xf32>
    %154 = vector.extract_strided_slice %48 {offsets = [0, 0], sizes = [6, 256], strides = [1, 1]} : vector<6x512xf32> to vector<6x256xf32>
    %155 = vector.extract_strided_slice %48 {offsets = [0, 256], sizes = [6, 256], strides = [1, 1]} : vector<6x512xf32> to vector<6x256xf32>
    %156 = arith.maximumf %154, %155 : vector<6x256xf32>
    %157 = vector.extract_strided_slice %83 {offsets = [0, 0], sizes = [6, 256], strides = [1, 1]} : vector<6x512xf32> to vector<6x256xf32>
    %158 = vector.extract_strided_slice %83 {offsets = [0, 256], sizes = [6, 256], strides = [1, 1]} : vector<6x512xf32> to vector<6x256xf32>
    %159 = arith.maximumf %157, %158 : vector<6x256xf32>
    %160 = arith.maximumf %156, %159 : vector<6x256xf32>
    %161 = vector.extract_strided_slice %118 {offsets = [0, 0], sizes = [6, 256], strides = [1, 1]} : vector<6x512xf32> to vector<6x256xf32>
    %162 = vector.extract_strided_slice %118 {offsets = [0, 256], sizes = [6, 256], strides = [1, 1]} : vector<6x512xf32> to vector<6x256xf32>
    %163 = arith.maximumf %161, %162 : vector<6x256xf32>
    %164 = vector.extract_strided_slice %153 {offsets = [0, 0], sizes = [6, 256], strides = [1, 1]} : vector<6x512xf32> to vector<6x256xf32>
    %165 = vector.extract_strided_slice %153 {offsets = [0, 256], sizes = [6, 256], strides = [1, 1]} : vector<6x512xf32> to vector<6x256xf32>
    %166 = arith.maximumf %164, %165 : vector<6x256xf32>
    %167 = arith.maximumf %163, %166 : vector<6x256xf32>
    %168 = vector.extract_strided_slice %160 {offsets = [0, 0], sizes = [4, 256], strides = [1, 1]} : vector<6x256xf32> to vector<4x256xf32>
    %169 = arith.truncf %168 : vector<4x256xf32> to vector<4x256xbf16>
    %c0_102 = arith.constant 0 : index
    %c0_103 = arith.constant 0 : index
    %c0_104 = arith.constant 0 : index
    %170 = vector.load %arg8[%c0_102, %c0_103, %c0_104] : memref<5x256x512xbf16, #tpu.memory_space<vmem>>, vector<1x256x512xbf16>
    %171 = vector.shape_cast %170 : vector<1x256x512xbf16> to vector<256x512xbf16>
    %cst_105 = arith.constant dense<0.000000e+00> : vector<4x512xf32>
    %172 = tpu.matmul %169, %171, %cst_105 {dimension_numbers = #tpu.dot_dimension_numbers<[1], [0], [0], [1], [0, 0, 1, 1], [], []>} : vector<4x256xbf16>, vector<256x512xbf16>, vector<4x512xf32> -> vector<4x512xf32>
    %173 = vector.extract_strided_slice %167 {offsets = [0, 0], sizes = [4, 256], strides = [1, 1]} : vector<6x256xf32> to vector<4x256xf32>
    %174 = arith.truncf %173 : vector<4x256xf32> to vector<4x256xbf16>
    %c1_106 = arith.constant 1 : index
    %c0_107 = arith.constant 0 : index
    %c0_108 = arith.constant 0 : index
    %175 = vector.load %arg8[%c1_106, %c0_107, %c0_108] : memref<5x256x512xbf16, #tpu.memory_space<vmem>>, vector<1x256x512xbf16>
    %176 = vector.shape_cast %175 : vector<1x256x512xbf16> to vector<256x512xbf16>
    %cst_109 = arith.constant dense<0.000000e+00> : vector<4x512xf32>
    %177 = tpu.matmul %174, %176, %cst_109 {dimension_numbers = #tpu.dot_dimension_numbers<[1], [0], [0], [1], [0, 0, 1, 1], [], []>} : vector<4x256xbf16>, vector<256x512xbf16>, vector<4x512xf32> -> vector<4x512xf32>
    %178 = arith.addf %172, %177 : vector<4x512xf32>
    %179 = vector.extract_strided_slice %160 {offsets = [1, 0], sizes = [4, 256], strides = [1, 1]} : vector<6x256xf32> to vector<4x256xf32>
    %180 = arith.truncf %179 : vector<4x256xf32> to vector<4x256xbf16>
    %c2_110 = arith.constant 2 : index
    %c0_111 = arith.constant 0 : index
    %c0_112 = arith.constant 0 : index
    %181 = vector.load %arg8[%c2_110, %c0_111, %c0_112] : memref<5x256x512xbf16, #tpu.memory_space<vmem>>, vector<1x256x512xbf16>
    %182 = vector.shape_cast %181 : vector<1x256x512xbf16> to vector<256x512xbf16>
    %cst_113 = arith.constant dense<0.000000e+00> : vector<4x512xf32>
    %183 = tpu.matmul %180, %182, %cst_113 {dimension_numbers = #tpu.dot_dimension_numbers<[1], [0], [0], [1], [0, 0, 1, 1], [], []>} : vector<4x256xbf16>, vector<256x512xbf16>, vector<4x512xf32> -> vector<4x512xf32>
    %184 = arith.addf %178, %183 : vector<4x512xf32>
    %185 = vector.extract_strided_slice %167 {offsets = [1, 0], sizes = [4, 256], strides = [1, 1]} : vector<6x256xf32> to vector<4x256xf32>
    %186 = arith.truncf %185 : vector<4x256xf32> to vector<4x256xbf16>
    %c3_114 = arith.constant 3 : index
    %c0_115 = arith.constant 0 : index
    %c0_116 = arith.constant 0 : index
    %187 = vector.load %arg8[%c3_114, %c0_115, %c0_116] : memref<5x256x512xbf16, #tpu.memory_space<vmem>>, vector<1x256x512xbf16>
    %188 = vector.shape_cast %187 : vector<1x256x512xbf16> to vector<256x512xbf16>
    %cst_117 = arith.constant dense<0.000000e+00> : vector<4x512xf32>
    %189 = tpu.matmul %186, %188, %cst_117 {dimension_numbers = #tpu.dot_dimension_numbers<[1], [0], [0], [1], [0, 0, 1, 1], [], []>} : vector<4x256xbf16>, vector<256x512xbf16>, vector<4x512xf32> -> vector<4x512xf32>
    %190 = arith.addf %184, %189 : vector<4x512xf32>
    %191 = vector.extract_strided_slice %160 {offsets = [2, 0], sizes = [4, 256], strides = [1, 1]} : vector<6x256xf32> to vector<4x256xf32>
    %192 = arith.truncf %191 : vector<4x256xf32> to vector<4x256xbf16>
    %c4_118 = arith.constant 4 : index
    %c0_119 = arith.constant 0 : index
    %c0_120 = arith.constant 0 : index
    %193 = vector.load %arg8[%c4_118, %c0_119, %c0_120] : memref<5x256x512xbf16, #tpu.memory_space<vmem>>, vector<1x256x512xbf16>
    %194 = vector.shape_cast %193 : vector<1x256x512xbf16> to vector<256x512xbf16>
    %cst_121 = arith.constant dense<0.000000e+00> : vector<4x512xf32>
    %195 = tpu.matmul %192, %194, %cst_121 {dimension_numbers = #tpu.dot_dimension_numbers<[1], [0], [0], [1], [0, 0, 1, 1], [], []>} : vector<4x256xbf16>, vector<256x512xbf16>, vector<4x512xf32> -> vector<4x512xf32>
    %196 = arith.addf %190, %195 : vector<4x512xf32>
    %197 = vector.broadcast %2 : vector<1x512xf32> to vector<4x512xf32>
    %198 = arith.mulf %196, %197 : vector<4x512xf32>
    %199 = vector.broadcast %3 : vector<1x512xf32> to vector<4x512xf32>
    %200 = arith.addf %198, %199 : vector<4x512xf32>
    %cst_122 = arith.constant 0.000000e+00 : f32
    %201 = vector.broadcast %cst_122 : f32 to vector<4x512xf32>
    %202 = arith.maximumf %200, %201 : vector<4x512xf32>
    %203 = vector.extract_strided_slice %167 {offsets = [0, 0], sizes = [4, 256], strides = [1, 1]} : vector<6x256xf32> to vector<4x256xf32>
    %204 = arith.truncf %203 : vector<4x256xf32> to vector<4x256xbf16>
    %c0_123 = arith.constant 0 : index
    %c0_124 = arith.constant 0 : index
    %c0_125 = arith.constant 0 : index
    %205 = vector.load %arg8[%c0_123, %c0_124, %c0_125] : memref<5x256x512xbf16, #tpu.memory_space<vmem>>, vector<1x256x512xbf16>
    %206 = vector.shape_cast %205 : vector<1x256x512xbf16> to vector<256x512xbf16>
    %cst_126 = arith.constant dense<0.000000e+00> : vector<4x512xf32>
    %207 = tpu.matmul %204, %206, %cst_126 {dimension_numbers = #tpu.dot_dimension_numbers<[1], [0], [0], [1], [0, 0, 1, 1], [], []>} : vector<4x256xbf16>, vector<256x512xbf16>, vector<4x512xf32> -> vector<4x512xf32>
    %208 = vector.extract_strided_slice %160 {offsets = [1, 0], sizes = [4, 256], strides = [1, 1]} : vector<6x256xf32> to vector<4x256xf32>
    %209 = arith.truncf %208 : vector<4x256xf32> to vector<4x256xbf16>
    %c1_127 = arith.constant 1 : index
    %c0_128 = arith.constant 0 : index
    %c0_129 = arith.constant 0 : index
    %210 = vector.load %arg8[%c1_127, %c0_128, %c0_129] : memref<5x256x512xbf16, #tpu.memory_space<vmem>>, vector<1x256x512xbf16>
    %211 = vector.shape_cast %210 : vector<1x256x512xbf16> to vector<256x512xbf16>
    %cst_130 = arith.constant dense<0.000000e+00> : vector<4x512xf32>
    %212 = tpu.matmul %209, %211, %cst_130 {dimension_numbers = #tpu.dot_dimension_numbers<[1], [0], [0], [1], [0, 0, 1, 1], [], []>} : vector<4x256xbf16>, vector<256x512xbf16>, vector<4x512xf32> -> vector<4x512xf32>
    %213 = arith.addf %207, %212 : vector<4x512xf32>
    %214 = vector.extract_strided_slice %167 {offsets = [1, 0], sizes = [4, 256], strides = [1, 1]} : vector<6x256xf32> to vector<4x256xf32>
    %215 = arith.truncf %214 : vector<4x256xf32> to vector<4x256xbf16>
    %c2_131 = arith.constant 2 : index
    %c0_132 = arith.constant 0 : index
    %c0_133 = arith.constant 0 : index
    %216 = vector.load %arg8[%c2_131, %c0_132, %c0_133] : memref<5x256x512xbf16, #tpu.memory_space<vmem>>, vector<1x256x512xbf16>
    %217 = vector.shape_cast %216 : vector<1x256x512xbf16> to vector<256x512xbf16>
    %cst_134 = arith.constant dense<0.000000e+00> : vector<4x512xf32>
    %218 = tpu.matmul %215, %217, %cst_134 {dimension_numbers = #tpu.dot_dimension_numbers<[1], [0], [0], [1], [0, 0, 1, 1], [], []>} : vector<4x256xbf16>, vector<256x512xbf16>, vector<4x512xf32> -> vector<4x512xf32>
    %219 = arith.addf %213, %218 : vector<4x512xf32>
    %220 = vector.extract_strided_slice %160 {offsets = [2, 0], sizes = [4, 256], strides = [1, 1]} : vector<6x256xf32> to vector<4x256xf32>
    %221 = arith.truncf %220 : vector<4x256xf32> to vector<4x256xbf16>
    %c3_135 = arith.constant 3 : index
    %c0_136 = arith.constant 0 : index
    %c0_137 = arith.constant 0 : index
    %222 = vector.load %arg8[%c3_135, %c0_136, %c0_137] : memref<5x256x512xbf16, #tpu.memory_space<vmem>>, vector<1x256x512xbf16>
    %223 = vector.shape_cast %222 : vector<1x256x512xbf16> to vector<256x512xbf16>
    %cst_138 = arith.constant dense<0.000000e+00> : vector<4x512xf32>
    %224 = tpu.matmul %221, %223, %cst_138 {dimension_numbers = #tpu.dot_dimension_numbers<[1], [0], [0], [1], [0, 0, 1, 1], [], []>} : vector<4x256xbf16>, vector<256x512xbf16>, vector<4x512xf32> -> vector<4x512xf32>
    %225 = arith.addf %219, %224 : vector<4x512xf32>
    %226 = vector.extract_strided_slice %167 {offsets = [2, 0], sizes = [4, 256], strides = [1, 1]} : vector<6x256xf32> to vector<4x256xf32>
    %227 = arith.truncf %226 : vector<4x256xf32> to vector<4x256xbf16>
    %c4_139 = arith.constant 4 : index
    %c0_140 = arith.constant 0 : index
    %c0_141 = arith.constant 0 : index
    %228 = vector.load %arg8[%c4_139, %c0_140, %c0_141] : memref<5x256x512xbf16, #tpu.memory_space<vmem>>, vector<1x256x512xbf16>
    %229 = vector.shape_cast %228 : vector<1x256x512xbf16> to vector<256x512xbf16>
    %cst_142 = arith.constant dense<0.000000e+00> : vector<4x512xf32>
    %230 = tpu.matmul %227, %229, %cst_142 {dimension_numbers = #tpu.dot_dimension_numbers<[1], [0], [0], [1], [0, 0, 1, 1], [], []>} : vector<4x256xbf16>, vector<256x512xbf16>, vector<4x512xf32> -> vector<4x512xf32>
    %231 = arith.addf %225, %230 : vector<4x512xf32>
    %232 = vector.broadcast %2 : vector<1x512xf32> to vector<4x512xf32>
    %233 = arith.mulf %231, %232 : vector<4x512xf32>
    %234 = vector.broadcast %3 : vector<1x512xf32> to vector<4x512xf32>
    %235 = arith.addf %233, %234 : vector<4x512xf32>
    %cst_143 = arith.constant 0.000000e+00 : f32
    %236 = vector.broadcast %cst_143 : f32 to vector<4x512xf32>
    %237 = arith.maximumf %235, %236 : vector<4x512xf32>
    %238 = vector.extract_strided_slice %202 {offsets = [0, 0], sizes = [4, 256], strides = [1, 1]} : vector<4x512xf32> to vector<4x256xf32>
    %239 = vector.extract_strided_slice %202 {offsets = [0, 256], sizes = [4, 256], strides = [1, 1]} : vector<4x512xf32> to vector<4x256xf32>
    %240 = arith.maximumf %238, %239 : vector<4x256xf32>
    %241 = vector.extract_strided_slice %237 {offsets = [0, 0], sizes = [4, 256], strides = [1, 1]} : vector<4x512xf32> to vector<4x256xf32>
    %242 = vector.extract_strided_slice %237 {offsets = [0, 256], sizes = [4, 256], strides = [1, 1]} : vector<4x512xf32> to vector<4x256xf32>
    %243 = arith.maximumf %241, %242 : vector<4x256xf32>
    %244 = arith.maximumf %240, %243 : vector<4x256xf32>
    %245 = vector.extract_strided_slice %244 {offsets = [0, 0], sizes = [1, 256], strides = [1, 1]} : vector<4x256xf32> to vector<1x256xf32>
    %246 = arith.truncf %245 : vector<1x256xf32> to vector<1x256xbf16>
    %c0_144 = arith.constant 0 : index
    %c0_145 = arith.constant 0 : index
    %c0_146 = arith.constant 0 : index
    %247 = vector.load %arg11[%c0_144, %c0_145, %c0_146] : memref<4x256x512xbf16, #tpu.memory_space<vmem>>, vector<1x256x512xbf16>
    %248 = vector.shape_cast %247 : vector<1x256x512xbf16> to vector<256x512xbf16>
    %cst_147 = arith.constant dense<0.000000e+00> : vector<1x512xf32>
    %249 = tpu.matmul %246, %248, %cst_147 {dimension_numbers = #tpu.dot_dimension_numbers<[1], [0], [0], [1], [0, 0, 1, 1], [], []>} : vector<1x256xbf16>, vector<256x512xbf16>, vector<1x512xf32> -> vector<1x512xf32>
    %250 = vector.extract_strided_slice %244 {offsets = [1, 0], sizes = [1, 256], strides = [1, 1]} : vector<4x256xf32> to vector<1x256xf32>
    %251 = arith.truncf %250 : vector<1x256xf32> to vector<1x256xbf16>
    %c1_148 = arith.constant 1 : index
    %c0_149 = arith.constant 0 : index
    %c0_150 = arith.constant 0 : index
    %252 = vector.load %arg11[%c1_148, %c0_149, %c0_150] : memref<4x256x512xbf16, #tpu.memory_space<vmem>>, vector<1x256x512xbf16>
    %253 = vector.shape_cast %252 : vector<1x256x512xbf16> to vector<256x512xbf16>
    %cst_151 = arith.constant dense<0.000000e+00> : vector<1x512xf32>
    %254 = tpu.matmul %251, %253, %cst_151 {dimension_numbers = #tpu.dot_dimension_numbers<[1], [0], [0], [1], [0, 0, 1, 1], [], []>} : vector<1x256xbf16>, vector<256x512xbf16>, vector<1x512xf32> -> vector<1x512xf32>
    %255 = arith.addf %249, %254 : vector<1x512xf32>
    %256 = vector.extract_strided_slice %244 {offsets = [2, 0], sizes = [1, 256], strides = [1, 1]} : vector<4x256xf32> to vector<1x256xf32>
    %257 = arith.truncf %256 : vector<1x256xf32> to vector<1x256xbf16>
    %c2_152 = arith.constant 2 : index
    %c0_153 = arith.constant 0 : index
    %c0_154 = arith.constant 0 : index
    %258 = vector.load %arg11[%c2_152, %c0_153, %c0_154] : memref<4x256x512xbf16, #tpu.memory_space<vmem>>, vector<1x256x512xbf16>
    %259 = vector.shape_cast %258 : vector<1x256x512xbf16> to vector<256x512xbf16>
    %cst_155 = arith.constant dense<0.000000e+00> : vector<1x512xf32>
    %260 = tpu.matmul %257, %259, %cst_155 {dimension_numbers = #tpu.dot_dimension_numbers<[1], [0], [0], [1], [0, 0, 1, 1], [], []>} : vector<1x256xbf16>, vector<256x512xbf16>, vector<1x512xf32> -> vector<1x512xf32>
    %261 = arith.addf %255, %260 : vector<1x512xf32>
    %262 = vector.extract_strided_slice %244 {offsets = [3, 0], sizes = [1, 256], strides = [1, 1]} : vector<4x256xf32> to vector<1x256xf32>
    %263 = arith.truncf %262 : vector<1x256xf32> to vector<1x256xbf16>
    %c3_156 = arith.constant 3 : index
    %c0_157 = arith.constant 0 : index
    %c0_158 = arith.constant 0 : index
    %264 = vector.load %arg11[%c3_156, %c0_157, %c0_158] : memref<4x256x512xbf16, #tpu.memory_space<vmem>>, vector<1x256x512xbf16>
    %265 = vector.shape_cast %264 : vector<1x256x512xbf16> to vector<256x512xbf16>
    %cst_159 = arith.constant dense<0.000000e+00> : vector<1x512xf32>
    %266 = tpu.matmul %263, %265, %cst_159 {dimension_numbers = #tpu.dot_dimension_numbers<[1], [0], [0], [1], [0, 0, 1, 1], [], []>} : vector<1x256xbf16>, vector<256x512xbf16>, vector<1x512xf32> -> vector<1x512xf32>
    %267 = arith.addf %261, %266 : vector<1x512xf32>
    %268 = arith.addf %267, %4 : vector<1x512xf32>
    %cst_160 = arith.constant 0.000000e+00 : f32
    %269 = vector.broadcast %cst_160 : f32 to vector<1x512xf32>
    %270 = arith.maximumf %268, %269 : vector<1x512xf32>
    %271 = arith.truncf %270 : vector<1x512xf32> to vector<1x512xbf16>
    %c0_161 = arith.constant 0 : index
    %c0_162 = arith.constant 0 : index
    %272 = vector.load %arg13[%c0_161, %c0_162] : memref<512x128xbf16, #tpu.memory_space<vmem>>, vector<512x128xbf16>
    %cst_163 = arith.constant dense<0.000000e+00> : vector<1x128xf32>
    %273 = tpu.matmul %271, %272, %cst_163 {dimension_numbers = #tpu.dot_dimension_numbers<[1], [0], [0], [1], [0, 0, 1, 1], [], []>} : vector<1x512xbf16>, vector<512x128xbf16>, vector<1x128xf32> -> vector<1x128xf32>
    %274 = arith.addf %273, %5 : vector<1x128xf32>
    %275 = tpu.iota {dimensions = array<i32: 1>} : vector<1x128xi32>
    %c10_i32 = arith.constant 10 : i32
    %276 = vector.broadcast %c10_i32 : i32 to vector<1x128xi32>
    %277 = arith.cmpi slt, %275, %276 : vector<1x128xi32>
    %cst_164 = arith.constant -1.000000e+30 : f32
    %278 = vector.broadcast %cst_164 : f32 to vector<1x128xf32>
    %279 = arith.select %277, %274, %278 : vector<1x128xi1>, vector<1x128xf32>
    %cst_165 = arith.constant dense<0xFF800000> : vector<1xf32>
    %280 = vector.multi_reduction <maximumf>, %279, %cst_165 [1] : vector<1x128xf32> to vector<1xf32>
    %281 = vector.shape_cast %280 : vector<1xf32> to vector<1x1xf32>
    %282 = vector.broadcast %281 : vector<1x1xf32> to vector<1x128xf32>
    %283 = arith.subf %279, %282 : vector<1x128xf32>
    %284 = math.exp %283 : vector<1x128xf32>
    %cst_166 = arith.constant dense<0.000000e+00> : vector<1xf32>
    %285 = vector.multi_reduction <add>, %284, %cst_166 [1] : vector<1x128xf32> to vector<1xf32>
    %286 = vector.shape_cast %285 : vector<1xf32> to vector<1x1xf32>
    %287 = math.log %286 : vector<1x1xf32>
    %288 = vector.broadcast %287 : vector<1x1xf32> to vector<1x128xf32>
    %289 = arith.subf %283, %288 : vector<1x128xf32>
    %c0_167 = arith.constant 0 : index
    %c0_168 = arith.constant 0 : index
    %c0_169 = arith.constant 0 : index
    %290 = vector.load %arg15[%c0_167, %c0_168, %c0_169] : memref<1x1x128xf32, #tpu.memory_space<vmem>>, vector<1x1x128xf32>
    %291 = vector.shape_cast %290 : vector<1x1x128xf32> to vector<1x128xf32>
    %292 = vector.shape_cast %289 : vector<1x128xf32> to vector<1x1x128xf32>
    tpu.vector_store %arg15[%c0_167, %c0_168, %c0_169], %292 {strides = array<i32>} : memref<1x1x128xf32, #tpu.memory_space<vmem>>, vector<1x1x128xf32>,
    return
  }
  func.func @transform_0(%arg0: i32) -> (i32, i32, i32) {
    %c0_i32 = arith.constant 0 : i32
    %c0_i32_0 = arith.constant 0 : i32
    %c0_i32_1 = arith.constant 0 : i32
    return %arg0, %c0_i32, %c0_i32_0 : i32, i32, i32
  }
  func.func @transform_1(%arg0: i32) -> (i32, i32, i32) {
    %c0_i32 = arith.constant 0 : i32
    %c0_i32_0 = arith.constant 0 : i32
    %c0_i32_1 = arith.constant 0 : i32
    return %arg0, %c0_i32, %c0_i32_0 : i32, i32, i32
  }
  func.func @transform_2(%arg0: i32) -> (i32, i32, i32) {
    %c0_i32 = arith.constant 0 : i32
    %c0_i32_0 = arith.constant 0 : i32
    %c0_i32_1 = arith.constant 0 : i32
    return %arg0, %c0_i32, %c0_i32_0 : i32, i32, i32
  }
  func.func @transform_3(%arg0: i32) -> (i32, i32, i32) {
    %c0_i32 = arith.constant 0 : i32
    %c0_i32_0 = arith.constant 0 : i32
    %c0_i32_1 = arith.constant 0 : i32
    return %arg0, %c0_i32, %c0_i32_0 : i32, i32, i32
  }
  func.func @transform_4(%arg0: i32) -> (i32, i32, i32) {
    %c0_i32 = arith.constant 0 : i32
    %c0_i32_0 = arith.constant 0 : i32
    %c0_i32_1 = arith.constant 0 : i32
    %c0_i32_2 = arith.constant 0 : i32
    return %c0_i32, %c0_i32_0, %c0_i32_1 : i32, i32, i32
  }
  func.func @transform_5(%arg0: i32) -> (i32, i32) {
    %c0_i32 = arith.constant 0 : i32
    %c0_i32_0 = arith.constant 0 : i32
    %c0_i32_1 = arith.constant 0 : i32
    return %c0_i32, %c0_i32_0 : i32, i32
  }
  func.func @transform_6(%arg0: i32) -> (i32, i32) {
    %c0_i32 = arith.constant 0 : i32
    %c0_i32_0 = arith.constant 0 : i32
    %c0_i32_1 = arith.constant 0 : i32
    return %c0_i32, %c0_i32_0 : i32, i32
  }
  func.func @transform_7(%arg0: i32) -> (i32, i32, i32) {
    %c0_i32 = arith.constant 0 : i32
    %c0_i32_0 = arith.constant 0 : i32
    %c0_i32_1 = arith.constant 0 : i32
    %c0_i32_2 = arith.constant 0 : i32
    return %c0_i32, %c0_i32_0, %c0_i32_1 : i32, i32, i32
  }
  func.func @transform_8(%arg0: i32) -> (i32, i32) {
    %c0_i32 = arith.constant 0 : i32
    %c0_i32_0 = arith.constant 0 : i32
    %c0_i32_1 = arith.constant 0 : i32
    return %c0_i32, %c0_i32_0 : i32, i32
  }
  func.func @transform_9(%arg0: i32) -> (i32, i32) {
    %c0_i32 = arith.constant 0 : i32
    %c0_i32_0 = arith.constant 0 : i32
    %c0_i32_1 = arith.constant 0 : i32
    return %c0_i32, %c0_i32_0 : i32, i32
  }
  func.func @transform_10(%arg0: i32) -> (i32, i32, i32) {
    %c0_i32 = arith.constant 0 : i32
    %c0_i32_0 = arith.constant 0 : i32
    %c0_i32_1 = arith.constant 0 : i32
    %c0_i32_2 = arith.constant 0 : i32
    return %c0_i32, %c0_i32_0, %c0_i32_1 : i32, i32, i32
  }
  func.func @transform_11(%arg0: i32) -> (i32, i32) {
    %c0_i32 = arith.constant 0 : i32
    %c0_i32_0 = arith.constant 0 : i32
    %c0_i32_1 = arith.constant 0 : i32
    return %c0_i32, %c0_i32_0 : i32, i32
  }
  func.func @transform_12(%arg0: i32) -> (i32, i32) {
    %c0_i32 = arith.constant 0 : i32
    %c0_i32_0 = arith.constant 0 : i32
    %c0_i32_1 = arith.constant 0 : i32
    return %c0_i32, %c0_i32_0 : i32, i32
  }
  func.func @transform_13(%arg0: i32) -> (i32, i32) {
    %c0_i32 = arith.constant 0 : i32
    %c0_i32_0 = arith.constant 0 : i32
    %c0_i32_1 = arith.constant 0 : i32
    return %c0_i32, %c0_i32_0 : i32, i32
  }
  func.func @transform_14(%arg0: i32) -> (i32, i32, i32) {
    %c0_i32 = arith.constant 0 : i32
    %c0_i32_0 = arith.constant 0 : i32
    %c0_i32_1 = arith.constant 0 : i32
    return %arg0, %c0_i32, %c0_i32_0 : i32, i32, i32
  }
}

</mosaic_0001>

<bundles_post_ra>
// kernel: cnn_3l_bn_forward.1
= control target key start
LH: loop header
LB: loop body
LE: loop exit
PB: predicated region body
PF: predicated region fallthrough
CT: control target
= control target key end

     0   :  { %s14142_s0 = inlined_call_operand.vmem [shape: f32[2,7,28], index: 0, kind: input, shape index: {}]   ;;  %s14143_s1 = inlined_call_operand.vmem [shape: f32[2,7,28], index: 1, kind: input, shape index: {}]   ;;  %s14144_s2 = inlined_call_operand.vmem [shape: f32[2,7,28], index: 2, kind: input, shape index: {}]   ;;  %s14145_s3 = inlined_call_operand.vmem [shape: f32[2,7,28], index: 3, kind: input, shape index: {}]   ;;  %s14146_s4 = inlined_call_operand.hbm [shape: bf16[5,28,512], index: 4, kind: input, shape index: {}]   ;;  %s14147_s5 = inlined_call_operand.hbm [shape: f32[1,512], index: 5, kind: input, shape index: {}]   ;;  %s14148_s6 = inlined_call_operand.hbm [shape: f32[1,512], index: 6, kind: input, shape index: {}]   ;;  %s14149_s7 = inlined_call_operand.hbm [shape: bf16[5,256,512], index: 7, kind: input, shape index: {}]   ;;  %s14150_s8 = inlined_call_operand.hbm [shape: f32[1,512], index: 8, kind: input, shape index: {}]   ;;  %s14151_s9 = inlined_call_operand.hbm [shape: f32[1,512], index: 9, kind: input, shape index: {}]   ;;  %s14152_s10 = inlined_call_operand.hbm [shape: bf16[4,256,512], index: 10, kind: input, shape index: {}]   ;;  %s14153_s11 = inlined_call_operand.hbm [shape: f32[1,512], index: 11, kind: input, shape index: {}]   ;;  %s14154_s12 = inlined_call_operand.hbm [shape: bf16[512,128], index: 12, kind: input, shape index: {}]   ;;  %s14155_s13 = inlined_call_operand.hbm [shape: f32[1,128], index: 13, kind: input, shape index: {}]   ;;  %s14156_s14 = inlined_call_operand.hbm [shape: f32[2,1,128], index: 14, kind: output, shape index: {}]  }
   0x1   :  { %14452 = sst [smem:[#allocation314_spill]] %s14147_s5 }
   0x2   :  { %14453 = sst [smem:[#allocation315_spill]] %s14149_s7 }
   0x3   :  { %14454 = sst [smem:[#allocation316_spill]] %s14151_s9 }
   0x4   :  { %19 = vsyncpa [#allocation3], 0 }
   0x5   :  { %20 = vsyncpa [#allocation6], 0 }
   0x6   :  { %21 = vsyncpa [#allocation9], 0 }
   0x7   :  { %22 = vsyncpa [#allocation12], 0 }
   0x8   :  { %23 = vsyncpa [#allocation15], 0 }
   0x9   :  { %24 = vsyncpa [#allocation18], 0 }
   0xa   :  { %25 = vsyncpa [#allocation4], 0 }
   0xb   :  { %27 = vsyncpa [#allocation4 + $0x1], 0  ;;  %s11773_s29 = smov 0   ;;  %s11775_s30 = smov 0  }
   0xc   :  { %s11777_s15 = smov 0   ;;  %s11779_s16 = smov 0  }
   0xd LB: > { %14455 = sst [smem:[#allocation27_spill]] %s11670_s29  ;;  %s11794_s17 = sadd.s32 4294967295, %s11682_s16   ;;  %s11682_s16 = sphi %s11779_s16, %s15043_s16   ;;  %s11678_s15 = sphi %s11777_s15, %s15045_s15   ;;  %s11674_s30 = sphi %s11775_s30, %s15047_s30   ;;  %s11670_s29 = sphi %s11773_s29, %s15046_s29  }
   0xe   : > { %14456 = sst [smem:[#allocation28_spill]] %s11678_s15  ;;  %s7798_s18 = sadd.s32 4294967294, %s11682_s16  }
   0xf   : > { %14457 = sst [smem:[#allocation29_spill]] %s11682_s16  ;;  %s11798_s19 = sadd.s32 1, %s11682_s16  }
  0x10   : > { %14458 = sst [smem:[#allocation30_spill]] %s11798_s19  ;;  %s354_s20 = sadd.s32 1, %s11678_s15 }
  0x11   : > { %s351_s21 = ssub.s32 %s11682_s16, %s11798_s19  ;;  %p364_p0 = scmp.ne.s32.totalorder %s11678_s15, %s11674_s30 }
  0x12   : > { %p352_p1 = scmp.eq.s32.totalorder %s351_s21, 0  ;;  %p365_p2 = scmp.eq.s32.totalorder %s11794_s17, 1 }
  0x13   : > { %p370_p3 = scmp.ne.s32.totalorder %s11674_s30, %s11670_s29  ;;  %p371_p4 = scmp.eq.s32.totalorder %s7798_s18, 1 }
  0x14   : > { %s11809_s22 = scalar_select %p352_p1, %s11678_s15, %s354_s20  }
  0x15   : > { %p11811_p5 = por %p365_p2, %p364_p0  ;;  %p11815_p6 = por %p371_p4, %p370_p3 }
  0x16   : > { %14459 = sst [smem:[#allocation31_spill]] %s11809_s22  ;;  %p7799_p7 = scmp.ge.s32.totalorder %s11682_s16, 1 }
  0x17   : > { %s14460_s23 = scalar_select %p11811_p5, 1, 0 }
  0x18   : > { %s14462_s24 = scalar_select %p11815_p6, 1, 0 }
  0x19   : > { %14461 = sst [smem:[#allocation32_spill]] %s14460_s23  ;;  %p378_p8 = scmp.lt.s32.totalorder %s11682_s16, 3 }
  0x1a   : > { %14463 = sst [smem:[#allocation33_spill]] %s14462_s24  ;;  %p11225_p9 = scmp.eq.s32.totalorder %s11794_s17, 0 }
  0x1b   : > { %p11822_p10 = pnand %p7799_p7, %p378_p8  ;;  %s14465_s5 = sld [smem:[#allocation314_spill]] }
  0x1c   : > { %s11684_s18 = smov [#allocation5]   ;;  %s14467_s7 = sld [smem:[#allocation315_spill]] }
  0x1d   : > { %p11190_p11 = pneg %p11822_p10  ;;  %s406_s20 = sshll.u32 %s11684_s18, 4  ;;  %s407_s20 = int_to_ptr.vmem [resolvable:$true] %s406_s20 }
  0x1e   : > { %s11685_s26 = smov [#allocation8]   ;;  %s14468_s9 = sld [smem:[#allocation316_spill]] }
  0x1f   : > { %p11833_p12 = pnand %p11225_p9, %p11190_p11  ;;  %s429_s27 = sshll.u32 %s11685_s26, 4  ;;  %s430_s27 = int_to_ptr.vmem [resolvable:$true] %s429_s27 }
  0x20   : > { %s11686_s29 = smov 256   ;;  %s11687_s16 = smov 16  }
  0x21   : > { %s404_s28 = sshll.u32 %s14465_s5, 4  ;;  %s11689_s5 = smov [#allocation14]   ;;  %s405_s28 = int_to_ptr.hbm [resolvable:$true] %s404_s28 }
  0x22   : > { %s427_s19 = sshll.u32 %s14467_s7, 4  ;;  %s482_s18 = sshll.u32 %s11689_s5, 4  ;;  %s428_s19 = int_to_ptr.hbm [resolvable:$true] %s427_s19  ;;  %s483_s18 = int_to_ptr.vmem [resolvable:$true] %s482_s18 }
  0x23   : > { %11196 = dma.hbm_to_vmem [thread:$0]  (!%p11833_p12), %s405_s28, 64, %s407_s20, [#allocation6]  }
  0x24   : > { %s454_s24 = sshll.u32 %s14468_s9, 4  ;;  %s480_s28 = sshll.u32 %s14153_s11, 4  ;;  %s455_s24 = int_to_ptr.hbm [resolvable:$true] %s454_s24  ;;  %s481_s28 = int_to_ptr.hbm [resolvable:$true] %s480_s28 }
  0x25   : > { %11202 = dma.hbm_to_vmem [thread:$0]  (!%p11833_p12), %s428_s19, 40960, %s430_s27, [#allocation9], %s11686_s29, %s11686_s29, %s11687_s16  }
  0x26   : > { %s11688_s20 = smov [#allocation11]   ;;  %s389_s23 = sshll.u32 %s14146_s4, 4  ;;  %s390_s23 = int_to_ptr.hbm [resolvable:$true] %s389_s23 }
  0x27   : > { %s456_s26 = sshll.u32 %s11688_s20, 4  ;;  %s416_s15 = sshll.u32 %s14148_s6, 4  ;;  %s457_s26 = int_to_ptr.vmem [resolvable:$true] %s456_s26  ;;  %s417_s15 = int_to_ptr.hbm [resolvable:$true] %s416_s15 }
  0x28   : > { %11208 = dma.hbm_to_vmem [thread:$0]  (!%p11833_p12), %s455_s24, 64, %s457_s26, [#allocation12]  }
  0x29   : > { %11214 = dma.hbm_to_vmem [thread:$0]  (!%p11833_p12), %s481_s28, 64, %s483_s18, [#allocation15]  }
  0x2a   : > { %s11690_s22 = smov [#allocation2]   ;;  %s11691_s7 = smov [#allocation7]  }
  0x2b   : > { %s391_s20 = sshll.u32 %s11690_s22, 4  ;;  %s418_s9 = sshll.u32 %s11691_s7, 4  ;;  %s392_s20 = int_to_ptr.vmem [resolvable:$true] %s391_s20  ;;  %s419_s9 = int_to_ptr.vmem [resolvable:$true] %s418_s9 }
  0x2c   : > { %11193 = dma.hbm_to_vmem [thread:$0]  (!%p11833_p12), %s390_s23, 5120, %s392_s20, [#allocation3], %s11686_s29, %s11686_s29, %s11687_s16  }
  0x2d   : > { %s442_s28 = sshll.u32 %s14150_s8, 4  ;;  %s465_s19 = sshll.u32 %s14152_s10, 4  ;;  %s443_s28 = int_to_ptr.hbm [resolvable:$true] %s442_s28  ;;  %s466_s19 = int_to_ptr.hbm [resolvable:$true] %s465_s19 }
  0x2e   : > { %11199 = dma.hbm_to_vmem [thread:$0]  (!%p11833_p12), %s417_s15, 64, %s419_s9, [#allocation6]  }
  0x2f   : > { %s11692_s27 = smov [#allocation10]   ;;  %s11693_s23 = smov [#allocation13]  }
  0x30   : > { %s444_s22 = sshll.u32 %s11692_s27, 4  ;;  %s467_s20 = sshll.u32 %s11693_s23, 4  ;;  %s445_s22 = int_to_ptr.vmem [resolvable:$true] %s444_s22  ;;  %s468_s20 = int_to_ptr.vmem [resolvable:$true] %s467_s20 }
  0x31   : > { %11205 = dma.hbm_to_vmem [thread:$0]  (!%p11833_p12), %s443_s28, 64, %s445_s22, [#allocation9]  }
  0x32   : > { %s491_s26 = sshll.u32 %s14154_s12, 4  ;;  %s11694_s15 = smov [#allocation16]   ;;  %s492_s26 = int_to_ptr.hbm [resolvable:$true] %s491_s26 }
  0x33   : > { %11211 = dma.hbm_to_vmem [thread:$0]  (!%p11833_p12), %s466_s19, 32768, %s468_s20, [#allocation12], %s11686_s29, %s11686_s29, %s11687_s16  }
  0x34   : > { %s493_s9 = sshll.u32 %s11694_s15, 4  ;;  %s506_s28 = sshll.u32 %s14155_s13, 4  ;;  %s494_s9 = int_to_ptr.vmem [resolvable:$true] %s493_s9  ;;  %s507_s28 = int_to_ptr.hbm [resolvable:$true] %s506_s28 }
  0x35   : > { %s11695_s27 = smov 64   ;;  %s11696_s22 = smov 4  }
  0x36   : > { %11217 = dma.hbm_to_vmem [thread:$0]  (!%p11833_p12), %s492_s26, 4096, %s494_s9, [#allocation15], %s11695_s27, %s11695_s27, %s11696_s22  }
  0x37   : > { %s11697_s23 = smov [#allocation17]   ;;  %549 = sbr.rel (%p11822_p10) target bundleno = 1990 (0x7c6), region = 76 }
  0x38   : > { %s508_s7 = sshll.u32 %s11697_s23, 4  ;;  %s509_s7 = int_to_ptr.vmem [resolvable:$true] %s508_s7 }
  0x39   : > { %11220 = dma.hbm_to_vmem [thread:$0]  (!%p11833_p12), %s507_s28, 16, %s509_s7, [#allocation18]  }
  0x3c   : > { %11641 = dma.done.wait (%p11225_p9), [#allocation3], 5120  }
  0x3d   : > { %11643 = vsyncadd (%p11225_p9), [#allocation3], 4294962176 }
  0x3e   : > { %11645 = dma.done.wait (%p11225_p9), [#allocation6], 128  }
  0x3f   : > { %11647 = vsyncadd (%p11225_p9), [#allocation6], 4294967168 }
  0x40   : > { %11649 = dma.done.wait (%p11225_p9), [#allocation9], 41024  }
  0x41   : > { %11651 = vsyncadd (%p11225_p9), [#allocation9], 4294926272 }
  0x42   : > { %11653 = dma.done.wait (%p11225_p9), [#allocation12], 32832  }
  0x43   : > { %11655 = vsyncadd (%p11225_p9), [#allocation12], 4294934464 }
  0x44   : > { %11657 = dma.done.wait (%p11225_p9), [#allocation15], 4160  }
  0x45   : > { %11659 = vsyncadd (%p11225_p9), [#allocation15], 4294963136 }
  0x46   : > { %11661 = dma.done.wait (%p11225_p9), [#allocation18], 16  }
  0x47   : > { %11663 = vsyncadd (%p11225_p9), [#allocation18], 4294967280  ;;  %p651_p13 = scmp.lt.s32.totalorder %s11794_s17, 1  ;;  %vm737_vm0 = vcmask 1045504   ;;  %v7844_v0 = vld [vmem:[#allocation2 + $0x60] sm:$0xf] }
  0x48   : > { %v10514_v1 = vld [vmem:[#allocation2 + $0x6c] sm:$0x30]  ;;  %v10512_v2 = vld [vmem:[#allocation2 + $0x64] sm:$0xf]  ;;  %v7846_v4 = vld [vmem:[#allocation2 + $0x70] sm:$0x30] }
  0x49   : > { %s652_s29 = scalar_select %p651_p13, %s11794_s17, 1  ;;  %v7845_v3 = vor.u32 %v10514_v1, %v7844_v0  ;;  %v7852_v5 = vld [vmem:[#allocation2 + $0x68] sm:$0xf]  ;;  %v10515_v6 = vld [vmem:[#allocation2 + $0x74] sm:$0x30]  ;;  %v7849_v7 = vor.u32 %v10512_v2, %v7846_v4  ;;  %vm733_vm1 = vcmask 228352  }
  0x4a   : > { %v7853_v8 = vor.u32 %v10515_v6, %v7852_v5  ;;  %v10513_v9 = vld [vmem:[#allocation2 + $0x6c] sm:$0xf]  ;;  %v7854_v10 = vld [vmem:[#allocation2 + $0x78] sm:$0x30]  ;;  %v7828_v11 = vld [vmem:[#allocation2 + $0x40] sm:$0xf] }
  0x4b   : > { %s11921_s16 = sshll.u32 %s652_s29, 3  ;;  %v11924_v12 = vsel %vm737_vm0, %v7845_v3, 0  ;;  %v7857_v13 = vor.u32 %v10513_v9, %v7854_v10  ;;  %v10510_v14 = vld [vmem:[#allocation2 + $0x4c] sm:$0xf0]  ;;  %v10508_v15 = vld [vmem:[#allocation2 + $0x44] sm:$0xf] }
  0x4c   : > { %s658_s19 = scalar_lea.vmem %s14143_s1, %s11921_s16  ;;  %756 = vmatpush.bf16.msra.mxu0 %v11924_v12  ;;  %v11932_v16 = vsel %vm737_vm0, %v7849_v7, 0  ;;  %v11935_v17 = vsel %vm737_vm0, %v7853_v8, 0  ;;  %v11937_v18 = vor.u32 %v10510_v14, %v7828_v11  ;;  %v7830_v19 = vld [vmem:[#allocation2 + $0x50] sm:$0xf0]  ;;  %v7836_v20 = vld [vmem:[#allocation2 + $0x48] sm:$0xf]  ;;  %s654_s26 = scalar_lea.vmem %s14142_s0, %s11921_s16 }
  0x4d   : > { %769 = vmatpush.bf16.msra.mxu1 %v11932_v16  ;;  %782 = vmatpush.bf16.msra.mxu2 %v11935_v17  ;;  %v11942_v21 = vsel %vm737_vm0, %v7857_v13, 0  ;;  %v11944_v22 = vor.u32 %v10508_v15, %v7830_v19  ;;  %v10511_v23 = vld [vmem:[#allocation2 + $0x54] sm:$0xf0]  ;;  %v10509_v24 = vld [vmem:[#allocation2 + $0x4c] sm:$0xf]  ;;  %s662_s5 = scalar_lea.vmem %s14144_s2, %s11921_s16  ;;  %s666_s27 = scalar_lea.vmem %s14145_s3, %s11921_s16  ;;  %vm7582_vm3 = vcmask 1040384  }
  0x4e   : > { %795 = vmatpush.bf16.msra.mxu3 %v11942_v21  ;;  %v11947_v25 = vor.u32 %v10511_v23, %v7836_v20  ;;  %v7838_v26 = vld [vmem:[#allocation2 + $0x58] sm:$0xf0]  ;;  %v675_v27 = vld [vmem:[%s658_s19] sm:$0x7f]  ;;  %v10506_v31 = vld [vmem:[#allocation2 + $0x2c] sm:$0x30]  ;;  %s7605_s16 = scalar_lea.hbm %s14156_s14, %s11794_s17 }
  0x4f   : > { %v11949_v28 = vor.u32 %v10509_v24, %v7838_v26  ;;  %v11951_v29 = vpack.c.bf16 %v675_v27, %v675_v27  ;;  %v7880_v30 = vld [vmem:[#allocation2 + $0x20] sm:$0xf]  ;;  %v10504_v33 = vld [vmem:[#allocation2 + $0x24] sm:$0xf]  ;;  %v7882_v34 = vld [vmem:[#allocation2 + $0x30] sm:$0x30] }
  0x50   : > { %757 = vmatpush.bf16.msra.mxu0 %v11937_v18  ;;  %v7881_v32 = vor.u32 %v10506_v31, %v7880_v30  ;;  %v7888_v35 = vld [vmem:[#allocation2 + $0x28] sm:$0xf]  ;;  %v7885_v36 = vor.u32 %v10504_v33, %v7882_v34  ;;  %v10507_v37 = vld [vmem:[#allocation2 + $0x34] sm:$0x30]  ;;  %v10505_v38 = vld [vmem:[#allocation2 + $0x2c] sm:$0xf] }
  0x51   : > { %770 = vmatpush.bf16.msra.mxu1 %v11944_v22  ;;  %783 = vmatpush.bf16.msra.mxu2 %v11947_v25  ;;  %v7890_v39 = vld [vmem:[#allocation2 + $0x38] sm:$0x30]  ;;  %v7889_v41 = vor.u32 %v10507_v37, %v7888_v35  ;;  %v7864_v43 = vld [vmem:[#allocation2] sm:$0xf]  ;;  %v10502_v44 = vld [vmem:[#allocation2 + $0xc] sm:$0xf0] }
  0x52   : > { %796 = vmatpush.bf16.msra.mxu3 %v11949_v28  ;;  %v11958_v40 = vsel %vm737_vm0, %v7881_v32, 0  ;;  %v7893_v42 = vor.u32 %v10505_v38, %v7890_v39  ;;  %v11963_v45 = vsel %vm737_vm0, %v7885_v36, 0  ;;  %v10500_v46 = vld [vmem:[#allocation2 + $0x4] sm:$0xf]  ;;  %v7866_v47 = vld [vmem:[#allocation2 + $0x10] sm:$0xf0]  ;;  %v11978_v52 = vor.u32 %v10502_v44, %v7864_v43 }
  0x53   : > { %7858 = vmatmul.msk.bf16.vlgmr.msra.gmra.mxu0 %vm733_vm1, %v11951_v29  ;;  %v11970_v48 = vsel %vm737_vm0, %v7889_v41, 0  ;;  %v7872_v50 = vld [vmem:[#allocation2 + $0x8] sm:$0xf]  ;;  %v10503_v51 = vld [vmem:[#allocation2 + $0x14] sm:$0xf0]  ;;  %v11982_v55 = vor.u32 %v10500_v46, %v7866_v47  ;;  %s649_s22 = sand.u32 1, %s11674_s30  }
  0x54   : > { %7859 = vmatmul.msk.bf16.vlgmr.msra.gmra.mxu1 %vm733_vm1, %v11951_v29  ;;  %7860 = vmatmul.msk.bf16.vlgmr.msra.gmra.mxu2 %vm733_vm1, %v11951_v29  ;;  %v11973_v49 = vsel %vm737_vm0, %v7893_v42, 0  ;;  %v10501_v53 = vld [vmem:[#allocation2 + $0xc] sm:$0xf]  ;;  %v7874_v54 = vld [vmem:[#allocation2 + $0x18] sm:$0xf0]  ;;  %v11984_v56 = vor.u32 %v10503_v51, %v7872_v50  ;;  %s650_s25 = scalar_lea.vmem [#allocation19], %s649_s22 }
  0x55   : > { %7861 = vmatmul.msk.bf16.vlgmr.msra.gmra.mxu3 %vm733_vm1, %v11951_v29  ;;  %859 = vmatpush.bf16.msrb.mxu0 %v11958_v40  ;;  %v7916_v57 = vld [vmem:[#allocation2 + $0xa0] sm:$0xf]  ;;  %v10522_v58 = vld [vmem:[#allocation2 + $0xac] sm:$0x30]  ;;  %v10520_v59 = vld [vmem:[#allocation2 + $0xa4] sm:$0xf]  ;;  %v11987_v60 = vor.u32 %v10501_v53, %v7874_v54 }
  0x56   : > { %872 = vmatpush.bf16.msrb.mxu1 %v11963_v45  ;;  %885 = vmatpush.bf16.msrb.mxu2 %v11970_v48  ;;  %v7917_v61 = vor.u32 %v10522_v58, %v7916_v57  ;;  %v7918_v62 = vld [vmem:[#allocation2 + $0xb0] sm:$0x30]  ;;  %v7924_v63 = vld [vmem:[#allocation2 + $0xa8] sm:$0xf]  ;;  %v10523_v0 = vld [vmem:[#allocation2 + $0xb4] sm:$0x30] }
  0x57   : > { %898 = vmatpush.bf16.msrb.mxu3 %v11973_v49  ;;  %v7921_v1 = vor.u32 %v10520_v59, %v7918_v62  ;;  %v7925_v2 = vor.u32 %v10523_v0, %v7924_v63  ;;  %v10521_v3 = vld [vmem:[#allocation2 + $0xac] sm:$0xf]  ;;  %v7926_v4 = vld [vmem:[#allocation2 + $0xb8] sm:$0x30]  ;;  %v7900_v7 = vld [vmem:[#allocation2 + $0x80] sm:$0xf] }
  0x58   : > { %v11995_v5 = vsel %vm737_vm0, %v7917_v61, 0  ;;  %v7929_v6 = vor.u32 %v10521_v3, %v7926_v4  ;;  %v10518_v8 = vld [vmem:[#allocation2 + $0x8c] sm:$0xf0]  ;;  %v674_v9 = vld [vmem:[%s654_s26] sm:$0x7f]  ;;  %s7607_s21 = sshll.u32 %s650_s25, 4  ;;  %s7608_s21 = int_to_ptr.vmem [resolvable:$true] %s7607_s21 }
  0x59   : > { %860 = vmatpush.bf16.msrb.mxu0 %v11978_v52  ;;  %v12000_v10 = vsel %vm737_vm0, %v7921_v1, 0  ;;  %v12003_v11 = vsel %vm737_vm0, %v7925_v2, 0  ;;  %v10516_v13 = vld [vmem:[#allocation2 + $0x84] sm:$0xf]  ;;  %v12010_v15 = vor.u32 %v10518_v8, %v7900_v7  ;;  %v7902_v19 = vld [vmem:[#allocation2 + $0x90] sm:$0xf0]  ;;  %v12021_v39 = vpack.c.bf16 %v674_v9, %v674_v9 }
  0x5a   : > { %873 = vmatpush.bf16.msrb.mxu1 %v11982_v55  ;;  %886 = vmatpush.bf16.msrb.mxu2 %v11984_v56  ;;  %v12008_v14 = vsel %vm737_vm0, %v7929_v6, 0  ;;  %v7908_v20 = vld [vmem:[#allocation2 + $0x88] sm:$0xf]  ;;  %v12014_v23 = vor.u32 %v10516_v13, %v7902_v19  ;;  %v10519_v24 = vld [vmem:[#allocation2 + $0x94] sm:$0xf0]  ;;  %s7609_s19 = sshll.u32 %s7605_s16, 4  ;;  %s7610_s19 = int_to_ptr.hbm [resolvable:$true] %s7609_s19 }
  0x5b   : > { %899 = vmatpush.bf16.msrb.mxu3 %v11987_v60  ;;  %v10517_v26 = vld [vmem:[#allocation2 + $0x8c] sm:$0xf]  ;;  %v7910_v27 = vld [vmem:[#allocation2 + $0x98] sm:$0xf0]  ;;  %v12017_v30 = vor.u32 %v10519_v24, %v7908_v20  ;;  %v7952_v32 = vld [vmem:[#allocation2 + $0xe0] sm:$0xf] }
  0x5c   : > { %v12019_v31 = vor.u32 %v10517_v26, %v7910_v27  ;;  %v10530_v33 = vld [vmem:[#allocation2 + $0xec] sm:$0x30]  ;;  %v10528_v34 = vld [vmem:[#allocation2 + $0xe4] sm:$0xf]  ;;  %v7954_v36 = vld [vmem:[#allocation2 + $0xf0] sm:$0x30] }
  0x5d   : > { %972 = vmatpush.bf16.msra.mxu0 %v11995_v5  ;;  %v7953_v35 = vor.u32 %v10530_v33, %v7952_v32  ;;  %v7960_v37 = vld [vmem:[#allocation2 + $0xe8] sm:$0xf]  ;;  %v10531_v38 = vld [vmem:[#allocation2 + $0xf4] sm:$0x30]  ;;  %v7957_v41 = vor.u32 %v10528_v34, %v7954_v36  ;;  %v10529_v43 = vld [vmem:[#allocation2 + $0xec] sm:$0xf] }
  0x5e   : > { %985 = vmatpush.bf16.msra.mxu1 %v12000_v10  ;;  %998 = vmatpush.bf16.msra.mxu2 %v12003_v11  ;;  %v7961_v42 = vor.u32 %v10531_v38, %v7960_v37  ;;  %v7962_v44 = vld [vmem:[#allocation2 + $0xf8] sm:$0x30]  ;;  %v7936_v50 = vld [vmem:[#allocation2 + $0xc0] sm:$0xf]  ;;  %v10526_v54 = vld [vmem:[#allocation2 + $0xcc] sm:$0xf0] }
  0x5f   : > { %1011 = vmatpush.bf16.msra.mxu3 %v12008_v14  ;;  %v7965_v46 = vor.u32 %v10529_v43, %v7962_v44  ;;  %v12028_v47 = vsel %vm737_vm0, %v7953_v35, 0  ;;  %v12031_v51 = vsel %vm737_vm0, %v7957_v41, 0  ;;  %v10524_v57 = vld [vmem:[#allocation2 + $0xc4] sm:$0xf]  ;;  %v7938_v58 = vld [vmem:[#allocation2 + $0xd0] sm:$0xf0]  ;;  %v12048_v1 = vor.u32 %v10526_v54, %v7936_v50 }
  0x60   : > { %v12034_v53 = vsel %vm737_vm0, %v7961_v42, 0  ;;  %v7944_v59 = vld [vmem:[#allocation2 + $0xc8] sm:$0xf]  ;;  %v10527_v61 = vld [vmem:[#allocation2 + $0xd4] sm:$0xf0]  ;;  %v12052_v2 = vor.u32 %v10524_v57, %v7938_v58  ;;  %s7597_s20 = scalar_lea.sflag [#allocation4], %s649_s22 }
  0x61   : > { %973 = vmatpush.bf16.msra.mxu0 %v12010_v15  ;;  %v12043_v62 = vsel %vm737_vm0, %v7965_v46, 0  ;;  %v10525_v63 = vld [vmem:[#allocation2 + $0xcc] sm:$0xf]  ;;  %v7946_v0 = vld [vmem:[#allocation2 + $0xd8] sm:$0xf0]  ;;  %v12054_v3 = vor.u32 %v10527_v61, %v7944_v59  ;;  %s11610_s24 = sshra.s32 %s7610_s19, 4  ;;  %s11611_s24 = int_to_ptr.hbm [resolvable:$true] %s11610_s24 }
  0x62   : > { %986 = vmatpush.bf16.msra.mxu1 %v12014_v23  ;;  %999 = vmatpush.bf16.msra.mxu2 %v12017_v30  ;;  %v12057_v4 = vor.u32 %v10525_v63, %v7946_v0  ;;  %v7988_v6 = vld [vmem:[#allocation2 + $0x120] sm:$0xf]  ;;  %v10538_v7 = vld [vmem:[#allocation2 + $0x12c] sm:$0x30]  ;;  %v10536_v8 = vld [vmem:[#allocation2 + $0x124] sm:$0xf]  ;;  %p11617_p3 = scmp.lt.s32.totalorder %s11611_s24, %s14156_s14 }
  0x63   : > { %1012 = vmatpush.bf16.msra.mxu3 %v12019_v31  ;;  %7894 = vmatmul.msk.bf16.vlgmr.msrb.gmra.mxu0 %vm733_vm1, %v12021_v39  ;;  %v7990_v9 = vld [vmem:[#allocation2 + $0x130] sm:$0x30]  ;;  %v7996_v13 = vld [vmem:[#allocation2 + $0x128] sm:$0xf]  ;;  %v10539_v19 = vld [vmem:[#allocation2 + $0x134] sm:$0x30]  ;;  %v7989_v24 = vor.u32 %v10538_v7, %v7988_v6 }
  0x64   : > { %7895 = vmatmul.msk.bf16.vlgmr.msrb.gmra.mxu1 %vm733_vm1, %v12021_v39  ;;  %7896 = vmatmul.msk.bf16.vlgmr.msrb.gmra.mxu2 %vm733_vm1, %v12021_v39  ;;  %v676_v20 = vld [vmem:[%s662_s5] sm:$0x7f]  ;;  %v10537_v26 = vld [vmem:[#allocation2 + $0x12c] sm:$0xf]  ;;  %v7998_v27 = vld [vmem:[#allocation2 + $0x138] sm:$0x30]  ;;  %v7993_v32 = vor.u32 %v10536_v8, %v7990_v9  ;;  %v7997_v33 = vor.u32 %v10539_v19, %v7996_v13 }
  0x65   : > { %7897 = vmatmul.msk.bf16.vlgmr.msrb.gmra.mxu3 %vm733_vm1, %v12021_v39  ;;  %1089 = vmatpush.bf16.msrb.mxu0 %v12028_v47  ;;  %v12067_v34 = vpack.c.bf16 %v676_v20, %v676_v20  ;;  %v8001_v35 = vor.u32 %v10537_v26, %v7998_v27  ;;  %v12070_v36 = vsel %vm737_vm0, %v7989_v24, 0  ;;  %v7972_v37 = vld [vmem:[#allocation2 + $0x100] sm:$0xf]  ;;  %v10534_v42 = vld [vmem:[#allocation2 + $0x10c] sm:$0xf0]  ;;  %v1150_v8 = vshll.u32 %v12021_v39, 16 }
  0x66   : > { %1102 = vmatpush.bf16.msrb.mxu1 %v12031_v51  ;;  %1115 = vmatpush.bf16.msrb.mxu2 %v12034_v53  ;;  %v12073_v38 = vsel %vm737_vm0, %v7993_v32, 0  ;;  %v12076_v41 = vsel %vm737_vm0, %v7997_v33, 0  ;;  %v10532_v43 = vld [vmem:[#allocation2 + $0x104] sm:$0xf]  ;;  %v7974_v44 = vld [vmem:[#allocation2 + $0x110] sm:$0xf0]  ;;  %v12090_v59 = vor.u32 %v10534_v42, %v7972_v37 }
  0x67   : > { %1128 = vmatpush.bf16.msrb.mxu3 %v12043_v62  ;;  %14469 = vst [vmem:[#allocation34_spill] sm:$0xff] %v12073_v38  ;;  %v7980_v46 = vld [vmem:[#allocation2 + $0x108] sm:$0xf]  ;;  %v10535_v50 = vld [vmem:[#allocation2 + $0x114] sm:$0xf0]  ;;  %v12085_v54 = vsel %vm737_vm0, %v8001_v35, 0  ;;  %v12094_v61 = vor.u32 %v10532_v43, %v7974_v44 }
  0x68   : > { %v10533_v57 = vld [vmem:[#allocation2 + $0x10c] sm:$0xf]  ;;  %v7982_v58 = vld [vmem:[#allocation2 + $0x118] sm:$0xf0]  ;;  %v12096_v63 = vor.u32 %v10535_v50, %v7980_v46  ;;  %v677_v6 = vld [vmem:[%s666_s27] sm:$0x7f] }
  0x69   : > { %1090 = vmatpush.bf16.msrb.mxu0 %v12048_v1  ;;  %14470 = vst [vmem:[#allocation35_spill] sm:$0xff] %v12094_v61  ;;  %v12099_v0 = vor.u32 %v10533_v57, %v7982_v58  ;;  %v12109_v7 = vpack.c.bf16 %v677_v6, %v677_v6  ;;  %v1148_v9 = vshrl.u32 %v12021_v39, 16  ;;  %v1152_v13 = vrot.slane %v1150_v8, 1  ;;  %s11612_s26 = scalar_lea.hbm %s11611_s24, 1  ;;  %s11616_s17 = scalar_lea.hbm %s14156_s14, 2 }
  0x6a   : > { %1103 = vmatpush.bf16.msrb.mxu1 %v12052_v2  ;;  %1116 = vmatpush.bf16.msrb.mxu2 %v12054_v3  ;;  %14471 = vst [vmem:[#allocation36_spill] sm:$0xff] %v12096_v63  ;;  %v1509_v26 = vshll.u32 %v11951_v29, 16  ;;  %v1507_v35 = vshrl.u32 %v11951_v29, 16  ;;  %p11613_p0 = scmp.ne.s32.totalorder %s11611_s24, %s11612_s26  ;;  %p11618_p4 = scmp.lt.s32.totalorder %s11616_s17, %s11612_s26 }
  0x6b   : > { %1129 = vmatpush.bf16.msrb.mxu3 %v12057_v4  ;;  %v12129_v19 = vor.u32 %v1152_v13, %v1148_v9 }
  0x6c   : > { %v1511_v37 = vrot.slane %v1509_v26, 1  ;;  %p11614_p1 = pnand %p11613_p0, %p11811_p5  ;;  %p11619_p7 = por %p11618_p4, %p11617_p3 }
  0x6e   : > { %v12213_v43 = vor.u32 %v1511_v37, %v1507_v35  ;;  %p11615_p2 = pneg %p11614_p1 }
  0x70   : > { %p11620_p8 = pnand %p11619_p7, %p11615_p2 }
  0x73   : > { %7930 = vmatmul.msk.bf16.vlgmr.msra.gmra.mxu0 %vm733_vm1, %v12067_v34 }
  0x74   : > { %7931 = vmatmul.msk.bf16.vlgmr.msra.gmra.mxu1 %vm733_vm1, %v12067_v34  ;;  %7932 = vmatmul.msk.bf16.vlgmr.msra.gmra.mxu2 %vm733_vm1, %v12067_v34 }
  0x75   : > { %7933 = vmatmul.msk.bf16.vlgmr.msra.gmra.mxu3 %vm733_vm1, %v12067_v34  ;;  %1211 = vmatpush.bf16.msra.mxu0 %v12070_v36 }
  0x76   : > { %1224 = vmatpush.bf16.msra.mxu1 %v12073_v38  ;;  %1237 = vmatpush.bf16.msra.mxu2 %v12076_v41 }
  0x77   : > { %1250 = vmatpush.bf16.msra.mxu3 %v12085_v54 }
  0x79   : > { %1212 = vmatpush.bf16.msra.mxu0 %v12090_v59 }
  0x7a   : > { %1225 = vmatpush.bf16.msra.mxu1 %v12094_v61  ;;  %1238 = vmatpush.bf16.msra.mxu2 %v12096_v63 }
  0x7b   : > { %1251 = vmatpush.bf16.msra.mxu3 %v12099_v0 }
  0x83   : > { %7966 = vmatmul.msk.bf16.vlgmr.msrb.gmra.mxu0 %vm733_vm1, %v12109_v7 }
  0x84   : > { %7967 = vmatmul.msk.bf16.vlgmr.msrb.gmra.mxu1 %vm733_vm1, %v12109_v7  ;;  %7968 = vmatmul.msk.bf16.vlgmr.msrb.gmra.mxu2 %vm733_vm1, %v12109_v7 }
  0x85   : > { %7969 = vmatmul.msk.bf16.vlgmr.msrb.gmra.mxu3 %vm733_vm1, %v12109_v7  ;;  %1297 = vmatpush.bf16.msrb.mxu0 %v11924_v12 }
  0x86   : > { %1310 = vmatpush.bf16.msrb.mxu1 %v11932_v16  ;;  %1323 = vmatpush.bf16.msrb.mxu2 %v11935_v17 }
  0x87   : > { %1336 = vmatpush.bf16.msrb.mxu3 %v11942_v21 }
  0x89   : > { %1298 = vmatpush.bf16.msrb.mxu0 %v11937_v18 }
  0x8a   : > { %1311 = vmatpush.bf16.msrb.mxu1 %v11944_v22  ;;  %1324 = vmatpush.bf16.msrb.mxu2 %v11947_v25 }
  0x8b   : > { %1337 = vmatpush.bf16.msrb.mxu3 %v11949_v28 }
  0x93   : > { %8002 = vmatmul.msk.bf16.vlgmr.msra.gmra.mxu0 %vm733_vm1, %v12129_v19 }
  0x94   : > { %8003 = vmatmul.msk.bf16.vlgmr.msra.gmra.mxu1 %vm733_vm1, %v12129_v19  ;;  %8004 = vmatmul.msk.bf16.vlgmr.msra.gmra.mxu2 %vm733_vm1, %v12129_v19 }
  0x95   : > { %8005 = vmatmul.msk.bf16.vlgmr.msra.gmra.mxu3 %vm733_vm1, %v12129_v19  ;;  %1349 = vmatpush.bf16.msra.mxu0 %v11958_v40 }
  0x96   : > { %1362 = vmatpush.bf16.msra.mxu1 %v11963_v45  ;;  %1375 = vmatpush.bf16.msra.mxu2 %v11970_v48 }
  0x97   : > { %1388 = vmatpush.bf16.msra.mxu3 %v11973_v49 }
  0x99   : > { %1350 = vmatpush.bf16.msra.mxu0 %v11978_v52 }
  0x9a   : > { %1363 = vmatpush.bf16.msra.mxu1 %v11982_v55  ;;  %1376 = vmatpush.bf16.msra.mxu2 %v11984_v56 }
  0x9b   : > { %1389 = vmatpush.bf16.msra.mxu3 %v11987_v60 }
  0xa3   : > { %8006 = vmatmul.msk.bf16.vlgmr.msrb.gmra.mxu0 %vm733_vm1, %v12067_v34 }
  0xa4   : > { %8007 = vmatmul.msk.bf16.vlgmr.msrb.gmra.mxu1 %vm733_vm1, %v12067_v34  ;;  %8008 = vmatmul.msk.bf16.vlgmr.msrb.gmra.mxu2 %vm733_vm1, %v12067_v34 }
  0xa5   : > { %8009 = vmatmul.msk.bf16.vlgmr.msrb.gmra.mxu3 %vm733_vm1, %v12067_v34  ;;  %1401 = vmatpush.bf16.msrb.mxu0 %v11995_v5 }
  0xa6   : > { %1414 = vmatpush.bf16.msrb.mxu1 %v12000_v10  ;;  %1427 = vmatpush.bf16.msrb.mxu2 %v12003_v11 }
  0xa7   : > { %1440 = vmatpush.bf16.msrb.mxu3 %v12008_v14 }
  0xa9   : > { %1402 = vmatpush.bf16.msrb.mxu0 %v12010_v15 }
  0xaa   : > { %1415 = vmatpush.bf16.msrb.mxu1 %v12014_v23  ;;  %1428 = vmatpush.bf16.msrb.mxu2 %v12017_v30 }
  0xab   : > { %1441 = vmatpush.bf16.msrb.mxu3 %v12019_v31 }
  0xb3   : > { %8010 = vmatmul.msk.bf16.vlgmr.msra.gmra.mxu0 %vm733_vm1, %v11951_v29 }
  0xb4   : > { %8011 = vmatmul.msk.bf16.vlgmr.msra.gmra.mxu1 %vm733_vm1, %v11951_v29  ;;  %8012 = vmatmul.msk.bf16.vlgmr.msra.gmra.mxu2 %vm733_vm1, %v11951_v29 }
  0xb5   : > { %8013 = vmatmul.msk.bf16.vlgmr.msra.gmra.mxu3 %vm733_vm1, %v11951_v29  ;;  %1457 = vmatpush.bf16.msra.mxu0 %v12028_v47 }
  0xb6   : > { %1470 = vmatpush.bf16.msra.mxu1 %v12031_v51  ;;  %1483 = vmatpush.bf16.msra.mxu2 %v12034_v53 }
  0xb7   : > { %1496 = vmatpush.bf16.msra.mxu3 %v12043_v62 }
  0xb9   : > { %1458 = vmatpush.bf16.msra.mxu0 %v12048_v1 }
  0xba   : > { %1471 = vmatpush.bf16.msra.mxu1 %v12052_v2  ;;  %1484 = vmatpush.bf16.msra.mxu2 %v12054_v3 }
  0xbb   : > { %1497 = vmatpush.bf16.msra.mxu3 %v12057_v4 }
  0xc3   : > { %8014 = vmatmul.msk.bf16.vlgmr.msrb.gmra.mxu0 %vm733_vm1, %v12109_v7 }
  0xc4   : > { %8015 = vmatmul.msk.bf16.vlgmr.msrb.gmra.mxu1 %vm733_vm1, %v12109_v7  ;;  %8016 = vmatmul.msk.bf16.vlgmr.msrb.gmra.mxu2 %vm733_vm1, %v12109_v7 }
  0xc5   : > { %8017 = vmatmul.msk.bf16.vlgmr.msrb.gmra.mxu3 %vm733_vm1, %v12109_v7  ;;  %1522 = vmatpush.bf16.msrb.mxu0 %v12070_v36 }
  0xc6   : > { %1535 = vmatpush.bf16.msrb.mxu1 %v12073_v38  ;;  %1548 = vmatpush.bf16.msrb.mxu2 %v12076_v41 }
  0xc7   : > { %1561 = vmatpush.bf16.msrb.mxu3 %v12085_v54 }
  0xc9   : > { %1523 = vmatpush.bf16.msrb.mxu0 %v12090_v59 }
  0xca   : > { %1536 = vmatpush.bf16.msrb.mxu1 %v12094_v61  ;;  %1549 = vmatpush.bf16.msrb.mxu2 %v12096_v63 }
  0xcb   : > { %1562 = vmatpush.bf16.msrb.mxu3 %v12099_v0 }
  0xd0   : > { %v759_v39 = vpop.f32.mrf.mxu0 }
  0xd1   : > { %v772_v20 = vpop.f32.mrf.mxu1 }
  0xd3   : > { %8018 = vmatmul.msk.bf16.vlgmr.msra.gmra.mxu0 %vm733_vm1, %v12129_v19 }
  0xd4   : > { %8019 = vmatmul.msk.bf16.vlgmr.msra.gmra.mxu1 %vm733_vm1, %v12129_v19  ;;  %8020 = vmatmul.msk.bf16.vlgmr.msra.gmra.mxu2 %vm733_vm1, %v12129_v19 }
  0xd5   : > { %8021 = vmatmul.msk.bf16.vlgmr.msra.gmra.mxu3 %vm733_vm1, %v12129_v19  ;;  %1590 = vmatpush.bf16.msra.mxu0 %v11924_v12 }
  0xd6   : > { %1603 = vmatpush.bf16.msra.mxu1 %v11932_v16  ;;  %1616 = vmatpush.bf16.msra.mxu2 %v11935_v17 }
  0xd7   : > { %v785_v24 = vpop.f32.mrf.mxu2  ;;  %1629 = vmatpush.bf16.msra.mxu3 %v11942_v21 }
  0xd8   : > { %v798_v27 = vpop.f32.mrf.mxu3  ;;  %v761_v32 = vpop.f32.mrf.mxu0 }
  0xd9   : > { %v774_v33 = vpop.f32.mrf.mxu1  ;;  %1591 = vmatpush.bf16.msra.mxu0 %v11937_v18 }
  0xda   : > { %1604 = vmatpush.bf16.msra.mxu1 %v11944_v22  ;;  %1617 = vmatpush.bf16.msra.mxu2 %v11947_v25 }
  0xdb   : > { %1630 = vmatpush.bf16.msra.mxu3 %v11949_v28 }
  0xdf   : > { %v787_v42 = vpop.f32.mrf.mxu2 }
  0xe0   : > { %v800_v44 = vpop.f32.mrf.mxu3  ;;  %v862_v46 = vpop.f32.mrf.mxu0 }
  0xe1   : > { %v863_v50 = vadd.f32 %v862_v46, %v759_v39  ;;  %v875_v57 = vpop.f32.mrf.mxu1 }
  0xe2   : > { %v876_v58 = vadd.f32 %v875_v57, %v772_v20 }
  0xe3   : > { %8022 = vmatmul.msk.bf16.vlgmr.msrb.gmra.mxu0 %vm733_vm1, %v12213_v43 }
  0xe4   : > { %8023 = vmatmul.msk.bf16.vlgmr.msrb.gmra.mxu1 %vm733_vm1, %v12213_v43  ;;  %8024 = vmatmul.msk.bf16.vlgmr.msrb.gmra.mxu2 %vm733_vm1, %v12213_v43 }
  0xe5   : > { %8025 = vmatmul.msk.bf16.vlgmr.msrb.gmra.mxu3 %vm733_vm1, %v12213_v43  ;;  %1642 = vmatpush.bf16.msrb.mxu0 %v11958_v40 }
  0xe6   : > { %1655 = vmatpush.bf16.msrb.mxu1 %v11963_v45  ;;  %1668 = vmatpush.bf16.msrb.mxu2 %v11970_v48 }
  0xe7   : > { %v888_v29 = vpop.f32.mrf.mxu2  ;;  %1681 = vmatpush.bf16.msrb.mxu3 %v11973_v49 }
  0xe8   : > { %v889_v6 = vadd.f32 %v888_v29, %v785_v24  ;;  %v901_v8 = vpop.f32.mrf.mxu3  ;;  %v864_v9 = vpop.f32.mrf.mxu0 }
  0xe9   : > { %v902_v13 = vadd.f32 %v901_v8, %v798_v27  ;;  %v877_v39 = vpop.f32.mrf.mxu1  ;;  %1643 = vmatpush.bf16.msrb.mxu0 %v11978_v52 }
  0xea   : > { %1656 = vmatpush.bf16.msrb.mxu1 %v11982_v55  ;;  %1669 = vmatpush.bf16.msrb.mxu2 %v11984_v56 }
  0xeb   : > { %1682 = vmatpush.bf16.msrb.mxu3 %v11987_v60 }
  0xef   : > { %v890_v20 = vpop.f32.mrf.mxu2 }
  0xf0   : > { %v903_v26 = vpop.f32.mrf.mxu3  ;;  %v975_v32 = vpop.f32.mrf.mxu0 }
  0xf1   : > { %v1018_v33 = vadd.f32 %v975_v32, %v863_v50  ;;  %v988_v35 = vpop.f32.mrf.mxu1 }
  0xf2   : > { %v1019_v37 = vadd.f32 %v988_v35, %v876_v58 }
  0xf3   : > { %8026 = vmatmul.msk.bf16.vlgmr.msra.gmra.mxu0 %vm733_vm1, %v12109_v7 }
  0xf4   : > { %8027 = vmatmul.msk.bf16.vlgmr.msra.gmra.mxu1 %vm733_vm1, %v12109_v7  ;;  %8028 = vmatmul.msk.bf16.vlgmr.msra.gmra.mxu2 %vm733_vm1, %v12109_v7 }
  0xf5   : > { %8029 = vmatmul.msk.bf16.vlgmr.msra.gmra.mxu3 %vm733_vm1, %v12109_v7  ;;  %1694 = vmatpush.bf16.msra.mxu0 %v11995_v5 }
  0xf6   : > { %1707 = vmatpush.bf16.msra.mxu1 %v12000_v10  ;;  %1720 = vmatpush.bf16.msra.mxu2 %v12003_v11 }
  0xf7   : > { %v1001_v24 = vpop.f32.mrf.mxu2  ;;  %1733 = vmatpush.bf16.msra.mxu3 %v12008_v14 }
  0xf8   : > { %v1020_v27 = vadd.f32 %v1001_v24, %v889_v6  ;;  %v1014_v42 = vpop.f32.mrf.mxu3  ;;  %v977_v44 = vpop.f32.mrf.mxu0 }
  0xf9   : > { %v1021_v46 = vadd.f32 %v1014_v42, %v902_v13  ;;  %v990_v50 = vpop.f32.mrf.mxu1  ;;  %1695 = vmatpush.bf16.msra.mxu0 %v12010_v15 }
  0xfa   : > { %1708 = vmatpush.bf16.msra.mxu1 %v12014_v23  ;;  %1721 = vmatpush.bf16.msra.mxu2 %v12017_v30 }
  0xfb   : > { %1734 = vmatpush.bf16.msra.mxu3 %v12019_v31 }
  0xff   : > { %v1003_v57 = vpop.f32.mrf.mxu2 }
 0x100   : > { %v1016_v58 = vpop.f32.mrf.mxu3  ;;  %v1092_v29 = vpop.f32.mrf.mxu0 }
 0x101   : > { %v1135_v8 = vadd.f32 %v1092_v29, %v1018_v33  ;;  %v1105_v9 = vpop.f32.mrf.mxu1  ;;  %v669_v58 = vld [vmem:[#allocation7] sm:$0xf] }
 0x102   : > { %v1136_v39 = vadd.f32 %v1105_v9, %v1019_v37  ;;  %v668_v37 = vld [vmem:[#allocation5] sm:$0xf] }
 0x103   : > { %8030 = vmatmul.msk.bf16.vlgmr.msrb.gmra.mxu0 %vm733_vm1, %v12067_v34  ;;  %v12263_v57 = vperm.slane %v668_v37, 0  ;;  %v12279_v9 = vperm.slane %v668_v37, 2 }
 0x104   : > { %8031 = vmatmul.msk.bf16.vlgmr.msrb.gmra.mxu1 %vm733_vm1, %v12067_v34  ;;  %8032 = vmatmul.msk.bf16.vlgmr.msrb.gmra.mxu2 %vm733_vm1, %v12067_v34 }
 0x105   : > { %8033 = vmatmul.msk.bf16.vlgmr.msrb.gmra.mxu3 %vm733_vm1, %v12067_v34  ;;  %1750 = vmatpush.bf16.msrb.mxu0 %v12028_v47  ;;  %14473 = vst [vmem:[#allocation38_spill] sm:$0xff] %v12279_v9 }
 0x106   : > { %1763 = vmatpush.bf16.msrb.mxu1 %v12031_v51  ;;  %1776 = vmatpush.bf16.msrb.mxu2 %v12034_v53 }
 0x107   : > { %v1118_v6 = vpop.f32.mrf.mxu2  ;;  %1789 = vmatpush.bf16.msrb.mxu3 %v12043_v62 }
 0x108   : > { %v1137_v13 = vadd.f32 %v1118_v6, %v1020_v27  ;;  %v1131_v20 = vpop.f32.mrf.mxu3  ;;  %v1094_v26 = vpop.f32.mrf.mxu0  ;;  %v12284_v6 = vperm.slane %v669_v58, 1 }
 0x109   : > { %v1138_v32 = vadd.f32 %v1131_v20, %v1021_v46  ;;  %v1107_v33 = vpop.f32.mrf.mxu1  ;;  %1751 = vmatpush.bf16.msrb.mxu0 %v12048_v1  ;;  %v12265_v46 = vperm.slane %v668_v37, 1  ;;  %v12286_v26 = vperm.slane %v668_v37, 3 }
 0x10a   : > { %1764 = vmatpush.bf16.msrb.mxu1 %v12052_v2  ;;  %1777 = vmatpush.bf16.msrb.mxu2 %v12054_v3 }
 0x10b   : > { %1790 = vmatpush.bf16.msrb.mxu3 %v12057_v4  ;;  %14472 = vst [vmem:[#allocation37_spill] sm:$0xff] %v12265_v46 }
 0x10f   : > { %v1120_v35 = vpop.f32.mrf.mxu2 }
 0x110   : > { %v1133_v24 = vpop.f32.mrf.mxu3  ;;  %v1214_v42 = vpop.f32.mrf.mxu0  ;;  %v12289_v35 = vperm.slane %v669_v58, 2 }
 0x111   : > { %v1257_v44 = vadd.f32 %v1214_v42, %v1135_v8  ;;  %v1227_v50 = vpop.f32.mrf.mxu1  ;;  %v12277_v8 = vperm.slane %v669_v58, 0 }
 0x112   : > { %v1258_v27 = vadd.f32 %v1227_v50, %v1136_v39  ;;  %v12291_v50 = vperm.slane %v669_v58, 3 }
 0x113   : > { %8034 = vmatmul.msk.bf16.vlgmr.msra.gmra.mxu0 %vm733_vm1, %v12129_v19  ;;  %v1270_v29 = vmul.f32 %v12263_v57, %v1257_v44 }
 0x114   : > { %8035 = vmatmul.msk.bf16.vlgmr.msra.gmra.mxu1 %vm733_vm1, %v12129_v19  ;;  %8036 = vmatmul.msk.bf16.vlgmr.msra.gmra.mxu2 %vm733_vm1, %v12129_v19  ;;  %v1271_v39 = vmul.f32 %v12265_v46, %v1258_v27 }
 0x115   : > { %8037 = vmatmul.msk.bf16.vlgmr.msra.gmra.mxu3 %vm733_vm1, %v12129_v19  ;;  %1815 = vmatpush.bf16.msra.mxu0 %v12070_v36  ;;  %v1283_v27 = vadd.f32 %v12277_v8, %v1270_v29 }
 0x116   : > { %1828 = vmatpush.bf16.msra.mxu1 %v12073_v38  ;;  %1841 = vmatpush.bf16.msra.mxu2 %v12076_v41 }
 0x117   : > { %v1240_v20 = vpop.f32.mrf.mxu2  ;;  %1854 = vmatpush.bf16.msra.mxu3 %v12085_v54  ;;  %v1287_v58 = vmax.f32 %v1283_v27, 0.0 }
 0x118   : > { %v1259_v33 = vadd.f32 %v1240_v20, %v1137_v13  ;;  %v1253_v24 = vpop.f32.mrf.mxu3  ;;  %v1216_v42 = vpop.f32.mrf.mxu0  ;;  %v1284_v13 = vadd.f32 %v12284_v6, %v1271_v39 }
 0x119   : > { %v1260_v44 = vadd.f32 %v1253_v24, %v1138_v32  ;;  %v1229_v38 = vpop.f32.mrf.mxu1  ;;  %1816 = vmatpush.bf16.msra.mxu0 %v12090_v59 }
 0x11a   : > { %v1272_v46 = vmul.f32 %v12279_v9, %v1259_v33  ;;  %1829 = vmatpush.bf16.msra.mxu1 %v12094_v61  ;;  %1842 = vmatpush.bf16.msra.mxu2 %v12096_v63  ;;  %v1288_v24 = vmax.f32 %v1284_v13, 0.0 }
 0x11b   : > { %v1273_v37 = vmul.f32 %v12286_v26, %v1260_v44  ;;  %1855 = vmatpush.bf16.msra.mxu3 %v12099_v0 }
 0x11c   : > { %v1285_v32 = vadd.f32 %v12289_v35, %v1272_v46  ;;  %v1802_v46 = vshll.u32 %v12067_v34, 16 }
 0x11d   : > { %v1286_v38 = vadd.f32 %v12291_v50, %v1273_v37 }
 0x11e   : > { %v1289_v20 = vmax.f32 %v1285_v32, 0.0  ;;  %v1804_v37 = vrot.slane %v1802_v46, 1 }
 0x11f   : > { %v1290_v29 = vmax.f32 %v1286_v38, 0.0  ;;  %v1242_v42 = vpop.f32.mrf.mxu2 }
 0x120   : > { %v12303_v33 = vmax.f32 %v1287_v58, %v1289_v20  ;;  %v1255_v61 = vpop.f32.mrf.mxu3  ;;  %v1300_v9 = vpop.f32.mrf.mxu0 }
 0x121   : > { %v12305_v63 = vmax.f32 %v1288_v24, %v1290_v29  ;;  %v1313_v39 = vpop.f32.mrf.mxu1 }
 0x123   : > { %8038 = vmatmul.msk.bf16.vlgmr.msrb.gmra.mxu0 %vm733_vm1, %v12213_v43 }
 0x124   : > { %8039 = vmatmul.msk.bf16.vlgmr.msrb.gmra.mxu1 %vm733_vm1, %v12213_v43  ;;  %8040 = vmatmul.msk.bf16.vlgmr.msrb.gmra.mxu2 %vm733_vm1, %v12213_v43 }
 0x125   : > { %8041 = vmatmul.msk.bf16.vlgmr.msrb.gmra.mxu3 %vm733_vm1, %v12213_v43  ;;  %1883 = vmatpush.bf16.msrb.mxu0 %v11924_v12  ;;  %v1800_v12 = vshrl.u32 %v12067_v34, 16 }
 0x126   : > { %1896 = vmatpush.bf16.msrb.mxu1 %v11932_v16  ;;  %1909 = vmatpush.bf16.msrb.mxu2 %v11935_v17 }
 0x127   : > { %v1326_v61 = vpop.f32.mrf.mxu2  ;;  %1922 = vmatpush.bf16.msrb.mxu3 %v11942_v21  ;;  %v12325_v17 = vor.u32 %v1804_v37, %v1800_v12 }
 0x128   : > { %v1339_v44 = vpop.f32.mrf.mxu3  ;;  %v1302_v27 = vpop.f32.mrf.mxu0 }
 0x129   : > { %v1315_v13 = vpop.f32.mrf.mxu1  ;;  %1884 = vmatpush.bf16.msrb.mxu0 %v11937_v18 }
 0x12a   : > { %1897 = vmatpush.bf16.msrb.mxu1 %v11944_v22  ;;  %1910 = vmatpush.bf16.msrb.mxu2 %v11947_v25 }
 0x12b   : > { %1923 = vmatpush.bf16.msrb.mxu3 %v11949_v28 }
 0x12f   : > { %v1328_v16 = vpop.f32.mrf.mxu2 }
 0x130   : > { %v1341_v32 = vpop.f32.mrf.mxu3  ;;  %v1352_v38 = vpop.f32.mrf.mxu0 }
 0x131   : > { %v1353_v21 = vadd.f32 %v1352_v38, %v1300_v9  ;;  %v1365_v58 = vpop.f32.mrf.mxu1 }
 0x132   : > { %v1366_v20 = vadd.f32 %v1365_v58, %v1313_v39 }
 0x133   : > { %8042 = vmatmul.msk.bf16.vlgmr.msra.gmra.mxu0 %vm733_vm1, %v12325_v17 }
 0x134   : > { %8043 = vmatmul.msk.bf16.vlgmr.msra.gmra.mxu1 %vm733_vm1, %v12325_v17  ;;  %8044 = vmatmul.msk.bf16.vlgmr.msra.gmra.mxu2 %vm733_vm1, %v12325_v17 }
 0x135   : > { %8045 = vmatmul.msk.bf16.vlgmr.msra.gmra.mxu3 %vm733_vm1, %v12325_v17  ;;  %1935 = vmatpush.bf16.msra.mxu0 %v11958_v40 }
 0x136   : > { %1948 = vmatpush.bf16.msra.mxu1 %v11963_v45  ;;  %1961 = vmatpush.bf16.msra.mxu2 %v11970_v48 }
 0x137   : > { %v1378_v18 = vpop.f32.mrf.mxu2  ;;  %1974 = vmatpush.bf16.msra.mxu3 %v11973_v49 }
 0x138   : > { %v1379_v22 = vadd.f32 %v1378_v18, %v1326_v61  ;;  %v1391_v25 = vpop.f32.mrf.mxu3  ;;  %v1354_v28 = vpop.f32.mrf.mxu0  ;;  %v14478_v18 = vld [vmem:[#allocation36_spill] sm:$0xff] }
 0x139   : > { %v1392_v34 = vadd.f32 %v1391_v25, %v1339_v44  ;;  %v1367_v9 = vpop.f32.mrf.mxu1  ;;  %1936 = vmatpush.bf16.msra.mxu0 %v11978_v52 }
 0x13a   : > { %1949 = vmatpush.bf16.msra.mxu1 %v11982_v55  ;;  %1962 = vmatpush.bf16.msra.mxu2 %v11984_v56 }
 0x13b   : > { %1975 = vmatpush.bf16.msra.mxu3 %v11987_v60 }
 0x13f   : > { %v1380_v40 = vpop.f32.mrf.mxu2 }
 0x140   : > { %v1393_v45 = vpop.f32.mrf.mxu3  ;;  %v1404_v24 = vpop.f32.mrf.mxu0 }
 0x141   : > { %v1447_v48 = vadd.f32 %v1404_v24, %v1353_v21  ;;  %v1417_v29 = vpop.f32.mrf.mxu1 }
 0x142   : > { %v1448_v42 = vadd.f32 %v1417_v29, %v1366_v20  ;;  %v14477_v20 = vld [vmem:[#allocation35_spill] sm:$0xff] }
 0x143   : > { %8046 = vmatmul.msk.bf16.vlgmr.msrb.gmra.mxu0 %vm733_vm1, %v12129_v19 }
 0x144   : > { %8047 = vmatmul.msk.bf16.vlgmr.msrb.gmra.mxu1 %vm733_vm1, %v12129_v19  ;;  %8048 = vmatmul.msk.bf16.vlgmr.msrb.gmra.mxu2 %vm733_vm1, %v12129_v19 }
 0x145   : > { %8049 = vmatmul.msk.bf16.vlgmr.msrb.gmra.mxu3 %vm733_vm1, %v12129_v19  ;;  %1987 = vmatpush.bf16.msrb.mxu0 %v11995_v5 }
 0x146   : > { %2000 = vmatpush.bf16.msrb.mxu1 %v12000_v10  ;;  %2013 = vmatpush.bf16.msrb.mxu2 %v12003_v11 }
 0x147   : > { %v1430_v49 = vpop.f32.mrf.mxu2  ;;  %2026 = vmatpush.bf16.msrb.mxu3 %v12008_v14 }
 0x148   : > { %v1449_v52 = vadd.f32 %v1430_v49, %v1379_v22  ;;  %v1443_v55 = vpop.f32.mrf.mxu3  ;;  %v1406_v56 = vpop.f32.mrf.mxu0 }
 0x149   : > { %v1450_v60 = vadd.f32 %v1443_v55, %v1392_v34  ;;  %v1419_v39 = vpop.f32.mrf.mxu1  ;;  %1988 = vmatpush.bf16.msrb.mxu0 %v12010_v15  ;;  %v2095_v55 = vshll.u32 %v12109_v7, 16 }
 0x14a   : > { %2001 = vmatpush.bf16.msrb.mxu1 %v12014_v23  ;;  %2014 = vmatpush.bf16.msrb.mxu2 %v12017_v30 }
 0x14b   : > { %2027 = vmatpush.bf16.msrb.mxu3 %v12019_v31  ;;  %v2097_v39 = vrot.slane %v2095_v55, 1 }
 0x14f   : > { %v1432_v5 = vpop.f32.mrf.mxu2 }
 0x150   : > { %v1445_v10 = vpop.f32.mrf.mxu3  ;;  %v1460_v19 = vpop.f32.mrf.mxu0 }
 0x151   : > { %v1503_v11 = vadd.f32 %v1460_v19, %v1447_v48  ;;  %v1473_v61 = vpop.f32.mrf.mxu1 }
 0x152   : > { %v1504_v46 = vadd.f32 %v1473_v61, %v1448_v42 }
 0x153   : > { %8050 = vmatmul.msk.bf16.vlgmr.msra.gmra.mxu0 %vm733_vm1, %v12109_v7 }
 0x154   : > { %8051 = vmatmul.msk.bf16.vlgmr.msra.gmra.mxu1 %vm733_vm1, %v12109_v7  ;;  %8052 = vmatmul.msk.bf16.vlgmr.msra.gmra.mxu2 %vm733_vm1, %v12109_v7 }
 0x155   : > { %8053 = vmatmul.msk.bf16.vlgmr.msra.gmra.mxu3 %vm733_vm1, %v12109_v7  ;;  %2043 = vmatpush.bf16.msra.mxu0 %v12028_v47 }
 0x156   : > { %2056 = vmatpush.bf16.msra.mxu1 %v12031_v51  ;;  %2069 = vmatpush.bf16.msra.mxu2 %v12034_v53 }
 0x157   : > { %v1486_v14 = vpop.f32.mrf.mxu2  ;;  %2082 = vmatpush.bf16.msra.mxu3 %v12043_v62 }
 0x158   : > { %v1505_v15 = vadd.f32 %v1486_v14, %v1449_v52  ;;  %v1499_v23 = vpop.f32.mrf.mxu3  ;;  %v1462_v30 = vpop.f32.mrf.mxu0 }
 0x159   : > { %v1506_v31 = vadd.f32 %v1499_v23, %v1450_v60  ;;  %v1475_v44 = vpop.f32.mrf.mxu1  ;;  %2044 = vmatpush.bf16.msra.mxu0 %v12048_v1  ;;  %v14474_v1 = vld [vmem:[#allocation34_spill] sm:$0xff] }
 0x15a   : > { %2057 = vmatpush.bf16.msra.mxu1 %v12052_v2  ;;  %2070 = vmatpush.bf16.msra.mxu2 %v12054_v3  ;;  %v14475_v2 = vld [vmem:[#allocation37_spill] sm:$0xff] }
 0x15b   : > { %2083 = vmatpush.bf16.msra.mxu3 %v12057_v4 }
 0x15f   : > { %v1488_v47 = vpop.f32.mrf.mxu2 }
 0x160   : > { %v1501_v51 = vpop.f32.mrf.mxu3  ;;  %v1525_v27 = vpop.f32.mrf.mxu0 }
 0x161   : > { %v1568_v53 = vadd.f32 %v1525_v27, %v1503_v11  ;;  %v1538_v13 = vpop.f32.mrf.mxu1 }
 0x162   : > { %v1569_v12 = vadd.f32 %v1538_v13, %v1504_v46 }
 0x163   : > { %8054 = vmatmul.msk.bf16.vlgmr.msrb.gmra.mxu0 %vm733_vm1, %v12213_v43  ;;  %v1572_v62 = vmul.f32 %v1568_v53, %v12263_v57 }
 0x164   : > { %8055 = vmatmul.msk.bf16.vlgmr.msrb.gmra.mxu1 %vm733_vm1, %v12213_v43  ;;  %8056 = vmatmul.msk.bf16.vlgmr.msrb.gmra.mxu2 %vm733_vm1, %v12213_v43  ;;  %v1573_v3 = vmul.f32 %v1569_v12, %v14475_v2 }
 0x165   : > { %8057 = vmatmul.msk.bf16.vlgmr.msrb.gmra.mxu3 %vm733_vm1, %v12213_v43  ;;  %2108 = vmatpush.bf16.msrb.mxu0 %v12070_v36  ;;  %v1576_v36 = vadd.f32 %v1572_v62, %v12277_v8  ;;  %v14476_v43 = vld [vmem:[#allocation38_spill] sm:$0xff] }
 0x166   : > { %2121 = vmatpush.bf16.msrb.mxu1 %v14474_v1  ;;  %2134 = vmatpush.bf16.msrb.mxu2 %v12076_v41  ;;  %v1577_v41 = vadd.f32 %v1573_v3, %v12284_v6 }
 0x167   : > { %v1551_v4 = vpop.f32.mrf.mxu2  ;;  %2147 = vmatpush.bf16.msrb.mxu3 %v12085_v54  ;;  %v1580_v28 = vmax.f32 %v1576_v36, 0.0 }
 0x168   : > { %v1570_v37 = vadd.f32 %v1551_v4, %v1505_v15  ;;  %v1564_v16 = vpop.f32.mrf.mxu3  ;;  %v1527_v32 = vpop.f32.mrf.mxu0  ;;  %v1581_v34 = vmax.f32 %v1577_v41, 0.0 }
 0x169   : > { %v1571_v38 = vadd.f32 %v1564_v16, %v1506_v31  ;;  %v1540_v21 = vpop.f32.mrf.mxu1  ;;  %2109 = vmatpush.bf16.msrb.mxu0 %v12090_v59 }
 0x16a   : > { %v1574_v58 = vmul.f32 %v1570_v37, %v14476_v43  ;;  %2122 = vmatpush.bf16.msrb.mxu1 %v14477_v20  ;;  %2135 = vmatpush.bf16.msrb.mxu2 %v14478_v18 }
 0x16b   : > { %v1575_v22 = vmul.f32 %v1571_v38, %v12286_v26  ;;  %2148 = vmatpush.bf16.msrb.mxu3 %v12099_v0 }
 0x16c   : > { %v1578_v54 = vadd.f32 %v1574_v58, %v12289_v35 }
 0x16d   : > { %v1579_v25 = vadd.f32 %v1575_v22, %v12291_v50 }
 0x16e   : > { %v1582_v59 = vmax.f32 %v1578_v54, 0.0 }
 0x16f   : > { %v1583_v9 = vmax.f32 %v1579_v25, 0.0  ;;  %v1553_v40 = vpop.f32.mrf.mxu2 }
 0x170   : > { %v2172_v45 = vmax.f32 %v1580_v28, %v1582_v59  ;;  %v1566_v24 = vpop.f32.mrf.mxu3  ;;  %v1593_v48 = vpop.f32.mrf.mxu0 }
 0x171   : > { %v2173_v29 = vmax.f32 %v1581_v34, %v1583_v9  ;;  %v1606_v42 = vpop.f32.mrf.mxu1 }
 0x172   : > { %v12400_v49 = vmax.f32 %v12303_v33, %v2172_v45 }
 0x173   : > { %v12403_v52 = vmax.f32 %v12305_v63, %v2173_v29  ;;  %8058 = vmatmul.msk.bf16.vlgmr.msra.gmra.mxu0 %vm733_vm1, %v12325_v17  ;;  %v2093_v63 = vshrl.u32 %v12109_v7, 16 }
 0x174   : > { %8059 = vmatmul.msk.bf16.vlgmr.msra.gmra.mxu1 %vm733_vm1, %v12325_v17  ;;  %8060 = vmatmul.msk.bf16.vlgmr.msra.gmra.mxu2 %vm733_vm1, %v12325_v17 }
 0x175   : > { %8061 = vmatmul.msk.bf16.vlgmr.msra.gmra.mxu3 %vm733_vm1, %v12325_v17  ;;  %v2098_v10 = vor.u32 %v2097_v39, %v2093_v63  ;;  %v10634_v63 = vld [vmem:[#allocation8 + $0x2ec] sm:$0xf0]  ;;  %v8308_v39 = vld [vmem:[#allocation8 + $0x3e0] sm:$0xf] }
 0x177   : > { %v1619_v0 = vpop.f32.mrf.mxu2 }
 0x178   : > { %v1632_v33 = vpop.f32.mrf.mxu3  ;;  %v1595_v56 = vpop.f32.mrf.mxu0 }
 0x179   : > { %v1608_v60 = vpop.f32.mrf.mxu1 }
 0x17a   : > { %v8180_v60 = vld [vmem:[#allocation8 + $0x2e0] sm:$0xf] }
 0x17f   : > { %v1621_v5 = vpop.f32.mrf.mxu2 }
 0x180   : > { %v1634_v19 = vpop.f32.mrf.mxu3  ;;  %v1645_v11 = vpop.f32.mrf.mxu0 }
 0x181   : > { %v1646_v61 = vadd.f32 %v1645_v11, %v1593_v48  ;;  %v1658_v46 = vpop.f32.mrf.mxu1  ;;  %v12423_v19 = vor.u32 %v10634_v63, %v8180_v60  ;;  %v10666_v11 = vld [vmem:[#allocation8 + $0x3ec] sm:$0xf0]  ;;  %v8260_v60 = vld [vmem:[#allocation8 + $0x380] sm:$0xf] }
 0x182   : > { %v1659_v14 = vadd.f32 %v1658_v46, %v1606_v42  ;;  %v8182_v46 = vld [vmem:[#allocation8 + $0x2f0] sm:$0xf0] }
 0x183   : > { %8062 = vmatmul.msk.bf16.vlgmr.msrb.gmra.mxu0 %vm733_vm1, %v2098_v10 }
 0x184   : > { %8063 = vmatmul.msk.bf16.vlgmr.msrb.gmra.mxu1 %vm733_vm1, %v2098_v10  ;;  %8064 = vmatmul.msk.bf16.vlgmr.msrb.gmra.mxu2 %vm733_vm1, %v2098_v10 }
 0x185   : > { %8065 = vmatmul.msk.bf16.vlgmr.msrb.gmra.mxu3 %vm733_vm1, %v2098_v10  ;;  %2635 = vmatpush.bf16.msra.mxu0 %v12423_v19 }
 0x187   : > { %v1671_v17 = vpop.f32.mrf.mxu2 }
 0x188   : > { %v1672_v15 = vadd.f32 %v1671_v17, %v1619_v0  ;;  %v1684_v23 = vpop.f32.mrf.mxu3  ;;  %v1647_v7 = vpop.f32.mrf.mxu0 }
 0x189   : > { %v1685_v30 = vadd.f32 %v1684_v23, %v1632_v33  ;;  %v1660_v31 = vpop.f32.mrf.mxu1  ;;  %v10664_v7 = vld [vmem:[#allocation8 + $0x3e4] sm:$0xf] }
 0x18f   : > { %v1673_v44 = vpop.f32.mrf.mxu2 }
 0x190   : > { %v1686_v47 = vpop.f32.mrf.mxu3  ;;  %v1697_v51 = vpop.f32.mrf.mxu0 }
 0x191   : > { %v1740_v27 = vadd.f32 %v1697_v51, %v1646_v61  ;;  %v1710_v53 = vpop.f32.mrf.mxu1  ;;  %v10632_v61 = vld [vmem:[#allocation8 + $0x2e4] sm:$0xf] }
 0x192   : > { %v1741_v13 = vadd.f32 %v1710_v53, %v1659_v14  ;;  %v12429_v23 = vor.u32 %v10632_v61, %v8182_v46  ;;  %v8164_v53 = vld [vmem:[#allocation8 + $0x2c0] sm:$0xf] }
 0x194   : > { %2661 = vmatpush.bf16.msra.mxu2 %v12429_v23 }
 0x197   : > { %v1723_v12 = vpop.f32.mrf.mxu2 }
 0x198   : > { %v1742_v62 = vadd.f32 %v1723_v12, %v1672_v15  ;;  %v1736_v1 = vpop.f32.mrf.mxu3  ;;  %v1699_v3 = vpop.f32.mrf.mxu0  ;;  %v12427_v15 = vor.u32 %v10666_v11, %v8308_v39  ;;  %v8134_v11 = vld [vmem:[#allocation8 + $0x290] sm:$0xf0] }
 0x199   : > { %v1743_v4 = vadd.f32 %v1736_v1, %v1685_v30  ;;  %v1712_v37 = vpop.f32.mrf.mxu1  ;;  %v8310_v30 = vld [vmem:[#allocation8 + $0x3f0] sm:$0xf0] }
 0x19a   : > { %v12433_v44 = vor.u32 %v10664_v7, %v8310_v30  ;;  %2648 = vmatpush.bf16.msra.mxu1 %v12427_v15  ;;  %v10662_v37 = vld [vmem:[#allocation8 + $0x3cc] sm:$0xf0]  ;;  %v10652_v7 = vld [vmem:[#allocation8 + $0x384] sm:$0xf]  ;;  %v8262_v30 = vld [vmem:[#allocation8 + $0x390] sm:$0xf0] }
 0x19c   : > { %2674 = vmatpush.bf16.msra.mxu3 %v12433_v44 }
 0x19f   : > { %v1725_v16 = vpop.f32.mrf.mxu2 }
 0x1a0   : > { %v1738_v32 = vpop.f32.mrf.mxu3  ;;  %v1753_v38 = vpop.f32.mrf.mxu0 }
 0x1a1   : > { %v1796_v21 = vadd.f32 %v1753_v38, %v1740_v27  ;;  %v1766_v36 = vpop.f32.mrf.mxu1 }
 0x1a2   : > { %v1797_v58 = vadd.f32 %v1766_v36, %v1741_v13  ;;  %v10630_v13 = vld [vmem:[#allocation8 + $0x2cc] sm:$0xf0]  ;;  %v10628_v36 = vld [vmem:[#allocation8 + $0x2c4] sm:$0xf] }
 0x1a3   : > { %v12439_v3 = vor.u32 %v10630_v13, %v8164_v53  ;;  %v8244_v53 = vld [vmem:[#allocation8 + $0x360] sm:$0xf] }
 0x1a5   : > { %2636 = vmatpush.bf16.msra.mxu0 %v12439_v3 }
 0x1a7   : > { %v1779_v20 = vpop.f32.mrf.mxu2 }
 0x1a8   : > { %v1798_v18 = vadd.f32 %v1779_v20, %v1742_v62  ;;  %v1792_v41 = vpop.f32.mrf.mxu3  ;;  %v1755_v22 = vpop.f32.mrf.mxu0  ;;  %v10660_v20 = vld [vmem:[#allocation8 + $0x3c4] sm:$0xf] }
 0x1a9   : > { %v1799_v54 = vadd.f32 %v1792_v41, %v1743_v4  ;;  %v1768_v25 = vpop.f32.mrf.mxu1  ;;  %v8292_v4 = vld [vmem:[#allocation8 + $0x3c0] sm:$0xf] }
 0x1af   : > { %v1781_v28 = vpop.f32.mrf.mxu2 }
 0x1b0   : > { %v1794_v59 = vpop.f32.mrf.mxu3  ;;  %v1818_v34 = vpop.f32.mrf.mxu0  ;;  %v8148_v28 = vld [vmem:[#allocation8 + $0x2a0] sm:$0xf] }
 0x1b1   : > { %v1861_v9 = vadd.f32 %v1818_v34, %v1796_v21  ;;  %v1831_v40 = vpop.f32.mrf.mxu1  ;;  %v12445_v21 = vor.u32 %v10662_v37, %v8292_v4  ;;  %v10626_v59 = vld [vmem:[#allocation8 + $0x2ac] sm:$0xf0]  ;;  %v8276_v34 = vld [vmem:[#allocation8 + $0x3a0] sm:$0xf] }
 0x1b2   : > { %v1862_v45 = vadd.f32 %v1831_v40, %v1797_v58  ;;  %v8166_v58 = vld [vmem:[#allocation8 + $0x2d0] sm:$0xf0]  ;;  %v10658_v40 = vld [vmem:[#allocation8 + $0x3ac] sm:$0xf0] }
 0x1b3   : > { %v1865_v24 = vmul.f32 %v1861_v9, %v12263_v57  ;;  %v12452_v22 = vor.u32 %v10628_v36, %v8166_v58  ;;  %2649 = vmatpush.bf16.msra.mxu1 %v12445_v21  ;;  %v12458_v9 = vor.u32 %v10626_v59, %v8148_v28  ;;  %v8246_v36 = vld [vmem:[#allocation8 + $0x370] sm:$0xf0]  ;;  %v8228_v28 = vld [vmem:[#allocation8 + $0x340] sm:$0xf] }
 0x1b4   : > { %v1866_v48 = vmul.f32 %v1862_v45, %v14475_v2  ;;  %v10624_v45 = vld [vmem:[#allocation8 + $0x2a4] sm:$0xf] }
 0x1b5   : > { %v1869_v5 = vadd.f32 %v1865_v24, %v12277_v8  ;;  %2662 = vmatpush.bf16.msra.mxu2 %v12452_v22  ;;  %v8150_v24 = vld [vmem:[#allocation8 + $0x2b0] sm:$0xf0]  ;;  %2637 = vmatpush.bf16.msra.mxu0 %v12458_v9 }
 0x1b6   : > { %v1870_v14 = vadd.f32 %v1866_v48, %v12284_v6  ;;  %v12461_v48 = vor.u32 %v10658_v40, %v8276_v34  ;;  %v10646_v40 = vld [vmem:[#allocation8 + $0x34c] sm:$0xf0] }
 0x1b7   : > { %v1844_v29 = vpop.f32.mrf.mxu2  ;;  %v1873_v51 = vmax.f32 %v1869_v5, 0.0  ;;  %v10654_v5 = vld [vmem:[#allocation8 + $0x38c] sm:$0xf0] }
 0x1b8   : > { %v1863_v42 = vadd.f32 %v1844_v29, %v1798_v18  ;;  %v1857_v0 = vpop.f32.mrf.mxu3  ;;  %v1820_v55 = vpop.f32.mrf.mxu0  ;;  %v1874_v12 = vmax.f32 %v1870_v14, 0.0  ;;  %v12463_v29 = vor.u32 %v10624_v45, %v8150_v24  ;;  %2650 = vmatpush.bf16.msra.mxu1 %v12461_v48  ;;  %v12477_v14 = vor.u32 %v10654_v5, %v8260_v60  ;;  %v10612_v45 = vld [vmem:[#allocation8 + $0x244] sm:$0xf]  ;;  %v8102_v24 = vld [vmem:[#allocation8 + $0x250] sm:$0xf0] }
 0x1b9   : > { %v1864_v33 = vadd.f32 %v1857_v0, %v1799_v54  ;;  %v1833_v56 = vpop.f32.mrf.mxu1  ;;  %v8294_v54 = vld [vmem:[#allocation8 + $0x3d0] sm:$0xf0]  ;;  %v10644_v60 = vld [vmem:[#allocation8 + $0x344] sm:$0xf] }
 0x1ba   : > { %v1867_v10 = vmul.f32 %v1863_v42, %v14476_v43  ;;  %v12455_v25 = vor.u32 %v10660_v20, %v8294_v54  ;;  %v10656_v42 = vld [vmem:[#allocation8 + $0x3a4] sm:$0xf]  ;;  %v8278_v0 = vld [vmem:[#allocation8 + $0x3b0] sm:$0xf0]  ;;  %v10622_v56 = vld [vmem:[#allocation8 + $0x28c] sm:$0xf0]  ;;  %2663 = vmatpush.bf16.msra.mxu2 %v12463_v29 }
 0x1bb   : > { %v1868_v17 = vmul.f32 %v1864_v33, %v12286_v26  ;;  %v12466_v55 = vor.u32 %v10656_v42, %v8278_v0  ;;  %v8132_v33 = vld [vmem:[#allocation8 + $0x280] sm:$0xf]  ;;  %v10614_v54 = vld [vmem:[#allocation8 + $0x24c] sm:$0xf0]  ;;  %v8230_v5 = vld [vmem:[#allocation8 + $0x350] sm:$0xf0] }
 0x1bc   : > { %v1871_v31 = vadd.f32 %v1867_v10, %v12289_v35  ;;  %2675 = vmatpush.bf16.msra.mxu3 %v12455_v25  ;;  %v12472_v39 = vor.u32 %v10622_v56, %v8132_v33  ;;  %v10620_v10 = vld [vmem:[#allocation8 + $0x284] sm:$0xf]  ;;  %2651 = vmatpush.bf16.msra.mxu1 %v12477_v14  ;;  %v8100_v20 = vld [vmem:[#allocation8 + $0x240] sm:$0xf]  ;;  %v12503_v33 = vor.u32 %v10646_v40, %v8228_v28 }
 0x1bd   : > { %v1872_v47 = vadd.f32 %v1868_v17, %v12291_v50  ;;  %v12479_v17 = vor.u32 %v10620_v10, %v8134_v11  ;;  %v12498_v34 = vor.u32 %v10614_v54, %v8100_v20  ;;  %v12505_v56 = vor.u32 %v10612_v45, %v8102_v24  ;;  %v8068_v20 = vld [vmem:[#allocation8 + $0x200] sm:$0xf]  ;;  %v10606_v54 = vld [vmem:[#allocation8 + $0x20c] sm:$0xf0]  ;;  %v10604_v24 = vld [vmem:[#allocation8 + $0x204] sm:$0xf] }
 0x1be   : > { %v1875_v27 = vmax.f32 %v1871_v31, 0.0  ;;  %2638 = vmatpush.bf16.msra.mxu0 %v12472_v39  ;;  %14480 = vst [vmem:[#allocation37_spill] sm:$0xff] %v12503_v33  ;;  %v12510_v11 = vor.u32 %v10644_v60, %v8230_v5  ;;  %v8196_v28 = vld [vmem:[#allocation8 + $0x300] sm:$0xf]  ;;  %v12528_v40 = vor.u32 %v10606_v54, %v8068_v20  ;;  %v10638_v45 = vld [vmem:[#allocation8 + $0x30c] sm:$0xf0] }
 0x1bf   : > { %v1876_v62 = vmax.f32 %v1872_v47, 0.0  ;;  %v1846_v1 = vpop.f32.mrf.mxu2  ;;  %v12482_v47 = vor.u32 %v10652_v7, %v8262_v30  ;;  %2664 = vmatpush.bf16.msra.mxu2 %v12479_v17  ;;  %14479 = vst [vmem:[#allocation34_spill] sm:$0xff] %v12498_v34  ;;  %v10610_v7 = vld [vmem:[#allocation8 + $0x22c] sm:$0xf0]  ;;  %v8212_v30 = vld [vmem:[#allocation8 + $0x320] sm:$0xf] }
 0x1c0   : > { %v12441_v16 = vmax.f32 %v1873_v51, %v1875_v27  ;;  %v1859_v32 = vpop.f32.mrf.mxu3  ;;  %v12443_v38 = vpop.f32.mrf.mxu0  ;;  %2676 = vmatpush.bf16.msra.mxu3 %v12466_v55  ;;  %v8116_v51 = vld [vmem:[#allocation8 + $0x260] sm:$0xf]  ;;  %v10618_v27 = vld [vmem:[#allocation8 + $0x26c] sm:$0xf0]  ;;  %v8118_v1 = vld [vmem:[#allocation8 + $0x270] sm:$0xf0] }
 0x1c1   : > { %v12447_v18 = vmax.f32 %v1874_v12, %v1876_v62  ;;  %v12449_v41 = vpop.f32.mrf.mxu1  ;;  %v12485_v13 = vor.u32 %v10618_v27, %v8116_v51  ;;  %v10650_v12 = vld [vmem:[#allocation8 + $0x36c] sm:$0xf0]  ;;  %v10616_v62 = vld [vmem:[#allocation8 + $0x264] sm:$0xf]  ;;  %14481 = vst [vmem:[#allocation38_spill] sm:$0xff] %v12505_v56 }
 0x1c2   : > { %v12488_v4 = vor.u32 %v10650_v12, %v8244_v53  ;;  %v12490_v37 = vor.u32 %v10616_v62, %v8118_v1  ;;  %v10648_v32 = vld [vmem:[#allocation8 + $0x364] sm:$0xf]  ;;  %14482 = vst [vmem:[#allocation35_spill] sm:$0xff] %v12510_v11  ;;  %v10642_v51 = vld [vmem:[#allocation8 + $0x32c] sm:$0xf0] }
 0x1c3   : > { %v12493_v58 = vor.u32 %v10648_v32, %v8246_v36  ;;  %2639 = vmatpush.bf16.msra.mxu0 %v12485_v13  ;;  %v10608_v27 = vld [vmem:[#allocation8 + $0x224] sm:$0xf]  ;;  %v8086_v53 = vld [vmem:[#allocation8 + $0x230] sm:$0xf0]  ;;  %v12517_v12 = vor.u32 %v10642_v51, %v8212_v30  ;;  %14487 = vst [vmem:[#allocation42_spill] sm:$0xff] %v12528_v40 }
 0x1c4   : > { %2677 = vmatpush.bf16.msra.mxu3 %v12482_v47  ;;  %2652 = vmatpush.bf16.msra.mxu1 %v12488_v4  ;;  %v12519_v62 = vor.u32 %v10608_v27, %v8086_v53  ;;  %v10640_v1 = vld [vmem:[#allocation8 + $0x324] sm:$0xf]  ;;  %v8214_v32 = vld [vmem:[#allocation8 + $0x330] sm:$0xf0]  ;;  %v8188_v27 = vld [vmem:[#allocation8 + $0x2e8] sm:$0xf] }
 0x1c5   : > { %2665 = vmatpush.bf16.msra.mxu2 %v12490_v37  ;;  %14484 = vst [vmem:[#allocation39_spill] sm:$0xff] %v12517_v12  ;;  %v12522_v36 = vor.u32 %v10640_v1, %v8214_v32  ;;  %v10636_v30 = vld [vmem:[#allocation8 + $0x304] sm:$0xf]  ;;  %v8198_v51 = vld [vmem:[#allocation8 + $0x310] sm:$0xf0] }
 0x1c6   : > { %14485 = vst [vmem:[#allocation40_spill] sm:$0xff] %v12519_v62  ;;  %v12538_v1 = vor.u32 %v10636_v30, %v8198_v51  ;;  %v10635_v32 = vld [vmem:[#allocation8 + $0x2f4] sm:$0xf0]  ;;  %v8316_v20 = vld [vmem:[#allocation8 + $0x3e8] sm:$0xf] }
 0x1c7   : > { %v12469_v63 = vpop.f32.mrf.mxu2  ;;  %2640 = vmatpush.bf16.msra.mxu0 %v12498_v34  ;;  %14486 = vst [vmem:[#allocation41_spill] sm:$0xff] %v12522_v36  ;;  %v10667_v54 = vld [vmem:[#allocation8 + $0x3f4] sm:$0xf0]  ;;  %v10605_v34 = vld [vmem:[#allocation8 + $0x20c] sm:$0xf] }
 0x1c8   : > { %v12474_v61 = vpop.f32.mrf.mxu3  ;;  %v1888_v46 = vpop.f32.mrf.mxu0  ;;  %2678 = vmatpush.bf16.msra.mxu3 %v12493_v58  ;;  %2653 = vmatpush.bf16.msra.mxu1 %v12503_v33  ;;  %14490 = vst [vmem:[#allocation45_spill] sm:$0xff] %v12538_v1  ;;  %v10631_v30 = vld [vmem:[#allocation8 + $0x2d4] sm:$0xf0] }
 0x1c9   : > { %v1901_v31 = vpop.f32.mrf.mxu1  ;;  %v8084_v46 = vld [vmem:[#allocation8 + $0x220] sm:$0xf]  ;;  %2666 = vmatpush.bf16.msra.mxu2 %v12505_v56  ;;  %v10613_v56 = vld [vmem:[#allocation8 + $0x24c] sm:$0xf] }
 0x1ca   : > { %v12514_v31 = vor.u32 %v10610_v7, %v8084_v46  ;;  %v12533_v46 = vor.u32 %v10638_v45, %v8196_v28  ;;  %v10633_v28 = vld [vmem:[#allocation8 + $0x2ec] sm:$0xf]  ;;  %v8190_v45 = vld [vmem:[#allocation8 + $0x2f8] sm:$0xf0] }
 0x1cc   : > { %14483 = vst [vmem:[#allocation36_spill] sm:$0xff] %v12514_v31  ;;  %2679 = vmatpush.bf16.msra.mxu3 %v12510_v11  ;;  %2641 = vmatpush.bf16.msra.mxu0 %v12514_v31  ;;  %v8254_v11 = vld [vmem:[#allocation8 + $0x378] sm:$0xf0] }
 0x1cd   : > { %2654 = vmatpush.bf16.msra.mxu1 %v12517_v12  ;;  %2667 = vmatpush.bf16.msra.mxu2 %v12519_v62  ;;  %14488 = vst [vmem:[#allocation43_spill] sm:$0xff] %v12533_v46 }
 0x1cf   : > { %v1914_v59 = vpop.f32.mrf.mxu2 }
 0x1d0   : > { %v1927_v42 = vpop.f32.mrf.mxu3  ;;  %v12500_v0 = vpop.f32.mrf.mxu0  ;;  %2680 = vmatpush.bf16.msra.mxu3 %v12522_v36  ;;  %2642 = vmatpush.bf16.msra.mxu0 %v12528_v40  ;;  %v12543_v36 = vor.u32 %v10667_v54, %v8316_v20  ;;  %v8172_v40 = vld [vmem:[#allocation8 + $0x2c8] sm:$0xf]  ;;  %v10663_v20 = vld [vmem:[#allocation8 + $0x3d4] sm:$0xf0]  ;;  %v10629_v54 = vld [vmem:[#allocation8 + $0x2cc] sm:$0xf] }
 0x1d1   : > { %v12507_v10 = vpop.f32.mrf.mxu1  ;;  %v8070_v42 = vld [vmem:[#allocation8 + $0x210] sm:$0xf0]  ;;  %2655 = vmatpush.bf16.msra.mxu1 %v12533_v46  ;;  %v8302_v46 = vld [vmem:[#allocation8 + $0x3d8] sm:$0xf0] }
 0x1d2   : > { %v12535_v7 = vor.u32 %v10604_v24, %v8070_v42  ;;  %14492 = vst [vmem:[#allocation47_spill] sm:$0xff] %v12543_v36  ;;  %v10665_v24 = vld [vmem:[#allocation8 + $0x3ec] sm:$0xf]  ;;  %v12546_v42 = vor.u32 %v10633_v28, %v8190_v45  ;;  %v8174_v45 = vld [vmem:[#allocation8 + $0x2d8] sm:$0xf0] }
 0x1d4   : > { %14489 = vst [vmem:[#allocation44_spill] sm:$0xff] %v12535_v7  ;;  %2668 = vmatpush.bf16.msra.mxu2 %v12535_v7  ;;  %2681 = vmatpush.bf16.msra.mxu3 %v12538_v1  ;;  %v10661_v7 = vld [vmem:[#allocation8 + $0x3cc] sm:$0xf]  ;;  %v12559_v1 = vor.u32 %v10629_v54, %v8174_v45  ;;  %v8286_v54 = vld [vmem:[#allocation8 + $0x3b8] sm:$0xf0] }
 0x1d5   : > { %14493 = vst [vmem:[#allocation48_spill] sm:$0xff] %v12546_v42  ;;  %2700 = vmatpush.bf16.msrb.mxu1 %v12543_v36  ;;  %v8158_v36 = vld [vmem:[#allocation8 + $0x2b8] sm:$0xf0] }
 0x1d6   : > { %14497 = vst [vmem:[#allocation52_spill] sm:$0xff] %v12559_v1 }
 0x1d7   : > { %v12525_v59 = vpop.f32.mrf.mxu2 }
 0x1d8   : > { %v12530_v60 = vpop.f32.mrf.mxu3  ;;  %v1940_v5 = vpop.f32.mrf.mxu0  ;;  %2713 = vmatpush.bf16.msrb.mxu2 %v12546_v42  ;;  %v10625_v42 = vld [vmem:[#allocation8 + $0x2ac] sm:$0xf] }
 0x1d9   : > { %v1953_v53 = vpop.f32.mrf.mxu1  ;;  %v12541_v5 = vor.u32 %v10635_v32, %v8188_v27  ;;  %v12552_v27 = vor.u32 %v10631_v30, %v8172_v40  ;;  %v8300_v32 = vld [vmem:[#allocation8 + $0x3c8] sm:$0xf]  ;;  %v10627_v30 = vld [vmem:[#allocation8 + $0x2b4] sm:$0xf0] }
 0x1da   : > { %v8318_v53 = vld [vmem:[#allocation8 + $0x3f8] sm:$0xf0]  ;;  %v12556_v28 = vor.u32 %v10663_v20, %v8300_v32  ;;  %v10659_v20 = vld [vmem:[#allocation8 + $0x3b4] sm:$0xf0] }
 0x1db   : > { %14491 = vst [vmem:[#allocation46_spill] sm:$0xff] %v12541_v5  ;;  %2687 = vmatpush.bf16.msrb.mxu0 %v12541_v5  ;;  %v12550_v51 = vor.u32 %v10665_v24, %v8318_v53  ;;  %v12561_v24 = vor.u32 %v10661_v7, %v8302_v46  ;;  %v8156_v53 = vld [vmem:[#allocation8 + $0x2a8] sm:$0xf]  ;;  %v12574_v7 = vor.u32 %v10625_v42, %v8158_v36  ;;  %v10653_v42 = vld [vmem:[#allocation8 + $0x38c] sm:$0xf] }
 0x1dc   : > { %14495 = vst [vmem:[#allocation50_spill] sm:$0xff] %v12552_v27  ;;  %v8284_v5 = vld [vmem:[#allocation8 + $0x3a8] sm:$0xf]  ;;  %v12566_v32 = vor.u32 %v10627_v30, %v8156_v53  ;;  %2701 = vmatpush.bf16.msrb.mxu1 %v12556_v28  ;;  %2714 = vmatpush.bf16.msrb.mxu2 %v12559_v1  ;;  %v10623_v53 = vld [vmem:[#allocation8 + $0x294] sm:$0xf0] }
 0x1dd   : > { %14494 = vst [vmem:[#allocation49_spill] sm:$0xff] %v12550_v51  ;;  %2726 = vmatpush.bf16.msrb.mxu3 %v12550_v51  ;;  %v12572_v46 = vor.u32 %v10659_v20, %v8284_v5  ;;  %v8268_v30 = vld [vmem:[#allocation8 + $0x388] sm:$0xf]  ;;  %v10621_v51 = vld [vmem:[#allocation8 + $0x28c] sm:$0xf] }
 0x1de   : > { %14496 = vst [vmem:[#allocation51_spill] sm:$0xff] %v12556_v28  ;;  %v10655_v28 = vld [vmem:[#allocation8 + $0x394] sm:$0xf0]  ;;  %v8142_v1 = vld [vmem:[#allocation8 + $0x298] sm:$0xf0] }
 0x1df   : > { %14498 = vst [vmem:[#allocation53_spill] sm:$0xff] %v12561_v24  ;;  %v1966_v40 = vpop.f32.mrf.mxu2  ;;  %2688 = vmatpush.bf16.msrb.mxu0 %v12552_v27  ;;  %v12584_v36 = vor.u32 %v10655_v28, %v8268_v30  ;;  %v12586_v5 = vor.u32 %v10621_v51, %v8142_v1  ;;  %v8270_v20 = vld [vmem:[#allocation8 + $0x398] sm:$0xf0]  ;;  %v10651_v1 = vld [vmem:[#allocation8 + $0x374] sm:$0xf0] }
 0x1e0   : > { %v1979_v62 = vpop.f32.mrf.mxu3  ;;  %v12563_v12 = vpop.f32.mrf.mxu0  ;;  %14499 = vst [vmem:[#allocation54_spill] sm:$0xff] %v12566_v32  ;;  %v8140_v40 = vld [vmem:[#allocation8 + $0x288] sm:$0xf]  ;;  %2702 = vmatpush.bf16.msrb.mxu1 %v12572_v46  ;;  %2715 = vmatpush.bf16.msrb.mxu2 %v12574_v7  ;;  %v10617_v51 = vld [vmem:[#allocation8 + $0x26c] sm:$0xf] }
 0x1e1   : > { %v12568_v31 = vpop.f32.mrf.mxu1  ;;  %14500 = vst [vmem:[#allocation55_spill] sm:$0xff] %v12572_v46  ;;  %v10657_v62 = vld [vmem:[#allocation8 + $0x3ac] sm:$0xf]  ;;  %2727 = vmatpush.bf16.msrb.mxu3 %v12561_v24  ;;  %v12580_v27 = vor.u32 %v10623_v53, %v8140_v40  ;;  %v8124_v40 = vld [vmem:[#allocation8 + $0x268] sm:$0xf] }
 0x1e2   : > { %14501 = vst [vmem:[#allocation56_spill] sm:$0xff] %v12574_v7  ;;  %v12577_v45 = vor.u32 %v10657_v62, %v8286_v54  ;;  %v12589_v62 = vor.u32 %v10653_v42, %v8270_v20  ;;  %v10619_v53 = vld [vmem:[#allocation8 + $0x274] sm:$0xf0]  ;;  %v8126_v30 = vld [vmem:[#allocation8 + $0x278] sm:$0xf0] }
 0x1e3   : > { %2689 = vmatpush.bf16.msrb.mxu0 %v12566_v32  ;;  %14503 = vst [vmem:[#allocation58_spill] sm:$0xff] %v12580_v27  ;;  %v8252_v32 = vld [vmem:[#allocation8 + $0x368] sm:$0xf]  ;;  %v12596_v28 = vor.u32 %v10619_v53, %v8124_v40  ;;  %v12602_v20 = vor.u32 %v10617_v51, %v8126_v30  ;;  %v10615_v53 = vld [vmem:[#allocation8 + $0x254] sm:$0xf0] }
 0x1e4   : > { %14502 = vst [vmem:[#allocation57_spill] sm:$0xff] %v12577_v45  ;;  %2703 = vmatpush.bf16.msrb.mxu1 %v12584_v36  ;;  %2716 = vmatpush.bf16.msrb.mxu2 %v12586_v5  ;;  %v12600_v42 = vor.u32 %v10651_v1, %v8252_v32  ;;  %v8108_v40 = vld [vmem:[#allocation8 + $0x248] sm:$0xf] }
 0x1e5   : > { %14504 = vst [vmem:[#allocation59_spill] sm:$0xff] %v12584_v36  ;;  %2728 = vmatpush.bf16.msrb.mxu3 %v12577_v45  ;;  %v10649_v45 = vld [vmem:[#allocation8 + $0x36c] sm:$0xf]  ;;  %v10647_v36 = vld [vmem:[#allocation8 + $0x354] sm:$0xf0] }
 0x1e6   : > { %14505 = vst [vmem:[#allocation60_spill] sm:$0xff] %v12586_v5  ;;  %v8110_v5 = vld [vmem:[#allocation8 + $0x258] sm:$0xf0] }
 0x1e7   : > { %14506 = vst [vmem:[#allocation61_spill] sm:$0xff] %v12589_v62  ;;  %v12591_v54 = vpop.f32.mrf.mxu2  ;;  %2690 = vmatpush.bf16.msrb.mxu0 %v12580_v27  ;;  %v8236_v27 = vld [vmem:[#allocation8 + $0x348] sm:$0xf]  ;;  %v12614_v1 = vor.u32 %v10613_v56, %v8110_v5  ;;  %v8094_v56 = vld [vmem:[#allocation8 + $0x238] sm:$0xf0] }
 0x1e8   : > { %v12593_v24 = vpop.f32.mrf.mxu3  ;;  %v1992_v46 = vpop.f32.mrf.mxu0  ;;  %14507 = vst [vmem:[#allocation62_spill] sm:$0xff] %v12596_v28  ;;  %2704 = vmatpush.bf16.msrb.mxu1 %v12600_v42  ;;  %2717 = vmatpush.bf16.msrb.mxu2 %v12602_v20  ;;  %v12612_v32 = vor.u32 %v10647_v36, %v8236_v27  ;;  %v10643_v27 = vld [vmem:[#allocation8 + $0x334] sm:$0xf0]  ;;  %v10609_v36 = vld [vmem:[#allocation8 + $0x22c] sm:$0xf] }
 0x1e9   : > { %v2005_v7 = vpop.f32.mrf.mxu1  ;;  %14508 = vst [vmem:[#allocation63_spill] sm:$0xff] %v12600_v42  ;;  %2729 = vmatpush.bf16.msrb.mxu3 %v12589_v62  ;;  %v12605_v46 = vor.u32 %v10649_v45, %v8254_v11  ;;  %v10645_v11 = vld [vmem:[#allocation8 + $0x34c] sm:$0xf]  ;;  %v8238_v45 = vld [vmem:[#allocation8 + $0x358] sm:$0xf0] }
 0x1ea   : > { %14509 = vst [vmem:[#allocation64_spill] sm:$0xff] %v12602_v20  ;;  %v12608_v7 = vor.u32 %v10615_v53, %v8108_v40  ;;  %v12617_v51 = vor.u32 %v10645_v11, %v8238_v45  ;;  %v8092_v40 = vld [vmem:[#allocation8 + $0x228] sm:$0xf]  ;;  %v10611_v53 = vld [vmem:[#allocation8 + $0x234] sm:$0xf0]  ;;  %v12626_v45 = vor.u32 %v10609_v36, %v8094_v56 }
 0x1eb   : > { %14510 = vst [vmem:[#allocation65_spill] sm:$0xff] %v12605_v46  ;;  %2691 = vmatpush.bf16.msrb.mxu0 %v12596_v28  ;;  %v8220_v28 = vld [vmem:[#allocation8 + $0x328] sm:$0xf]  ;;  %v12620_v42 = vor.u32 %v10611_v53, %v8092_v40  ;;  %v10607_v53 = vld [vmem:[#allocation8 + $0x214] sm:$0xf0] }
 0x1ec   : > { %14511 = vst [vmem:[#allocation66_spill] sm:$0xff] %v12608_v7  ;;  %2705 = vmatpush.bf16.msrb.mxu1 %v12612_v32  ;;  %2718 = vmatpush.bf16.msrb.mxu2 %v12614_v1  ;;  %v12624_v11 = vor.u32 %v10643_v27, %v8220_v28  ;;  %v8076_v40 = vld [vmem:[#allocation8 + $0x208] sm:$0xf]  ;;  %v8206_v36 = vld [vmem:[#allocation8 + $0x318] sm:$0xf0] }
 0x1ed   : > { %14512 = vst [vmem:[#allocation67_spill] sm:$0xff] %v12612_v32  ;;  %2730 = vmatpush.bf16.msrb.mxu3 %v12605_v46  ;;  %v8222_v46 = vld [vmem:[#allocation8 + $0x338] sm:$0xf0]  ;;  %v12632_v20 = vor.u32 %v10607_v53, %v8076_v40  ;;  %v10639_v32 = vld [vmem:[#allocation8 + $0x314] sm:$0xf0] }
 0x1ee   : > { %14513 = vst [vmem:[#allocation68_spill] sm:$0xff] %v12614_v1  ;;  %v8078_v1 = vld [vmem:[#allocation8 + $0x218] sm:$0xf0] }
 0x1ef   : > { %v2018_v30 = vpop.f32.mrf.mxu2  ;;  %2692 = vmatpush.bf16.msrb.mxu0 %v12608_v7  ;;  %14514 = vst [vmem:[#allocation69_spill] sm:$0xff] %v12620_v42  ;;  %v8204_v7 = vld [vmem:[#allocation8 + $0x308] sm:$0xf]  ;;  %v12638_v27 = vor.u32 %v10605_v34, %v8078_v1  ;;  %v1939_v34 = vadd.f32 %v12500_v0, %v12443_v38  ;;  %v1978_v38 = vadd.f32 %v12530_v60, %v12474_v61 }
 0x1f0   : > { %v2031_v62 = vpop.f32.mrf.mxu3  ;;  %v2046_v33 = vpop.f32.mrf.mxu0  ;;  %v10641_v30 = vld [vmem:[#allocation8 + $0x32c] sm:$0xf]  ;;  %14515 = vst [vmem:[#allocation70_spill] sm:$0xff] %v12632_v20  ;;  %2706 = vmatpush.bf16.msrb.mxu1 %v12624_v11  ;;  %2719 = vmatpush.bf16.msrb.mxu2 %v12626_v45  ;;  %v12636_v28 = vor.u32 %v10639_v32, %v8204_v7  ;;  %v1952_v7 = vadd.f32 %v12507_v10, %v12449_v41 }
 0x1f1   : > { %v2059_v5 = vpop.f32.mrf.mxu1  ;;  %2731 = vmatpush.bf16.msrb.mxu3 %v12617_v51  ;;  %v12629_v62 = vor.u32 %v10641_v30, %v8222_v46  ;;  %14517 = vst [vmem:[#allocation72_spill] sm:$0xff] %v12638_v27  ;;  %v10637_v46 = vld [vmem:[#allocation8 + $0x30c] sm:$0xf]  ;;  %v2033_v32 = vadd.f32 %v12563_v12, %v1939_v34  ;;  %v2036_v10 = vadd.f32 %v12593_v24, %v1978_v38  ;;  %v10568_v38 = vld [vmem:[#allocation8 + $0xe4] sm:$0xf] }
 0x1f2   : > { %14516 = vst [vmem:[#allocation71_spill] sm:$0xff] %v12636_v28  ;;  %v12641_v56 = vor.u32 %v10637_v46, %v8206_v36  ;;  %v2034_v1 = vadd.f32 %v12568_v31, %v1952_v7 }
 0x1f3   : > { %2693 = vmatpush.bf16.msrb.mxu0 %v12620_v42  ;;  %v2089_v36 = vadd.f32 %v2046_v33, %v2033_v32 }
 0x1f4   : > { %14518 = vst [vmem:[#allocation73_spill] sm:$0xff] %v12641_v56  ;;  %2707 = vmatpush.bf16.msrb.mxu1 %v12636_v28  ;;  %2720 = vmatpush.bf16.msrb.mxu2 %v12638_v27  ;;  %v1965_v27 = vadd.f32 %v12525_v59, %v12469_v63 }
 0x1f5   : > { %2732 = vmatpush.bf16.msrb.mxu3 %v12629_v62 }
 0x1f6   : > { %v2035_v41 = vadd.f32 %v12591_v54, %v1965_v27 }
 0x1f7   : > { %v2072_v30 = vpop.f32.mrf.mxu2  ;;  %2694 = vmatpush.bf16.msrb.mxu0 %v12632_v20  ;;  %v2090_v20 = vadd.f32 %v2059_v5, %v2034_v1 }
 0x1f8   : > { %v2085_v40 = vpop.f32.mrf.mxu3  ;;  %v2048_v53 = vpop.f32.mrf.mxu0  ;;  %v2091_v12 = vadd.f32 %v2072_v30, %v2035_v41 }
 0x1f9   : > { %v2061_v42 = vpop.f32.mrf.mxu1  ;;  %2733 = vmatpush.bf16.msrb.mxu3 %v12641_v56  ;;  %v2092_v33 = vadd.f32 %v2085_v40, %v2036_v10 }
 0x1ff   : > { %v2074_v46 = vpop.f32.mrf.mxu2 }
 0x200   : > { %v2087_v53 = vpop.f32.mrf.mxu3  ;;  %v2111_v42 = vpop.f32.mrf.mxu0 }
 0x201   : > { %v2124_v28 = vpop.f32.mrf.mxu1  ;;  %v2154_v56 = vadd.f32 %v2111_v42, %v2089_v36  ;;  %v8436_v36 = vld [vmem:[#allocation8 + $0xe0] sm:$0xf]  ;;  %v10570_v53 = vld [vmem:[#allocation8 + $0xec] sm:$0xf0] }
 0x202   : > { %v2155_v0 = vadd.f32 %v2124_v28, %v2090_v20  ;;  %v8564_v42 = vld [vmem:[#allocation8 + $0x1e0] sm:$0xf]  ;;  %v12671_v10 = vor.u32 %v10570_v53, %v8436_v36 }
 0x203   : > { %v2158_v31 = vmul.f32 %v2154_v56, %v12263_v57  ;;  %v8388_v53 = vld [vmem:[#allocation8 + $0x80] sm:$0xf] }
 0x204   : > { %v2159_v34 = vmul.f32 %v2155_v0, %v14475_v2  ;;  %v10600_v0 = vld [vmem:[#allocation8 + $0x1e4] sm:$0xf] }
 0x205   : > { %v2162_v46 = vadd.f32 %v2158_v31, %v12277_v8  ;;  %v8420_v31 = vld [vmem:[#allocation8 + $0xc0] sm:$0xf] }
 0x206   : > { %v2163_v60 = vadd.f32 %v2159_v34, %v12284_v6 }
 0x207   : > { %v2137_v5 = vpop.f32.mrf.mxu2  ;;  %v2166_v20 = vmax.f32 %v2162_v46, 0.0 }
 0x208   : > { %v2156_v7 = vadd.f32 %v2137_v5, %v2091_v12  ;;  %v2150_v32 = vpop.f32.mrf.mxu3  ;;  %v2113_v1 = vpop.f32.mrf.mxu0  ;;  %v2167_v28 = vmax.f32 %v2163_v60, 0.0  ;;  %v8404_v60 = vld [vmem:[#allocation8 + $0xa0] sm:$0xf] }
 0x209   : > { %v2157_v63 = vadd.f32 %v2150_v32, %v2092_v33  ;;  %v2126_v59 = vpop.f32.mrf.mxu1  ;;  %v10566_v33 = vld [vmem:[#allocation8 + $0xcc] sm:$0xf0]  ;;  %v10564_v1 = vld [vmem:[#allocation8 + $0xc4] sm:$0xf] }
 0x20a   : > { %v2160_v61 = vmul.f32 %v2156_v7, %v14476_v43  ;;  %v10602_v43 = vld [vmem:[#allocation8 + $0x1ec] sm:$0xf0]  ;;  %v8550_v59 = vld [vmem:[#allocation8 + $0x1d0] sm:$0xf0]  ;;  %v12687_v46 = vor.u32 %v10566_v33, %v8420_v31 }
 0x20b   : > { %v2161_v24 = vmul.f32 %v2157_v63, %v12286_v26  ;;  %v8438_v26 = vld [vmem:[#allocation8 + $0xf0] sm:$0xf0]  ;;  %v12673_v12 = vor.u32 %v10602_v43, %v8564_v42  ;;  %v10598_v32 = vld [vmem:[#allocation8 + $0x1cc] sm:$0xf0]  ;;  %v10596_v63 = vld [vmem:[#allocation8 + $0x1c4] sm:$0xf] }
 0x20c   : > { %v2164_v54 = vadd.f32 %v2160_v61, %v12289_v35  ;;  %v8566_v35 = vld [vmem:[#allocation8 + $0x1f0] sm:$0xf0]  ;;  %v12677_v5 = vor.u32 %v10568_v38, %v8438_v26  ;;  %14522 = vst [vmem:[#allocation77_spill] sm:$0xff] %v12687_v46  ;;  %v8516_v38 = vld [vmem:[#allocation8 + $0x180] sm:$0xf] }
 0x20d   : > { %v2165_v57 = vadd.f32 %v2161_v24, %v12291_v50  ;;  %14519 = vst [vmem:[#allocation74_spill] sm:$0xff] %v12673_v12  ;;  %v12679_v7 = vor.u32 %v10600_v0, %v8566_v35  ;;  %v10562_v24 = vld [vmem:[#allocation8 + $0xac] sm:$0xf0]  ;;  %v10556_v26 = vld [vmem:[#allocation8 + $0x84] sm:$0xf] }
 0x20e   : > { %v2168_v2 = vmax.f32 %v2164_v54, 0.0  ;;  %14520 = vst [vmem:[#allocation75_spill] sm:$0xff] %v12677_v5  ;;  %v8390_v0 = vld [vmem:[#allocation8 + $0x90] sm:$0xf0]  ;;  %v10588_v35 = vld [vmem:[#allocation8 + $0x184] sm:$0xf] }
 0x20f   : > { %v2169_v27 = vmax.f32 %v2165_v57, 0.0  ;;  %v2139_v56 = vpop.f32.mrf.mxu2  ;;  %14521 = vst [vmem:[#allocation76_spill] sm:$0xff] %v12679_v7  ;;  %v12695_v57 = vor.u32 %v10596_v63, %v8550_v59  ;;  %v8500_v63 = vld [vmem:[#allocation8 + $0x160] sm:$0xf]  ;;  %v10586_v59 = vld [vmem:[#allocation8 + $0x16c] sm:$0xf0] }
 0x210   : > { %v2178_v30 = vmax.f32 %v2166_v20, %v2168_v2  ;;  %v2152_v40 = vpop.f32.mrf.mxu3  ;;  %v8532_v20 = vld [vmem:[#allocation8 + $0x1a0] sm:$0xf]  ;;  %v10594_v2 = vld [vmem:[#allocation8 + $0x1ac] sm:$0xf0]  ;;  %v10592_v56 = vld [vmem:[#allocation8 + $0x1a4] sm:$0xf] }
 0x211   : > { %v2179_v8 = vmax.f32 %v2167_v28, %v2169_v27  ;;  %14525 = vst [vmem:[#allocation80_spill] sm:$0xff] %v12695_v57  ;;  %v10560_v28 = vld [vmem:[#allocation8 + $0xa4] sm:$0xf]  ;;  %v8406_v27 = vld [vmem:[#allocation8 + $0xb0] sm:$0xf0]  ;;  %v12699_v40 = vor.u32 %v10562_v24, %v8404_v60  ;;  %v12701_v36 = vor.u32 %v10594_v2, %v8532_v20 }
 0x212   : > { %v2180_v6 = vmax.f32 %v12441_v16, %v2178_v30  ;;  %v8548_v16 = vld [vmem:[#allocation8 + $0x1c0] sm:$0xf]  ;;  %v8534_v30 = vld [vmem:[#allocation8 + $0x1b0] sm:$0xf0]  ;;  %v12705_v42 = vor.u32 %v10560_v28, %v8406_v27  ;;  %v10552_v60 = vld [vmem:[#allocation8 + $0x64] sm:$0xf]  ;;  %v12725_v27 = vor.u32 %v10586_v59, %v8500_v63 }
 0x213   : > { %v2181_v50 = vmax.f32 %v12447_v18, %v2179_v8  ;;  %v8422_v18 = vld [vmem:[#allocation8 + $0xd0] sm:$0xf0]  ;;  %v12689_v61 = vor.u32 %v10598_v32, %v8548_v16  ;;  %14526 = vst [vmem:[#allocation81_spill] sm:$0xff] %v12699_v40  ;;  %v10558_v8 = vld [vmem:[#allocation8 + $0x8c] sm:$0xf0]  ;;  %v12707_v43 = vor.u32 %v10592_v56, %v8534_v30 }
 0x214   : > { %v12669_v41 = vpack.c.bf16 %v2180_v6, %v2180_v6  ;;  %v12693_v54 = vor.u32 %v10564_v1, %v8422_v18  ;;  %14527 = vst [vmem:[#allocation82_spill] sm:$0xff] %v12701_v36  ;;  %v10590_v6 = vld [vmem:[#allocation8 + $0x18c] sm:$0xf0]  ;;  %v12711_v31 = vor.u32 %v10558_v8, %v8388_v53  ;;  %v8372_v16 = vld [vmem:[#allocation8 + $0x60] sm:$0xf]  ;;  %v12717_v1 = vor.u32 %v10556_v26, %v8390_v0 }
 0x215   : > { %v12675_v34 = vpack.c.bf16 %v2181_v50, %v2181_v50  ;;  %14523 = vst [vmem:[#allocation78_spill] sm:$0xff] %v12689_v61  ;;  %v8518_v50 = vld [vmem:[#allocation8 + $0x190] sm:$0xf0]  ;;  %v12713_v33 = vor.u32 %v10590_v6, %v8516_v38  ;;  %v10554_v32 = vld [vmem:[#allocation8 + $0x6c] sm:$0xf0] }
 0x216   : > { %2643 = vmatmul.bf16.vlgmr.msra.gmra.mxu0 %v12669_v41  ;;  %2669 = vmatmul.bf16.vlgmr.msra.gmra.mxu2 %v12669_v41  ;;  %14524 = vst [vmem:[#allocation79_spill] sm:$0xff] %v12693_v54  ;;  %v12719_v18 = vor.u32 %v10588_v35, %v8518_v50  ;;  %v8374_v24 = vld [vmem:[#allocation8 + $0x70] sm:$0xf0]  ;;  %v10584_v20 = vld [vmem:[#allocation8 + $0x164] sm:$0xf]  ;;  %v12723_v28 = vor.u32 %v10554_v32, %v8372_v16 }
 0x217   : > { %2656 = vmatmul.bf16.vlgmr.msra.gmra.mxu1 %v12675_v34  ;;  %2682 = vmatmul.bf16.vlgmr.msra.gmra.mxu3 %v12675_v34  ;;  %14528 = vst [vmem:[#allocation83_spill] sm:$0xff] %v12705_v42  ;;  %v8502_v2 = vld [vmem:[#allocation8 + $0x170] sm:$0xf0]  ;;  %v8356_v56 = vld [vmem:[#allocation8 + $0x40] sm:$0xf]  ;;  %v12729_v53 = vor.u32 %v10552_v60, %v8374_v24 }
 0x218   : > { %3059 = vmatpush.bf16.msra.mxu0 %v12671_v10  ;;  %3072 = vmatpush.bf16.msra.mxu1 %v12673_v12  ;;  %14529 = vst [vmem:[#allocation84_spill] sm:$0xff] %v12707_v43  ;;  %v10550_v30 = vld [vmem:[#allocation8 + $0x4c] sm:$0xf0]  ;;  %v12731_v8 = vor.u32 %v10584_v20, %v8502_v2  ;;  %v8484_v38 = vld [vmem:[#allocation8 + $0x140] sm:$0xf] }
 0x219   : > { %3085 = vmatpush.bf16.msra.mxu2 %v12677_v5  ;;  %3098 = vmatpush.bf16.msra.mxu3 %v12679_v7  ;;  %14530 = vst [vmem:[#allocation85_spill] sm:$0xff] %v12711_v31  ;;  %v10582_v6 = vld [vmem:[#allocation8 + $0x14c] sm:$0xf0]  ;;  %v10548_v26 = vld [vmem:[#allocation8 + $0x44] sm:$0xf]  ;;  %v12739_v16 = vor.u32 %v10550_v30, %v8356_v56 }
 0x21a   : > { %14531 = vst [vmem:[#allocation86_spill] sm:$0xff] %v12713_v33  ;;  %v8358_v0 = vld [vmem:[#allocation8 + $0x50] sm:$0xf0]  ;;  %v10580_v35 = vld [vmem:[#allocation8 + $0x144] sm:$0xf]  ;;  %v12741_v32 = vor.u32 %v10582_v6, %v8484_v38 }
 0x21b   : > { %14532 = vst [vmem:[#allocation87_spill] sm:$0xff] %v12717_v1  ;;  %v8486_v50 = vld [vmem:[#allocation8 + $0x150] sm:$0xf0]  ;;  %v8340_v63 = vld [vmem:[#allocation8 + $0x20] sm:$0xf]  ;;  %v12745_v60 = vor.u32 %v10548_v26, %v8358_v0 }
 0x21c   : > { %3060 = vmatpush.bf16.msra.mxu0 %v12687_v46  ;;  %3073 = vmatpush.bf16.msra.mxu1 %v12689_v61  ;;  %14533 = vst [vmem:[#allocation88_spill] sm:$0xff] %v12719_v18  ;;  %v10546_v59 = vld [vmem:[#allocation8 + $0x2c] sm:$0xf0]  ;;  %v12747_v24 = vor.u32 %v10580_v35, %v8486_v50  ;;  %v8468_v20 = vld [vmem:[#allocation8 + $0x120] sm:$0xf] }
 0x21d   : > { %3086 = vmatpush.bf16.msra.mxu2 %v12693_v54  ;;  %3099 = vmatpush.bf16.msra.mxu3 %v12695_v57  ;;  %14534 = vst [vmem:[#allocation89_spill] sm:$0xff] %v12723_v28  ;;  %v10578_v2 = vld [vmem:[#allocation8 + $0x12c] sm:$0xf0]  ;;  %v8324_v56 = vld [vmem:[#allocation8] sm:$0xf]  ;;  %v12751_v30 = vor.u32 %v10546_v59, %v8340_v63 }
 0x21e   : > { %14535 = vst [vmem:[#allocation90_spill] sm:$0xff] %v12725_v27  ;;  %v12753_v38 = vor.u32 %v10578_v2, %v8468_v20  ;;  %v10542_v6 = vld [vmem:[#allocation8 + $0xc] sm:$0xf0]  ;;  %v8452_v26 = vld [vmem:[#allocation8 + $0x100] sm:$0xf] }
 0x21f   : > { %14536 = vst [vmem:[#allocation91_spill] sm:$0xff] %v12729_v53  ;;  %v10574_v0 = vld [vmem:[#allocation8 + $0x10c] sm:$0xf0]  ;;  %v10571_v63 = vld [vmem:[#allocation8 + $0xf4] sm:$0xf0] }
 0x220   : > { %3061 = vmatpush.bf16.msra.mxu0 %v12699_v40  ;;  %3074 = vmatpush.bf16.msra.mxu1 %v12701_v36  ;;  %14537 = vst [vmem:[#allocation92_spill] sm:$0xff] %v12731_v8  ;;  %v8572_v59 = vld [vmem:[#allocation8 + $0x1e8] sm:$0xf]  ;;  %v10603_v20 = vld [vmem:[#allocation8 + $0x1f4] sm:$0xf0] }
 0x221   : > { %3087 = vmatpush.bf16.msra.mxu2 %v12705_v42  ;;  %3100 = vmatpush.bf16.msra.mxu3 %v12707_v43  ;;  %14538 = vst [vmem:[#allocation93_spill] sm:$0xff] %v12739_v16  ;;  %v10569_v2 = vld [vmem:[#allocation8 + $0xec] sm:$0xf]  ;;  %v10599_v42 = vld [vmem:[#allocation8 + $0x1d4] sm:$0xf0] }
 0x222   : > { %14539 = vst [vmem:[#allocation94_spill] sm:$0xff] %v12741_v32  ;;  %v10565_v36 = vld [vmem:[#allocation8 + $0xcc] sm:$0xf]  ;;  %v9084_v54 = vld [vmem:[#allocation8 + $0x7e8] sm:$0xf] }
 0x223   : > { %14540 = vst [vmem:[#allocation95_spill] sm:$0xff] %v12745_v60  ;;  %v10795_v61 = vld [vmem:[#allocation8 + $0x7f4] sm:$0xf0]  ;;  %v10761_v46 = vld [vmem:[#allocation8 + $0x6ec] sm:$0xf] }
 0x224   : > { %3062 = vmatpush.bf16.msra.mxu0 %v12711_v31  ;;  %3075 = vmatpush.bf16.msra.mxu1 %v12713_v33  ;;  %14541 = vst [vmem:[#allocation96_spill] sm:$0xff] %v12747_v24  ;;  %v8454_v33 = vld [vmem:[#allocation8 + $0x110] sm:$0xf0]  ;;  %v8940_v5 = vld [vmem:[#allocation8 + $0x6c8] sm:$0xf] }
 0x225   : > { %3088 = vmatpush.bf16.msra.mxu2 %v12717_v1  ;;  %3101 = vmatpush.bf16.msra.mxu3 %v12719_v18  ;;  %v10544_v18 = vld [vmem:[#allocation8 + $0x24] sm:$0xf]  ;;  %14542 = vst [vmem:[#allocation97_spill] sm:$0xff] %v12751_v30 }
 0x226   : > { %2695 = vmatmul.bf16.vlgmr.msrb.gmra.mxu0 %v12669_v41  ;;  %2721 = vmatmul.bf16.vlgmr.msrb.gmra.mxu2 %v12669_v41  ;;  %v10576_v1 = vld [vmem:[#allocation8 + $0x124] sm:$0xf]  ;;  %14543 = vst [vmem:[#allocation98_spill] sm:$0xff] %v12753_v38 }
 0x227   : > { %2708 = vmatmul.bf16.vlgmr.msrb.gmra.mxu1 %v12675_v34  ;;  %2734 = vmatmul.bf16.vlgmr.msrb.gmra.mxu3 %v12675_v34 }
 0x228   : > { %3063 = vmatpush.bf16.msra.mxu0 %v12723_v28  ;;  %3076 = vmatpush.bf16.msra.mxu1 %v12725_v27  ;;  %v8342_v28 = vld [vmem:[#allocation8 + $0x30] sm:$0xf0] }
 0x229   : > { %3089 = vmatpush.bf16.msra.mxu2 %v12729_v53  ;;  %3102 = vmatpush.bf16.msra.mxu3 %v12731_v8  ;;  %v8470_v27 = vld [vmem:[#allocation8 + $0x130] sm:$0xf0]  ;;  %v12757_v35 = vor.u32 %v10544_v18, %v8342_v28  ;;  %v10540_v8 = vld [vmem:[#allocation8 + $0x4] sm:$0xf]  ;;  %v8446_v18 = vld [vmem:[#allocation8 + $0xf8] sm:$0xf0] }
 0x22a   : > { %v12759_v50 = vor.u32 %v10576_v1, %v8470_v27  ;;  %v8326_v53 = vld [vmem:[#allocation8 + $0x10] sm:$0xf0]  ;;  %v10601_v1 = vld [vmem:[#allocation8 + $0x1ec] sm:$0xf]  ;;  %v8574_v28 = vld [vmem:[#allocation8 + $0x1f8] sm:$0xf0] }
 0x22b   : > { %14544 = vst [vmem:[#allocation99_spill] sm:$0xff] %v12757_v35  ;;  %v12769_v27 = vor.u32 %v10540_v8, %v8326_v53  ;;  %v8430_v53 = vld [vmem:[#allocation8 + $0xd8] sm:$0xf0] }
 0x22c   : > { %3064 = vmatpush.bf16.msra.mxu0 %v12739_v16  ;;  %3077 = vmatpush.bf16.msra.mxu1 %v12741_v32  ;;  %14545 = vst [vmem:[#allocation100_spill] sm:$0xff] %v12759_v50  ;;  %v10572_v16 = vld [vmem:[#allocation8 + $0x104] sm:$0xf]  ;;  %v8444_v32 = vld [vmem:[#allocation8 + $0xe8] sm:$0xf] }
 0x22d   : > { %3090 = vmatpush.bf16.msra.mxu2 %v12745_v60  ;;  %3103 = vmatpush.bf16.msra.mxu3 %v12747_v24  ;;  %v12763_v60 = vor.u32 %v10542_v6, %v8324_v56  ;;  %v12765_v24 = vor.u32 %v10574_v0, %v8452_v26  ;;  %14548 = vst [vmem:[#allocation103_spill] sm:$0xff] %v12769_v27  ;;  %v10567_v56 = vld [vmem:[#allocation8 + $0xd4] sm:$0xf0]  ;;  %v8556_v0 = vld [vmem:[#allocation8 + $0x1c8] sm:$0xf] }
 0x22e   : > { %v12771_v31 = vor.u32 %v10572_v16, %v8454_v33  ;;  %v12773_v43 = vor.u32 %v10571_v63, %v8444_v32  ;;  %v12777_v6 = vor.u32 %v10569_v2, %v8446_v18  ;;  %v12779_v26 = vor.u32 %v10601_v1, %v8574_v28  ;;  %v10597_v33 = vld [vmem:[#allocation8 + $0x1cc] sm:$0xf]  ;;  %v8558_v8 = vld [vmem:[#allocation8 + $0x1d8] sm:$0xf0]  ;;  %v10563_v2 = vld [vmem:[#allocation8 + $0xb4] sm:$0xf0] }
 0x22f   : > { %14546 = vst [vmem:[#allocation101_spill] sm:$0xff] %v12763_v60  ;;  %v12785_v16 = vpack.c.bf16 %v12400_v49, %v12400_v49  ;;  %v12791_v32 = vpack.c.bf16 %v12403_v52, %v12403_v52  ;;  %v12801_v49 = vor.u32 %v10565_v36, %v8430_v53  ;;  %v12803_v18 = vor.u32 %v10597_v33, %v8558_v8  ;;  %v8540_v52 = vld [vmem:[#allocation8 + $0x1a8] sm:$0xf]  ;;  %v10595_v1 = vld [vmem:[#allocation8 + $0x1b4] sm:$0xf0] }
 0x230   : > { %3065 = vmatpush.bf16.msra.mxu0 %v12751_v30  ;;  %3078 = vmatpush.bf16.msra.mxu1 %v12753_v38  ;;  %14547 = vst [vmem:[#allocation102_spill] sm:$0xff] %v12765_v24  ;;  %v12775_v30 = vor.u32 %v10603_v20, %v8572_v59  ;;  %v8428_v38 = vld [vmem:[#allocation8 + $0xc8] sm:$0xf]  ;;  %v12797_v59 = vor.u32 %v10599_v42, %v8556_v0  ;;  %v10561_v28 = vld [vmem:[#allocation8 + $0xac] sm:$0xf] }
 0x231   : > { %3091 = vmatpush.bf16.msra.mxu2 %v12757_v35  ;;  %3104 = vmatpush.bf16.msra.mxu3 %v12759_v50  ;;  %14549 = vst [vmem:[#allocation104_spill] sm:$0xff] %v12771_v31  ;;  %v12795_v63 = vor.u32 %v10567_v56, %v8428_v38  ;;  %v8412_v20 = vld [vmem:[#allocation8 + $0xa8] sm:$0xf]  ;;  %v8414_v38 = vld [vmem:[#allocation8 + $0xb8] sm:$0xf0]  ;;  %v12813_v0 = vor.u32 %v10595_v1, %v8540_v52 }
 0x232   : > { %14550 = vst [vmem:[#allocation105_spill] sm:$0xff] %v12773_v43  ;;  %v10593_v42 = vld [vmem:[#allocation8 + $0x1ac] sm:$0xf]  ;;  %v8542_v56 = vld [vmem:[#allocation8 + $0x1b8] sm:$0xf0]  ;;  %v12811_v36 = vor.u32 %v10563_v2, %v8412_v20  ;;  %v12817_v8 = vor.u32 %v10561_v28, %v8414_v38 }
 0x233   : > { %14551 = vst [vmem:[#allocation106_spill] sm:$0xff] %v12775_v30  ;;  %v8396_v53 = vld [vmem:[#allocation8 + $0x88] sm:$0xf]  ;;  %v10559_v33 = vld [vmem:[#allocation8 + $0x94] sm:$0xf0] }
 0x234   : > { %14552 = vst [vmem:[#allocation107_spill] sm:$0xff] %v12777_v6  ;;  %3066 = vmatpush.bf16.msra.mxu0 %v12763_v60  ;;  %3079 = vmatpush.bf16.msra.mxu1 %v12765_v24  ;;  %v12823_v20 = vor.u32 %v10559_v33, %v8396_v53  ;;  %v8380_v52 = vld [vmem:[#allocation8 + $0x68] sm:$0xf]  ;;  %v10555_v1 = vld [vmem:[#allocation8 + $0x74] sm:$0xf0] }
 0x235   : > { %14553 = vst [vmem:[#allocation108_spill] sm:$0xff] %v12779_v26  ;;  %3092 = vmatpush.bf16.msra.mxu2 %v12769_v27  ;;  %3105 = vmatpush.bf16.msra.mxu3 %v12771_v31  ;;  %v10589_v31 = vld [vmem:[#allocation8 + $0x18c] sm:$0xf]  ;;  %v8364_v53 = vld [vmem:[#allocation8 + $0x48] sm:$0xf] }
 0x236   : > { %14554 = vst [vmem:[#allocation109_spill] sm:$0xff] %v12795_v63  ;;  %v10551_v33 = vld [vmem:[#allocation8 + $0x54] sm:$0xf0]  ;;  %v8462_v27 = vld [vmem:[#allocation8 + $0x118] sm:$0xf0] }
 0x237   : > { %14555 = vst [vmem:[#allocation110_spill] sm:$0xff] %v12797_v59  ;;  %3067 = vmatmul.bf16.vlgmr.msra.gmra.mxu0 %v12785_v16  ;;  %3080 = vmatmul.bf16.vlgmr.msra.gmra.mxu1 %v12791_v32  ;;  %v10726_v50 = vld [vmem:[#allocation8 + $0x5cc] sm:$0xf0]  ;;  %v10692_v35 = vld [vmem:[#allocation8 + $0x4c4] sm:$0xf] }
 0x238   : > { %3111 = vmatpush.bf16.msrb.mxu0 %v12773_v43  ;;  %3124 = vmatpush.bf16.msrb.mxu1 %v12775_v30  ;;  %14556 = vst [vmem:[#allocation111_spill] sm:$0xff] %v12801_v49  ;;  %v10591_v30 = vld [vmem:[#allocation8 + $0x194] sm:$0xf0]  ;;  %v10557_v43 = vld [vmem:[#allocation8 + $0x8c] sm:$0xf] }
 0x239   : > { %3137 = vmatpush.bf16.msrb.mxu2 %v12777_v6  ;;  %3150 = vmatpush.bf16.msrb.mxu3 %v12779_v26  ;;  %14557 = vst [vmem:[#allocation112_spill] sm:$0xff] %v12803_v18  ;;  %v12819_v26 = vor.u32 %v10593_v42, %v8542_v56  ;;  %v8524_v6 = vld [vmem:[#allocation8 + $0x188] sm:$0xf]  ;;  %v10587_v56 = vld [vmem:[#allocation8 + $0x174] sm:$0xf0] }
 0x23a   : > { %3093 = vmatmul.bf16.vlgmr.msra.gmra.mxu2 %v12785_v16  ;;  %3106 = vmatmul.bf16.vlgmr.msra.gmra.mxu3 %v12791_v32  ;;  %14558 = vst [vmem:[#allocation113_spill] sm:$0xff] %v12811_v36  ;;  %v12825_v2 = vor.u32 %v10591_v30, %v8524_v6  ;;  %v8508_v42 = vld [vmem:[#allocation8 + $0x168] sm:$0xf]  ;;  %v12835_v30 = vor.u32 %v10555_v1, %v8380_v52 }
 0x23b   : > { %14559 = vst [vmem:[#allocation114_spill] sm:$0xff] %v12813_v0  ;;  %v12837_v6 = vor.u32 %v10587_v56, %v8508_v42  ;;  %v12847_v52 = vor.u32 %v10551_v33, %v8364_v53  ;;  %v8348_v42 = vld [vmem:[#allocation8 + $0x28] sm:$0xf]  ;;  %v10547_v56 = vld [vmem:[#allocation8 + $0x34] sm:$0xf0] }
 0x23c   : > { %3112 = vmatpush.bf16.msrb.mxu0 %v12795_v63  ;;  %3125 = vmatpush.bf16.msrb.mxu1 %v12797_v59  ;;  %14560 = vst [vmem:[#allocation115_spill] sm:$0xff] %v12817_v8  ;;  %v8398_v63 = vld [vmem:[#allocation8 + $0x98] sm:$0xf0]  ;;  %v8332_v53 = vld [vmem:[#allocation8 + $0x8] sm:$0xf]  ;;  %v12859_v33 = vor.u32 %v10547_v56, %v8348_v42 }
 0x23d   : > { %3138 = vmatpush.bf16.msrb.mxu2 %v12801_v49  ;;  %3151 = vmatpush.bf16.msrb.mxu3 %v12803_v18  ;;  %14561 = vst [vmem:[#allocation116_spill] sm:$0xff] %v12819_v26  ;;  %v8526_v59 = vld [vmem:[#allocation8 + $0x198] sm:$0xf0]  ;;  %v12829_v28 = vor.u32 %v10557_v43, %v8398_v63  ;;  %v10553_v18 = vld [vmem:[#allocation8 + $0x6c] sm:$0xf] }
 0x23e   : > { %14562 = vst [vmem:[#allocation117_spill] sm:$0xff] %v12823_v20  ;;  %v12831_v38 = vor.u32 %v10589_v31, %v8526_v59  ;;  %v10585_v49 = vld [vmem:[#allocation8 + $0x16c] sm:$0xf]  ;;  %v8492_v63 = vld [vmem:[#allocation8 + $0x148] sm:$0xf] }
 0x23f   : > { %14563 = vst [vmem:[#allocation118_spill] sm:$0xff] %v12825_v2  ;;  %v10583_v59 = vld [vmem:[#allocation8 + $0x154] sm:$0xf0]  ;;  %v10698_v42 = vld [vmem:[#allocation8 + $0x4ec] sm:$0xf0] }
 0x240   : > { %3113 = vmatpush.bf16.msrb.mxu0 %v12811_v36  ;;  %3126 = vmatpush.bf16.msrb.mxu1 %v12813_v0  ;;  %14564 = vst [vmem:[#allocation119_spill] sm:$0xff] %v12829_v28  ;;  %v8382_v36 = vld [vmem:[#allocation8 + $0x78] sm:$0xf0]  ;;  %v12849_v1 = vor.u32 %v10583_v59, %v8492_v63  ;;  %v10543_v59 = vld [vmem:[#allocation8 + $0x14] sm:$0xf0] }
 0x241   : > { %3139 = vmatpush.bf16.msrb.mxu2 %v12817_v8  ;;  %3152 = vmatpush.bf16.msrb.mxu3 %v12819_v26  ;;  %14565 = vst [vmem:[#allocation120_spill] sm:$0xff] %v12831_v38  ;;  %v8510_v0 = vld [vmem:[#allocation8 + $0x178] sm:$0xf0]  ;;  %v12841_v43 = vor.u32 %v10553_v18, %v8382_v36  ;;  %v10549_v26 = vld [vmem:[#allocation8 + $0x4c] sm:$0xf] }
 0x242   : > { %14566 = vst [vmem:[#allocation121_spill] sm:$0xff] %v12835_v30  ;;  %v12843_v31 = vor.u32 %v10585_v49, %v8510_v0  ;;  %v10581_v8 = vld [vmem:[#allocation8 + $0x14c] sm:$0xf]  ;;  %v8476_v36 = vld [vmem:[#allocation8 + $0x128] sm:$0xf] }
 0x243   : > { %14567 = vst [vmem:[#allocation122_spill] sm:$0xff] %v12837_v6  ;;  %v10579_v0 = vld [vmem:[#allocation8 + $0x134] sm:$0xf0]  ;;  %v8820_v56 = vld [vmem:[#allocation8 + $0x5e0] sm:$0xf] }
 0x244   : > { %3114 = vmatpush.bf16.msrb.mxu0 %v12823_v20  ;;  %3127 = vmatpush.bf16.msrb.mxu1 %v12825_v2  ;;  %14568 = vst [vmem:[#allocation123_spill] sm:$0xff] %v12841_v43  ;;  %v8366_v20 = vld [vmem:[#allocation8 + $0x58] sm:$0xf0]  ;;  %v12861_v63 = vor.u32 %v10579_v0, %v8476_v36  ;;  %v10730_v36 = vld [vmem:[#allocation8 + $0x5ec] sm:$0xf0] }
 0x245   : > { %3140 = vmatpush.bf16.msrb.mxu2 %v12829_v28  ;;  %3153 = vmatpush.bf16.msrb.mxu3 %v12831_v38  ;;  %14569 = vst [vmem:[#allocation124_spill] sm:$0xff] %v12843_v31  ;;  %v8494_v2 = vld [vmem:[#allocation8 + $0x158] sm:$0xf0]  ;;  %v12853_v49 = vor.u32 %v10549_v26, %v8366_v20  ;;  %v10545_v38 = vld [vmem:[#allocation8 + $0x2c] sm:$0xf] }
 0x246   : > { %14570 = vst [vmem:[#allocation125_spill] sm:$0xff] %v12847_v52  ;;  %v12855_v18 = vor.u32 %v10581_v8, %v8494_v2  ;;  %v10577_v28 = vld [vmem:[#allocation8 + $0x12c] sm:$0xf]  ;;  %v8460_v26 = vld [vmem:[#allocation8 + $0x108] sm:$0xf] }
 0x247   : > { %14571 = vst [vmem:[#allocation126_spill] sm:$0xff] %v12849_v1  ;;  %v10575_v20 = vld [vmem:[#allocation8 + $0x114] sm:$0xf0]  ;;  %v10696_v0 = vld [vmem:[#allocation8 + $0x4e4] sm:$0xf] }
 0x248   : > { %3115 = vmatpush.bf16.msrb.mxu0 %v12835_v30  ;;  %3128 = vmatpush.bf16.msrb.mxu1 %v12837_v6  ;;  %14572 = vst [vmem:[#allocation127_spill] sm:$0xff] %v12853_v49  ;;  %v8350_v30 = vld [vmem:[#allocation8 + $0x38] sm:$0xf0] }
 0x249   : > { %3141 = vmatpush.bf16.msrb.mxu2 %v12841_v43  ;;  %3154 = vmatpush.bf16.msrb.mxu3 %v12843_v31  ;;  %14573 = vst [vmem:[#allocation128_spill] sm:$0xff] %v12855_v18  ;;  %v8478_v6 = vld [vmem:[#allocation8 + $0x138] sm:$0xf0]  ;;  %v12865_v8 = vor.u32 %v10545_v38, %v8350_v30  ;;  %v10541_v31 = vld [vmem:[#allocation8 + $0xc] sm:$0xf] }
 0x24a   : > { %14574 = vst [vmem:[#allocation129_spill] sm:$0xff] %v12859_v33  ;;  %v12867_v2 = vor.u32 %v10577_v28, %v8478_v6  ;;  %v8334_v43 = vld [vmem:[#allocation8 + $0x18] sm:$0xf0]  ;;  %v8694_v38 = vld [vmem:[#allocation8 + $0x4f0] sm:$0xf0] }
 0x24b   : > { %14575 = vst [vmem:[#allocation130_spill] sm:$0xff] %v12861_v63  ;;  %v10728_v28 = vld [vmem:[#allocation8 + $0x5e4] sm:$0xf]  ;;  %v8822_v30 = vld [vmem:[#allocation8 + $0x5f0] sm:$0xf0]  ;;  %v12877_v6 = vor.u32 %v10541_v31, %v8334_v43 }
 0x24c   : > { %3116 = vmatpush.bf16.msrb.mxu0 %v12847_v52  ;;  %3129 = vmatpush.bf16.msrb.mxu1 %v12849_v1  ;;  %14576 = vst [vmem:[#allocation131_spill] sm:$0xff] %v12865_v8  ;;  %v10573_v52 = vld [vmem:[#allocation8 + $0x10c] sm:$0xf]  ;;  %v8692_v1 = vld [vmem:[#allocation8 + $0x4e0] sm:$0xf] }
 0x24d   : > { %3142 = vmatpush.bf16.msrb.mxu2 %v12853_v49  ;;  %3155 = vmatpush.bf16.msrb.mxu3 %v12855_v18  ;;  %14577 = vst [vmem:[#allocation132_spill] sm:$0xff] %v12867_v2  ;;  %v12871_v49 = vor.u32 %v10543_v59, %v8332_v53  ;;  %v12873_v18 = vor.u32 %v10575_v20, %v8460_v26  ;;  %v10694_v53 = vld [vmem:[#allocation8 + $0x4cc] sm:$0xf0]  ;;  %v8804_v20 = vld [vmem:[#allocation8 + $0x5c0] sm:$0xf] }
 0x24e   : > { %14580 = vst [vmem:[#allocation135_spill] sm:$0xff] %v12877_v6  ;;  %v12879_v24 = vor.u32 %v10573_v52, %v8462_v27  ;;  %v12881_v60 = vor.u32 %v10698_v42, %v8692_v1  ;;  %v12885_v59 = vor.u32 %v10696_v0, %v8694_v38  ;;  %v12887_v26 = vor.u32 %v10728_v28, %v8822_v30  ;;  %v8678_v43 = vld [vmem:[#allocation8 + $0x4d0] sm:$0xf0]  ;;  %v10724_v27 = vld [vmem:[#allocation8 + $0x5c4] sm:$0xf] }
 0x24f   : > { %14578 = vst [vmem:[#allocation133_spill] sm:$0xff] %v12871_v49  ;;  %v8806_v31 = vld [vmem:[#allocation8 + $0x5d0] sm:$0xf0]  ;;  %v12897_v1 = vor.u32 %v10726_v50, %v8804_v20  ;;  %v8660_v42 = vld [vmem:[#allocation8 + $0x4a0] sm:$0xf] }
 0x250   : > { %3117 = vmatpush.bf16.msrb.mxu0 %v12859_v33  ;;  %3130 = vmatpush.bf16.msrb.mxu1 %v12861_v63  ;;  %14579 = vst [vmem:[#allocation134_spill] sm:$0xff] %v12873_v18  ;;  %v12883_v33 = vor.u32 %v10730_v36, %v8820_v56  ;;  %v8676_v63 = vld [vmem:[#allocation8 + $0x4c0] sm:$0xf]  ;;  %v10690_v56 = vld [vmem:[#allocation8 + $0x4ac] sm:$0xf0]  ;;  %v12901_v36 = vor.u32 %v10692_v35, %v8678_v43 }
 0x251   : > { %3143 = vmatpush.bf16.msrb.mxu2 %v12865_v8  ;;  %3156 = vmatpush.bf16.msrb.mxu3 %v12867_v2  ;;  %14581 = vst [vmem:[#allocation136_spill] sm:$0xff] %v12879_v24  ;;  %v12895_v52 = vor.u32 %v10694_v53, %v8676_v63  ;;  %v12903_v0 = vor.u32 %v10724_v27, %v8806_v31  ;;  %v8788_v38 = vld [vmem:[#allocation8 + $0x5a0] sm:$0xf]  ;;  %v10722_v28 = vld [vmem:[#allocation8 + $0x5ac] sm:$0xf0]  ;;  %v3229_v8 = vshrl.u32 %v12785_v16, 16 }
 0x252   : > { %14582 = vst [vmem:[#allocation137_spill] sm:$0xff] %v12881_v60  ;;  %v10688_v30 = vld [vmem:[#allocation8 + $0x4a4] sm:$0xf]  ;;  %v8662_v63 = vld [vmem:[#allocation8 + $0x4b0] sm:$0xf0]  ;;  %v12911_v35 = vor.u32 %v10690_v56, %v8660_v42  ;;  %v12913_v20 = vor.u32 %v10722_v28, %v8788_v38 }
 0x253   : > { %14583 = vst [vmem:[#allocation138_spill] sm:$0xff] %v12883_v33  ;;  %v10720_v50 = vld [vmem:[#allocation8 + $0x5a4] sm:$0xf]  ;;  %v8790_v53 = vld [vmem:[#allocation8 + $0x5b0] sm:$0xf0]  ;;  %v12917_v31 = vor.u32 %v10688_v30, %v8662_v63 }
 0x254   : > { %14584 = vst [vmem:[#allocation139_spill] sm:$0xff] %v12885_v59  ;;  %3118 = vmatpush.bf16.msrb.mxu0 %v12871_v49  ;;  %3131 = vmatpush.bf16.msrb.mxu1 %v12873_v18  ;;  %v8644_v43 = vld [vmem:[#allocation8 + $0x480] sm:$0xf]  ;;  %v10686_v27 = vld [vmem:[#allocation8 + $0x48c] sm:$0xf0] }
 0x255   : > { %14585 = vst [vmem:[#allocation140_spill] sm:$0xff] %v12887_v26  ;;  %3144 = vmatpush.bf16.msrb.mxu2 %v12877_v6  ;;  %3157 = vmatpush.bf16.msrb.mxu3 %v12879_v24  ;;  %v10716_v24 = vld [vmem:[#allocation8 + $0x584] sm:$0xf]  ;;  %v12923_v42 = vor.u32 %v10686_v27, %v8644_v43  ;;  %v8628_v38 = vld [vmem:[#allocation8 + $0x460] sm:$0xf] }
 0x256   : > { %14586 = vst [vmem:[#allocation141_spill] sm:$0xff] %v12895_v52  ;;  %v10682_v28 = vld [vmem:[#allocation8 + $0x46c] sm:$0xf0]  ;;  %v8612_v43 = vld [vmem:[#allocation8 + $0x440] sm:$0xf] }
 0x257   : > { %14587 = vst [vmem:[#allocation142_spill] sm:$0xff] %v12897_v1  ;;  %3119 = vmatmul.bf16.vlgmr.msrb.gmra.mxu0 %v12785_v16  ;;  %3132 = vmatmul.bf16.vlgmr.msrb.gmra.mxu1 %v12791_v32  ;;  %v10678_v27 = vld [vmem:[#allocation8 + $0x44c] sm:$0xf0]  ;;  %v10668_v6 = vld [vmem:[#allocation8 + $0x404] sm:$0xf] }
 0x258   : > { %3564 = vmatpush.bf16.msra.mxu0 %v12881_v60  ;;  %3577 = vmatpush.bf16.msra.mxu1 %v12883_v33  ;;  %14588 = vst [vmem:[#allocation143_spill] sm:$0xff] %v12901_v36  ;;  %v10718_v33 = vld [vmem:[#allocation8 + $0x58c] sm:$0xf0]  ;;  %v10684_v60 = vld [vmem:[#allocation8 + $0x484] sm:$0xf] }
 0x259   : > { %3590 = vmatpush.bf16.msra.mxu2 %v12885_v59  ;;  %3603 = vmatpush.bf16.msra.mxu3 %v12887_v26  ;;  %14589 = vst [vmem:[#allocation144_spill] sm:$0xff] %v12903_v0  ;;  %v12919_v26 = vor.u32 %v10720_v50, %v8790_v53  ;;  %v8772_v59 = vld [vmem:[#allocation8 + $0x580] sm:$0xf]  ;;  %v10714_v53 = vld [vmem:[#allocation8 + $0x56c] sm:$0xf0] }
 0x25a   : > { %3145 = vmatmul.bf16.vlgmr.msrb.gmra.mxu2 %v12785_v16  ;;  %3158 = vmatmul.bf16.vlgmr.msrb.gmra.mxu3 %v12791_v32  ;;  %14590 = vst [vmem:[#allocation145_spill] sm:$0xff] %v12911_v35  ;;  %v12925_v56 = vor.u32 %v10718_v33, %v8772_v59  ;;  %v8756_v50 = vld [vmem:[#allocation8 + $0x560] sm:$0xf]  ;;  %v12935_v33 = vor.u32 %v10682_v28, %v8628_v38  ;;  %v8582_v18 = vld [vmem:[#allocation8 + $0x410] sm:$0xf0] }
 0x25b   : > { %14591 = vst [vmem:[#allocation146_spill] sm:$0xff] %v12913_v20  ;;  %v12937_v59 = vor.u32 %v10714_v53, %v8756_v50  ;;  %v12947_v38 = vor.u32 %v10678_v27, %v8612_v43  ;;  %v8596_v50 = vld [vmem:[#allocation8 + $0x420] sm:$0xf]  ;;  %v10674_v53 = vld [vmem:[#allocation8 + $0x42c] sm:$0xf0]  ;;  %v3231_v27 = vshll.u32 %v12785_v16, 16 }
 0x25c   : > { %3565 = vmatpush.bf16.msra.mxu0 %v12895_v52  ;;  %3578 = vmatpush.bf16.msra.mxu1 %v12897_v1  ;;  %14592 = vst [vmem:[#allocation147_spill] sm:$0xff] %v12917_v31  ;;  %v8646_v52 = vld [vmem:[#allocation8 + $0x490] sm:$0xf0]  ;;  %v8580_v43 = vld [vmem:[#allocation8 + $0x400] sm:$0xf] }
 0x25d   : > { %3591 = vmatpush.bf16.msra.mxu2 %v12901_v36  ;;  %3604 = vmatpush.bf16.msra.mxu3 %v12903_v0  ;;  %14593 = vst [vmem:[#allocation148_spill] sm:$0xff] %v12919_v26  ;;  %v8774_v1 = vld [vmem:[#allocation8 + $0x590] sm:$0xf0]  ;;  %v12929_v30 = vor.u32 %v10684_v60, %v8646_v52  ;;  %v10680_v0 = vld [vmem:[#allocation8 + $0x464] sm:$0xf] }
 0x25e   : > { %14594 = vst [vmem:[#allocation149_spill] sm:$0xff] %v12923_v42  ;;  %v12931_v63 = vor.u32 %v10716_v24, %v8774_v1  ;;  %v10712_v36 = vld [vmem:[#allocation8 + $0x564] sm:$0xf]  ;;  %v8740_v52 = vld [vmem:[#allocation8 + $0x540] sm:$0xf] }
 0x25f   : > { %14595 = vst [vmem:[#allocation150_spill] sm:$0xff] %v12925_v56  ;;  %v10710_v1 = vld [vmem:[#allocation8 + $0x54c] sm:$0xf0]  ;;  %v8710_v49 = vld [vmem:[#allocation8 + $0x510] sm:$0xf0] }
 0x260   : > { %3566 = vmatpush.bf16.msra.mxu0 %v12911_v35  ;;  %3579 = vmatpush.bf16.msra.mxu1 %v12913_v20  ;;  %14596 = vst [vmem:[#allocation151_spill] sm:$0xff] %v12929_v30  ;;  %v8630_v35 = vld [vmem:[#allocation8 + $0x470] sm:$0xf0]  ;;  %v12949_v28 = vor.u32 %v10710_v1, %v8740_v52  ;;  %v3238_v52 = vshll.u32 %v12791_v32, 16  ;;  %v12961_v1 = vor.u32 %v10674_v53, %v8596_v50  ;;  %v10699_v50 = vld [vmem:[#allocation8 + $0x4f4] sm:$0xf0] }
 0x261   : > { %3592 = vmatpush.bf16.msra.mxu2 %v12917_v31  ;;  %3605 = vmatpush.bf16.msra.mxu3 %v12919_v26  ;;  %14597 = vst [vmem:[#allocation152_spill] sm:$0xff] %v12931_v63  ;;  %v8758_v20 = vld [vmem:[#allocation8 + $0x570] sm:$0xf0]  ;;  %v12941_v60 = vor.u32 %v10680_v0, %v8630_v35  ;;  %v10676_v26 = vld [vmem:[#allocation8 + $0x444] sm:$0xf] }
 0x262   : > { %14598 = vst [vmem:[#allocation153_spill] sm:$0xff] %v12935_v33  ;;  %v12943_v24 = vor.u32 %v10712_v36, %v8758_v20  ;;  %v10708_v31 = vld [vmem:[#allocation8 + $0x544] sm:$0xf]  ;;  %v8724_v35 = vld [vmem:[#allocation8 + $0x520] sm:$0xf] }
 0x263   : > { %14599 = vst [vmem:[#allocation154_spill] sm:$0xff] %v12937_v59  ;;  %v10706_v20 = vld [vmem:[#allocation8 + $0x52c] sm:$0xf0]  ;;  %v8828_v53 = vld [vmem:[#allocation8 + $0x5e8] sm:$0xf] }
 0x264   : > { %3567 = vmatpush.bf16.msra.mxu0 %v12923_v42  ;;  %3580 = vmatpush.bf16.msra.mxu1 %v12925_v56  ;;  %14600 = vst [vmem:[#allocation155_spill] sm:$0xff] %v12941_v60  ;;  %v8614_v42 = vld [vmem:[#allocation8 + $0x450] sm:$0xf0] }
 0x265   : > { %3593 = vmatpush.bf16.msra.mxu2 %v12929_v30  ;;  %3606 = vmatpush.bf16.msra.mxu3 %v12931_v63  ;;  %14601 = vst [vmem:[#allocation156_spill] sm:$0xff] %v12943_v24  ;;  %v8742_v56 = vld [vmem:[#allocation8 + $0x550] sm:$0xf0]  ;;  %v12953_v36 = vor.u32 %v10676_v26, %v8614_v42  ;;  %v10672_v63 = vld [vmem:[#allocation8 + $0x424] sm:$0xf]  ;;  %v12963_v26 = vor.u32 %v10706_v20, %v8724_v35 }
 0x266   : > { %14602 = vst [vmem:[#allocation157_spill] sm:$0xff] %v12947_v38  ;;  %v12955_v0 = vor.u32 %v10708_v31, %v8742_v56  ;;  %v10704_v30 = vld [vmem:[#allocation8 + $0x524] sm:$0xf]  ;;  %v10670_v31 = vld [vmem:[#allocation8 + $0x40c] sm:$0xf0] }
 0x267   : > { %14603 = vst [vmem:[#allocation158_spill] sm:$0xff] %v12949_v28  ;;  %v8708_v42 = vld [vmem:[#allocation8 + $0x500] sm:$0xf]  ;;  %v10702_v56 = vld [vmem:[#allocation8 + $0x50c] sm:$0xf0] }
 0x268   : > { %3568 = vmatpush.bf16.msra.mxu0 %v12935_v33  ;;  %3581 = vmatpush.bf16.msra.mxu1 %v12937_v59  ;;  %14604 = vst [vmem:[#allocation159_spill] sm:$0xff] %v12953_v36  ;;  %v8598_v33 = vld [vmem:[#allocation8 + $0x430] sm:$0xf0]  ;;  %v10731_v35 = vld [vmem:[#allocation8 + $0x5f4] sm:$0xf0] }
 0x269   : > { %3594 = vmatpush.bf16.msra.mxu2 %v12941_v60  ;;  %3607 = vmatpush.bf16.msra.mxu3 %v12943_v24  ;;  %14605 = vst [vmem:[#allocation160_spill] sm:$0xff] %v12955_v0  ;;  %v8726_v59 = vld [vmem:[#allocation8 + $0x530] sm:$0xf0]  ;;  %v12967_v24 = vor.u32 %v10672_v63, %v8598_v33  ;;  %v10697_v20 = vld [vmem:[#allocation8 + $0x4ec] sm:$0xf] }
 0x26a   : > { %14606 = vst [vmem:[#allocation161_spill] sm:$0xff] %v12961_v1  ;;  %v12969_v60 = vor.u32 %v10704_v30, %v8726_v59  ;;  %v8702_v63 = vld [vmem:[#allocation8 + $0x4f8] sm:$0xf0]  ;;  %v10729_v30 = vld [vmem:[#allocation8 + $0x5ec] sm:$0xf]  ;;  %v12979_v59 = vor.u32 %v10668_v6, %v8582_v18 }
 0x26b   : > { %14607 = vst [vmem:[#allocation162_spill] sm:$0xff] %v12963_v26  ;;  %v8830_v33 = vld [vmem:[#allocation8 + $0x5f8] sm:$0xf0]  ;;  %v12989_v57 = vor.u32 %v10697_v20, %v8702_v63  ;;  %v8812_v18 = vld [vmem:[#allocation8 + $0x5c8] sm:$0xf] }
 0x26c   : > { %3569 = vmatpush.bf16.msra.mxu0 %v12947_v38  ;;  %3582 = vmatpush.bf16.msra.mxu1 %v12949_v28  ;;  %14608 = vst [vmem:[#allocation163_spill] sm:$0xff] %v12967_v24  ;;  %v10700_v38 = vld [vmem:[#allocation8 + $0x504] sm:$0xf]  ;;  %v8700_v28 = vld [vmem:[#allocation8 + $0x4e8] sm:$0xf] }
 0x26d   : > { %3595 = vmatpush.bf16.msra.mxu2 %v12953_v36  ;;  %3608 = vmatpush.bf16.msra.mxu3 %v12955_v0  ;;  %14609 = vst [vmem:[#allocation164_spill] sm:$0xff] %v12969_v60  ;;  %v12973_v36 = vor.u32 %v10670_v31, %v8580_v43  ;;  %v12975_v0 = vor.u32 %v10702_v56, %v8708_v42  ;;  %v3236_v31 = vshrl.u32 %v12791_v32, 16  ;;  %v3240_v42 = vrot.slane %v3238_v52, 1  ;;  %v8684_v56 = vld [vmem:[#allocation8 + $0x4c8] sm:$0xf] }
 0x26e   : > { %14612 = vst [vmem:[#allocation167_spill] sm:$0xff] %v12979_v59  ;;  %v12981_v2 = vor.u32 %v10700_v38, %v8710_v49  ;;  %v12984_v40 = vor.u32 %v10699_v50, %v8700_v28  ;;  %v12986_v43 = vor.u32 %v10731_v35, %v8828_v53  ;;  %v10727_v6 = vld [vmem:[#allocation8 + $0x5d4] sm:$0xf0]  ;;  %v10693_v49 = vld [vmem:[#allocation8 + $0x4cc] sm:$0xf] }
 0x26f   : > { %14610 = vst [vmem:[#allocation165_spill] sm:$0xff] %v12973_v36  ;;  %v8686_v38 = vld [vmem:[#allocation8 + $0x4d8] sm:$0xf0]  ;;  %v10725_v28 = vld [vmem:[#allocation8 + $0x5cc] sm:$0xf]  ;;  %v13001_v50 = vor.u32 %v3240_v42, %v3236_v31  ;;  %v13005_v35 = vor.u32 %v10727_v6, %v8812_v18 }
 0x270   : > { %3570 = vmatpush.bf16.msra.mxu0 %v12961_v1  ;;  %3583 = vmatpush.bf16.msra.mxu1 %v12963_v26  ;;  %14611 = vst [vmem:[#allocation166_spill] sm:$0xff] %v12975_v0  ;;  %v3233_v1 = vrot.slane %v3231_v27, 1  ;;  %v10695_v26 = vld [vmem:[#allocation8 + $0x4d4] sm:$0xf0]  ;;  %v8814_v27 = vld [vmem:[#allocation8 + $0x5d8] sm:$0xf0] }
 0x271   : > { %3596 = vmatpush.bf16.msra.mxu2 %v12967_v24  ;;  %3609 = vmatpush.bf16.msra.mxu3 %v12969_v60  ;;  %14613 = vst [vmem:[#allocation168_spill] sm:$0xff] %v12981_v2  ;;  %v12991_v24 = vor.u32 %v10729_v30, %v8830_v33  ;;  %v13003_v53 = vor.u32 %v10695_v26, %v8684_v56  ;;  %v8668_v20 = vld [vmem:[#allocation8 + $0x4a8] sm:$0xf]  ;;  %v10691_v63 = vld [vmem:[#allocation8 + $0x4b4] sm:$0xf0] }
 0x272   : > { %14614 = vst [vmem:[#allocation169_spill] sm:$0xff] %v12984_v40  ;;  %v12997_v52 = vor.u32 %v3233_v1, %v3229_v8  ;;  %v13009_v30 = vor.u32 %v10693_v49, %v8686_v38  ;;  %v13011_v8 = vor.u32 %v10725_v28, %v8814_v27  ;;  %v8796_v1 = vld [vmem:[#allocation8 + $0x5a8] sm:$0xf]  ;;  %v10723_v33 = vld [vmem:[#allocation8 + $0x5b4] sm:$0xf0]  ;;  %v13019_v56 = vor.u32 %v10691_v63, %v8668_v20 }
 0x273   : > { %14615 = vst [vmem:[#allocation170_spill] sm:$0xff] %v12986_v43  ;;  %v8670_v26 = vld [vmem:[#allocation8 + $0x4b8] sm:$0xf0]  ;;  %v10721_v31 = vld [vmem:[#allocation8 + $0x5ac] sm:$0xf]  ;;  %v13021_v18 = vor.u32 %v10723_v33, %v8796_v1 }
 0x274   : > { %14616 = vst [vmem:[#allocation171_spill] sm:$0xff] %v12989_v57  ;;  %3571 = vmatpush.bf16.msra.mxu0 %v12973_v36  ;;  %3584 = vmatpush.bf16.msra.mxu1 %v12975_v0  ;;  %v8798_v42 = vld [vmem:[#allocation8 + $0x5b8] sm:$0xf0]  ;;  %v8652_v6 = vld [vmem:[#allocation8 + $0x488] sm:$0xf] }
 0x275   : > { %14617 = vst [vmem:[#allocation172_spill] sm:$0xff] %v12991_v24  ;;  %3597 = vmatpush.bf16.msra.mxu2 %v12979_v59  ;;  %3610 = vmatpush.bf16.msra.mxu3 %v12981_v2  ;;  %v10687_v49 = vld [vmem:[#allocation8 + $0x494] sm:$0xf0]  ;;  %v13027_v28 = vor.u32 %v10721_v31, %v8798_v42  ;;  %v8780_v27 = vld [vmem:[#allocation8 + $0x588] sm:$0xf] }
 0x276   : > { %14618 = vst [vmem:[#allocation173_spill] sm:$0xff] %v13003_v53  ;;  %v13031_v20 = vor.u32 %v10687_v49, %v8652_v6  ;;  %v8636_v1 = vld [vmem:[#allocation8 + $0x468] sm:$0xf]  ;;  %v10683_v33 = vld [vmem:[#allocation8 + $0x474] sm:$0xf0] }
 0x277   : > { %14619 = vst [vmem:[#allocation174_spill] sm:$0xff] %v13005_v35  ;;  %3572 = vmatmul.bf16.vlgmr.msra.gmra.mxu0 %v12997_v52  ;;  %3585 = vmatmul.bf16.vlgmr.msra.gmra.mxu1 %v13001_v50  ;;  %v8764_v31 = vld [vmem:[#allocation8 + $0x568] sm:$0xf]  ;;  %v10715_v42 = vld [vmem:[#allocation8 + $0x574] sm:$0xf0] }
 0x278   : > { %3616 = vmatpush.bf16.msrb.mxu0 %v12984_v40  ;;  %3629 = vmatpush.bf16.msrb.mxu1 %v12986_v43  ;;  %14620 = vst [vmem:[#allocation175_spill] sm:$0xff] %v13009_v30  ;;  %v10689_v40 = vld [vmem:[#allocation8 + $0x4ac] sm:$0xf]  ;;  %v13045_v6 = vor.u32 %v10715_v42, %v8764_v31  ;;  %v8620_v49 = vld [vmem:[#allocation8 + $0x448] sm:$0xf] }
 0x279   : > { %3642 = vmatpush.bf16.msrb.mxu2 %v12989_v57  ;;  %3655 = vmatpush.bf16.msrb.mxu3 %v12991_v24  ;;  %14621 = vst [vmem:[#allocation176_spill] sm:$0xff] %v13011_v8  ;;  %v13025_v38 = vor.u32 %v10689_v40, %v8670_v26  ;;  %v10719_v24 = vld [vmem:[#allocation8 + $0x594] sm:$0xf0]  ;;  %v10685_v57 = vld [vmem:[#allocation8 + $0x48c] sm:$0xf] }
 0x27a   : > { %3598 = vmatmul.bf16.vlgmr.msra.gmra.mxu2 %v12997_v52  ;;  %3611 = vmatmul.bf16.vlgmr.msra.gmra.mxu3 %v13001_v50  ;;  %14622 = vst [vmem:[#allocation177_spill] sm:$0xff] %v13019_v56  ;;  %v10717_v43 = vld [vmem:[#allocation8 + $0x58c] sm:$0xf]  ;;  %v13033_v63 = vor.u32 %v10719_v24, %v8780_v27  ;;  %v13043_v24 = vor.u32 %v10683_v33, %v8636_v1  ;;  %v10679_v27 = vld [vmem:[#allocation8 + $0x454] sm:$0xf0] }
 0x27b   : > { %14623 = vst [vmem:[#allocation178_spill] sm:$0xff] %v13021_v18  ;;  %v13055_v1 = vor.u32 %v10679_v27, %v8620_v49  ;;  %v8604_v31 = vld [vmem:[#allocation8 + $0x428] sm:$0xf]  ;;  %v10675_v42 = vld [vmem:[#allocation8 + $0x434] sm:$0xf0] }
 0x27c   : > { %3617 = vmatpush.bf16.msrb.mxu0 %v13003_v53  ;;  %3630 = vmatpush.bf16.msrb.mxu1 %v13005_v35  ;;  %14624 = vst [vmem:[#allocation179_spill] sm:$0xff] %v13025_v38  ;;  %v8654_v53 = vld [vmem:[#allocation8 + $0x498] sm:$0xf0]  ;;  %v8588_v49 = vld [vmem:[#allocation8 + $0x408] sm:$0xf]  ;;  %v13067_v27 = vor.u32 %v10675_v42, %v8604_v31 }
 0x27d   : > { %3643 = vmatpush.bf16.msrb.mxu2 %v13009_v30  ;;  %3656 = vmatpush.bf16.msrb.mxu3 %v13011_v8  ;;  %14625 = vst [vmem:[#allocation180_spill] sm:$0xff] %v13027_v28  ;;  %v8782_v35 = vld [vmem:[#allocation8 + $0x598] sm:$0xf0]  ;;  %v13037_v40 = vor.u32 %v10685_v57, %v8654_v53  ;;  %v10681_v8 = vld [vmem:[#allocation8 + $0x46c] sm:$0xf] }
 0x27e   : > { %14626 = vst [vmem:[#allocation181_spill] sm:$0xff] %v13031_v20  ;;  %v13039_v26 = vor.u32 %v10717_v43, %v8782_v35  ;;  %v10713_v30 = vld [vmem:[#allocation8 + $0x56c] sm:$0xf]  ;;  %v8748_v53 = vld [vmem:[#allocation8 + $0x548] sm:$0xf] }
 0x27f   : > { %14627 = vst [vmem:[#allocation182_spill] sm:$0xff] %v13033_v63  ;;  %v10711_v35 = vld [vmem:[#allocation8 + $0x554] sm:$0xf0]  ;;  %v8718_v2 = vld [vmem:[#allocation8 + $0x518] sm:$0xf0] }
 0x280   : > { %3618 = vmatpush.bf16.msrb.mxu0 %v13019_v56  ;;  %3631 = vmatpush.bf16.msrb.mxu1 %v13021_v18  ;;  %14628 = vst [vmem:[#allocation183_spill] sm:$0xff] %v13037_v40  ;;  %v8638_v56 = vld [vmem:[#allocation8 + $0x478] sm:$0xf0]  ;;  %v13057_v33 = vor.u32 %v10711_v35, %v8748_v53  ;;  %v10671_v35 = vld [vmem:[#allocation8 + $0x414] sm:$0xf0] }
 0x281   : > { %3644 = vmatpush.bf16.msrb.mxu2 %v13025_v38  ;;  %3657 = vmatpush.bf16.msrb.mxu3 %v13027_v28  ;;  %14629 = vst [vmem:[#allocation184_spill] sm:$0xff] %v13039_v26  ;;  %v8766_v18 = vld [vmem:[#allocation8 + $0x578] sm:$0xf0]  ;;  %v13049_v57 = vor.u32 %v10681_v8, %v8638_v56  ;;  %v10677_v28 = vld [vmem:[#allocation8 + $0x44c] sm:$0xf] }
 0x282   : > { %14630 = vst [vmem:[#allocation185_spill] sm:$0xff] %v13043_v24  ;;  %v13051_v43 = vor.u32 %v10713_v30, %v8766_v18  ;;  %v10709_v38 = vld [vmem:[#allocation8 + $0x54c] sm:$0xf]  ;;  %v8732_v56 = vld [vmem:[#allocation8 + $0x528] sm:$0xf] }
 0x283   : > { %14631 = vst [vmem:[#allocation186_spill] sm:$0xff] %v13045_v6  ;;  %v10707_v18 = vld [vmem:[#allocation8 + $0x534] sm:$0xf0]  ;;  %v10762_v31 = vld [vmem:[#allocation8 + $0x6ec] sm:$0xf0] }
 0x284   : > { %3619 = vmatpush.bf16.msrb.mxu0 %v13031_v20  ;;  %3632 = vmatpush.bf16.msrb.mxu1 %v13033_v63  ;;  %14632 = vst [vmem:[#allocation187_spill] sm:$0xff] %v13049_v57  ;;  %v8622_v20 = vld [vmem:[#allocation8 + $0x458] sm:$0xf0]  ;;  %v13069_v53 = vor.u32 %v10707_v18, %v8732_v56  ;;  %v9076_v42 = vld [vmem:[#allocation8 + $0x7e0] sm:$0xf] }
 0x285   : > { %3645 = vmatpush.bf16.msrb.mxu2 %v13037_v40  ;;  %3658 = vmatpush.bf16.msrb.mxu3 %v13039_v26  ;;  %14633 = vst [vmem:[#allocation188_spill] sm:$0xff] %v13051_v43  ;;  %v8750_v63 = vld [vmem:[#allocation8 + $0x558] sm:$0xf0]  ;;  %v13061_v30 = vor.u32 %v10677_v28, %v8622_v20  ;;  %v10673_v26 = vld [vmem:[#allocation8 + $0x42c] sm:$0xf] }
 0x286   : > { %14634 = vst [vmem:[#allocation189_spill] sm:$0xff] %v13055_v1  ;;  %v13063_v8 = vor.u32 %v10709_v38, %v8750_v63  ;;  %v10705_v40 = vld [vmem:[#allocation8 + $0x52c] sm:$0xf]  ;;  %v8716_v28 = vld [vmem:[#allocation8 + $0x508] sm:$0xf] }
 0x287   : > { %14635 = vst [vmem:[#allocation190_spill] sm:$0xff] %v13057_v33  ;;  %v10703_v20 = vld [vmem:[#allocation8 + $0x514] sm:$0xf0]  ;;  %v10794_v56 = vld [vmem:[#allocation8 + $0x7ec] sm:$0xf0] }
 0x288   : > { %3620 = vmatpush.bf16.msrb.mxu0 %v13043_v24  ;;  %3633 = vmatpush.bf16.msrb.mxu1 %v13045_v6  ;;  %14636 = vst [vmem:[#allocation191_spill] sm:$0xff] %v13061_v30  ;;  %v8606_v24 = vld [vmem:[#allocation8 + $0x438] sm:$0xf0]  ;;  %v10760_v18 = vld [vmem:[#allocation8 + $0x6e4] sm:$0xf] }
 0x289   : > { %3646 = vmatpush.bf16.msrb.mxu2 %v13049_v57  ;;  %3659 = vmatpush.bf16.msrb.mxu3 %v13051_v43  ;;  %14637 = vst [vmem:[#allocation192_spill] sm:$0xff] %v13063_v8  ;;  %v8734_v6 = vld [vmem:[#allocation8 + $0x538] sm:$0xf0]  ;;  %v13073_v38 = vor.u32 %v10673_v26, %v8606_v24  ;;  %v10669_v43 = vld [vmem:[#allocation8 + $0x40c] sm:$0xf] }
 0x28a   : > { %14638 = vst [vmem:[#allocation193_spill] sm:$0xff] %v13067_v27  ;;  %v13075_v63 = vor.u32 %v10705_v40, %v8734_v6  ;;  %v8590_v57 = vld [vmem:[#allocation8 + $0x418] sm:$0xf0]  ;;  %v8950_v26 = vld [vmem:[#allocation8 + $0x6f0] sm:$0xf0] }
 0x28b   : > { %14639 = vst [vmem:[#allocation194_spill] sm:$0xff] %v13069_v53  ;;  %v10792_v40 = vld [vmem:[#allocation8 + $0x7e4] sm:$0xf]  ;;  %v9078_v24 = vld [vmem:[#allocation8 + $0x7f0] sm:$0xf0]  ;;  %v13085_v6 = vor.u32 %v10669_v43, %v8590_v57 }
 0x28c   : > { %3621 = vmatpush.bf16.msrb.mxu0 %v13055_v1  ;;  %3634 = vmatpush.bf16.msrb.mxu1 %v13057_v33  ;;  %14640 = vst [vmem:[#allocation195_spill] sm:$0xff] %v13073_v38  ;;  %v10701_v1 = vld [vmem:[#allocation8 + $0x50c] sm:$0xf]  ;;  %v8948_v33 = vld [vmem:[#allocation8 + $0x6e0] sm:$0xf] }
 0x28d   : > { %3647 = vmatpush.bf16.msrb.mxu2 %v13061_v30  ;;  %3660 = vmatpush.bf16.msrb.mxu3 %v13063_v8  ;;  %14641 = vst [vmem:[#allocation196_spill] sm:$0xff] %v13075_v63  ;;  %v13079_v30 = vor.u32 %v10671_v35, %v8588_v49  ;;  %v13081_v8 = vor.u32 %v10703_v20, %v8716_v28  ;;  %v10758_v49 = vld [vmem:[#allocation8 + $0x6cc] sm:$0xf0]  ;;  %v9060_v20 = vld [vmem:[#allocation8 + $0x7c0] sm:$0xf] }
 0x28e   : > { %14644 = vst [vmem:[#allocation199_spill] sm:$0xff] %v13085_v6  ;;  %v13087_v59 = vor.u32 %v10701_v1, %v8718_v2  ;;  %v13089_v0 = vor.u32 %v10762_v31, %v8948_v33  ;;  %v13093_v35 = vor.u32 %v10760_v18, %v8950_v26  ;;  %v13095_v28 = vor.u32 %v10792_v40, %v9078_v24  ;;  %v10790_v36 = vld [vmem:[#allocation8 + $0x7cc] sm:$0xf0]  ;;  %v10756_v60 = vld [vmem:[#allocation8 + $0x6c4] sm:$0xf] }
 0x28f   : > { %14642 = vst [vmem:[#allocation197_spill] sm:$0xff] %v13079_v30  ;;  %v8934_v57 = vld [vmem:[#allocation8 + $0x6d0] sm:$0xf0]  ;;  %v10788_v2 = vld [vmem:[#allocation8 + $0x7c4] sm:$0xf]  ;;  %v13105_v33 = vor.u32 %v10790_v36, %v9060_v20 }
 0x290   : > { %3622 = vmatpush.bf16.msrb.mxu0 %v13067_v27  ;;  %3635 = vmatpush.bf16.msrb.mxu1 %v13069_v53  ;;  %14643 = vst [vmem:[#allocation198_spill] sm:$0xff] %v13081_v8  ;;  %v13091_v27 = vor.u32 %v10794_v56, %v9076_v42  ;;  %v8932_v53 = vld [vmem:[#allocation8 + $0x6c0] sm:$0xf]  ;;  %v9062_v43 = vld [vmem:[#allocation8 + $0x7d0] sm:$0xf0]  ;;  %v13109_v56 = vor.u32 %v10756_v60, %v8934_v57 }
 0x291   : > { %3648 = vmatpush.bf16.msrb.mxu2 %v13073_v38  ;;  %3661 = vmatpush.bf16.msrb.mxu3 %v13075_v63  ;;  %14645 = vst [vmem:[#allocation200_spill] sm:$0xff] %v13087_v59  ;;  %v13103_v1 = vor.u32 %v10758_v49, %v8932_v53  ;;  %v8916_v31 = vld [vmem:[#allocation8 + $0x6a0] sm:$0xf]  ;;  %v10754_v42 = vld [vmem:[#allocation8 + $0x6ac] sm:$0xf0]  ;;  %v13111_v18 = vor.u32 %v10788_v2, %v9062_v43 }
 0x292   : > { %14646 = vst [vmem:[#allocation201_spill] sm:$0xff] %v13089_v0  ;;  %v9044_v26 = vld [vmem:[#allocation8 + $0x7a0] sm:$0xf]  ;;  %v10786_v40 = vld [vmem:[#allocation8 + $0x7ac] sm:$0xf0]  ;;  %v13119_v60 = vor.u32 %v10754_v42, %v8916_v31 }
 0x293   : > { %14647 = vst [vmem:[#allocation202_spill] sm:$0xff] %v13091_v27  ;;  %v10752_v24 = vld [vmem:[#allocation8 + $0x6a4] sm:$0xf]  ;;  %v8918_v53 = vld [vmem:[#allocation8 + $0x6b0] sm:$0xf0]  ;;  %v2644_v20 = vpop.f32.mrf.mxu0  ;;  %v13121_v57 = vor.u32 %v10786_v40, %v9044_v26 }
 0x294   : > { %14648 = vst [vmem:[#allocation203_spill] sm:$0xff] %v13093_v35  ;;  %3623 = vmatpush.bf16.msrb.mxu0 %v13079_v30  ;;  %3636 = vmatpush.bf16.msrb.mxu1 %v13081_v8  ;;  %v10784_v36 = vld [vmem:[#allocation8 + $0x7a4] sm:$0xf]  ;;  %v9046_v49 = vld [vmem:[#allocation8 + $0x7b0] sm:$0xf0]  ;;  %v2657_v2 = vpop.f32.mrf.mxu1  ;;  %v3740_v30 = vshll.u32 %v12669_v41, 16 }
 0x295   : > { %14649 = vst [vmem:[#allocation204_spill] sm:$0xff] %v13095_v28  ;;  %3649 = vmatpush.bf16.msrb.mxu2 %v13085_v6  ;;  %3662 = vmatpush.bf16.msrb.mxu3 %v13087_v59  ;;  %v8900_v43 = vld [vmem:[#allocation8 + $0x680] sm:$0xf]  ;;  %v10782_v59 = vld [vmem:[#allocation8 + $0x78c] sm:$0xf0] }
 0x296   : > { %14650 = vst [vmem:[#allocation205_spill] sm:$0xff] %v13103_v1  ;;  %v8902_v31 = vld [vmem:[#allocation8 + $0x690] sm:$0xf0]  ;;  %v10780_v42 = vld [vmem:[#allocation8 + $0x784] sm:$0xf]  ;;  %v3742_v7 = vrot.slane %v3740_v30, 1 }
 0x297   : > { %14651 = vst [vmem:[#allocation206_spill] sm:$0xff] %v13105_v33  ;;  %3624 = vmatmul.bf16.vlgmr.msrb.gmra.mxu0 %v12997_v52  ;;  %3637 = vmatmul.bf16.vlgmr.msrb.gmra.mxu1 %v13001_v50  ;;  %v9030_v26 = vld [vmem:[#allocation8 + $0x790] sm:$0xf0]  ;;  %v10757_v30 = vld [vmem:[#allocation8 + $0x6cc] sm:$0xf] }
 0x298   : > { %4073 = vmatpush.bf16.msra.mxu0 %v13089_v0  ;;  %4086 = vmatpush.bf16.msra.mxu1 %v13091_v27  ;;  %14652 = vst [vmem:[#allocation207_spill] sm:$0xff] %v13109_v56  ;;  %v13127_v27 = vor.u32 %v10784_v36, %v9046_v49  ;;  %v13129_v0 = vadd.f32 %v2657_v2, %v2644_v20  ;;  %v9012_v2 = vld [vmem:[#allocation8 + $0x760] sm:$0xf]  ;;  %v8870_v8 = vld [vmem:[#allocation8 + $0x650] sm:$0xf0] }
 0x299   : > { %4099 = vmatpush.bf16.msra.mxu2 %v13093_v35  ;;  %4112 = vmatpush.bf16.msra.mxu3 %v13095_v28  ;;  %14653 = vst [vmem:[#allocation208_spill] sm:$0xff] %v13111_v18  ;;  %v10750_v28 = vld [vmem:[#allocation8 + $0x68c] sm:$0xf0]  ;;  %v13125_v35 = vor.u32 %v10752_v24, %v8918_v53  ;;  %v8884_v24 = vld [vmem:[#allocation8 + $0x660] sm:$0xf]  ;;  %v13141_v49 = vor.u32 %v10780_v42, %v9030_v26  ;;  %v2670_v20 = vpop.f32.mrf.mxu2 }
 0x29a   : > { %3650 = vmatmul.bf16.vlgmr.msrb.gmra.mxu2 %v12997_v52  ;;  %3663 = vmatmul.bf16.vlgmr.msrb.gmra.mxu3 %v13001_v50  ;;  %14654 = vst [vmem:[#allocation209_spill] sm:$0xff] %v13119_v60  ;;  %v13133_v40 = vor.u32 %v10750_v28, %v8900_v43  ;;  %v10746_v53 = vld [vmem:[#allocation8 + $0x66c] sm:$0xf0]  ;;  %v2683_v6 = vpop.f32.mrf.mxu3  ;;  %v10776_v28 = vld [vmem:[#allocation8 + $0x764] sm:$0xf] }
 0x29b   : > { %14655 = vst [vmem:[#allocation210_spill] sm:$0xff] %v13121_v57  ;;  %v9014_v43 = vld [vmem:[#allocation8 + $0x770] sm:$0xf0]  ;;  %v8868_v42 = vld [vmem:[#allocation8 + $0x640] sm:$0xf] }
 0x29c   : > { %4074 = vmatpush.bf16.msra.mxu0 %v13103_v1  ;;  %4087 = vmatpush.bf16.msra.mxu1 %v13105_v33  ;;  %14656 = vst [vmem:[#allocation211_spill] sm:$0xff] %v13125_v35  ;;  %v9028_v1 = vld [vmem:[#allocation8 + $0x780] sm:$0xf]  ;;  %v10748_v33 = vld [vmem:[#allocation8 + $0x684] sm:$0xf] }
 0x29d   : > { %4100 = vmatpush.bf16.msra.mxu2 %v13109_v56  ;;  %4113 = vmatpush.bf16.msra.mxu3 %v13111_v18  ;;  %14657 = vst [vmem:[#allocation212_spill] sm:$0xff] %v13127_v27  ;;  %v13135_v56 = vor.u32 %v10782_v59, %v9028_v1  ;;  %v13139_v36 = vor.u32 %v10748_v33, %v8902_v31  ;;  %v10778_v18 = vld [vmem:[#allocation8 + $0x76c] sm:$0xf0]  ;;  %v2646_v1 = vpop.f32.mrf.mxu0  ;;  %v2659_v31 = vpop.f32.mrf.mxu1 }
 0x29e   : > { %14658 = vst [vmem:[#allocation213_spill] sm:$0xff] %v13133_v40  ;;  %v13143_v59 = vadd.f32 %v2683_v6, %v2670_v20  ;;  %v13149_v33 = vor.u32 %v10778_v18, %v9012_v2  ;;  %v10742_v26 = vld [vmem:[#allocation8 + $0x64c] sm:$0xf0]  ;;  %v13155_v6 = vor.u32 %v10776_v28, %v9014_v43  ;;  %v8996_v20 = vld [vmem:[#allocation8 + $0x740] sm:$0xf] }
 0x29f   : > { %14659 = vst [vmem:[#allocation214_spill] sm:$0xff] %v13135_v56  ;;  %v10774_v1 = vld [vmem:[#allocation8 + $0x74c] sm:$0xf0]  ;;  %v13159_v18 = vor.u32 %v10742_v26, %v8868_v42  ;;  %v8852_v2 = vld [vmem:[#allocation8 + $0x620] sm:$0xf] }
 0x2a0   : > { %4075 = vmatpush.bf16.msra.mxu0 %v13119_v60  ;;  %4088 = vmatpush.bf16.msra.mxu1 %v13121_v57  ;;  %14660 = vst [vmem:[#allocation215_spill] sm:$0xff] %v13139_v36  ;;  %v10744_v60 = vld [vmem:[#allocation8 + $0x664] sm:$0xf]  ;;  %v8886_v57 = vld [vmem:[#allocation8 + $0x670] sm:$0xf0] }
 0x2a1   : > { %4101 = vmatpush.bf16.msra.mxu2 %v13125_v35  ;;  %4114 = vmatpush.bf16.msra.mxu3 %v13127_v27  ;;  %14661 = vst [vmem:[#allocation216_spill] sm:$0xff] %v13141_v49  ;;  %v13147_v27 = vor.u32 %v10746_v53, %v8884_v24  ;;  %v13153_v35 = vor.u32 %v10744_v60, %v8886_v57  ;;  %v8998_v24 = vld [vmem:[#allocation8 + $0x750] sm:$0xf0]  ;;  %v10738_v31 = vld [vmem:[#allocation8 + $0x62c] sm:$0xf0]  ;;  %v2672_v28 = vpop.f32.mrf.mxu2 }
 0x2a2   : > { %14663 = vst [vmem:[#allocation218_spill] sm:$0xff] %v13149_v33  ;;  %v13161_v53 = vor.u32 %v10774_v1, %v8996_v20  ;;  %v8980_v43 = vld [vmem:[#allocation8 + $0x720] sm:$0xf]  ;;  %v10768_v42 = vld [vmem:[#allocation8 + $0x724] sm:$0xf] }
 0x2a3   : > { %14662 = vst [vmem:[#allocation217_spill] sm:$0xff] %v13147_v27  ;;  %v8982_v26 = vld [vmem:[#allocation8 + $0x730] sm:$0xf0]  ;;  %v8836_v1 = vld [vmem:[#allocation8 + $0x600] sm:$0xf] }
 0x2a4   : > { %4076 = vmatpush.bf16.msra.mxu0 %v13133_v40  ;;  %4089 = vmatpush.bf16.msra.mxu1 %v13135_v56  ;;  %14664 = vst [vmem:[#allocation219_spill] sm:$0xff] %v13153_v35  ;;  %v10740_v40 = vld [vmem:[#allocation8 + $0x644] sm:$0xf]  ;;  %v10766_v28 = vld [vmem:[#allocation8 + $0x70c] sm:$0xf0]  ;;  %v13181_v63 = vor.u32 %v10768_v42, %v8982_v26 }
 0x2a5   : > { %4102 = vmatpush.bf16.msra.mxu2 %v13139_v36  ;;  %4115 = vmatpush.bf16.msra.mxu3 %v13141_v49  ;;  %14665 = vst [vmem:[#allocation220_spill] sm:$0xff] %v13155_v6  ;;  %v10772_v56 = vld [vmem:[#allocation8 + $0x744] sm:$0xf]  ;;  %v13165_v60 = vor.u32 %v10740_v40, %v8870_v8  ;;  %v10770_v49 = vld [vmem:[#allocation8 + $0x72c] sm:$0xf0]  ;;  %v2685_v36 = vpop.f32.mrf.mxu3  ;;  %v2696_v20 = vpop.f32.mrf.mxu0  ;;  %v13173_v8 = vor.u32 %v10738_v31, %v8852_v2 }
 0x2a6   : > { %14666 = vst [vmem:[#allocation221_spill] sm:$0xff] %v13159_v18  ;;  %v13167_v57 = vor.u32 %v10772_v56, %v8998_v24  ;;  %v13175_v56 = vor.u32 %v10770_v49, %v8980_v43  ;;  %v2709_v40 = vpop.f32.mrf.mxu1  ;;  %v10734_v24 = vld [vmem:[#allocation8 + $0x60c] sm:$0xf0]  ;;  %v8964_v36 = vld [vmem:[#allocation8 + $0x700] sm:$0xf] }
 0x2a7   : > { %14667 = vst [vmem:[#allocation222_spill] sm:$0xff] %v13161_v53  ;;  %v13183_v38 = vadd.f32 %v2709_v40, %v2696_v20  ;;  %v10764_v2 = vld [vmem:[#allocation8 + $0x704] sm:$0xf]  ;;  %v8966_v31 = vld [vmem:[#allocation8 + $0x710] sm:$0xf0] }
 0x2a8   : > { %4077 = vmatpush.bf16.msra.mxu0 %v13147_v27  ;;  %4090 = vmatpush.bf16.msra.mxu1 %v13149_v33  ;;  %14668 = vst [vmem:[#allocation223_spill] sm:$0xff] %v13165_v60  ;;  %v10736_v27 = vld [vmem:[#allocation8 + $0x624] sm:$0xf]  ;;  %v8854_v33 = vld [vmem:[#allocation8 + $0x630] sm:$0xf0]  ;;  %v13195_v40 = vor.u32 %v10764_v2, %v8966_v31 }
 0x2a9   : > { %4103 = vmatpush.bf16.msra.mxu2 %v13153_v35  ;;  %4116 = vmatpush.bf16.msra.mxu3 %v13155_v6  ;;  %14669 = vst [vmem:[#allocation224_spill] sm:$0xff] %v13167_v57  ;;  %v3747_v35 = vshll.u32 %v12675_v34, 16  ;;  %v13179_v6 = vor.u32 %v10736_v27, %v8854_v33  ;;  %v8956_v49 = vld [vmem:[#allocation8 + $0x6e8] sm:$0xf]  ;;  %v10763_v43 = vld [vmem:[#allocation8 + $0x6f4] sm:$0xf0]  ;;  %v13189_v27 = vor.u32 %v10766_v28, %v8964_v36 }
 0x2aa   : > { %14670 = vst [vmem:[#allocation225_spill] sm:$0xff] %v13173_v8  ;;  %v8958_v33 = vld [vmem:[#allocation8 + $0x6f8] sm:$0xf0]  ;;  %v10793_v42 = vld [vmem:[#allocation8 + $0x7ec] sm:$0xf]  ;;  %v3745_v36 = vshrl.u32 %v12675_v34, 16 }
 0x2ab   : > { %14671 = vst [vmem:[#allocation226_spill] sm:$0xff] %v13175_v56  ;;  %v9086_v26 = vld [vmem:[#allocation8 + $0x7f8] sm:$0xf0]  ;;  %v3749_v28 = vrot.slane %v3747_v35, 1  ;;  %v13203_v12 = vor.u32 %v10761_v46, %v8958_v33  ;;  %v9068_v31 = vld [vmem:[#allocation8 + $0x7c8] sm:$0xf] }
 0x2ac   : > { %4078 = vmatpush.bf16.msra.mxu0 %v13159_v18  ;;  %4091 = vmatpush.bf16.msra.mxu1 %v13161_v53  ;;  %14672 = vst [vmem:[#allocation227_spill] sm:$0xff] %v13179_v6  ;;  %v10732_v18 = vld [vmem:[#allocation8 + $0x604] sm:$0xf]  ;;  %v8838_v53 = vld [vmem:[#allocation8 + $0x610] sm:$0xf0] }
 0x2ad   : > { %4104 = vmatpush.bf16.msra.mxu2 %v13165_v60  ;;  %4117 = vmatpush.bf16.msra.mxu3 %v13167_v57  ;;  %14673 = vst [vmem:[#allocation228_spill] sm:$0xff] %v13181_v63  ;;  %v13187_v57 = vor.u32 %v10734_v24, %v8836_v1  ;;  %v13193_v20 = vor.u32 %v10732_v18, %v8838_v53  ;;  %v2722_v60 = vpop.f32.mrf.mxu2  ;;  %v2735_v24 = vpop.f32.mrf.mxu3  ;;  %v9070_v35 = vld [vmem:[#allocation8 + $0x7d8] sm:$0xf0] }
 0x2ae   : > { %14675 = vst [vmem:[#allocation230_spill] sm:$0xff] %v13189_v27  ;;  %v13200_v1 = vor.u32 %v10795_v61, %v9084_v54  ;;  %v13205_v18 = vor.u32 %v10793_v42, %v9086_v26  ;;  %v13207_v53 = vadd.f32 %v2735_v24, %v2722_v60  ;;  %v2698_v2 = vpop.f32.mrf.mxu0  ;;  %v2711_v61 = vpop.f32.mrf.mxu1  ;;  %v8942_v54 = vld [vmem:[#allocation8 + $0x6d8] sm:$0xf0]  ;;  %v13217_v60 = vor.u32 %v3749_v28, %v3745_v36  ;;  %v8924_v42 = vld [vmem:[#allocation8 + $0x6a8] sm:$0xf] }
 0x2af   : > { %14674 = vst [vmem:[#allocation229_spill] sm:$0xff] %v13187_v57  ;;  %v10755_v26 = vld [vmem:[#allocation8 + $0x6b4] sm:$0xf0]  ;;  %v13225_v24 = vor.u32 %v10757_v30, %v8942_v54  ;;  %v10753_v61 = vld [vmem:[#allocation8 + $0x6ac] sm:$0xf] }
 0x2b0   : > { %4079 = vmatpush.bf16.msra.mxu0 %v13173_v8  ;;  %4092 = vmatpush.bf16.msra.mxu1 %v13175_v56  ;;  %14676 = vst [vmem:[#allocation231_spill] sm:$0xff] %v13193_v20  ;;  %v3738_v8 = vshrl.u32 %v12669_v41, 16  ;;  %v13198_v56 = vor.u32 %v10763_v43, %v8956_v49  ;;  %v10789_v49 = vld [vmem:[#allocation8 + $0x7cc] sm:$0xf]  ;;  %v10787_v2 = vld [vmem:[#allocation8 + $0x7b4] sm:$0xf0]  ;;  %v13235_v28 = vor.u32 %v10755_v26, %v8924_v42 }
 0x2b1   : > { %4105 = vmatpush.bf16.msra.mxu2 %v13179_v6  ;;  %4118 = vmatpush.bf16.msra.mxu3 %v13181_v63  ;;  %14677 = vst [vmem:[#allocation232_spill] sm:$0xff] %v13195_v40  ;;  %v10759_v6 = vld [vmem:[#allocation8 + $0x6d4] sm:$0xf0]  ;;  %v8908_v54 = vld [vmem:[#allocation8 + $0x688] sm:$0xf] }
 0x2b2   : > { %14678 = vst [vmem:[#allocation233_spill] sm:$0xff] %v13198_v56  ;;  %v10791_v63 = vld [vmem:[#allocation8 + $0x7d4] sm:$0xf0]  ;;  %v13213_v46 = vor.u32 %v3742_v7, %v3738_v8  ;;  %v13219_v43 = vor.u32 %v10759_v6, %v8940_v5  ;;  %v13227_v7 = vor.u32 %v10789_v49, %v9070_v35  ;;  %v9052_v8 = vld [vmem:[#allocation8 + $0x7a8] sm:$0xf] }
 0x2b3   : > { %14679 = vst [vmem:[#allocation234_spill] sm:$0xff] %v13200_v1  ;;  %v13221_v33 = vor.u32 %v10791_v63, %v9068_v31  ;;  %v8926_v5 = vld [vmem:[#allocation8 + $0x6b8] sm:$0xf0]  ;;  %v10785_v63 = vld [vmem:[#allocation8 + $0x7ac] sm:$0xf]  ;;  %v13237_v31 = vor.u32 %v10787_v2, %v9052_v8 }
 0x2b4   : > { %14680 = vst [vmem:[#allocation235_spill] sm:$0xff] %v13203_v12  ;;  %4080 = vmatpush.bf16.msra.mxu0 %v13187_v57  ;;  %4093 = vmatpush.bf16.msra.mxu1 %v13189_v27  ;;  %v9054_v6 = vld [vmem:[#allocation8 + $0x7b8] sm:$0xf0]  ;;  %v10751_v49 = vld [vmem:[#allocation8 + $0x694] sm:$0xf0]  ;;  %v13241_v35 = vor.u32 %v10753_v61, %v8926_v5 }
 0x2b5   : > { %14681 = vst [vmem:[#allocation236_spill] sm:$0xff] %v13205_v18  ;;  %4106 = vmatpush.bf16.msra.mxu2 %v13193_v20  ;;  %4119 = vmatpush.bf16.msra.mxu3 %v13195_v40  ;;  %v2724_v36 = vpop.f32.mrf.mxu2  ;;  %v2737_v30 = vpop.f32.mrf.mxu3  ;;  %v9038_v42 = vld [vmem:[#allocation8 + $0x798] sm:$0xf0]  ;;  %v8892_v5 = vld [vmem:[#allocation8 + $0x668] sm:$0xf] }
 0x2b6   : > { %14682 = vst [vmem:[#allocation237_spill] sm:$0xff] %v13219_v43  ;;  %v9036_v36 = vld [vmem:[#allocation8 + $0x788] sm:$0xf]  ;;  %v3068_v26 = vpop.f32.mrf.mxu0  ;;  %v3081_v8 = vpop.f32.mrf.mxu1  ;;  %v13248_v30 = vor.u32 %v10751_v49, %v8908_v54  ;;  %v10777_v54 = vld [vmem:[#allocation8 + $0x76c] sm:$0xf] }
 0x2b7   : > { %14683 = vst [vmem:[#allocation238_spill] sm:$0xff] %v13221_v33  ;;  %4081 = vmatmul.bf16.vlgmr.msra.gmra.mxu0 %v13213_v46  ;;  %4094 = vmatmul.bf16.vlgmr.msra.gmra.mxu1 %v13217_v60  ;;  %v3069_v2 = vadd.f32 %v3068_v26, %v13129_v0  ;;  %v8894_v0 = vld [vmem:[#allocation8 + $0x678] sm:$0xf0]  ;;  %v9004_v26 = vld [vmem:[#allocation8 + $0x748] sm:$0xf] }
 0x2b8   : > { %4125 = vmatpush.bf16.msrb.mxu0 %v13198_v56  ;;  %4138 = vmatpush.bf16.msrb.mxu1 %v13200_v1  ;;  %14684 = vst [vmem:[#allocation239_spill] sm:$0xff] %v13225_v24  ;;  %v8910_v1 = vld [vmem:[#allocation8 + $0x698] sm:$0xf0]  ;;  %v10745_v56 = vld [vmem:[#allocation8 + $0x66c] sm:$0xf] }
 0x2b9   : > { %4151 = vmatpush.bf16.msrb.mxu2 %v13203_v12  ;;  %4164 = vmatpush.bf16.msrb.mxu3 %v13205_v18  ;;  %14685 = vst [vmem:[#allocation240_spill] sm:$0xff] %v13227_v7  ;;  %v13243_v18 = vor.u32 %v10785_v63, %v9054_v6  ;;  %v10783_v12 = vld [vmem:[#allocation8 + $0x794] sm:$0xf0]  ;;  %v9022_v49 = vld [vmem:[#allocation8 + $0x778] sm:$0xf0] }
 0x2ba   : > { %4107 = vmatmul.bf16.vlgmr.msra.gmra.mxu2 %v13213_v46  ;;  %4120 = vmatmul.bf16.vlgmr.msra.gmra.mxu3 %v13217_v60  ;;  %14686 = vst [vmem:[#allocation241_spill] sm:$0xff] %v13235_v28  ;;  %v13250_v61 = vor.u32 %v10783_v12, %v9036_v36  ;;  %v10747_v63 = vld [vmem:[#allocation8 + $0x674] sm:$0xf0]  ;;  %v10858_v40 = vld [vmem:[#allocation8 + $0x9ec] sm:$0xf0] }
 0x2bb   : > { %14687 = vst [vmem:[#allocation242_spill] sm:$0xff] %v13237_v31  ;;  %v13262_v12 = vor.u32 %v10747_v63, %v8892_v5  ;;  %v10773_v5 = vld [vmem:[#allocation8 + $0x74c] sm:$0xf]  ;;  %v9006_v63 = vld [vmem:[#allocation8 + $0x758] sm:$0xf0] }
 0x2bc   : > { %4126 = vmatpush.bf16.msrb.mxu0 %v13219_v43  ;;  %4139 = vmatpush.bf16.msrb.mxu1 %v13221_v33  ;;  %14688 = vst [vmem:[#allocation243_spill] sm:$0xff] %v13241_v35  ;;  %v10749_v43 = vld [vmem:[#allocation8 + $0x68c] sm:$0xf]  ;;  %v10824_v20 = vld [vmem:[#allocation8 + $0x8e4] sm:$0xf] }
 0x2bd   : > { %4152 = vmatpush.bf16.msrb.mxu2 %v13225_v24  ;;  %4165 = vmatpush.bf16.msrb.mxu3 %v13227_v7  ;;  %14689 = vst [vmem:[#allocation244_spill] sm:$0xff] %v13243_v18  ;;  %v10781_v33 = vld [vmem:[#allocation8 + $0x78c] sm:$0xf]  ;;  %v13254_v6 = vor.u32 %v10749_v43, %v8910_v1  ;;  %v9020_v24 = vld [vmem:[#allocation8 + $0x768] sm:$0xf] }
 0x2be   : > { %14690 = vst [vmem:[#allocation245_spill] sm:$0xff] %v13248_v30  ;;  %v13256_v7 = vor.u32 %v10781_v33, %v9038_v42  ;;  %v8876_v1 = vld [vmem:[#allocation8 + $0x648] sm:$0xf]  ;;  %v10743_v43 = vld [vmem:[#allocation8 + $0x654] sm:$0xf0]  ;;  %v13268_v33 = vor.u32 %v10745_v56, %v8894_v0  ;;  %v13270_v42 = vor.u32 %v10777_v54, %v9022_v49 }
 0x2bf   : > { %14691 = vst [vmem:[#allocation246_spill] sm:$0xff] %v13250_v61  ;;  %v13275_v56 = vor.u32 %v10743_v43, %v8876_v1  ;;  %v8860_v54 = vld [vmem:[#allocation8 + $0x628] sm:$0xf]  ;;  %v10739_v49 = vld [vmem:[#allocation8 + $0x634] sm:$0xf0] }
 0x2c0   : > { %4127 = vmatpush.bf16.msrb.mxu0 %v13235_v28  ;;  %4140 = vmatpush.bf16.msrb.mxu1 %v13237_v31  ;;  %14692 = vst [vmem:[#allocation247_spill] sm:$0xff] %v13254_v6  ;;  %v10779_v28 = vld [vmem:[#allocation8 + $0x774] sm:$0xf0]  ;;  %v13258_v31 = vadd.f32 %v3081_v8, %v3069_v2  ;;  %v10741_v2 = vld [vmem:[#allocation8 + $0x64c] sm:$0xf] }
 0x2c1   : > { %4153 = vmatpush.bf16.msrb.mxu2 %v13241_v35  ;;  %4166 = vmatpush.bf16.msrb.mxu3 %v13243_v18  ;;  %14693 = vst [vmem:[#allocation248_spill] sm:$0xff] %v13256_v7  ;;  %v13264_v36 = vor.u32 %v10779_v28, %v9020_v24  ;;  %v10775_v8 = vld [vmem:[#allocation8 + $0x754] sm:$0xf0]  ;;  %v3107_v18 = vpop.f32.mrf.mxu3  ;;  %v3070_v28 = vpop.f32.mrf.mxu0  ;;  %v10769_v1 = vld [vmem:[#allocation8 + $0x72c] sm:$0xf] }
 0x2c2   : > { %14694 = vst [vmem:[#allocation249_spill] sm:$0xff] %v13262_v12  ;;  %v3083_v35 = vpop.f32.mrf.mxu1  ;;  %v13277_v0 = vor.u32 %v10775_v8, %v9004_v26  ;;  %v10737_v28 = vld [vmem:[#allocation8 + $0x62c] sm:$0xf]  ;;  %v8990_v43 = vld [vmem:[#allocation8 + $0x738] sm:$0xf0]  ;;  %v13289_v8 = vor.u32 %v10739_v49, %v8860_v54 }
 0x2c3   : > { %14695 = vst [vmem:[#allocation250_spill] sm:$0xff] %v13264_v36  ;;  %v8988_v35 = vld [vmem:[#allocation8 + $0x728] sm:$0xf]  ;;  %v8974_v54 = vld [vmem:[#allocation8 + $0x718] sm:$0xf0] }
 0x2c4   : > { %4128 = vmatpush.bf16.msrb.mxu0 %v13248_v30  ;;  %4141 = vmatpush.bf16.msrb.mxu1 %v13250_v61  ;;  %14696 = vst [vmem:[#allocation251_spill] sm:$0xff] %v13268_v33  ;;  %v3094_v30 = vpop.f32.mrf.mxu2  ;;  %v8878_v61 = vld [vmem:[#allocation8 + $0x658] sm:$0xf0]  ;;  %v8844_v26 = vld [vmem:[#allocation8 + $0x608] sm:$0xf] }
 0x2c5   : > { %4154 = vmatpush.bf16.msrb.mxu2 %v13254_v6  ;;  %4167 = vmatpush.bf16.msrb.mxu3 %v13256_v7  ;;  %14697 = vst [vmem:[#allocation252_spill] sm:$0xff] %v13270_v42  ;;  %v3095_v24 = vadd.f32 %v3094_v30, %v13143_v59  ;;  %v13283_v6 = vor.u32 %v10741_v2, %v8878_v61  ;;  %v10771_v30 = vld [vmem:[#allocation8 + $0x734] sm:$0xf0]  ;;  %v8972_v61 = vld [vmem:[#allocation8 + $0x708] sm:$0xf] }
 0x2c6   : > { %14698 = vst [vmem:[#allocation253_spill] sm:$0xff] %v13275_v56  ;;  %v13285_v59 = vor.u32 %v10773_v5, %v9006_v63  ;;  %v10767_v2 = vld [vmem:[#allocation8 + $0x714] sm:$0xf0]  ;;  %v13297_v63 = vor.u32 %v10769_v1, %v8990_v43  ;;  %v9204_v49 = vld [vmem:[#allocation8 + $0x8e0] sm:$0xf] }
 0x2c7   : > { %14699 = vst [vmem:[#allocation254_spill] sm:$0xff] %v13277_v0  ;;  %v13281_v7 = vadd.f32 %v3107_v18, %v3095_v24  ;;  %v10735_v18 = vld [vmem:[#allocation8 + $0x614] sm:$0xf0]  ;;  %v10733_v24 = vld [vmem:[#allocation8 + $0x60c] sm:$0xf] }
 0x2c8   : > { %4129 = vmatpush.bf16.msrb.mxu0 %v13262_v12  ;;  %4142 = vmatpush.bf16.msrb.mxu1 %v13264_v36  ;;  %14700 = vst [vmem:[#allocation255_spill] sm:$0xff] %v13283_v6  ;;  %v8862_v36 = vld [vmem:[#allocation8 + $0x638] sm:$0xf0]  ;;  %v10856_v1 = vld [vmem:[#allocation8 + $0x9e4] sm:$0xf] }
 0x2c9   : > { %4155 = vmatpush.bf16.msrb.mxu2 %v13268_v33  ;;  %4168 = vmatpush.bf16.msrb.mxu3 %v13270_v42  ;;  %14701 = vst [vmem:[#allocation256_spill] sm:$0xff] %v13285_v59  ;;  %v13291_v42 = vor.u32 %v10771_v30, %v8988_v35  ;;  %v13295_v5 = vor.u32 %v10737_v28, %v8862_v36  ;;  %v8846_v33 = vld [vmem:[#allocation8 + $0x618] sm:$0xf0]  ;;  %v10826_v35 = vld [vmem:[#allocation8 + $0x8ec] sm:$0xf0] }
 0x2ca   : > { %14702 = vst [vmem:[#allocation257_spill] sm:$0xff] %v13289_v8  ;;  %v9332_v30 = vld [vmem:[#allocation8 + $0x9e0] sm:$0xf]  ;;  %v13303_v36 = vor.u32 %v10767_v2, %v8972_v61  ;;  %v9206_v28 = vld [vmem:[#allocation8 + $0x8f0] sm:$0xf0] }
 0x2cb   : > { %14703 = vst [vmem:[#allocation258_spill] sm:$0xff] %v13291_v42  ;;  %v9334_v43 = vld [vmem:[#allocation8 + $0x9f0] sm:$0xf0]  ;;  %v9316_v2 = vld [vmem:[#allocation8 + $0x9c0] sm:$0xf] }
 0x2cc   : > { %4130 = vmatpush.bf16.msrb.mxu0 %v13275_v56  ;;  %4143 = vmatpush.bf16.msrb.mxu1 %v13277_v0  ;;  %14704 = vst [vmem:[#allocation259_spill] sm:$0xff] %v13295_v5  ;;  %v10765_v56 = vld [vmem:[#allocation8 + $0x70c] sm:$0xf]  ;;  %v3096_v12 = vpop.f32.mrf.mxu2  ;;  %v3109_v0 = vpop.f32.mrf.mxu3  ;;  %v13317_v61 = vor.u32 %v10856_v1, %v9334_v43  ;;  %v10854_v27 = vld [vmem:[#allocation8 + $0x9cc] sm:$0xf0] }
 0x2cd   : > { %4156 = vmatpush.bf16.msrb.mxu2 %v13283_v6  ;;  %4169 = vmatpush.bf16.msrb.mxu3 %v13285_v59  ;;  %14705 = vst [vmem:[#allocation260_spill] sm:$0xff] %v13297_v63  ;;  %v13301_v59 = vor.u32 %v10735_v18, %v8844_v26  ;;  %v13307_v12 = vor.u32 %v10733_v24, %v8846_v33  ;;  %v10822_v26 = vld [vmem:[#allocation8 + $0x8cc] sm:$0xf0]  ;;  %v10820_v57 = vld [vmem:[#allocation8 + $0x8c4] sm:$0xf] }
 0x2ce   : > { %14707 = vst [vmem:[#allocation262_spill] sm:$0xff] %v13303_v36  ;;  %v13309_v0 = vor.u32 %v10765_v56, %v8974_v54  ;;  %v13311_v6 = vor.u32 %v10826_v35, %v9204_v49  ;;  %v13315_v18 = vor.u32 %v10824_v20, %v9206_v28  ;;  %v9190_v33 = vld [vmem:[#allocation8 + $0x8d0] sm:$0xf0]  ;;  %v10852_v56 = vld [vmem:[#allocation8 + $0x9c4] sm:$0xf] }
 0x2cf   : > { %14706 = vst [vmem:[#allocation261_spill] sm:$0xff] %v13301_v59  ;;  %v9318_v24 = vld [vmem:[#allocation8 + $0x9d0] sm:$0xf0]  ;;  %v9172_v54 = vld [vmem:[#allocation8 + $0x8a0] sm:$0xf]  ;;  %v13331_v35 = vor.u32 %v10820_v57, %v9190_v33 }
 0x2d0   : > { %4131 = vmatpush.bf16.msrb.mxu0 %v13289_v8  ;;  %4144 = vmatpush.bf16.msrb.mxu1 %v13291_v42  ;;  %14708 = vst [vmem:[#allocation263_spill] sm:$0xff] %v13307_v12  ;;  %v13313_v8 = vor.u32 %v10858_v40, %v9332_v30  ;;  %v9188_v42 = vld [vmem:[#allocation8 + $0x8c0] sm:$0xf]  ;;  %v13327_v40 = vor.u32 %v10854_v27, %v9316_v2  ;;  %v10818_v49 = vld [vmem:[#allocation8 + $0x8ac] sm:$0xf0] }
 0x2d1   : > { %4157 = vmatpush.bf16.msrb.mxu2 %v13295_v5  ;;  %4170 = vmatpush.bf16.msrb.mxu3 %v13297_v63  ;;  %14709 = vst [vmem:[#allocation264_spill] sm:$0xff] %v13309_v0  ;;  %v13325_v20 = vor.u32 %v10822_v26, %v9188_v42  ;;  %v13333_v30 = vor.u32 %v10852_v56, %v9318_v24  ;;  %v9300_v28 = vld [vmem:[#allocation8 + $0x9a0] sm:$0xf]  ;;  %v10850_v1 = vld [vmem:[#allocation8 + $0x9ac] sm:$0xf0] }
 0x2d2   : > { %14710 = vst [vmem:[#allocation265_spill] sm:$0xff] %v13311_v6  ;;  %v10816_v43 = vld [vmem:[#allocation8 + $0x8a4] sm:$0xf]  ;;  %v9174_v42 = vld [vmem:[#allocation8 + $0x8b0] sm:$0xf0]  ;;  %v13341_v57 = vor.u32 %v10818_v49, %v9172_v54  ;;  %v13343_v2 = vor.u32 %v10850_v1, %v9300_v28 }
 0x2d3   : > { %14711 = vst [vmem:[#allocation266_spill] sm:$0xff] %v13313_v8  ;;  %v10848_v27 = vld [vmem:[#allocation8 + $0x9a4] sm:$0xf]  ;;  %v9302_v26 = vld [vmem:[#allocation8 + $0x9b0] sm:$0xf0]  ;;  %v13347_v24 = vor.u32 %v10816_v43, %v9174_v42 }
 0x2d4   : > { %14712 = vst [vmem:[#allocation267_spill] sm:$0xff] %v13315_v18  ;;  %4132 = vmatpush.bf16.msrb.mxu0 %v13301_v59  ;;  %4145 = vmatpush.bf16.msrb.mxu1 %v13303_v36  ;;  %v9156_v33 = vld [vmem:[#allocation8 + $0x880] sm:$0xf]  ;;  %v10814_v56 = vld [vmem:[#allocation8 + $0x88c] sm:$0xf0]  ;;  %v3120_v54 = vpop.f32.mrf.mxu0  ;;  %v3133_v49 = vpop.f32.mrf.mxu1 }
 0x2d5   : > { %14713 = vst [vmem:[#allocation268_spill] sm:$0xff] %v13317_v61  ;;  %4158 = vmatpush.bf16.msrb.mxu2 %v13307_v12  ;;  %4171 = vmatpush.bf16.msrb.mxu3 %v13309_v0  ;;  %v10844_v0 = vld [vmem:[#allocation8 + $0x984] sm:$0xf]  ;;  %v3121_v28 = vadd.f32 %v3120_v54, %v13183_v38  ;;  %v13354_v1 = vor.u32 %v10814_v56, %v9156_v33  ;;  %v9140_v42 = vld [vmem:[#allocation8 + $0x860] sm:$0xf] }
 0x2d6   : > { %14714 = vst [vmem:[#allocation269_spill] sm:$0xff] %v13325_v20  ;;  %v10808_v12 = vld [vmem:[#allocation8 + $0x864] sm:$0xf]  ;;  %v9142_v38 = vld [vmem:[#allocation8 + $0x870] sm:$0xf0] }
 0x2d7   : > { %14715 = vst [vmem:[#allocation270_spill] sm:$0xff] %v13327_v40  ;;  %4133 = vmatmul.bf16.vlgmr.msrb.gmra.mxu0 %v13213_v46  ;;  %4146 = vmatmul.bf16.vlgmr.msrb.gmra.mxu1 %v13217_v60  ;;  %v10840_v33 = vld [vmem:[#allocation8 + $0x964] sm:$0xf]  ;;  %v9270_v56 = vld [vmem:[#allocation8 + $0x970] sm:$0xf0] }
 0x2d8   : > { %4572 = vmatpush.bf16.msra.mxu0 %v13311_v6  ;;  %4585 = vmatpush.bf16.msra.mxu1 %v13313_v8  ;;  %14716 = vst [vmem:[#allocation271_spill] sm:$0xff] %v13331_v35  ;;  %v10846_v8 = vld [vmem:[#allocation8 + $0x98c] sm:$0xf0]  ;;  %v10812_v6 = vld [vmem:[#allocation8 + $0x884] sm:$0xf] }
 0x2d9   : > { %4598 = vmatpush.bf16.msra.mxu2 %v13315_v18  ;;  %4611 = vmatpush.bf16.msra.mxu3 %v13317_v61  ;;  %14717 = vst [vmem:[#allocation272_spill] sm:$0xff] %v13333_v30  ;;  %v13349_v61 = vor.u32 %v10848_v27, %v9302_v26  ;;  %v9284_v18 = vld [vmem:[#allocation8 + $0x980] sm:$0xf]  ;;  %v10810_v27 = vld [vmem:[#allocation8 + $0x86c] sm:$0xf0] }
 0x2da   : > { %4159 = vmatmul.bf16.vlgmr.msrb.gmra.mxu2 %v13213_v46  ;;  %4172 = vmatmul.bf16.vlgmr.msrb.gmra.mxu3 %v13217_v60  ;;  %14718 = vst [vmem:[#allocation273_spill] sm:$0xff] %v13341_v57  ;;  %v13356_v43 = vor.u32 %v10846_v8, %v9284_v18  ;;  %v13368_v8 = vor.u32 %v10810_v27, %v9140_v42  ;;  %v9252_v54 = vld [vmem:[#allocation8 + $0x940] sm:$0xf]  ;;  %v10836_v42 = vld [vmem:[#allocation8 + $0x944] sm:$0xf] }
 0x2db   : > { %14719 = vst [vmem:[#allocation274_spill] sm:$0xff] %v13343_v2  ;;  %v9254_v27 = vld [vmem:[#allocation8 + $0x950] sm:$0xf0]  ;;  %v10859_v36 = vld [vmem:[#allocation8 + $0x9f4] sm:$0xf0] }
 0x2dc   : > { %4573 = vmatpush.bf16.msra.mxu0 %v13325_v20  ;;  %4586 = vmatpush.bf16.msra.mxu1 %v13327_v40  ;;  %14720 = vst [vmem:[#allocation275_spill] sm:$0xff] %v13347_v24  ;;  %v9158_v20 = vld [vmem:[#allocation8 + $0x890] sm:$0xf0]  ;;  %v10825_v59 = vld [vmem:[#allocation8 + $0x8ec] sm:$0xf] }
 0x2dd   : > { %4599 = vmatpush.bf16.msra.mxu2 %v13331_v35  ;;  %4612 = vmatpush.bf16.msra.mxu3 %v13333_v30  ;;  %14721 = vst [vmem:[#allocation276_spill] sm:$0xff] %v13349_v61  ;;  %v9286_v40 = vld [vmem:[#allocation8 + $0x990] sm:$0xf0]  ;;  %v13360_v26 = vor.u32 %v10812_v6, %v9158_v20  ;;  %v9268_v35 = vld [vmem:[#allocation8 + $0x960] sm:$0xf] }
 0x2de   : > { %14722 = vst [vmem:[#allocation277_spill] sm:$0xff] %v13354_v1  ;;  %v13362_v30 = vor.u32 %v10844_v0, %v9286_v40  ;;  %v9124_v6 = vld [vmem:[#allocation8 + $0x840] sm:$0xf]  ;;  %v10806_v20 = vld [vmem:[#allocation8 + $0x84c] sm:$0xf0]  ;;  %v13374_v0 = vor.u32 %v10808_v12, %v9142_v38  ;;  %v13376_v40 = vor.u32 %v10840_v33, %v9270_v56 }
 0x2df   : > { %14723 = vst [vmem:[#allocation278_spill] sm:$0xff] %v13356_v43  ;;  %v13381_v12 = vor.u32 %v10806_v20, %v9124_v6  ;;  %v9108_v33 = vld [vmem:[#allocation8 + $0x820] sm:$0xf]  ;;  %v10802_v56 = vld [vmem:[#allocation8 + $0x82c] sm:$0xf0] }
 0x2e0   : > { %4574 = vmatpush.bf16.msra.mxu0 %v13341_v57  ;;  %4587 = vmatpush.bf16.msra.mxu1 %v13343_v2  ;;  %14724 = vst [vmem:[#allocation279_spill] sm:$0xff] %v13360_v26  ;;  %v10842_v57 = vld [vmem:[#allocation8 + $0x96c] sm:$0xf0]  ;;  %v13364_v2 = vadd.f32 %v3133_v49, %v3121_v28  ;;  %v10804_v28 = vld [vmem:[#allocation8 + $0x844] sm:$0xf] }
 0x2e1   : > { %4600 = vmatpush.bf16.msra.mxu2 %v13347_v24  ;;  %4613 = vmatpush.bf16.msra.mxu3 %v13349_v61  ;;  %14725 = vst [vmem:[#allocation280_spill] sm:$0xff] %v13362_v30  ;;  %v13370_v18 = vor.u32 %v10842_v57, %v9268_v35  ;;  %v10838_v49 = vld [vmem:[#allocation8 + $0x94c] sm:$0xf0]  ;;  %v3159_v61 = vpop.f32.mrf.mxu3  ;;  %v3122_v57 = vpop.f32.mrf.mxu0  ;;  %v10832_v6 = vld [vmem:[#allocation8 + $0x924] sm:$0xf] }
 0x2e2   : > { %14726 = vst [vmem:[#allocation281_spill] sm:$0xff] %v13368_v8  ;;  %v3135_v24 = vpop.f32.mrf.mxu1  ;;  %v13383_v38 = vor.u32 %v10838_v49, %v9252_v54  ;;  %v10800_v57 = vld [vmem:[#allocation8 + $0x824] sm:$0xf]  ;;  %v9238_v20 = vld [vmem:[#allocation8 + $0x930] sm:$0xf0]  ;;  %v13395_v49 = vor.u32 %v10802_v56, %v9108_v33 }
 0x2e3   : > { %14727 = vst [vmem:[#allocation282_spill] sm:$0xff] %v13370_v18  ;;  %v9236_v24 = vld [vmem:[#allocation8 + $0x920] sm:$0xf]  ;;  %v9222_v33 = vld [vmem:[#allocation8 + $0x910] sm:$0xf0] }
 0x2e4   : > { %4575 = vmatpush.bf16.msra.mxu0 %v13354_v1  ;;  %4588 = vmatpush.bf16.msra.mxu1 %v13356_v43  ;;  %14728 = vst [vmem:[#allocation283_spill] sm:$0xff] %v13374_v0  ;;  %v3146_v1 = vpop.f32.mrf.mxu2  ;;  %v9126_v43 = vld [vmem:[#allocation8 + $0x850] sm:$0xf0]  ;;  %v9092_v54 = vld [vmem:[#allocation8 + $0x800] sm:$0xf] }
 0x2e5   : > { %4601 = vmatpush.bf16.msra.mxu2 %v13360_v26  ;;  %4614 = vmatpush.bf16.msra.mxu3 %v13362_v30  ;;  %14729 = vst [vmem:[#allocation284_spill] sm:$0xff] %v13376_v40  ;;  %v3147_v35 = vadd.f32 %v3146_v1, %v13207_v53  ;;  %v13389_v26 = vor.u32 %v10804_v28, %v9126_v43  ;;  %v10834_v1 = vld [vmem:[#allocation8 + $0x92c] sm:$0xf0]  ;;  %v9220_v43 = vld [vmem:[#allocation8 + $0x900] sm:$0xf] }
 0x2e6   : > { %14730 = vst [vmem:[#allocation285_spill] sm:$0xff] %v13381_v12  ;;  %v13391_v53 = vor.u32 %v10836_v42, %v9254_v27  ;;  %v10830_v28 = vld [vmem:[#allocation8 + $0x90c] sm:$0xf0]  ;;  %v13403_v27 = vor.u32 %v10832_v6, %v9238_v20  ;;  %v9212_v56 = vld [vmem:[#allocation8 + $0x8e8] sm:$0xf] }
 0x2e7   : > { %14731 = vst [vmem:[#allocation286_spill] sm:$0xff] %v13383_v38  ;;  %v13387_v30 = vadd.f32 %v3159_v61, %v3147_v35  ;;  %v10798_v61 = vld [vmem:[#allocation8 + $0x80c] sm:$0xf0]  ;;  %v10796_v35 = vld [vmem:[#allocation8 + $0x804] sm:$0xf] }
 0x2e8   : > { %4576 = vmatpush.bf16.msra.mxu0 %v13368_v8  ;;  %4589 = vmatpush.bf16.msra.mxu1 %v13370_v18  ;;  %14732 = vst [vmem:[#allocation287_spill] sm:$0xff] %v13389_v26  ;;  %v9110_v18 = vld [vmem:[#allocation8 + $0x830] sm:$0xf0]  ;;  %v10857_v6 = vld [vmem:[#allocation8 + $0x9ec] sm:$0xf] }
 0x2e9   : > { %4602 = vmatpush.bf16.msra.mxu2 %v13374_v0  ;;  %4615 = vmatpush.bf16.msra.mxu3 %v13376_v40  ;;  %14733 = vst [vmem:[#allocation288_spill] sm:$0xff] %v13391_v53  ;;  %v13397_v40 = vor.u32 %v10834_v1, %v9236_v24  ;;  %v13401_v42 = vor.u32 %v10800_v57, %v9110_v18  ;;  %v9094_v0 = vld [vmem:[#allocation8 + $0x810] sm:$0xf0]  ;;  %v10827_v24 = vld [vmem:[#allocation8 + $0x8f4] sm:$0xf0] }
 0x2ea   : > { %14734 = vst [vmem:[#allocation289_spill] sm:$0xff] %v13395_v49  ;;  %v9340_v1 = vld [vmem:[#allocation8 + $0x9e8] sm:$0xf]  ;;  %v13409_v18 = vor.u32 %v10830_v28, %v9220_v43  ;;  %v9214_v57 = vld [vmem:[#allocation8 + $0x8f8] sm:$0xf0] }
 0x2eb   : > { %14735 = vst [vmem:[#allocation290_spill] sm:$0xff] %v13397_v40  ;;  %v9342_v20 = vld [vmem:[#allocation8 + $0x9f8] sm:$0xf0]  ;;  %v9324_v28 = vld [vmem:[#allocation8 + $0x9c8] sm:$0xf] }
 0x2ec   : > { %4577 = vmatpush.bf16.msra.mxu0 %v13381_v12  ;;  %4590 = vmatpush.bf16.msra.mxu1 %v13383_v38  ;;  %v10828_v12 = vld [vmem:[#allocation8 + $0x904] sm:$0xf]  ;;  %v3148_v8 = vpop.f32.mrf.mxu2  ;;  %v3161_v38 = vpop.f32.mrf.mxu3  ;;  %v13423_v43 = vor.u32 %v10857_v6, %v9342_v20  ;;  %v10855_v63 = vld [vmem:[#allocation8 + $0x9d4] sm:$0xf0]  ;;  %v10821_v5 = vld [vmem:[#allocation8 + $0x8cc] sm:$0xf] }
 0x2ed   : > { %4603 = vmatpush.bf16.msra.mxu2 %v13389_v26  ;;  %4616 = vmatpush.bf16.msra.mxu3 %v13391_v53  ;;  %v13407_v53 = vor.u32 %v10798_v61, %v9092_v54  ;;  %v13413_v8 = vor.u32 %v10796_v35, %v9094_v0  ;;  %v13415_v38 = vor.u32 %v10828_v12, %v9222_v33  ;;  %v10823_v54 = vld [vmem:[#allocation8 + $0x8d4] sm:$0xf0]  ;;  %v9198_v0 = vld [vmem:[#allocation8 + $0x8d8] sm:$0xf0]  ;;  %v10853_v12 = vld [vmem:[#allocation8 + $0x9cc] sm:$0xf] }
 0x2ee   : > { %v13417_v26 = vor.u32 %v10827_v24, %v9212_v56  ;;  %v13421_v61 = vor.u32 %v10825_v59, %v9214_v57  ;;  %14741 = vst [vmem:[#allocation296_spill] sm:$0xff] %v13423_v43  ;;  %v9326_v35 = vld [vmem:[#allocation8 + $0x9d8] sm:$0xf0]  ;;  %v13432_v59 = vrot.slane %v12785_v16, 1  ;;  %v13439_v56 = vor.u32 %v10855_v63, %v9324_v28  ;;  %v9180_v24 = vld [vmem:[#allocation8 + $0x8a8] sm:$0xf] }
 0x2ef   : > { %14736 = vst [vmem:[#allocation291_spill] sm:$0xff] %v13413_v8  ;;  %v13443_v57 = vor.u32 %v10821_v5, %v9198_v0  ;;  %v13445_v6 = vor.u32 %v10853_v12, %v9326_v35  ;;  %v9308_v20 = vld [vmem:[#allocation8 + $0x9a8] sm:$0xf]  ;;  %v10851_v16 = vld [vmem:[#allocation8 + $0x9b4] sm:$0xf0] }
 0x2f0   : > { %4578 = vmatpush.bf16.msra.mxu0 %v13395_v49  ;;  %4591 = vmatpush.bf16.msra.mxu1 %v13397_v40  ;;  %14737 = vst [vmem:[#allocation292_spill] sm:$0xff] %v13415_v38  ;;  %v13419_v49 = vor.u32 %v10859_v36, %v9340_v1  ;;  %v9196_v40 = vld [vmem:[#allocation8 + $0x8c8] sm:$0xf]  ;;  %v13435_v36 = vrot.slane %v12791_v32, 1  ;;  %v10819_v1 = vld [vmem:[#allocation8 + $0x8b4] sm:$0xf0] }
 0x2f1   : > { %4604 = vmatpush.bf16.msra.mxu2 %v13401_v42  ;;  %4617 = vmatpush.bf16.msra.mxu3 %v13403_v27  ;;  %14738 = vst [vmem:[#allocation293_spill] sm:$0xff] %v13417_v26  ;;  %v13437_v33 = vor.u32 %v10823_v54, %v9196_v40  ;;  %v9182_v32 = vld [vmem:[#allocation8 + $0x8b8] sm:$0xf0]  ;;  %v10849_v63 = vld [vmem:[#allocation8 + $0x9ac] sm:$0xf]  ;;  %v13453_v5 = vor.u32 %v10819_v1, %v9180_v24 }
 0x2f2   : > { %14739 = vst [vmem:[#allocation294_spill] sm:$0xff] %v13419_v49  ;;  %v9310_v40 = vld [vmem:[#allocation8 + $0x9b8] sm:$0xf0]  ;;  %v13455_v54 = vor.u32 %v10851_v16, %v9308_v20  ;;  %v9164_v28 = vld [vmem:[#allocation8 + $0x888] sm:$0xf] }
 0x2f3   : > { %14740 = vst [vmem:[#allocation295_spill] sm:$0xff] %v13421_v61  ;;  %v10815_v0 = vld [vmem:[#allocation8 + $0x894] sm:$0xf0]  ;;  %v13461_v35 = vor.u32 %v10849_v63, %v9310_v40 }
 0x2f4   : > { %4579 = vmatpush.bf16.msra.mxu0 %v13407_v53  ;;  %4592 = vmatpush.bf16.msra.mxu1 %v13409_v18  ;;  %14742 = vst [vmem:[#allocation297_spill] sm:$0xff] %v13437_v33  ;;  %v3573_v24 = vpop.f32.mrf.mxu0  ;;  %v3586_v1 = vpop.f32.mrf.mxu1  ;;  %v13465_v16 = vor.u32 %v10815_v0, %v9164_v28  ;;  %v9150_v28 = vld [vmem:[#allocation8 + $0x878] sm:$0xf0]  ;;  %v10841_v0 = vld [vmem:[#allocation8 + $0x96c] sm:$0xf] }
 0x2f5   : > { %4605 = vmatpush.bf16.msra.mxu2 %v13413_v8  ;;  %4618 = vmatpush.bf16.msra.mxu3 %v13415_v38  ;;  %14743 = vst [vmem:[#allocation298_spill] sm:$0xff] %v13439_v56  ;;  %v10845_v38 = vld [vmem:[#allocation8 + $0x98c] sm:$0xf]  ;;  %v3587_v20 = vadd.f32 %v3586_v1, %v3573_v24  ;;  %v10843_v8 = vld [vmem:[#allocation8 + $0x974] sm:$0xf0] }
 0x2f6   : > { %14744 = vst [vmem:[#allocation299_spill] sm:$0xff] %v13443_v57  ;;  %v10839_v1 = vld [vmem:[#allocation8 + $0x954] sm:$0xf0] }
 0x2f7   : > { %14745 = vst [vmem:[#allocation300_spill] sm:$0xff] %v13445_v6  ;;  %4580 = vmatmul.bf16.vlgmr.msra.gmra.mxu0 %v13432_v59  ;;  %4593 = vmatmul.bf16.vlgmr.msra.gmra.mxu1 %v13435_v36 }
 0x2f8   : > { %4624 = vmatpush.bf16.msrb.mxu0 %v13417_v26  ;;  %4637 = vmatpush.bf16.msrb.mxu1 %v13419_v49  ;;  %v10817_v49 = vld [vmem:[#allocation8 + $0x8ac] sm:$0xf]  ;;  %14746 = vst [vmem:[#allocation301_spill] sm:$0xff] %v13453_v5 }
 0x2f9   : > { %4650 = vmatpush.bf16.msrb.mxu2 %v13421_v61  ;;  %4663 = vmatpush.bf16.msrb.mxu3 %v13423_v43  ;;  %14747 = vst [vmem:[#allocation302_spill] sm:$0xff] %v13455_v54  ;;  %v13459_v12 = vor.u32 %v10817_v49, %v9182_v32  ;;  %v9292_v43 = vld [vmem:[#allocation8 + $0x988] sm:$0xf]  ;;  %v10847_v61 = vld [vmem:[#allocation8 + $0x994] sm:$0xf0] }
 0x2fa   : > { %4606 = vmatmul.bf16.vlgmr.msra.gmra.mxu2 %v13432_v59  ;;  %4619 = vmatmul.bf16.vlgmr.msra.gmra.mxu3 %v13435_v36  ;;  %14749 = vst [vmem:[#allocation304_spill] sm:$0xff] %v13461_v35  ;;  %v10813_v26 = vld [vmem:[#allocation8 + $0x88c] sm:$0xf]  ;;  %v9148_v49 = vld [vmem:[#allocation8 + $0x868] sm:$0xf] }
 0x2fb   : > { %14748 = vst [vmem:[#allocation303_spill] sm:$0xff] %v13459_v12  ;;  %v10811_v32 = vld [vmem:[#allocation8 + $0x874] sm:$0xf0] }
 0x2fc   : > { %4625 = vmatpush.bf16.msrb.mxu0 %v13437_v33  ;;  %4638 = vmatpush.bf16.msrb.mxu1 %v13439_v56  ;;  %v9166_v33 = vld [vmem:[#allocation8 + $0x898] sm:$0xf0]  ;;  %14750 = vst [vmem:[#allocation305_spill] sm:$0xff] %v13465_v16 }
 0x2fd   : > { %4651 = vmatpush.bf16.msrb.mxu2 %v13443_v57  ;;  %4664 = vmatpush.bf16.msrb.mxu3 %v13445_v6  ;;  %v9294_v56 = vld [vmem:[#allocation8 + $0x998] sm:$0xf0]  ;;  %v13467_v6 = vor.u32 %v10847_v61, %v9292_v43  ;;  %v13471_v63 = vor.u32 %v10813_v26, %v9166_v33  ;;  %v9276_v57 = vld [vmem:[#allocation8 + $0x968] sm:$0xf]  ;;  %v13480_v43 = vor.u32 %v10811_v32, %v9148_v49  ;;  %v10837_v49 = vld [vmem:[#allocation8 + $0x94c] sm:$0xf] }
 0x2fe   : > { %v13473_v40 = vor.u32 %v10845_v38, %v9294_v56  ;;  %v9278_v61 = vld [vmem:[#allocation8 + $0x978] sm:$0xf0]  ;;  %v13482_v24 = vor.u32 %v10843_v8, %v9276_v57  ;;  %v9132_v26 = vld [vmem:[#allocation8 + $0x848] sm:$0xf]  ;;  %v10807_v38 = vld [vmem:[#allocation8 + $0x854] sm:$0xf0]  ;;  %v3575_v57 = vpop.f32.mrf.mxu0 }
 0x2ff   : > { %14751 = vst [vmem:[#allocation306_spill] sm:$0xff] %v13467_v6  ;;  %v9260_v56 = vld [vmem:[#allocation8 + $0x948] sm:$0xf]  ;;  %v9262_v32 = vld [vmem:[#allocation8 + $0x958] sm:$0xf0] }
 0x300   : > { %4626 = vmatpush.bf16.msrb.mxu0 %v13453_v5  ;;  %4639 = vmatpush.bf16.msrb.mxu1 %v13455_v54  ;;  %14752 = vst [vmem:[#allocation307_spill] sm:$0xff] %v13473_v40  ;;  %v10809_v5 = vld [vmem:[#allocation8 + $0x86c] sm:$0xf]  ;;  %v13476_v54 = vadd.f32 %v3587_v20, %v13258_v31  ;;  %v13488_v31 = vor.u32 %v10841_v0, %v9278_v61  ;;  %v10803_v0 = vld [vmem:[#allocation8 + $0x834] sm:$0xf0] }
 0x301   : > { %4652 = vmatpush.bf16.msrb.mxu2 %v13459_v12  ;;  %4665 = vmatpush.bf16.msrb.mxu3 %v13461_v35  ;;  %14753 = vst [vmem:[#allocation308_spill] sm:$0xff] %v13480_v43  ;;  %v13486_v33 = vor.u32 %v10809_v5, %v9150_v28  ;;  %v10805_v20 = vld [vmem:[#allocation8 + $0x84c] sm:$0xf]  ;;  %v3612_v35 = vpop.f32.mrf.mxu3  ;;  %v3588_v12 = vpop.f32.mrf.mxu1  ;;  %v13494_v5 = vor.u32 %v10839_v1, %v9260_v56  ;;  %v9116_v28 = vld [vmem:[#allocation8 + $0x828] sm:$0xf] }
 0x302   : > { %14754 = vst [vmem:[#allocation309_spill] sm:$0xff] %v13482_v24  ;;  %v13503_v12 = vor.u32 %v10837_v49, %v9262_v32  ;;  %v10835_v57 = vld [vmem:[#allocation8 + $0x934] sm:$0xf0]  ;;  %v9246_v56 = vld [vmem:[#allocation8 + $0x938] sm:$0xf0]  ;;  %v13507_v1 = vor.u32 %v10803_v0, %v9116_v28 }
 0x303   : > { %14755 = vst [vmem:[#allocation310_spill] sm:$0xff] %v13486_v33  ;;  %v9228_v49 = vld [vmem:[#allocation8 + $0x908] sm:$0xf]  ;;  %v10831_v32 = vld [vmem:[#allocation8 + $0x914] sm:$0xf0] }
 0x304   : > { %4627 = vmatpush.bf16.msrb.mxu0 %v13465_v16  ;;  %4640 = vmatpush.bf16.msrb.mxu1 %v13467_v6  ;;  %14756 = vst [vmem:[#allocation311_spill] sm:$0xff] %v13488_v31  ;;  %v3599_v16 = vpop.f32.mrf.mxu2  ;;  %v9134_v6 = vld [vmem:[#allocation8 + $0x858] sm:$0xf0]  ;;  %v10829_v28 = vld [vmem:[#allocation8 + $0x90c] sm:$0xf] }
 0x305   : > { %4653 = vmatpush.bf16.msrb.mxu2 %v13471_v63  ;;  %4666 = vmatpush.bf16.msrb.mxu3 %v13473_v40  ;;  %v3613_v8 = vadd.f32 %v3612_v35, %v3599_v16  ;;  %v13492_v40 = vor.u32 %v10807_v38, %v9132_v26  ;;  %14758 = vst [vmem:[#allocation313_spill] sm:$0xff] %v13494_v5  ;;  %v9244_v16 = vld [vmem:[#allocation8 + $0x928] sm:$0xf]  ;;  %v9118_v26 = vld [vmem:[#allocation8 + $0x838] sm:$0xf0] }
 0x306   : > { %v13501_v35 = vor.u32 %v10805_v20, %v9134_v6  ;;  %v10833_v38 = vld [vmem:[#allocation8 + $0x92c] sm:$0xf]  ;;  %v9230_v0 = vld [vmem:[#allocation8 + $0x918] sm:$0xf0] }
 0x307   : > { %14757 = vst [vmem:[#allocation312_spill] sm:$0xff] %v13492_v40  ;;  %v13499_v61 = vadd.f32 %v3613_v8, %v13281_v7  ;;  %v9100_v7 = vld [vmem:[#allocation8 + $0x808] sm:$0xf]  ;;  %v10799_v8 = vld [vmem:[#allocation8 + $0x814] sm:$0xf0]  ;;  %v13515_v20 = vor.u32 %v10833_v38, %v9246_v56  ;;  %v14773_v38 = vld [vmem:[#allocation48_spill] sm:$0xff] }
 0x308   : > { %4628 = vmatpush.bf16.msrb.mxu0 %v13480_v43  ;;  %4641 = vmatpush.bf16.msrb.mxu1 %v13482_v24  ;;  %v10801_v24 = vld [vmem:[#allocation8 + $0x82c] sm:$0xf] }
 0x309   : > { %4654 = vmatpush.bf16.msrb.mxu2 %v13486_v33  ;;  %4667 = vmatpush.bf16.msrb.mxu3 %v13488_v31  ;;  %v13509_v31 = vor.u32 %v10835_v57, %v9244_v16  ;;  %v13513_v6 = vor.u32 %v10801_v24, %v9118_v26  ;;  %v10797_v33 = vld [vmem:[#allocation8 + $0x80c] sm:$0xf]  ;;  %v3614_v43 = vpop.f32.mrf.mxu3  ;;  %v13519_v16 = vor.u32 %v10799_v8, %v9100_v7  ;;  %v14775_v7 = vld [vmem:[#allocation50_spill] sm:$0xff]  ;;  %v14776_v8 = vld [vmem:[#allocation51_spill] sm:$0xff] }
 0x30a   : > { %v13521_v57 = vor.u32 %v10831_v32, %v9228_v49  ;;  %v13527_v26 = vor.u32 %v10829_v28, %v9230_v0  ;;  %v14770_v43 = vld [vmem:[#allocation45_spill] sm:$0xff]  ;;  %v14777_v49 = vld [vmem:[#allocation52_spill] sm:$0xff] }
 0x30b   : > { %v14774_v56 = vld [vmem:[#allocation49_spill] sm:$0xff] }
 0x30c   : > { %4629 = vmatpush.bf16.msrb.mxu0 %v13492_v40  ;;  %4642 = vmatpush.bf16.msrb.mxu1 %v13494_v5  ;;  %v3601_v40 = vpop.f32.mrf.mxu2  ;;  %v9102_v5 = vld [vmem:[#allocation8 + $0x818] sm:$0xf0]  ;;  %v14778_v32 = vld [vmem:[#allocation53_spill] sm:$0xff] }
 0x30d   : > { %4655 = vmatpush.bf16.msrb.mxu2 %v13501_v35  ;;  %4668 = vmatpush.bf16.msrb.mxu3 %v13503_v12  ;;  %v13525_v24 = vor.u32 %v10797_v33, %v9102_v5  ;;  %v14769_v40 = vld [vmem:[#allocation44_spill] sm:$0xff]  ;;  %v14771_v33 = vld [vmem:[#allocation46_spill] sm:$0xff]  ;;  %v14772_v5 = vld [vmem:[#allocation47_spill] sm:$0xff] }
 0x310   : > { %4630 = vmatpush.bf16.msrb.mxu0 %v13507_v1  ;;  %4643 = vmatpush.bf16.msrb.mxu1 %v13509_v31 }
 0x311   : > { %4656 = vmatpush.bf16.msrb.mxu2 %v13513_v6  ;;  %4669 = vmatpush.bf16.msrb.mxu3 %v13515_v20 }
 0x314   : > { %4631 = vmatpush.bf16.msrb.mxu0 %v13519_v16  ;;  %4644 = vmatpush.bf16.msrb.mxu1 %v13521_v57 }
 0x315   : > { %4657 = vmatpush.bf16.msrb.mxu2 %v13525_v24  ;;  %4670 = vmatpush.bf16.msrb.mxu3 %v13527_v26 }
 0x317   : > { %4632 = vmatmul.bf16.vlgmr.msrb.gmra.mxu0 %v13432_v59  ;;  %4645 = vmatmul.bf16.vlgmr.msrb.gmra.mxu1 %v13435_v36 }
 0x318   : > { %4710 = vmatpush.bf16.msra.mxu0 %v12423_v19  ;;  %4723 = vmatpush.bf16.msra.mxu1 %v12427_v15  ;;  %v3625_v19 = vpop.f32.mrf.mxu0  ;;  %v3638_v15 = vpop.f32.mrf.mxu1 }
 0x319   : > { %4736 = vmatpush.bf16.msra.mxu2 %v12429_v23  ;;  %4749 = vmatpush.bf16.msra.mxu3 %v12433_v44  ;;  %v3639_v23 = vadd.f32 %v3638_v15, %v3625_v19  ;;  %v14779_v19 = vld [vmem:[#allocation54_spill] sm:$0xff]  ;;  %v14780_v15 = vld [vmem:[#allocation55_spill] sm:$0xff] }
 0x31a   : > { %4658 = vmatmul.bf16.vlgmr.msrb.gmra.mxu2 %v13432_v59  ;;  %4671 = vmatmul.bf16.vlgmr.msrb.gmra.mxu3 %v13435_v36 }
 0x31b   : > { %v13550_v44 = vadd.f32 %v3639_v23, %v13364_v2  ;;  %v14768_v2 = vld [vmem:[#allocation43_spill] sm:$0xff] }
 0x31c   : > { %4711 = vmatpush.bf16.msra.mxu0 %v12439_v3  ;;  %4724 = vmatpush.bf16.msra.mxu1 %v12445_v21 }
 0x31d   : > { %4737 = vmatpush.bf16.msra.mxu2 %v12452_v22  ;;  %4750 = vmatpush.bf16.msra.mxu3 %v12455_v25  ;;  %v3651_v3 = vpop.f32.mrf.mxu2  ;;  %v3664_v21 = vpop.f32.mrf.mxu3 }
 0x31e   : > { %v3665_v22 = vadd.f32 %v3664_v21, %v3651_v3  ;;  %v14781_v3 = vld [vmem:[#allocation56_spill] sm:$0xff]  ;;  %v14782_v21 = vld [vmem:[#allocation57_spill] sm:$0xff] }
 0x320   : > { %4712 = vmatpush.bf16.msra.mxu0 %v12458_v9  ;;  %4725 = vmatpush.bf16.msra.mxu1 %v12461_v48  ;;  %v3627_v25 = vpop.f32.mrf.mxu0  ;;  %v3640_v9 = vpop.f32.mrf.mxu1  ;;  %v13561_v48 = vadd.f32 %v3665_v22, %v13387_v30  ;;  %v14767_v30 = vld [vmem:[#allocation42_spill] sm:$0xff] }
 0x321   : > { %4738 = vmatpush.bf16.msra.mxu2 %v12463_v29  ;;  %4751 = vmatpush.bf16.msra.mxu3 %v12466_v55  ;;  %v14759_v29 = vld [vmem:[#allocation34_spill] sm:$0xff]  ;;  %v14760_v55 = vld [vmem:[#allocation37_spill] sm:$0xff]  ;;  %v14784_v9 = vld [vmem:[#allocation59_spill] sm:$0xff] }
 0x322   : > { %v14783_v25 = vld [vmem:[#allocation58_spill] sm:$0xff] }
 0x324   : > { %4713 = vmatpush.bf16.msra.mxu0 %v12472_v39  ;;  %4726 = vmatpush.bf16.msra.mxu1 %v12477_v14  ;;  %v14761_v39 = vld [vmem:[#allocation38_spill] sm:$0xff]  ;;  %v14762_v14 = vld [vmem:[#allocation35_spill] sm:$0xff] }
 0x325   : > { %4739 = vmatpush.bf16.msra.mxu2 %v12479_v17  ;;  %4752 = vmatpush.bf16.msra.mxu3 %v12482_v47  ;;  %v3653_v17 = vpop.f32.mrf.mxu2  ;;  %v3666_v47 = vpop.f32.mrf.mxu3 }
 0x328   : > { %4714 = vmatpush.bf16.msra.mxu0 %v12485_v13  ;;  %4727 = vmatpush.bf16.msra.mxu1 %v12488_v4  ;;  %v14763_v13 = vld [vmem:[#allocation36_spill] sm:$0xff]  ;;  %v14764_v4 = vld [vmem:[#allocation39_spill] sm:$0xff] }
 0x329   : > { %4740 = vmatpush.bf16.msra.mxu2 %v12490_v37  ;;  %4753 = vmatpush.bf16.msra.mxu3 %v12493_v58  ;;  %v14765_v37 = vld [vmem:[#allocation40_spill] sm:$0xff]  ;;  %v14766_v58 = vld [vmem:[#allocation41_spill] sm:$0xff] }
 0x32c   : > { %4715 = vmatpush.bf16.msra.mxu0 %v14759_v29  ;;  %4728 = vmatpush.bf16.msra.mxu1 %v14760_v55  ;;  %v14785_v29 = vld [vmem:[#allocation60_spill] sm:$0xff]  ;;  %v14786_v55 = vld [vmem:[#allocation61_spill] sm:$0xff] }
 0x32d   : > { %4741 = vmatpush.bf16.msra.mxu2 %v14761_v39  ;;  %4754 = vmatpush.bf16.msra.mxu3 %v14762_v14 }
 0x330   : > { %4716 = vmatpush.bf16.msra.mxu0 %v14763_v13  ;;  %4729 = vmatpush.bf16.msra.mxu1 %v14764_v4  ;;  %v14787_v4 = vld [vmem:[#allocation62_spill] sm:$0xff] }
 0x331   : > { %4742 = vmatpush.bf16.msra.mxu2 %v14765_v37  ;;  %4755 = vmatpush.bf16.msra.mxu3 %v14766_v58  ;;  %v14788_v37 = vld [vmem:[#allocation63_spill] sm:$0xff]  ;;  %v14789_v58 = vld [vmem:[#allocation64_spill] sm:$0xff] }
 0x334   : > { %4717 = vmatpush.bf16.msra.mxu0 %v14767_v30  ;;  %4730 = vmatpush.bf16.msra.mxu1 %v14768_v2  ;;  %v4082_v28 = vpop.f32.mrf.mxu0  ;;  %v4095_v0 = vpop.f32.mrf.mxu1  ;;  %v14791_v2 = vld [vmem:[#allocation66_spill] sm:$0xff] }
 0x335   : > { %4743 = vmatpush.bf16.msra.mxu2 %v14769_v40  ;;  %4756 = vmatpush.bf16.msra.mxu3 %v14770_v43  ;;  %v4096_v23 = vadd.f32 %v4095_v0, %v4082_v28  ;;  %v14792_v40 = vld [vmem:[#allocation67_spill] sm:$0xff]  ;;  %v14793_v43 = vld [vmem:[#allocation68_spill] sm:$0xff] }
 0x337   : > { %4718 = vmatmul.bf16.vlgmr.msra.gmra.mxu0 %v12997_v52  ;;  %4731 = vmatmul.bf16.vlgmr.msra.gmra.mxu1 %v13001_v50  ;;  %v13592_v22 = vadd.f32 %v4096_v23, %v13476_v54  ;;  %v14790_v54 = vld [vmem:[#allocation65_spill] sm:$0xff] }
 0x338   : > { %4762 = vmatpush.bf16.msrb.mxu0 %v14771_v33  ;;  %4775 = vmatpush.bf16.msrb.mxu1 %v14772_v5 }
 0x339   : > { %4788 = vmatpush.bf16.msrb.mxu2 %v14773_v38  ;;  %4801 = vmatpush.bf16.msrb.mxu3 %v14774_v56  ;;  %v14794_v38 = vld [vmem:[#allocation69_spill] sm:$0xff]  ;;  %v14796_v56 = vld [vmem:[#allocation71_spill] sm:$0xff] }
 0x33a   : > { %4744 = vmatmul.bf16.vlgmr.msra.gmra.mxu2 %v12997_v52  ;;  %4757 = vmatmul.bf16.vlgmr.msra.gmra.mxu3 %v13001_v50 }
 0x33c   : > { %4763 = vmatpush.bf16.msrb.mxu0 %v14775_v7  ;;  %4776 = vmatpush.bf16.msrb.mxu1 %v14776_v8  ;;  %v4084_v47 = vpop.f32.mrf.mxu0  ;;  %v4097_v13 = vpop.f32.mrf.mxu1  ;;  %v14797_v7 = vld [vmem:[#allocation72_spill] sm:$0xff]  ;;  %v14798_v8 = vld [vmem:[#allocation73_spill] sm:$0xff] }
 0x33d   : > { %4789 = vmatpush.bf16.msrb.mxu2 %v14777_v49  ;;  %4802 = vmatpush.bf16.msrb.mxu3 %v14778_v32  ;;  %v4108_v39 = vpop.f32.mrf.mxu2  ;;  %v4121_v14 = vpop.f32.mrf.mxu3  ;;  %v14800_v49 = vld [vmem:[#allocation75_spill] sm:$0xff]  ;;  %v14801_v32 = vld [vmem:[#allocation76_spill] sm:$0xff]  ;;  %v14814_v13 = vld [vmem:[#allocation89_spill] sm:$0xff] }
 0x33e   : > { %v4122_v17 = vadd.f32 %v4121_v14, %v4108_v39 }
 0x340   : > { %4764 = vmatpush.bf16.msrb.mxu0 %v14779_v19  ;;  %4777 = vmatpush.bf16.msrb.mxu1 %v14780_v15  ;;  %v13603_v30 = vadd.f32 %v4122_v17, %v13499_v61  ;;  %v14795_v61 = vld [vmem:[#allocation70_spill] sm:$0xff]  ;;  %v14806_v19 = vld [vmem:[#allocation81_spill] sm:$0xff] }
 0x341   : > { %4790 = vmatpush.bf16.msrb.mxu2 %v14781_v3  ;;  %4803 = vmatpush.bf16.msrb.mxu3 %v14782_v21  ;;  %v14807_v15 = vld [vmem:[#allocation82_spill] sm:$0xff]  ;;  %v14808_v3 = vld [vmem:[#allocation83_spill] sm:$0xff]  ;;  %v14810_v21 = vld [vmem:[#allocation85_spill] sm:$0xff] }
 0x344   : > { %4765 = vmatpush.bf16.msrb.mxu0 %v14783_v25  ;;  %4778 = vmatpush.bf16.msrb.mxu1 %v14784_v9  ;;  %v14811_v25 = vld [vmem:[#allocation86_spill] sm:$0xff]  ;;  %v14812_v9 = vld [vmem:[#allocation87_spill] sm:$0xff] }
 0x345   : > { %4791 = vmatpush.bf16.msrb.mxu2 %v14785_v29  ;;  %4804 = vmatpush.bf16.msrb.mxu3 %v14786_v55  ;;  %v4110_v33 = vpop.f32.mrf.mxu2  ;;  %v4123_v5 = vpop.f32.mrf.mxu3  ;;  %v14813_v29 = vld [vmem:[#allocation88_spill] sm:$0xff] }
 0x348   : > { %4766 = vmatpush.bf16.msrb.mxu0 %v14787_v4  ;;  %4779 = vmatpush.bf16.msrb.mxu1 %v14788_v37  ;;  %v14815_v4 = vld [vmem:[#allocation90_spill] sm:$0xff]  ;;  %v14816_v37 = vld [vmem:[#allocation91_spill] sm:$0xff] }
 0x349   : > { %4792 = vmatpush.bf16.msrb.mxu2 %v14789_v58  ;;  %4805 = vmatpush.bf16.msrb.mxu3 %v14790_v54  ;;  %v14818_v54 = vld [vmem:[#allocation93_spill] sm:$0xff] }
 0x34c   : > { %4767 = vmatpush.bf16.msrb.mxu0 %v14791_v2  ;;  %4780 = vmatpush.bf16.msrb.mxu1 %v14792_v40  ;;  %v14819_v2 = vld [vmem:[#allocation94_spill] sm:$0xff]  ;;  %v14820_v40 = vld [vmem:[#allocation95_spill] sm:$0xff] }
 0x34d   : > { %4793 = vmatpush.bf16.msrb.mxu2 %v14793_v43  ;;  %4806 = vmatpush.bf16.msrb.mxu3 %v12617_v51  ;;  %v14799_v51 = vld [vmem:[#allocation74_spill] sm:$0xff]  ;;  %v14821_v43 = vld [vmem:[#allocation96_spill] sm:$0xff] }
 0x350   : > { %4768 = vmatpush.bf16.msrb.mxu0 %v14794_v38  ;;  %4781 = vmatpush.bf16.msrb.mxu1 %v12624_v11  ;;  %v14802_v11 = vld [vmem:[#allocation77_spill] sm:$0xff] }
 0x351   : > { %4794 = vmatpush.bf16.msrb.mxu2 %v12626_v45  ;;  %4807 = vmatpush.bf16.msrb.mxu3 %v12629_v62  ;;  %v14803_v45 = vld [vmem:[#allocation78_spill] sm:$0xff]  ;;  %v14804_v62 = vld [vmem:[#allocation79_spill] sm:$0xff]  ;;  %v14822_v38 = vld [vmem:[#allocation97_spill] sm:$0xff] }
 0x354   : > { %4769 = vmatpush.bf16.msrb.mxu0 %v14795_v61  ;;  %4782 = vmatpush.bf16.msrb.mxu1 %v14796_v56  ;;  %v4134_v28 = vpop.f32.mrf.mxu0  ;;  %v4147_v0 = vpop.f32.mrf.mxu1  ;;  %v14823_v61 = vld [vmem:[#allocation98_spill] sm:$0xff]  ;;  %v14824_v56 = vld [vmem:[#allocation99_spill] sm:$0xff] }
 0x355   : > { %4795 = vmatpush.bf16.msrb.mxu2 %v14797_v7  ;;  %4808 = vmatpush.bf16.msrb.mxu3 %v14798_v8  ;;  %v4148_v23 = vadd.f32 %v4147_v0, %v4134_v28  ;;  %v14825_v7 = vld [vmem:[#allocation100_spill] sm:$0xff]  ;;  %v14827_v8 = vld [vmem:[#allocation102_spill] sm:$0xff]  ;;  %v14836_v0 = vld [vmem:[#allocation111_spill] sm:$0xff] }
 0x356   : > { %v14835_v28 = vld [vmem:[#allocation110_spill] sm:$0xff] }
 0x357   : > { %4770 = vmatmul.bf16.vlgmr.msrb.gmra.mxu0 %v12997_v52  ;;  %4783 = vmatmul.bf16.vlgmr.msrb.gmra.mxu1 %v13001_v50 }
 0x358   : > { %4814 = vmatpush.bf16.msra.mxu0 %v12671_v10  ;;  %4827 = vmatpush.bf16.msra.mxu1 %v14799_v51  ;;  %v14805_v10 = vld [vmem:[#allocation80_spill] sm:$0xff]  ;;  %v14828_v51 = vld [vmem:[#allocation103_spill] sm:$0xff] }
 0x359   : > { %4840 = vmatpush.bf16.msra.mxu2 %v14800_v49  ;;  %4853 = vmatpush.bf16.msra.mxu3 %v14801_v32  ;;  %v14829_v49 = vld [vmem:[#allocation104_spill] sm:$0xff]  ;;  %v14830_v32 = vld [vmem:[#allocation105_spill] sm:$0xff] }
 0x35a   : > { %4796 = vmatmul.bf16.vlgmr.msrb.gmra.mxu2 %v12997_v52  ;;  %4809 = vmatmul.bf16.vlgmr.msrb.gmra.mxu3 %v13001_v50  ;;  %v14809_v52 = vld [vmem:[#allocation84_spill] sm:$0xff]  ;;  %v13634_v50 = vadd.f32 %v4148_v23, %v13550_v44 }
 0x35b   : > { %v14817_v44 = vld [vmem:[#allocation92_spill] sm:$0xff] }
 0x35c   : > { %4815 = vmatpush.bf16.msra.mxu0 %v14802_v11  ;;  %4828 = vmatpush.bf16.msra.mxu1 %v14803_v45  ;;  %v4136_v17 = vpop.f32.mrf.mxu0  ;;  %v4149_v47 = vpop.f32.mrf.mxu1  ;;  %v14831_v11 = vld [vmem:[#allocation106_spill] sm:$0xff]  ;;  %v14832_v45 = vld [vmem:[#allocation107_spill] sm:$0xff] }
 0x35d   : > { %4841 = vmatpush.bf16.msra.mxu2 %v14804_v62  ;;  %4854 = vmatpush.bf16.msra.mxu3 %v14805_v10  ;;  %v4160_v55 = vpop.f32.mrf.mxu2  ;;  %v4173_v39 = vpop.f32.mrf.mxu3  ;;  %v14833_v62 = vld [vmem:[#allocation108_spill] sm:$0xff]  ;;  %v14834_v10 = vld [vmem:[#allocation109_spill] sm:$0xff] }
 0x35e   : > { %v4174_v14 = vadd.f32 %v4173_v39, %v4160_v55  ;;  %v14842_v55 = vld [vmem:[#allocation117_spill] sm:$0xff]  ;;  %v14843_v39 = vld [vmem:[#allocation118_spill] sm:$0xff]  ;;  %v14845_v17 = vld [vmem:[#allocation120_spill] sm:$0xff] }
 0x360   : > { %4816 = vmatpush.bf16.msra.mxu0 %v14806_v19  ;;  %4829 = vmatpush.bf16.msra.mxu1 %v14807_v15  ;;  %v13645_v58 = vadd.f32 %v4174_v14, %v13561_v48  ;;  %v14826_v48 = vld [vmem:[#allocation101_spill] sm:$0xff]  ;;  %v14837_v19 = vld [vmem:[#allocation112_spill] sm:$0xff]  ;;  %v14844_v14 = vld [vmem:[#allocation119_spill] sm:$0xff] }
 0x361   : > { %4842 = vmatpush.bf16.msra.mxu2 %v14808_v3  ;;  %4855 = vmatpush.bf16.msra.mxu3 %v14809_v52  ;;  %v14838_v3 = vld [vmem:[#allocation113_spill] sm:$0xff]  ;;  %v14839_v52 = vld [vmem:[#allocation114_spill] sm:$0xff] }
 0x364   : > { %4817 = vmatpush.bf16.msra.mxu0 %v14810_v21  ;;  %4830 = vmatpush.bf16.msra.mxu1 %v14811_v25  ;;  %v14840_v25 = vld [vmem:[#allocation115_spill] sm:$0xff] }
 0x365   : > { %4843 = vmatpush.bf16.msra.mxu2 %v14812_v9  ;;  %4856 = vmatpush.bf16.msra.mxu3 %v14813_v29  ;;  %v4162_v33 = vpop.f32.mrf.mxu2  ;;  %v4175_v5 = vpop.f32.mrf.mxu3  ;;  %v14841_v9 = vld [vmem:[#allocation116_spill] sm:$0xff] }
 0x366   : > { %v14850_v33 = vld [vmem:[#allocation125_spill] sm:$0xff]  ;;  %v14851_v5 = vld [vmem:[#allocation126_spill] sm:$0xff] }
 0x368   : > { %4818 = vmatpush.bf16.msra.mxu0 %v14814_v13  ;;  %4831 = vmatpush.bf16.msra.mxu1 %v14815_v4 }
 0x369   : > { %4844 = vmatpush.bf16.msra.mxu2 %v14816_v37  ;;  %4857 = vmatpush.bf16.msra.mxu3 %v14817_v44 }
 0x36c   : > { %4819 = vmatpush.bf16.msra.mxu0 %v14818_v54  ;;  %4832 = vmatpush.bf16.msra.mxu1 %v14819_v2  ;;  %v14846_v54 = vld [vmem:[#allocation121_spill] sm:$0xff]  ;;  %v14847_v2 = vld [vmem:[#allocation122_spill] sm:$0xff] }
 0x36d   : > { %4845 = vmatpush.bf16.msra.mxu2 %v14820_v40  ;;  %4858 = vmatpush.bf16.msra.mxu3 %v14821_v43  ;;  %v14848_v40 = vld [vmem:[#allocation123_spill] sm:$0xff] }
 0x370   : > { %4820 = vmatpush.bf16.msra.mxu0 %v14822_v38  ;;  %4833 = vmatpush.bf16.msra.mxu1 %v14823_v61  ;;  %v14852_v38 = vld [vmem:[#allocation127_spill] sm:$0xff]  ;;  %v14853_v61 = vld [vmem:[#allocation128_spill] sm:$0xff] }
 0x371   : > { %4846 = vmatpush.bf16.msra.mxu2 %v14824_v56  ;;  %4859 = vmatpush.bf16.msra.mxu3 %v14825_v7 }
 0x374   : > { %4821 = vmatpush.bf16.msra.mxu0 %v14826_v48  ;;  %4834 = vmatpush.bf16.msra.mxu1 %v14827_v8  ;;  %v4581_v15 = vpop.f32.mrf.mxu0  ;;  %v4594_v23 = vpop.f32.mrf.mxu1  ;;  %v14854_v48 = vld [vmem:[#allocation129_spill] sm:$0xff]  ;;  %v14855_v8 = vld [vmem:[#allocation130_spill] sm:$0xff] }
 0x375   : > { %4847 = vmatpush.bf16.msra.mxu2 %v14828_v51  ;;  %4860 = vmatpush.bf16.msra.mxu3 %v14829_v49  ;;  %v4595_v21 = vadd.f32 %v4594_v23, %v4581_v15  ;;  %v14856_v51 = vld [vmem:[#allocation131_spill] sm:$0xff]  ;;  %v14857_v49 = vld [vmem:[#allocation132_spill] sm:$0xff]  ;;  %v14866_v23 = vld [vmem:[#allocation141_spill] sm:$0xff] }
 0x377   : > { %4822 = vmatmul.bf16.vlgmr.msra.gmra.mxu0 %v12669_v41  ;;  %4835 = vmatmul.bf16.vlgmr.msra.gmra.mxu1 %v12675_v34  ;;  %v4676_v29 = vadd.f32 %v4595_v21, %v13592_v22  ;;  %v14849_v22 = vld [vmem:[#allocation124_spill] sm:$0xff]  ;;  %v14868_v21 = vld [vmem:[#allocation143_spill] sm:$0xff] }
 0x378   : > { %4866 = vmatpush.bf16.msrb.mxu0 %v14830_v32  ;;  %4879 = vmatpush.bf16.msrb.mxu1 %v14831_v11  ;;  %v14858_v32 = vld [vmem:[#allocation133_spill] sm:$0xff]  ;;  %v14860_v11 = vld [vmem:[#allocation135_spill] sm:$0xff] }
 0x379   : > { %4892 = vmatpush.bf16.msrb.mxu2 %v14832_v45  ;;  %4905 = vmatpush.bf16.msrb.mxu3 %v14833_v62  ;;  %v14861_v45 = vld [vmem:[#allocation136_spill] sm:$0xff]  ;;  %v14862_v62 = vld [vmem:[#allocation137_spill] sm:$0xff] }
 0x37a   : > { %4848 = vmatmul.bf16.vlgmr.msra.gmra.mxu2 %v12669_v41  ;;  %4861 = vmatmul.bf16.vlgmr.msra.gmra.mxu3 %v12675_v34 }
 0x37c   : > { %4867 = vmatpush.bf16.msrb.mxu0 %v14834_v10  ;;  %4880 = vmatpush.bf16.msrb.mxu1 %v14835_v28  ;;  %v4583_v37 = vpop.f32.mrf.mxu0  ;;  %v4596_v44 = vpop.f32.mrf.mxu1  ;;  %v14863_v10 = vld [vmem:[#allocation138_spill] sm:$0xff]  ;;  %v13699_v28 = vld [vmem:[#allocation10] sm:$0xf] }
 0x37d   : > { %4893 = vmatpush.bf16.msrb.mxu2 %v14836_v0  ;;  %4906 = vmatpush.bf16.msrb.mxu3 %v14837_v19  ;;  %v4607_v47 = vpop.f32.mrf.mxu2  ;;  %v4620_v13 = vpop.f32.mrf.mxu3  ;;  %v14864_v0 = vld [vmem:[#allocation139_spill] sm:$0xff]  ;;  %v14865_v19 = vld [vmem:[#allocation140_spill] sm:$0xff]  ;;  %v4681_v15 = vperm.slane %v13699_v28, 0 }
 0x37e   : > { %v4621_v4 = vadd.f32 %v4620_v13, %v4607_v47  ;;  %v14871_v47 = vld [vmem:[#allocation146_spill] sm:$0xff]  ;;  %v14872_v37 = vld [vmem:[#allocation147_spill] sm:$0xff]  ;;  %v14873_v44 = vld [vmem:[#allocation148_spill] sm:$0xff] }
 0x380   : > { %4868 = vmatpush.bf16.msrb.mxu0 %v14838_v3  ;;  %4881 = vmatpush.bf16.msrb.mxu1 %v14839_v52  ;;  %v4677_v43 = vadd.f32 %v4621_v4, %v13603_v30  ;;  %v14859_v30 = vld [vmem:[#allocation134_spill] sm:$0xff]  ;;  %v13710_v52 = vld [vmem:[#allocation11] sm:$0xf]  ;;  %v4683_v4 = vperm.slane %v13699_v28, 2 }
 0x381   : > { %4894 = vmatpush.bf16.msrb.mxu2 %v14840_v25  ;;  %4907 = vmatpush.bf16.msrb.mxu3 %v14841_v9  ;;  %v14867_v3 = vld [vmem:[#allocation142_spill] sm:$0xff]  ;;  %v14869_v25 = vld [vmem:[#allocation144_spill] sm:$0xff] }
 0x384   : > { %4869 = vmatpush.bf16.msrb.mxu0 %v14842_v55  ;;  %4882 = vmatpush.bf16.msrb.mxu1 %v14843_v39  ;;  %v4689_v39 = vmul.f32 %v4681_v15, %v4676_v29 }
 0x385   : > { %4895 = vmatpush.bf16.msrb.mxu2 %v14844_v14  ;;  %4908 = vmatpush.bf16.msrb.mxu3 %v14845_v17  ;;  %v4609_v56 = vpop.f32.mrf.mxu2  ;;  %v4622_v7 = vpop.f32.mrf.mxu3  ;;  %v4694_v14 = vperm.slane %v13710_v52, 0  ;;  %v14870_v17 = vld [vmem:[#allocation145_spill] sm:$0xff] }
 0x387   : > { %v4702_v29 = vadd.f32 %v4694_v14, %v4689_v39 }
 0x388   : > { %4870 = vmatpush.bf16.msrb.mxu0 %v14846_v54  ;;  %4883 = vmatpush.bf16.msrb.mxu1 %v14847_v2  ;;  %v4696_v2 = vperm.slane %v13710_v52, 2 }
 0x389   : > { %4896 = vmatpush.bf16.msrb.mxu2 %v14848_v40  ;;  %4909 = vmatpush.bf16.msrb.mxu3 %v14849_v22  ;;  %v4682_v40 = vperm.slane %v13699_v28, 1 }
 0x38c   : > { %4871 = vmatpush.bf16.msrb.mxu0 %v14850_v33  ;;  %4884 = vmatpush.bf16.msrb.mxu1 %v14851_v5  ;;  %v14874_v33 = vld [vmem:[#allocation149_spill] sm:$0xff]  ;;  %v14875_v5 = vld [vmem:[#allocation150_spill] sm:$0xff] }
 0x38d   : > { %4897 = vmatpush.bf16.msrb.mxu2 %v14852_v38  ;;  %4910 = vmatpush.bf16.msrb.mxu3 %v14853_v61  ;;  %v14876_v38 = vld [vmem:[#allocation151_spill] sm:$0xff]  ;;  %v14877_v61 = vld [vmem:[#allocation152_spill] sm:$0xff] }
 0x390   : > { %4872 = vmatpush.bf16.msrb.mxu0 %v14854_v48  ;;  %4885 = vmatpush.bf16.msrb.mxu1 %v14855_v8  ;;  %v4690_v48 = vmul.f32 %v4682_v40, %v4677_v43  ;;  %v4695_v8 = vperm.slane %v13710_v52, 1  ;;  %v4697_v43 = vperm.slane %v13710_v52, 3  ;;  %v9844_v52 = vld [vmem:[#allocation13 + $0x1e0] sm:$0xf] }
 0x391   : > { %4898 = vmatpush.bf16.msrb.mxu2 %v14856_v51  ;;  %4911 = vmatpush.bf16.msrb.mxu3 %v14857_v49  ;;  %v4684_v49 = vperm.slane %v13699_v28, 3  ;;  %v10886_v28 = vld [vmem:[#allocation13 + $0xcc] sm:$0xf0] }
 0x394   : > { %4873 = vmatpush.bf16.msrb.mxu0 %v14858_v32  ;;  %4886 = vmatpush.bf16.msrb.mxu1 %v14859_v30  ;;  %v4633_v9 = vpop.f32.mrf.mxu0  ;;  %v4646_v55 = vpop.f32.mrf.mxu1 }
 0x395   : > { %4899 = vmatpush.bf16.msrb.mxu2 %v14860_v11  ;;  %4912 = vmatpush.bf16.msrb.mxu3 %v14861_v45  ;;  %v4647_v13 = vadd.f32 %v4646_v55, %v4633_v9  ;;  %v4706_v11 = vmax.f32 %v4702_v29, 0.0  ;;  %v14882_v9 = vld [vmem:[#allocation157_spill] sm:$0xff]  ;;  %v14883_v55 = vld [vmem:[#allocation158_spill] sm:$0xff] }
 0x396   : > { %v14887_v29 = vld [vmem:[#allocation162_spill] sm:$0xff] }
 0x397   : > { %4874 = vmatmul.bf16.vlgmr.msrb.gmra.mxu0 %v12669_v41  ;;  %4887 = vmatmul.bf16.vlgmr.msrb.gmra.mxu1 %v12675_v34  ;;  %v4678_v54 = vadd.f32 %v4647_v13, %v13634_v50 }
 0x398   : > { %4918 = vmatpush.bf16.msra.mxu0 %v14862_v62  ;;  %4931 = vmatpush.bf16.msra.mxu1 %v14863_v10  ;;  %v14878_v62 = vld [vmem:[#allocation153_spill] sm:$0xff]  ;;  %v14879_v10 = vld [vmem:[#allocation154_spill] sm:$0xff] }
 0x399   : > { %4944 = vmatpush.bf16.msra.mxu2 %v14864_v0  ;;  %4957 = vmatpush.bf16.msra.mxu3 %v14865_v19  ;;  %v4691_v22 = vmul.f32 %v4683_v4, %v4678_v54  ;;  %v14880_v0 = vld [vmem:[#allocation155_spill] sm:$0xff]  ;;  %v14881_v19 = vld [vmem:[#allocation156_spill] sm:$0xff]  ;;  %v14886_v54 = vld [vmem:[#allocation161_spill] sm:$0xff] }
 0x39a   : > { %4900 = vmatmul.bf16.vlgmr.msrb.gmra.mxu2 %v12669_v41  ;;  %4913 = vmatmul.bf16.vlgmr.msrb.gmra.mxu3 %v12675_v34 }
 0x39b   : > { %v4704_v50 = vadd.f32 %v4696_v2, %v4691_v22 }
 0x39c   : > { %4919 = vmatpush.bf16.msra.mxu0 %v14866_v23  ;;  %4932 = vmatpush.bf16.msra.mxu1 %v14867_v3  ;;  %v4635_v32 = vpop.f32.mrf.mxu0  ;;  %v4648_v30 = vpop.f32.mrf.mxu1 }
 0x39d   : > { %4945 = vmatpush.bf16.msra.mxu2 %v14868_v21  ;;  %4958 = vmatpush.bf16.msra.mxu3 %v14869_v25  ;;  %v4659_v56 = vpop.f32.mrf.mxu2  ;;  %v4672_v7 = vpop.f32.mrf.mxu3  ;;  %v4708_v45 = vmax.f32 %v4704_v50, 0.0  ;;  %v4703_v21 = vadd.f32 %v4695_v8, %v4690_v48  ;;  %v14892_v50 = vld [vmem:[#allocation167_spill] sm:$0xff]  ;;  %v14895_v48 = vld [vmem:[#allocation170_spill] sm:$0xff]  ;;  %v14897_v32 = vld [vmem:[#allocation172_spill] sm:$0xff] }
 0x39e   : > { %v4673_v51 = vadd.f32 %v4672_v7, %v4659_v56  ;;  %v14893_v56 = vld [vmem:[#allocation168_spill] sm:$0xff]  ;;  %v14894_v7 = vld [vmem:[#allocation169_spill] sm:$0xff] }
 0x39f   : > { %v13745_v3 = vmax.f32 %v4706_v11, %v4708_v45  ;;  %v14898_v30 = vld [vmem:[#allocation173_spill] sm:$0xff]  ;;  %v14899_v11 = vld [vmem:[#allocation174_spill] sm:$0xff]  ;;  %v14900_v45 = vld [vmem:[#allocation175_spill] sm:$0xff] }
 0x3a0   : > { %4920 = vmatpush.bf16.msra.mxu0 %v14870_v17  ;;  %4933 = vmatpush.bf16.msra.mxu1 %v14871_v47  ;;  %v4679_v23 = vadd.f32 %v4673_v51, %v13645_v58  ;;  %v14884_v17 = vld [vmem:[#allocation159_spill] sm:$0xff]  ;;  %v14885_v58 = vld [vmem:[#allocation160_spill] sm:$0xff] }
 0x3a1   : > { %4946 = vmatpush.bf16.msra.mxu2 %v14872_v37  ;;  %4959 = vmatpush.bf16.msra.mxu3 %v14873_v44  ;;  %v4707_v37 = vmax.f32 %v4703_v21, 0.0  ;;  %v14896_v51 = vld [vmem:[#allocation171_spill] sm:$0xff] }
 0x3a2   : > { %v4692_v25 = vmul.f32 %v4684_v49, %v4679_v23  ;;  %v14903_v23 = vld [vmem:[#allocation178_spill] sm:$0xff] }
 0x3a4   : > { %4921 = vmatpush.bf16.msra.mxu0 %v14874_v33  ;;  %4934 = vmatpush.bf16.msra.mxu1 %v14875_v5  ;;  %v4705_v39 = vadd.f32 %v4697_v43, %v4692_v25  ;;  %v14888_v33 = vld [vmem:[#allocation163_spill] sm:$0xff]  ;;  %v14889_v5 = vld [vmem:[#allocation164_spill] sm:$0xff] }
 0x3a5   : > { %4947 = vmatpush.bf16.msra.mxu2 %v14876_v38  ;;  %4960 = vmatpush.bf16.msra.mxu3 %v14877_v61  ;;  %v4661_v47 = vpop.f32.mrf.mxu2  ;;  %v4674_v13 = vpop.f32.mrf.mxu3  ;;  %v14890_v38 = vld [vmem:[#allocation165_spill] sm:$0xff]  ;;  %v14891_v61 = vld [vmem:[#allocation166_spill] sm:$0xff]  ;;  %v14904_v25 = vld [vmem:[#allocation179_spill] sm:$0xff] }
 0x3a6   : > { %v4709_v44 = vmax.f32 %v4705_v39, 0.0  ;;  %v14907_v39 = vld [vmem:[#allocation182_spill] sm:$0xff] }
 0x3a8   : > { %4922 = vmatpush.bf16.msra.mxu0 %v14878_v62  ;;  %4935 = vmatpush.bf16.msra.mxu1 %v14879_v10  ;;  %v13759_v22 = vmax.f32 %v4707_v37, %v4709_v44  ;;  %v14901_v62 = vld [vmem:[#allocation176_spill] sm:$0xff] }
 0x3a9   : > { %4948 = vmatpush.bf16.msra.mxu2 %v14880_v0  ;;  %4961 = vmatpush.bf16.msra.mxu3 %v14881_v19  ;;  %v14902_v19 = vld [vmem:[#allocation177_spill] sm:$0xff] }
 0x3ac   : > { %4923 = vmatpush.bf16.msra.mxu0 %v14882_v9  ;;  %4936 = vmatpush.bf16.msra.mxu1 %v14883_v55  ;;  %v14905_v9 = vld [vmem:[#allocation180_spill] sm:$0xff]  ;;  %v14906_v55 = vld [vmem:[#allocation181_spill] sm:$0xff] }
 0x3ad   : > { %4949 = vmatpush.bf16.msra.mxu2 %v14884_v17  ;;  %4962 = vmatpush.bf16.msra.mxu3 %v14885_v58  ;;  %v14908_v17 = vld [vmem:[#allocation183_spill] sm:$0xff]  ;;  %v14909_v58 = vld [vmem:[#allocation184_spill] sm:$0xff] }
 0x3b0   : > { %4924 = vmatpush.bf16.msra.mxu0 %v14886_v54  ;;  %4937 = vmatpush.bf16.msra.mxu1 %v14887_v29  ;;  %v14910_v29 = vld [vmem:[#allocation185_spill] sm:$0xff] }
 0x3b1   : > { %4950 = vmatpush.bf16.msra.mxu2 %v14888_v33  ;;  %4963 = vmatpush.bf16.msra.mxu3 %v14889_v5  ;;  %v14911_v33 = vld [vmem:[#allocation186_spill] sm:$0xff]  ;;  %v14912_v5 = vld [vmem:[#allocation187_spill] sm:$0xff] }
 0x3b4   : > { %4925 = vmatpush.bf16.msra.mxu0 %v14890_v38  ;;  %4938 = vmatpush.bf16.msra.mxu1 %v14891_v61  ;;  %v4719_v10 = vpop.f32.mrf.mxu0  ;;  %v4732_v0 = vpop.f32.mrf.mxu1  ;;  %v14913_v38 = vld [vmem:[#allocation188_spill] sm:$0xff]  ;;  %v14914_v61 = vld [vmem:[#allocation189_spill] sm:$0xff] }
 0x3b5   : > { %4951 = vmatpush.bf16.msra.mxu2 %v14892_v50  ;;  %4964 = vmatpush.bf16.msra.mxu3 %v14893_v56  ;;  %v13781_v21 = vadd.f32 %v4732_v0, %v4719_v10  ;;  %v14915_v50 = vld [vmem:[#allocation190_spill] sm:$0xff]  ;;  %v14916_v56 = vld [vmem:[#allocation191_spill] sm:$0xff] }
 0x3b6   : > { %v14923_v10 = vld [vmem:[#allocation198_spill] sm:$0xff]  ;;  %v14924_v0 = vld [vmem:[#allocation199_spill] sm:$0xff] }
 0x3b7   : > { %4926 = vmatmul.bf16.vlgmr.msra.gmra.mxu0 %v13213_v46  ;;  %4939 = vmatmul.bf16.vlgmr.msra.gmra.mxu1 %v13217_v60 }
 0x3b8   : > { %4970 = vmatpush.bf16.msrb.mxu0 %v14894_v7  ;;  %4983 = vmatpush.bf16.msrb.mxu1 %v14895_v48  ;;  %v14917_v7 = vld [vmem:[#allocation192_spill] sm:$0xff] }
 0x3b9   : > { %4996 = vmatpush.bf16.msrb.mxu2 %v14896_v51  ;;  %5009 = vmatpush.bf16.msrb.mxu3 %v14897_v32  ;;  %v14918_v32 = vld [vmem:[#allocation193_spill] sm:$0xff] }
 0x3ba   : > { %4952 = vmatmul.bf16.vlgmr.msra.gmra.mxu2 %v13213_v46  ;;  %4965 = vmatmul.bf16.vlgmr.msra.gmra.mxu3 %v13217_v60 }
 0x3bc   : > { %4971 = vmatpush.bf16.msrb.mxu0 %v14898_v30  ;;  %4984 = vmatpush.bf16.msrb.mxu1 %v14899_v11  ;;  %v4721_v44 = vpop.f32.mrf.mxu0  ;;  %v4734_v54 = vpop.f32.mrf.mxu1  ;;  %v14919_v30 = vld [vmem:[#allocation194_spill] sm:$0xff]  ;;  %v14920_v11 = vld [vmem:[#allocation195_spill] sm:$0xff] }
 0x3bd   : > { %4997 = vmatpush.bf16.msrb.mxu2 %v14900_v45  ;;  %5010 = vmatpush.bf16.msrb.mxu3 %v14901_v62  ;;  %v4745_v47 = vpop.f32.mrf.mxu2  ;;  %v4758_v13 = vpop.f32.mrf.mxu3  ;;  %v14921_v45 = vld [vmem:[#allocation196_spill] sm:$0xff]  ;;  %v14922_v62 = vld [vmem:[#allocation197_spill] sm:$0xff] }
 0x3be   : > { %v13789_v37 = vadd.f32 %v4758_v13, %v4745_v47  ;;  %v14933_v47 = vld [vmem:[#allocation208_spill] sm:$0xff]  ;;  %v14934_v54 = vld [vmem:[#allocation209_spill] sm:$0xff] }
 0x3c0   : > { %4972 = vmatpush.bf16.msrb.mxu0 %v14902_v19  ;;  %4985 = vmatpush.bf16.msrb.mxu1 %v14903_v23  ;;  %v14925_v19 = vld [vmem:[#allocation200_spill] sm:$0xff]  ;;  %v14926_v23 = vld [vmem:[#allocation201_spill] sm:$0xff] }
 0x3c1   : > { %4998 = vmatpush.bf16.msrb.mxu2 %v14904_v25  ;;  %5011 = vmatpush.bf16.msrb.mxu3 %v14905_v9  ;;  %v14927_v25 = vld [vmem:[#allocation202_spill] sm:$0xff]  ;;  %v14928_v9 = vld [vmem:[#allocation203_spill] sm:$0xff] }
 0x3c4   : > { %4973 = vmatpush.bf16.msrb.mxu0 %v14906_v55  ;;  %4986 = vmatpush.bf16.msrb.mxu1 %v14907_v39  ;;  %v14929_v55 = vld [vmem:[#allocation204_spill] sm:$0xff]  ;;  %v14930_v39 = vld [vmem:[#allocation205_spill] sm:$0xff] }
 0x3c5   : > { %4999 = vmatpush.bf16.msrb.mxu2 %v14908_v17  ;;  %5012 = vmatpush.bf16.msrb.mxu3 %v14909_v58  ;;  %v4747_v48 = vpop.f32.mrf.mxu2  ;;  %v4760_v51 = vpop.f32.mrf.mxu3  ;;  %v14931_v17 = vld [vmem:[#allocation206_spill] sm:$0xff]  ;;  %v14932_v58 = vld [vmem:[#allocation207_spill] sm:$0xff] }
 0x3c8   : > { %4974 = vmatpush.bf16.msrb.mxu0 %v14910_v29  ;;  %4987 = vmatpush.bf16.msrb.mxu1 %v14911_v33  ;;  %v14935_v29 = vld [vmem:[#allocation210_spill] sm:$0xff] }
 0x3c9   : > { %5000 = vmatpush.bf16.msrb.mxu2 %v14912_v5  ;;  %5013 = vmatpush.bf16.msrb.mxu3 %v14913_v38  ;;  %v14936_v5 = vld [vmem:[#allocation211_spill] sm:$0xff]  ;;  %v14939_v38 = vld [vmem:[#allocation214_spill] sm:$0xff] }
 0x3cc   : > { %4975 = vmatpush.bf16.msrb.mxu0 %v14914_v61  ;;  %4988 = vmatpush.bf16.msrb.mxu1 %v14915_v50  ;;  %v14940_v61 = vld [vmem:[#allocation215_spill] sm:$0xff]  ;;  %v14941_v50 = vld [vmem:[#allocation216_spill] sm:$0xff] }
 0x3cd   : > { %5001 = vmatpush.bf16.msrb.mxu2 %v14916_v56  ;;  %5014 = vmatpush.bf16.msrb.mxu3 %v14917_v7 }
 0x3d0   : > { %4976 = vmatpush.bf16.msrb.mxu0 %v14918_v32  ;;  %4989 = vmatpush.bf16.msrb.mxu1 %v14919_v30  ;;  %v14942_v30 = vld [vmem:[#allocation217_spill] sm:$0xff] }
 0x3d1   : > { %5002 = vmatpush.bf16.msrb.mxu2 %v14920_v11  ;;  %5015 = vmatpush.bf16.msrb.mxu3 %v14921_v45  ;;  %v14943_v11 = vld [vmem:[#allocation218_spill] sm:$0xff]  ;;  %v14944_v45 = vld [vmem:[#allocation219_spill] sm:$0xff] }
 0x3d4   : > { %4977 = vmatpush.bf16.msrb.mxu0 %v14922_v62  ;;  %4990 = vmatpush.bf16.msrb.mxu1 %v14923_v10  ;;  %v4771_v13 = vpop.f32.mrf.mxu0  ;;  %v4784_v44 = vpop.f32.mrf.mxu1  ;;  %v14945_v62 = vld [vmem:[#allocation220_spill] sm:$0xff]  ;;  %v14946_v10 = vld [vmem:[#allocation221_spill] sm:$0xff] }
 0x3d5   : > { %5003 = vmatpush.bf16.msrb.mxu2 %v14924_v0  ;;  %5016 = vmatpush.bf16.msrb.mxu3 %v14925_v19  ;;  %v13821_v33 = vadd.f32 %v4784_v44, %v4771_v13  ;;  %v14947_v0 = vld [vmem:[#allocation222_spill] sm:$0xff]  ;;  %v14948_v19 = vld [vmem:[#allocation223_spill] sm:$0xff] }
 0x3d6   : > { %v14955_v13 = vld [vmem:[#allocation230_spill] sm:$0xff]  ;;  %v14956_v44 = vld [vmem:[#allocation231_spill] sm:$0xff] }
 0x3d7   : > { %4978 = vmatmul.bf16.vlgmr.msrb.gmra.mxu0 %v13213_v46  ;;  %4991 = vmatmul.bf16.vlgmr.msrb.gmra.mxu1 %v13217_v60 }
 0x3d8   : > { %5026 = vmatpush.bf16.msra.mxu0 %v14926_v23  ;;  %5039 = vmatpush.bf16.msra.mxu1 %v14927_v25  ;;  %v14949_v23 = vld [vmem:[#allocation224_spill] sm:$0xff] }
 0x3d9   : > { %5052 = vmatpush.bf16.msra.mxu2 %v14928_v9  ;;  %5065 = vmatpush.bf16.msra.mxu3 %v14929_v55  ;;  %v14950_v55 = vld [vmem:[#allocation225_spill] sm:$0xff] }
 0x3da   : > { %5004 = vmatmul.bf16.vlgmr.msrb.gmra.mxu2 %v13213_v46  ;;  %5017 = vmatmul.bf16.vlgmr.msrb.gmra.mxu3 %v13217_v60  ;;  %v14937_v46 = vld [vmem:[#allocation212_spill] sm:$0xff]  ;;  %v14938_v60 = vld [vmem:[#allocation213_spill] sm:$0xff] }
 0x3dc   : > { %5027 = vmatpush.bf16.msra.mxu0 %v14930_v39  ;;  %5040 = vmatpush.bf16.msra.mxu1 %v14931_v17  ;;  %v4773_v51 = vpop.f32.mrf.mxu0  ;;  %v4786_v32 = vpop.f32.mrf.mxu1  ;;  %v14951_v39 = vld [vmem:[#allocation226_spill] sm:$0xff]  ;;  %v14952_v17 = vld [vmem:[#allocation227_spill] sm:$0xff] }
 0x3dd   : > { %5053 = vmatpush.bf16.msra.mxu2 %v14932_v58  ;;  %5066 = vmatpush.bf16.msra.mxu3 %v14933_v47  ;;  %v4797_v56 = vpop.f32.mrf.mxu2  ;;  %v4810_v7 = vpop.f32.mrf.mxu3  ;;  %v14953_v58 = vld [vmem:[#allocation228_spill] sm:$0xff]  ;;  %v14954_v47 = vld [vmem:[#allocation229_spill] sm:$0xff] }
 0x3de   : > { %v13829_v48 = vadd.f32 %v4810_v7, %v4797_v56  ;;  %v14965_v56 = vld [vmem:[#allocation240_spill] sm:$0xff]  ;;  %v14966_v32 = vld [vmem:[#allocation241_spill] sm:$0xff] }
 0x3e0   : > { %5028 = vmatpush.bf16.msra.mxu0 %v14934_v54  ;;  %5041 = vmatpush.bf16.msra.mxu1 %v14935_v29  ;;  %v14957_v54 = vld [vmem:[#allocation232_spill] sm:$0xff]  ;;  %v14958_v29 = vld [vmem:[#allocation233_spill] sm:$0xff] }
 0x3e1   : > { %5054 = vmatpush.bf16.msra.mxu2 %v14936_v5  ;;  %5067 = vmatpush.bf16.msra.mxu3 %v14937_v46  ;;  %v14959_v5 = vld [vmem:[#allocation234_spill] sm:$0xff]  ;;  %v14960_v46 = vld [vmem:[#allocation235_spill] sm:$0xff] }
 0x3e4   : > { %5029 = vmatpush.bf16.msra.mxu0 %v14938_v60  ;;  %5042 = vmatpush.bf16.msra.mxu1 %v14939_v38  ;;  %v14961_v60 = vld [vmem:[#allocation236_spill] sm:$0xff]  ;;  %v14962_v38 = vld [vmem:[#allocation237_spill] sm:$0xff] }
 0x3e5   : > { %5055 = vmatpush.bf16.msra.mxu2 %v14940_v61  ;;  %5068 = vmatpush.bf16.msra.mxu3 %v14941_v50  ;;  %v4799_v25 = vpop.f32.mrf.mxu2  ;;  %v4812_v9 = vpop.f32.mrf.mxu3  ;;  %v14963_v61 = vld [vmem:[#allocation238_spill] sm:$0xff]  ;;  %v14964_v50 = vld [vmem:[#allocation239_spill] sm:$0xff] }
 0x3e6   : > { %v14973_v25 = vld [vmem:[#allocation248_spill] sm:$0xff] }
 0x3e8   : > { %5030 = vmatpush.bf16.msra.mxu0 %v14942_v30  ;;  %5043 = vmatpush.bf16.msra.mxu1 %v14943_v11  ;;  %v14967_v30 = vld [vmem:[#allocation242_spill] sm:$0xff] }
 0x3e9   : > { %5056 = vmatpush.bf16.msra.mxu2 %v14944_v45  ;;  %5069 = vmatpush.bf16.msra.mxu3 %v14945_v62  ;;  %v14968_v45 = vld [vmem:[#allocation243_spill] sm:$0xff]  ;;  %v14969_v62 = vld [vmem:[#allocation244_spill] sm:$0xff] }
 0x3ec   : > { %5031 = vmatpush.bf16.msra.mxu0 %v14946_v10  ;;  %5044 = vmatpush.bf16.msra.mxu1 %v14947_v0  ;;  %v14970_v0 = vld [vmem:[#allocation245_spill] sm:$0xff] }
 0x3ed   : > { %5057 = vmatpush.bf16.msra.mxu2 %v14948_v19  ;;  %5070 = vmatpush.bf16.msra.mxu3 %v14949_v23  ;;  %v14971_v19 = vld [vmem:[#allocation246_spill] sm:$0xff]  ;;  %v14972_v23 = vld [vmem:[#allocation247_spill] sm:$0xff] }
 0x3f0   : > { %5032 = vmatpush.bf16.msra.mxu0 %v14950_v55  ;;  %5045 = vmatpush.bf16.msra.mxu1 %v14951_v39 }
 0x3f1   : > { %5058 = vmatpush.bf16.msra.mxu2 %v14952_v17  ;;  %5071 = vmatpush.bf16.msra.mxu3 %v14953_v58  ;;  %v14974_v58 = vld [vmem:[#allocation249_spill] sm:$0xff] }
 0x3f4   : > { %5033 = vmatpush.bf16.msra.mxu0 %v14954_v47  ;;  %5046 = vmatpush.bf16.msra.mxu1 %v14955_v13  ;;  %v4823_v7 = vpop.f32.mrf.mxu0  ;;  %v4836_v51 = vpop.f32.mrf.mxu1  ;;  %v14975_v47 = vld [vmem:[#allocation250_spill] sm:$0xff]  ;;  %v14976_v13 = vld [vmem:[#allocation251_spill] sm:$0xff] }
 0x3f5   : > { %5059 = vmatpush.bf16.msra.mxu2 %v14956_v44  ;;  %5072 = vmatpush.bf16.msra.mxu3 %v14957_v54  ;;  %v4824_v11 = vadd.f32 %v4823_v7, %v13781_v21  ;;  %v14977_v44 = vld [vmem:[#allocation252_spill] sm:$0xff] }
 0x3f6   : > { %v14985_v7 = vld [vmem:[#allocation260_spill] sm:$0xff] }
 0x3f7   : > { %5034 = vmatmul.bf16.vlgmr.msra.gmra.mxu0 %v13432_v59  ;;  %5047 = vmatmul.bf16.vlgmr.msra.gmra.mxu1 %v13435_v36  ;;  %v13864_v10 = vadd.f32 %v4836_v51, %v4824_v11  ;;  %v14986_v51 = vld [vmem:[#allocation261_spill] sm:$0xff]  ;;  %v14989_v11 = vld [vmem:[#allocation264_spill] sm:$0xff] }
 0x3f8   : > { %5078 = vmatpush.bf16.msrb.mxu0 %v14958_v29  ;;  %5091 = vmatpush.bf16.msrb.mxu1 %v14959_v5  ;;  %v14978_v29 = vld [vmem:[#allocation253_spill] sm:$0xff]  ;;  %v14979_v5 = vld [vmem:[#allocation254_spill] sm:$0xff] }
 0x3f9   : > { %5104 = vmatpush.bf16.msrb.mxu2 %v14960_v46  ;;  %5117 = vmatpush.bf16.msrb.mxu3 %v14961_v60  ;;  %v14980_v46 = vld [vmem:[#allocation255_spill] sm:$0xff]  ;;  %v14981_v60 = vld [vmem:[#allocation256_spill] sm:$0xff] }
 0x3fa   : > { %5060 = vmatmul.bf16.vlgmr.msra.gmra.mxu2 %v13432_v59  ;;  %5073 = vmatmul.bf16.vlgmr.msra.gmra.mxu3 %v13435_v36 }
 0x3fc   : > { %5079 = vmatpush.bf16.msrb.mxu0 %v14962_v38  ;;  %5092 = vmatpush.bf16.msrb.mxu1 %v14963_v61  ;;  %v4825_v17 = vpop.f32.mrf.mxu0  ;;  %v4838_v21 = vpop.f32.mrf.mxu1  ;;  %v14982_v61 = vld [vmem:[#allocation257_spill] sm:$0xff] }
 0x3fd   : > { %5105 = vmatpush.bf16.msrb.mxu2 %v14964_v50  ;;  %5118 = vmatpush.bf16.msrb.mxu3 %v14965_v56  ;;  %v4849_v9 = vpop.f32.mrf.mxu2  ;;  %v4862_v55 = vpop.f32.mrf.mxu3  ;;  %v14983_v50 = vld [vmem:[#allocation258_spill] sm:$0xff]  ;;  %v14984_v56 = vld [vmem:[#allocation259_spill] sm:$0xff]  ;;  %v14998_v21 = vld [vmem:[#allocation273_spill] sm:$0xff] }
 0x3fe   : > { %v4850_v39 = vadd.f32 %v4849_v9, %v13789_v37  ;;  %v14996_v9 = vld [vmem:[#allocation271_spill] sm:$0xff] }
 0x400   : > { %5080 = vmatpush.bf16.msrb.mxu0 %v14966_v32  ;;  %5093 = vmatpush.bf16.msrb.mxu1 %v14967_v30  ;;  %v13875_v54 = vadd.f32 %v4862_v55, %v4850_v39  ;;  %v14987_v32 = vld [vmem:[#allocation262_spill] sm:$0xff]  ;;  %v14988_v30 = vld [vmem:[#allocation263_spill] sm:$0xff]  ;;  %v14997_v55 = vld [vmem:[#allocation272_spill] sm:$0xff] }
 0x401   : > { %5106 = vmatpush.bf16.msrb.mxu2 %v14968_v45  ;;  %5119 = vmatpush.bf16.msrb.mxu3 %v14969_v62  ;;  %v14990_v45 = vld [vmem:[#allocation265_spill] sm:$0xff]  ;;  %v14991_v62 = vld [vmem:[#allocation266_spill] sm:$0xff] }
 0x404   : > { %5081 = vmatpush.bf16.msrb.mxu0 %v14970_v0  ;;  %5094 = vmatpush.bf16.msrb.mxu1 %v14971_v19  ;;  %v14992_v0 = vld [vmem:[#allocation267_spill] sm:$0xff]  ;;  %v14993_v19 = vld [vmem:[#allocation268_spill] sm:$0xff] }
 0x405   : > { %5107 = vmatpush.bf16.msrb.mxu2 %v14972_v23  ;;  %5120 = vmatpush.bf16.msrb.mxu3 %v14973_v25  ;;  %v4851_v37 = vpop.f32.mrf.mxu2  ;;  %v4864_v38 = vpop.f32.mrf.mxu3  ;;  %v14994_v23 = vld [vmem:[#allocation269_spill] sm:$0xff]  ;;  %v14995_v25 = vld [vmem:[#allocation270_spill] sm:$0xff] }
 0x408   : > { %5082 = vmatpush.bf16.msrb.mxu0 %v14974_v58  ;;  %5095 = vmatpush.bf16.msrb.mxu1 %v14975_v47  ;;  %v14999_v58 = vld [vmem:[#allocation274_spill] sm:$0xff] }
 0x409   : > { %5108 = vmatpush.bf16.msrb.mxu2 %v14976_v13  ;;  %5121 = vmatpush.bf16.msrb.mxu3 %v14977_v44  ;;  %v15000_v13 = vld [vmem:[#allocation275_spill] sm:$0xff]  ;;  %v15002_v44 = vld [vmem:[#allocation277_spill] sm:$0xff] }
 0x40c   : > { %5083 = vmatpush.bf16.msrb.mxu0 %v14978_v29  ;;  %5096 = vmatpush.bf16.msrb.mxu1 %v14979_v5  ;;  %v15003_v29 = vld [vmem:[#allocation278_spill] sm:$0xff]  ;;  %v15004_v5 = vld [vmem:[#allocation279_spill] sm:$0xff] }
 0x40d   : > { %5109 = vmatpush.bf16.msrb.mxu2 %v14980_v46  ;;  %5122 = vmatpush.bf16.msrb.mxu3 %v14981_v60  ;;  %v15005_v46 = vld [vmem:[#allocation280_spill] sm:$0xff] }
 0x410   : > { %5084 = vmatpush.bf16.msrb.mxu0 %v14982_v61  ;;  %5097 = vmatpush.bf16.msrb.mxu1 %v14983_v50  ;;  %v15006_v50 = vld [vmem:[#allocation281_spill] sm:$0xff] }
 0x411   : > { %5110 = vmatpush.bf16.msrb.mxu2 %v14984_v56  ;;  %5123 = vmatpush.bf16.msrb.mxu3 %v14985_v7  ;;  %v15007_v56 = vld [vmem:[#allocation282_spill] sm:$0xff]  ;;  %v15008_v7 = vld [vmem:[#allocation283_spill] sm:$0xff] }
 0x414   : > { %5085 = vmatpush.bf16.msrb.mxu0 %v14986_v51  ;;  %5098 = vmatpush.bf16.msrb.mxu1 %v14987_v32  ;;  %v4875_v39 = vpop.f32.mrf.mxu0  ;;  %v4888_v17 = vpop.f32.mrf.mxu1  ;;  %v15009_v51 = vld [vmem:[#allocation284_spill] sm:$0xff] }
 0x415   : > { %5111 = vmatpush.bf16.msrb.mxu2 %v14988_v30  ;;  %5124 = vmatpush.bf16.msrb.mxu3 %v14989_v11  ;;  %v4876_v47 = vadd.f32 %v4875_v39, %v13821_v33  ;;  %v15010_v30 = vld [vmem:[#allocation285_spill] sm:$0xff]  ;;  %v15011_v11 = vld [vmem:[#allocation286_spill] sm:$0xff] }
 0x416   : > { %v15019_v39 = vld [vmem:[#allocation294_spill] sm:$0xff] }
 0x417   : > { %5086 = vmatmul.bf16.vlgmr.msrb.gmra.mxu0 %v13432_v59  ;;  %5099 = vmatmul.bf16.vlgmr.msrb.gmra.mxu1 %v13435_v36 }
 0x418   : > { %5140 = vmatpush.bf16.msra.mxu0 %v14990_v45  ;;  %5153 = vmatpush.bf16.msra.mxu1 %v14991_v62  ;;  %v15012_v45 = vld [vmem:[#allocation287_spill] sm:$0xff]  ;;  %v15013_v62 = vld [vmem:[#allocation288_spill] sm:$0xff] }
 0x419   : > { %5166 = vmatpush.bf16.msra.mxu2 %v14992_v0  ;;  %5179 = vmatpush.bf16.msra.mxu3 %v14993_v19  ;;  %v15014_v19 = vld [vmem:[#allocation289_spill] sm:$0xff] }
 0x41a   : > { %5112 = vmatmul.bf16.vlgmr.msrb.gmra.mxu2 %v13432_v59  ;;  %5125 = vmatmul.bf16.vlgmr.msrb.gmra.mxu3 %v13435_v36  ;;  %v15001_v59 = vld [vmem:[#allocation276_spill] sm:$0xff]  ;;  %v13906_v36 = vadd.f32 %v4888_v17, %v4876_v47  ;;  %v5136_v17 = vrot.slane %v12669_v41, 1 }
 0x41b   : > { %v15025_v47 = vld [vmem:[#allocation300_spill] sm:$0xff] }
 0x41c   : > { %5141 = vmatpush.bf16.msra.mxu0 %v14994_v23  ;;  %5154 = vmatpush.bf16.msra.mxu1 %v14995_v25  ;;  %v4877_v61 = vpop.f32.mrf.mxu0  ;;  %v4890_v33 = vpop.f32.mrf.mxu1  ;;  %v15015_v23 = vld [vmem:[#allocation290_spill] sm:$0xff]  ;;  %v15016_v25 = vld [vmem:[#allocation291_spill] sm:$0xff] }
 0x41d   : > { %5167 = vmatpush.bf16.msra.mxu2 %v14996_v9  ;;  %5180 = vmatpush.bf16.msra.mxu3 %v14997_v55  ;;  %v4901_v60 = vpop.f32.mrf.mxu2  ;;  %v4914_v37 = vpop.f32.mrf.mxu3  ;;  %v15017_v9 = vld [vmem:[#allocation292_spill] sm:$0xff]  ;;  %v15018_v55 = vld [vmem:[#allocation293_spill] sm:$0xff] }
 0x41e   : > { %v4902_v38 = vadd.f32 %v4901_v60, %v13829_v48  ;;  %v15030_v60 = vld [vmem:[#allocation305_spill] sm:$0xff] }
 0x420   : > { %5142 = vmatpush.bf16.msra.mxu0 %v14998_v21  ;;  %5155 = vmatpush.bf16.msra.mxu1 %v14999_v58  ;;  %v13917_v32 = vadd.f32 %v4914_v37, %v4902_v38  ;;  %v5137_v21 = vrot.slane %v12675_v34, 1  ;;  %v15020_v58 = vld [vmem:[#allocation295_spill] sm:$0xff]  ;;  %v15027_v34 = vld [vmem:[#allocation302_spill] sm:$0xff] }
 0x421   : > { %5168 = vmatpush.bf16.msra.mxu2 %v15000_v13  ;;  %5181 = vmatpush.bf16.msra.mxu3 %v15001_v59  ;;  %v15026_v59 = vld [vmem:[#allocation301_spill] sm:$0xff]  ;;  %v15031_v37 = vld [vmem:[#allocation306_spill] sm:$0xff]  ;;  %v15032_v38 = vld [vmem:[#allocation307_spill] sm:$0xff] }
 0x424   : > { %5143 = vmatpush.bf16.msra.mxu0 %v15002_v44  ;;  %5156 = vmatpush.bf16.msra.mxu1 %v15003_v29  ;;  %v15028_v29 = vld [vmem:[#allocation303_spill] sm:$0xff] }
 0x425   : > { %5169 = vmatpush.bf16.msra.mxu2 %v15004_v5  ;;  %5182 = vmatpush.bf16.msra.mxu3 %v15005_v46  ;;  %v4903_v48 = vpop.f32.mrf.mxu2  ;;  %v4916_v0 = vpop.f32.mrf.mxu3  ;;  %v15029_v5 = vld [vmem:[#allocation304_spill] sm:$0xff] }
 0x428   : > { %5144 = vmatpush.bf16.msra.mxu0 %v15006_v50  ;;  %5157 = vmatpush.bf16.msra.mxu1 %v15007_v56 }
 0x429   : > { %5170 = vmatpush.bf16.msra.mxu2 %v15008_v7  ;;  %5183 = vmatpush.bf16.msra.mxu3 %v15009_v51  ;;  %v15033_v51 = vld [vmem:[#allocation308_spill] sm:$0xff] }
 0x42c   : > { %5145 = vmatpush.bf16.msra.mxu0 %v15010_v30  ;;  %5158 = vmatpush.bf16.msra.mxu1 %v15011_v11  ;;  %v15034_v30 = vld [vmem:[#allocation309_spill] sm:$0xff]  ;;  %v15035_v11 = vld [vmem:[#allocation310_spill] sm:$0xff] }
 0x42d   : > { %5171 = vmatpush.bf16.msra.mxu2 %v15012_v45  ;;  %5184 = vmatpush.bf16.msra.mxu3 %v15013_v62  ;;  %v15037_v62 = vld [vmem:[#allocation312_spill] sm:$0xff] }
 0x430   : > { %5146 = vmatpush.bf16.msra.mxu0 %v15014_v19  ;;  %5159 = vmatpush.bf16.msra.mxu1 %v15015_v23 }
 0x431   : > { %5172 = vmatpush.bf16.msra.mxu2 %v13401_v42  ;;  %5185 = vmatpush.bf16.msra.mxu3 %v13403_v27  ;;  %v15021_v42 = vld [vmem:[#allocation296_spill] sm:$0xff]  ;;  %v15023_v27 = vld [vmem:[#allocation298_spill] sm:$0xff] }
 0x434   : > { %5147 = vmatpush.bf16.msra.mxu0 %v13407_v53  ;;  %5160 = vmatpush.bf16.msra.mxu1 %v13409_v18  ;;  %v15022_v53 = vld [vmem:[#allocation297_spill] sm:$0xff]  ;;  %v15024_v18 = vld [vmem:[#allocation299_spill] sm:$0xff]  ;;  %v4927_v13 = vpop.f32.mrf.mxu0  ;;  %v4940_v41 = vpop.f32.mrf.mxu1 }
 0x435   : > { %5173 = vmatpush.bf16.msra.mxu2 %v15016_v25  ;;  %5186 = vmatpush.bf16.msra.mxu3 %v15017_v9  ;;  %v4941_v44 = vadd.f32 %v4940_v41, %v4927_v13  ;;  %v9444_v13 = vld [vmem:[#allocation13 + $0x2c0] sm:$0xf]  ;;  %v10950_v41 = vld [vmem:[#allocation13 + $0x2cc] sm:$0xf0] }
 0x437   : > { %5148 = vmatmul.bf16.vlgmr.msra.gmra.mxu0 %v5136_v17  ;;  %5161 = vmatmul.bf16.vlgmr.msra.gmra.mxu1 %v5137_v21  ;;  %v5022_v46 = vadd.f32 %v4941_v44, %v13864_v10  ;;  %v15036_v10 = vld [vmem:[#allocation311_spill] sm:$0xff] }
 0x438   : > { %5192 = vmatpush.bf16.msrb.mxu0 %v15018_v55  ;;  %5205 = vmatpush.bf16.msrb.mxu1 %v15019_v39 }
 0x439   : > { %5218 = vmatpush.bf16.msrb.mxu2 %v15020_v58  ;;  %5231 = vmatpush.bf16.msrb.mxu3 %v15021_v42 }
 0x43a   : > { %5174 = vmatmul.bf16.vlgmr.msra.gmra.mxu2 %v5136_v17  ;;  %5187 = vmatmul.bf16.vlgmr.msra.gmra.mxu3 %v5137_v21 }
 0x43c   : > { %5193 = vmatpush.bf16.msrb.mxu0 %v15022_v53  ;;  %5206 = vmatpush.bf16.msrb.mxu1 %v15023_v27  ;;  %v4929_v56 = vpop.f32.mrf.mxu0  ;;  %v4942_v7 = vpop.f32.mrf.mxu1  ;;  %v9460_v53 = vld [vmem:[#allocation13 + $0x2e0] sm:$0xf]  ;;  %v10954_v27 = vld [vmem:[#allocation13 + $0x2ec] sm:$0xf0] }
 0x43d   : > { %5219 = vmatpush.bf16.msrb.mxu2 %v15024_v18  ;;  %5232 = vmatpush.bf16.msrb.mxu3 %v15025_v47  ;;  %v4953_v61 = vpop.f32.mrf.mxu2  ;;  %v4966_v33 = vpop.f32.mrf.mxu3  ;;  %v10952_v18 = vld [vmem:[#allocation13 + $0x2e4] sm:$0xf]  ;;  %v9461_v47 = vor.u32 %v10954_v27, %v9460_v53  ;;  %v9428_v7 = vld [vmem:[#allocation13 + $0x2a0] sm:$0xf] }
 0x43e   : > { %v4967_v50 = vadd.f32 %v4966_v33, %v4953_v61  ;;  %v9590_v61 = vld [vmem:[#allocation13 + $0x3f0] sm:$0xf0]  ;;  %v10936_v53 = vld [vmem:[#allocation13 + $0x264] sm:$0xf] }
 0x440   : > { %5194 = vmatpush.bf16.msrb.mxu0 %v15026_v59  ;;  %5207 = vmatpush.bf16.msrb.mxu1 %v15027_v34  ;;  %v5023_v45 = vadd.f32 %v4967_v50, %v13875_v54 }
 0x441   : > { %5220 = vmatpush.bf16.msrb.mxu2 %v15028_v29  ;;  %5233 = vmatpush.bf16.msrb.mxu3 %v15029_v5  ;;  %v10948_v29 = vld [vmem:[#allocation13 + $0x2c4] sm:$0xf]  ;;  %v9446_v5 = vld [vmem:[#allocation13 + $0x2d0] sm:$0xf0] }
 0x442   : > { %v9449_v33 = vor.u32 %v10948_v29, %v9446_v5  ;;  %v9380_v29 = vld [vmem:[#allocation13 + $0x240] sm:$0xf]  ;;  %v10934_v5 = vld [vmem:[#allocation13 + $0x24c] sm:$0xf0] }
 0x444   : > { %5195 = vmatpush.bf16.msrb.mxu0 %v15030_v60  ;;  %5208 = vmatpush.bf16.msrb.mxu1 %v15031_v37  ;;  %v9445_v60 = vor.u32 %v10950_v41, %v9444_v13  ;;  %v10986_v37 = vld [vmem:[#allocation13 + $0x3ec] sm:$0xf0]  ;;  %v10972_v41 = vld [vmem:[#allocation13 + $0x384] sm:$0xf] }
 0x445   : > { %5221 = vmatpush.bf16.msrb.mxu2 %v13471_v63  ;;  %5234 = vmatpush.bf16.msrb.mxu3 %v15032_v38  ;;  %v15038_v63 = vld [vmem:[#allocation313_spill] sm:$0xff]  ;;  %v4955_v48 = vpop.f32.mrf.mxu2  ;;  %v4968_v0 = vpop.f32.mrf.mxu3  ;;  %v10974_v13 = vld [vmem:[#allocation13 + $0x38c] sm:$0xf0] }
 0x446   : > { %v10984_v38 = vld [vmem:[#allocation13 + $0x3e4] sm:$0xf] }
 0x447   : > { %v9593_v56 = vor.u32 %v10984_v38, %v9590_v61  ;;  %v10980_v48 = vld [vmem:[#allocation13 + $0x3c4] sm:$0xf]  ;;  %v9381_v38 = vor.u32 %v10934_v5, %v9380_v29  ;;  %v9382_v61 = vld [vmem:[#allocation13 + $0x250] sm:$0xf0] }
 0x448   : > { %5196 = vmatpush.bf16.msrb.mxu0 %v15033_v51  ;;  %5209 = vmatpush.bf16.msrb.mxu1 %v15034_v30  ;;  %v10946_v51 = vld [vmem:[#allocation13 + $0x2ac] sm:$0xf0]  ;;  %v10944_v30 = vld [vmem:[#allocation13 + $0x2a4] sm:$0xf] }
 0x449   : > { %5222 = vmatpush.bf16.msrb.mxu2 %v15035_v11  ;;  %5235 = vmatpush.bf16.msrb.mxu3 %v15036_v10  ;;  %v9430_v11 = vld [vmem:[#allocation13 + $0x2b0] sm:$0xf0]  ;;  %v9429_v10 = vor.u32 %v10946_v51, %v9428_v7  ;;  %v9524_v7 = vld [vmem:[#allocation13 + $0x360] sm:$0xf]  ;;  %v10970_v51 = vld [vmem:[#allocation13 + $0x36c] sm:$0xf0] }
 0x44c   : > { %5197 = vmatpush.bf16.msrb.mxu0 %v15037_v62  ;;  %5210 = vmatpush.bf16.msrb.mxu1 %v15038_v63  ;;  %v9572_v62 = vld [vmem:[#allocation13 + $0x3c0] sm:$0xf]  ;;  %v10982_v63 = vld [vmem:[#allocation13 + $0x3cc] sm:$0xf0] }
 0x44d   : > { %5223 = vmatpush.bf16.msrb.mxu2 %v13501_v35  ;;  %5236 = vmatpush.bf16.msrb.mxu3 %v13503_v12  ;;  %v9573_v0 = vor.u32 %v10982_v63, %v9572_v62  ;;  %v9364_v62 = vld [vmem:[#allocation13 + $0x220] sm:$0xf]  ;;  %v10930_v63 = vld [vmem:[#allocation13 + $0x22c] sm:$0xf0] }
 0x450   : > { %5198 = vmatpush.bf16.msrb.mxu0 %v13507_v1  ;;  %5211 = vmatpush.bf16.msrb.mxu1 %v13509_v31 }
 0x451   : > { %5224 = vmatpush.bf16.msrb.mxu2 %v13513_v6  ;;  %5237 = vmatpush.bf16.msrb.mxu3 %v13515_v20 }
 0x454   : > { %5199 = vmatpush.bf16.msrb.mxu0 %v13519_v16  ;;  %5212 = vmatpush.bf16.msrb.mxu1 %v13521_v57  ;;  %v4979_v35 = vpop.f32.mrf.mxu0  ;;  %v4992_v12 = vpop.f32.mrf.mxu1 }
 0x455   : > { %5225 = vmatpush.bf16.msrb.mxu2 %v13525_v24  ;;  %5238 = vmatpush.bf16.msrb.mxu3 %v13527_v26  ;;  %v4993_v1 = vadd.f32 %v4992_v12, %v4979_v35  ;;  %v9574_v35 = vld [vmem:[#allocation13 + $0x3d0] sm:$0xf0] }
 0x456   : > { %v9577_v12 = vor.u32 %v10980_v48, %v9574_v35  ;;  %v10928_v48 = vld [vmem:[#allocation13 + $0x224] sm:$0xf]  ;;  %v9366_v35 = vld [vmem:[#allocation13 + $0x230] sm:$0xf0] }
 0x457   : > { %5200 = vmatmul.bf16.vlgmr.msrb.gmra.mxu0 %v5136_v17  ;;  %5213 = vmatmul.bf16.vlgmr.msrb.gmra.mxu1 %v5137_v21  ;;  %v13968_v31 = vadd.f32 %v4993_v1, %v13906_v36  ;;  %v9412_v1 = vld [vmem:[#allocation13 + $0x280] sm:$0xf] }
 0x458   : > { %5226 = vmatmul.bf16.vlgmr.msrb.gmra.mxu2 %v5136_v17  ;;  %5239 = vmatmul.bf16.vlgmr.msrb.gmra.mxu3 %v5137_v21 }
 0x459   : > { %5725 = vmatpush.bf16.msra.mxu0 %v9461_v47  ;;  %5764 = vmatpush.bf16.msra.mxu3 %v9593_v56 }
 0x45c   : > { %v4981_v16 = vpop.f32.mrf.mxu0  ;;  %v4994_v19 = vpop.f32.mrf.mxu1 }
 0x45d   : > { %v5005_v6 = vpop.f32.mrf.mxu2  ;;  %v5018_v20 = vpop.f32.mrf.mxu3  ;;  %5726 = vmatpush.bf16.msra.mxu0 %v9445_v60  ;;  %v9414_v16 = vld [vmem:[#allocation13 + $0x290] sm:$0xf0]  ;;  %5765 = vmatpush.bf16.msra.mxu3 %v9577_v12  ;;  %v9369_v12 = vor.u32 %v10928_v48, %v9366_v35  ;;  %v10985_v48 = vld [vmem:[#allocation13 + $0x3ec] sm:$0xf] }
 0x45e   : > { %v5019_v54 = vadd.f32 %v5018_v20, %v5005_v6  ;;  %v10942_v6 = vld [vmem:[#allocation13 + $0x28c] sm:$0xf0]  ;;  %v10940_v20 = vld [vmem:[#allocation13 + $0x284] sm:$0xf] }
 0x460   : > { %v13971_v57 = vadd.f32 %v5019_v54, %v13917_v32  ;;  %v9462_v32 = vld [vmem:[#allocation13 + $0x2f0] sm:$0xf0]  ;;  %v9413_v54 = vor.u32 %v10942_v6, %v9412_v1  ;;  %v9508_v1 = vld [vmem:[#allocation13 + $0x340] sm:$0xf]  ;;  %v10966_v6 = vld [vmem:[#allocation13 + $0x34c] sm:$0xf0] }
 0x461   : > { %v9465_v44 = vor.u32 %v10952_v18, %v9462_v32  ;;  %5727 = vmatpush.bf16.msra.mxu0 %v9429_v10  ;;  %v9398_v18 = vld [vmem:[#allocation13 + $0x270] sm:$0xf0]  ;;  %v9540_v32 = vld [vmem:[#allocation13 + $0x380] sm:$0xf] }
 0x462   : > { %v9401_v47 = vor.u32 %v10936_v53, %v9398_v18  ;;  %v9526_v10 = vld [vmem:[#allocation13 + $0x370] sm:$0xf0]  ;;  %v10955_v53 = vld [vmem:[#allocation13 + $0x2f4] sm:$0xf0] }
 0x463   : > { %5751 = vmatpush.bf16.msra.mxu2 %v9465_v44 }
 0x465   : > { %v5007_v24 = vpop.f32.mrf.mxu2  ;;  %v5020_v26 = vpop.f32.mrf.mxu3  ;;  %5728 = vmatpush.bf16.msra.mxu0 %v9413_v54  ;;  %v9509_v54 = vor.u32 %v10966_v6, %v9508_v1  ;;  %v9436_v1 = vld [vmem:[#allocation13 + $0x2a8] sm:$0xf]  ;;  %v10947_v6 = vld [vmem:[#allocation13 + $0x2b4] sm:$0xf0] }
 0x466   : > { %v9417_v26 = vor.u32 %v10940_v20, %v9414_v16  ;;  %v10964_v20 = vld [vmem:[#allocation13 + $0x344] sm:$0xf]  ;;  %v9510_v16 = vld [vmem:[#allocation13 + $0x350] sm:$0xf0] }
 0x467   : > { %5752 = vmatpush.bf16.msra.mxu2 %v9449_v33 }
 0x474   : > { %v5035_v23 = vpop.f32.mrf.mxu0  ;;  %v5048_v25 = vpop.f32.mrf.mxu1 }
 0x475   : > { %v5049_v9 = vadd.f32 %v5048_v25, %v5035_v23  ;;  %v9556_v23 = vld [vmem:[#allocation13 + $0x3a0] sm:$0xf]  ;;  %v10978_v25 = vld [vmem:[#allocation13 + $0x3ac] sm:$0xf0] }
 0x477   : > { %v13973_v55 = vadd.f32 %v5049_v9, %v5022_v46  ;;  %v9588_v46 = vld [vmem:[#allocation13 + $0x3e0] sm:$0xf]  ;;  %v10976_v9 = vld [vmem:[#allocation13 + $0x3a4] sm:$0xf] }
 0x478   : > { %v9589_v50 = vor.u32 %v10986_v37, %v9588_v46  ;;  %v10932_v46 = vld [vmem:[#allocation13 + $0x244] sm:$0xf] }
 0x479   : > { %v9385_v56 = vor.u32 %v10932_v46, %v9382_v61  ;;  %v9452_v46 = vld [vmem:[#allocation13 + $0x2c8] sm:$0xf]  ;;  %v10949_v61 = vld [vmem:[#allocation13 + $0x2cc] sm:$0xf] }
 0x47a   : > { %5738 = vmatpush.bf16.msra.mxu1 %v9589_v50 }
 0x47c   : > { %v5037_v36 = vpop.f32.mrf.mxu0  ;;  %v5050_v58 = vpop.f32.mrf.mxu1 }
 0x47d   : > { %v5061_v39 = vpop.f32.mrf.mxu2  ;;  %v5074_v17 = vpop.f32.mrf.mxu3  ;;  %v9396_v36 = vld [vmem:[#allocation13 + $0x260] sm:$0xf]  ;;  %v10938_v58 = vld [vmem:[#allocation13 + $0x26c] sm:$0xf0] }
 0x47e   : > { %v5075_v21 = vadd.f32 %v5074_v17, %v5061_v39  ;;  %5739 = vmatpush.bf16.msra.mxu1 %v9573_v0  ;;  %v9557_v39 = vor.u32 %v10978_v25, %v9556_v23  ;;  %v9558_v17 = vld [vmem:[#allocation13 + $0x3b0] sm:$0xf0]  ;;  %v9397_v27 = vor.u32 %v10938_v58, %v9396_v36  ;;  %v9365_v0 = vor.u32 %v10930_v63, %v9364_v62  ;;  %v9348_v23 = vld [vmem:[#allocation13 + $0x200] sm:$0xf]  ;;  %v10926_v25 = vld [vmem:[#allocation13 + $0x20c] sm:$0xf0] }
 0x47f   : > { %v9350_v36 = vld [vmem:[#allocation13 + $0x210] sm:$0xf0]  ;;  %v9468_v58 = vld [vmem:[#allocation13 + $0x2e8] sm:$0xf]  ;;  %v10987_v63 = vld [vmem:[#allocation13 + $0x3f4] sm:$0xf0] }
 0x480   : > { %v13975_v42 = vadd.f32 %v5075_v21, %v5023_v45  ;;  %v9433_v45 = vor.u32 %v10944_v30, %v9430_v11  ;;  %v9561_v21 = vor.u32 %v10976_v9, %v9558_v17  ;;  %5729 = vmatpush.bf16.msra.mxu0 %v9397_v27  ;;  %v10968_v30 = vld [vmem:[#allocation13 + $0x364] sm:$0xf]  ;;  %v9525_v11 = vor.u32 %v10970_v51, %v9524_v7  ;;  %v10958_v7 = vld [vmem:[#allocation13 + $0x30c] sm:$0xf0] }
 0x481   : > { %v10924_v9 = vld [vmem:[#allocation13 + $0x204] sm:$0xf]  ;;  %v9469_v18 = vor.u32 %v10955_v53, %v9468_v58  ;;  %v10943_v58 = vld [vmem:[#allocation13 + $0x294] sm:$0xf0]  ;;  %v10941_v53 = vld [vmem:[#allocation13 + $0x28c] sm:$0xf] }
 0x482   : > { %5753 = vmatpush.bf16.msra.mxu2 %v9433_v45  ;;  %5740 = vmatpush.bf16.msra.mxu1 %v9557_v39  ;;  %v9529_v45 = vor.u32 %v10968_v30, %v9526_v10  ;;  %v9353_v27 = vor.u32 %v10924_v9, %v9350_v36  ;;  %v9478_v10 = vld [vmem:[#allocation13 + $0x310] sm:$0xf0]  ;;  %v10981_v9 = vld [vmem:[#allocation13 + $0x3cc] sm:$0xf]  ;;  %v9420_v36 = vld [vmem:[#allocation13 + $0x288] sm:$0xf] }
 0x483   : > { %5766 = vmatpush.bf16.msra.mxu3 %v9561_v21  ;;  %v9349_v21 = vor.u32 %v10926_v25, %v9348_v23  ;;  %v9580_v23 = vld [vmem:[#allocation13 + $0x3c8] sm:$0xf]  ;;  %v10983_v25 = vld [vmem:[#allocation13 + $0x3d4] sm:$0xf0] }
 0x484   : > { %5730 = vmatpush.bf16.msra.mxu0 %v9381_v38  ;;  %v10951_v38 = vld [vmem:[#allocation13 + $0x2d4] sm:$0xf0] }
 0x485   : > { %v5063_v59 = vpop.f32.mrf.mxu2  ;;  %v5076_v34 = vpop.f32.mrf.mxu3 }
 0x486   : > { %5754 = vmatpush.bf16.msra.mxu2 %v9417_v26  ;;  %v9541_v59 = vor.u32 %v10974_v13, %v9540_v32  ;;  %v9542_v34 = vld [vmem:[#allocation13 + $0x390] sm:$0xf0]  ;;  %v9513_v26 = vor.u32 %v10964_v20, %v9510_v16  ;;  %v9470_v32 = vld [vmem:[#allocation13 + $0x2f8] sm:$0xf0]  ;;  %v9492_v13 = vld [vmem:[#allocation13 + $0x320] sm:$0xf] }
 0x487   : > { %v9545_v44 = vor.u32 %v10972_v41, %v9542_v34  ;;  %v10960_v34 = vld [vmem:[#allocation13 + $0x324] sm:$0xf]  ;;  %v10945_v20 = vld [vmem:[#allocation13 + $0x2ac] sm:$0xf]  ;;  %v9438_v16 = vld [vmem:[#allocation13 + $0x2b8] sm:$0xf0] }
 0x488   : > { %5741 = vmatpush.bf16.msra.mxu1 %v9541_v59  ;;  %5731 = vmatpush.bf16.msra.mxu0 %v9365_v0  ;;  %v10962_v59 = vld [vmem:[#allocation13 + $0x32c] sm:$0xf0]  ;;  %v9598_v0 = vld [vmem:[#allocation13 + $0x3f8] sm:$0xf0] }
 0x489   : > { %5767 = vmatpush.bf16.msra.mxu3 %v9545_v44  ;;  %v9494_v44 = vld [vmem:[#allocation13 + $0x330] sm:$0xf0]  ;;  %v9493_v29 = vor.u32 %v10962_v59, %v9492_v13  ;;  %v10979_v13 = vld [vmem:[#allocation13 + $0x3b4] sm:$0xf0] }
 0x48a   : > { %5755 = vmatpush.bf16.msra.mxu2 %v9401_v47  ;;  %v10953_v47 = vld [vmem:[#allocation13 + $0x2ec] sm:$0xf]  ;;  %v9497_v5 = vor.u32 %v10960_v34, %v9494_v44 }
 0x48b   : > { %v9473_v41 = vor.u32 %v10953_v47, %v9470_v32  ;;  %v9564_v32 = vld [vmem:[#allocation13 + $0x3a8] sm:$0xf] }
 0x48c   : > { %5742 = vmatpush.bf16.msra.mxu1 %v9525_v11  ;;  %5732 = vmatpush.bf16.msra.mxu0 %v9349_v21  ;;  %v10956_v11 = vld [vmem:[#allocation13 + $0x304] sm:$0xf]  ;;  %v9565_v44 = vor.u32 %v10979_v13, %v9564_v32  ;;  %v10965_v32 = vld [vmem:[#allocation13 + $0x34c] sm:$0xf] }
 0x48d   : > { %5768 = vmatpush.bf16.msra.mxu3 %v9529_v45  ;;  %v9596_v45 = vld [vmem:[#allocation13 + $0x3e8] sm:$0xf]  ;;  %v9481_v62 = vor.u32 %v10956_v11, %v9478_v10  ;;  %v9550_v10 = vld [vmem:[#allocation13 + $0x398] sm:$0xf0] }
 0x48e   : > { %5756 = vmatpush.bf16.msra.mxu2 %v9385_v56  ;;  %v9476_v56 = vld [vmem:[#allocation13 + $0x300] sm:$0xf]  ;;  %v9597_v35 = vor.u32 %v10987_v63, %v9596_v45  ;;  %v10935_v63 = vld [vmem:[#allocation13 + $0x254] sm:$0xf0] }
 0x48f   : > { %v9477_v30 = vor.u32 %v10958_v7, %v9476_v56  ;;  %v9548_v7 = vld [vmem:[#allocation13 + $0x388] sm:$0xf] }
 0x490   : > { %5743 = vmatpush.bf16.msra.mxu1 %v9509_v54  ;;  %5777 = vmatpush.bf16.msrb.mxu0 %v9469_v18  ;;  %v9437_v54 = vor.u32 %v10947_v6, %v9436_v1  ;;  %v9422_v18 = vld [vmem:[#allocation13 + $0x298] sm:$0xf0] }
 0x491   : > { %5769 = vmatpush.bf16.msra.mxu3 %v9513_v26  ;;  %v9441_v26 = vor.u32 %v10945_v20, %v9438_v16  ;;  %v9425_v47 = vor.u32 %v10941_v53, %v9422_v18  ;;  %v9532_v20 = vld [vmem:[#allocation13 + $0x368] sm:$0xf]  ;;  %v10969_v16 = vld [vmem:[#allocation13 + $0x36c] sm:$0xf]  ;;  %v9374_v53 = vld [vmem:[#allocation13 + $0x238] sm:$0xf0] }
 0x492   : > { %5757 = vmatpush.bf16.msra.mxu2 %v9369_v12  ;;  %v9601_v12 = vor.u32 %v10985_v48, %v9598_v0  ;;  %v10933_v48 = vld [vmem:[#allocation13 + $0x24c] sm:$0xf]  ;;  %v9516_v18 = vld [vmem:[#allocation13 + $0x348] sm:$0xf] }
 0x494   : > { %v13977_v19 = vpop.f32.mrf.mxu0  ;;  %v13979_v24 = vpop.f32.mrf.mxu1  ;;  %5744 = vmatpush.bf16.msra.mxu1 %v9493_v29  ;;  %v9566_v29 = vld [vmem:[#allocation13 + $0x3b8] sm:$0xf0] }
 0x495   : > { %5770 = vmatpush.bf16.msra.mxu3 %v9497_v5 }
 0x496   : > { %5758 = vmatpush.bf16.msra.mxu2 %v9353_v27  ;;  %v9421_v27 = vor.u32 %v10943_v58, %v9420_v36  ;;  %v10929_v58 = vld [vmem:[#allocation13 + $0x22c] sm:$0xf] }
 0x498   : > { %5745 = vmatpush.bf16.msra.mxu1 %v9477_v30  ;;  %v10973_v30 = vld [vmem:[#allocation13 + $0x38c] sm:$0xf] }
 0x499   : > { %5771 = vmatpush.bf16.msra.mxu3 %v9481_v62  ;;  %v9553_v45 = vor.u32 %v10973_v30, %v9550_v10  ;;  %v9388_v62 = vld [vmem:[#allocation13 + $0x248] sm:$0xf]  ;;  %v10961_v30 = vld [vmem:[#allocation13 + $0x32c] sm:$0xf]  ;;  %v9502_v10 = vld [vmem:[#allocation13 + $0x338] sm:$0xf0] }
 0x49a   : > { %5803 = vmatpush.bf16.msrb.mxu2 %v9473_v41  ;;  %v10977_v41 = vld [vmem:[#allocation13 + $0x3ac] sm:$0xf]  ;;  %v9389_v0 = vor.u32 %v10935_v63, %v9388_v62  ;;  %v9484_v62 = vld [vmem:[#allocation13 + $0x308] sm:$0xf]  ;;  %v10959_v63 = vld [vmem:[#allocation13 + $0x314] sm:$0xf0] }
 0x49b   : > { %v9569_v5 = vor.u32 %v10977_v41, %v9566_v29  ;;  %v9518_v41 = vld [vmem:[#allocation13 + $0x358] sm:$0xf0]  ;;  %v9356_v29 = vld [vmem:[#allocation13 + $0x208] sm:$0xf] }
 0x49c   : > { %v5089_v33 = vpop.f32.mrf.mxu0  ;;  %v5102_v50 = vpop.f32.mrf.mxu1  ;;  %5790 = vmatpush.bf16.msrb.mxu1 %v9597_v35  ;;  %v9390_v35 = vld [vmem:[#allocation13 + $0x258] sm:$0xf0] }
 0x49d   : > { %v13981_v60 = vpop.f32.mrf.mxu2  ;;  %v13983_v37 = vpop.f32.mrf.mxu3  ;;  %v9453_v33 = vor.u32 %v10951_v38, %v9452_v46  ;;  %v9454_v50 = vld [vmem:[#allocation13 + $0x2d8] sm:$0xf0]  ;;  %5816 = vmatpush.bf16.msrb.mxu3 %v9601_v12  ;;  %v9404_v46 = vld [vmem:[#allocation13 + $0x268] sm:$0xf]  ;;  %v10939_v38 = vld [vmem:[#allocation13 + $0x274] sm:$0xf0]  ;;  %v9393_v6 = vor.u32 %v10933_v48, %v9390_v35  ;;  %v9485_v48 = vor.u32 %v10959_v63, %v9484_v62 }
 0x49e   : > { %v9457_v51 = vor.u32 %v10949_v61, %v9454_v50  ;;  %v10937_v61 = vld [vmem:[#allocation13 + $0x26c] sm:$0xf]  ;;  %v9406_v50 = vld [vmem:[#allocation13 + $0x278] sm:$0xf0]  ;;  %v9686_v62 = vld [vmem:[#allocation13 + $0xb0] sm:$0xf0] }
 0x49f   : > { %5778 = vmatpush.bf16.msrb.mxu0 %v9453_v33  ;;  %v9405_v33 = vor.u32 %v10939_v38, %v9404_v46  ;;  %v9409_v56 = vor.u32 %v10937_v61, %v9406_v50  ;;  %v10925_v46 = vld [vmem:[#allocation13 + $0x20c] sm:$0xf]  ;;  %v9358_v61 = vld [vmem:[#allocation13 + $0x218] sm:$0xf0] }
 0x4a0   : > { %5804 = vmatpush.bf16.msrb.mxu2 %v9457_v51  ;;  %v10975_v51 = vld [vmem:[#allocation13 + $0x394] sm:$0xf0]  ;;  %v9486_v35 = vld [vmem:[#allocation13 + $0x318] sm:$0xf0] }
 0x4a1   : > { %v9549_v11 = vor.u32 %v10975_v51, %v9548_v7  ;;  %v9500_v7 = vld [vmem:[#allocation13 + $0x328] sm:$0xf]  ;;  %v10963_v51 = vld [vmem:[#allocation13 + $0x334] sm:$0xf0] }
 0x4a3   : > { %5779 = vmatpush.bf16.msrb.mxu0 %v9437_v54  ;;  %v10971_v54 = vld [vmem:[#allocation13 + $0x374] sm:$0xf0] }
 0x4a4   : > { %5805 = vmatpush.bf16.msrb.mxu2 %v9441_v26 }
 0x4a5   : > { %v5115_v39 = vpop.f32.mrf.mxu2  ;;  %v5128_v17 = vpop.f32.mrf.mxu3 }
 0x4a6   : > { %v9581_v39 = vor.u32 %v10983_v25, %v9580_v23  ;;  %v9582_v17 = vld [vmem:[#allocation13 + $0x3d8] sm:$0xf0]  ;;  %v9533_v25 = vor.u32 %v10971_v54, %v9532_v20  ;;  %v5101_v54 = vadd.f32 %v13979_v24, %v13977_v19 }
 0x4a7   : > { %v9585_v21 = vor.u32 %v10981_v9, %v9582_v17  ;;  %5780 = vmatpush.bf16.msrb.mxu0 %v9421_v27  ;;  %v9534_v9 = vld [vmem:[#allocation13 + $0x378] sm:$0xf0]  ;;  %v9372_v17 = vld [vmem:[#allocation13 + $0x228] sm:$0xf]  ;;  %v9377_v27 = vor.u32 %v10929_v58, %v9374_v53 }
 0x4a8   : > { %5791 = vmatpush.bf16.msrb.mxu1 %v9581_v39  ;;  %5806 = vmatpush.bf16.msrb.mxu2 %v9425_v47  ;;  %v9537_v39 = vor.u32 %v10969_v16, %v9534_v9  ;;  %v10967_v47 = vld [vmem:[#allocation13 + $0x354] sm:$0xf0]  ;;  %v5132_v9 = vadd.f32 %v5101_v54, %v13968_v31 }
 0x4a9   : > { %5817 = vmatpush.bf16.msrb.mxu3 %v9585_v21  ;;  %v10931_v21 = vld [vmem:[#allocation13 + $0x234] sm:$0xf0]  ;;  %v9517_v13 = vor.u32 %v10967_v47, %v9516_v18  ;;  %v10888_v47 = vld [vmem:[#allocation13 + $0xe4] sm:$0xf] }
 0x4aa   : > { %v9373_v36 = vor.u32 %v10931_v21, %v9372_v17 }
 0x4ab   : > { %5781 = vmatpush.bf16.msrb.mxu0 %v9405_v33 }
 0x4ac   : > { %5792 = vmatpush.bf16.msrb.mxu1 %v9565_v44  ;;  %5807 = vmatpush.bf16.msrb.mxu2 %v9409_v56  ;;  %v9521_v44 = vor.u32 %v10965_v32, %v9518_v41  ;;  %v9361_v56 = vor.u32 %v10925_v46, %v9358_v61  ;;  %v9718_v32 = vld [vmem:[#allocation13 + $0xf0] sm:$0xf0] }
 0x4ad   : > { %5818 = vmatpush.bf16.msrb.mxu3 %v9569_v5  ;;  %v10927_v5 = vld [vmem:[#allocation13 + $0x214] sm:$0xf0]  ;;  %v9702_v61 = vld [vmem:[#allocation13 + $0xd0] sm:$0xf0] }
 0x4ae   : > { %v9357_v38 = vor.u32 %v10927_v5, %v9356_v29 }
 0x4af   : > { %5782 = vmatpush.bf16.msrb.mxu0 %v9389_v0  ;;  %v10957_v0 = vld [vmem:[#allocation13 + $0x30c] sm:$0xf] }
 0x4b0   : > { %5793 = vmatpush.bf16.msrb.mxu1 %v9549_v11  ;;  %5808 = vmatpush.bf16.msrb.mxu2 %v9393_v6  ;;  %v9501_v11 = vor.u32 %v10963_v51, %v9500_v7  ;;  %v9489_v6 = vor.u32 %v10957_v0, %v9486_v35  ;;  %v10920_v51 = vld [vmem:[#allocation13 + $0x1e4] sm:$0xf]  ;;  %v9828_v35 = vld [vmem:[#allocation13 + $0x1c0] sm:$0xf] }
 0x4b1   : > { %5819 = vmatpush.bf16.msrb.mxu3 %v9553_v45  ;;  %v9505_v45 = vor.u32 %v10961_v30, %v9502_v10  ;;  %v9846_v30 = vld [vmem:[#allocation13 + $0x1f0] sm:$0xf0]  ;;  %v10882_v10 = vld [vmem:[#allocation13 + $0xac] sm:$0xf0] }
 0x4b2   : > { %v9849_v0 = vor.u32 %v10920_v51, %v9846_v30 }
 0x4b3   : > { %5783 = vmatpush.bf16.msrb.mxu0 %v9373_v36 }
 0x4b4   : > { %v13985_v59 = vpop.f32.mrf.mxu0  ;;  %v13987_v34 = vpop.f32.mrf.mxu1  ;;  %5794 = vmatpush.bf16.msrb.mxu1 %v9533_v25  ;;  %5809 = vmatpush.bf16.msrb.mxu2 %v9377_v27  ;;  %v9716_v27 = vld [vmem:[#allocation13 + $0xe0] sm:$0xf] }
 0x4b5   : > { %5820 = vmatpush.bf16.msrb.mxu3 %v9537_v39  ;;  %v5163_v20 = vadd.f32 %v13987_v34, %v13985_v59  ;;  %v5127_v59 = vadd.f32 %v13983_v37, %v13981_v60 }
 0x4b7   : > { %5784 = vmatpush.bf16.msrb.mxu0 %v9357_v38  ;;  %v5244_v16 = vadd.f32 %v5163_v20, %v13973_v55  ;;  %v9700_v38 = vld [vmem:[#allocation13 + $0xc0] sm:$0xf]  ;;  %v10916_v20 = vld [vmem:[#allocation13 + $0x1c4] sm:$0xf] }
 0x4b8   : > { %5795 = vmatpush.bf16.msrb.mxu1 %v9517_v13  ;;  %5810 = vmatpush.bf16.msrb.mxu2 %v9361_v56  ;;  %v9701_v56 = vor.u32 %v10886_v28, %v9700_v38  ;;  %v9620_v38 = vld [vmem:[#allocation13 + $0x20] sm:$0xf]  ;;  %v10866_v28 = vld [vmem:[#allocation13 + $0x2c] sm:$0xf0] }
 0x4b9   : > { %5821 = vmatpush.bf16.msrb.mxu3 %v9521_v44  ;;  %v5248_v39 = vmul.f32 %v5244_v16, %v4681_v15  ;;  %v5133_v15 = vadd.f32 %v5127_v59, %v13971_v57  ;;  %v10890_v57 = vld [vmem:[#allocation13 + $0xec] sm:$0xf0]  ;;  %v9812_v59 = vld [vmem:[#allocation13 + $0x1a0] sm:$0xf]  ;;  %v9621_v51 = vor.u32 %v10866_v28, %v9620_v38  ;;  %v9676_v38 = vld [vmem:[#allocation13 + $0x88] sm:$0xf] }
 0x4ba   : > { %v9717_v46 = vor.u32 %v10890_v57, %v9716_v27  ;;  %v9636_v27 = vld [vmem:[#allocation13 + $0x40] sm:$0xf]  ;;  %v10868_v57 = vld [vmem:[#allocation13 + $0x44] sm:$0xf]  ;;  %v10879_v28 = vld [vmem:[#allocation13 + $0x94] sm:$0xf0] }
 0x4bb   : > { %v5252_v19 = vadd.f32 %v5248_v39, %v4694_v14  ;;  %v9670_v39 = vld [vmem:[#allocation13 + $0x90] sm:$0xf0] }
 0x4bc   : > { %v5151_v26 = vpop.f32.mrf.mxu0  ;;  %v5164_v23 = vpop.f32.mrf.mxu1  ;;  %5796 = vmatpush.bf16.msrb.mxu1 %v9501_v11  ;;  %v9684_v11 = vld [vmem:[#allocation13 + $0xa0] sm:$0xf] }
 0x4bd   : > { %v5175_v12 = vpop.f32.mrf.mxu2  ;;  %v5188_v1 = vpop.f32.mrf.mxu3  ;;  %5822 = vmatpush.bf16.msrb.mxu3 %v9505_v45  ;;  %v10880_v45 = vld [vmem:[#allocation13 + $0xa4] sm:$0xf]  ;;  %v9685_v54 = vor.u32 %v10882_v10, %v9684_v11  ;;  %v9604_v11 = vld [vmem:[#allocation13] sm:$0xf]  ;;  %v10862_v10 = vld [vmem:[#allocation13 + $0xc] sm:$0xf0] }
 0x4be   : > { %v5189_v26 = vadd.f32 %v5188_v1, %v5175_v12  ;;  %v9689_v16 = vor.u32 %v10880_v45, %v9686_v62  ;;  %v10860_v45 = vld [vmem:[#allocation13 + $0x4] sm:$0xf]  ;;  %v9606_v62 = vld [vmem:[#allocation13 + $0x10] sm:$0xf0] }
 0x4c0   : > { %5797 = vmatpush.bf16.msrb.mxu1 %v9485_v48  ;;  %v5245_v34 = vadd.f32 %v5189_v26, %v13975_v42  ;;  %v5256_v42 = vmax.f32 %v5252_v19, 0.0  ;;  %v9830_v26 = vld [vmem:[#allocation13 + $0x1d0] sm:$0xf0] }
 0x4c1   : > { %5823 = vmatpush.bf16.msrb.mxu3 %v9489_v6  ;;  %v10918_v6 = vld [vmem:[#allocation13 + $0x1cc] sm:$0xf0] }
 0x4c2   : > { %v5249_v1 = vmul.f32 %v5245_v34, %v4682_v40 }
 0x4c5   : > { %v5177_v33 = vpop.f32.mrf.mxu2  ;;  %v5190_v50 = vpop.f32.mrf.mxu3 }
 0x4d4   : > { %v5201_v23 = vpop.f32.mrf.mxu0  ;;  %v5214_v25 = vpop.f32.mrf.mxu1 }
 0x4d5   : > { %v5215_v17 = vadd.f32 %v5214_v25, %v5201_v23  ;;  %v9668_v23 = vld [vmem:[#allocation13 + $0x80] sm:$0xf]  ;;  %v10878_v25 = vld [vmem:[#allocation13 + $0x8c] sm:$0xf0] }
 0x4d6   : > { %v9669_v34 = vor.u32 %v10878_v25, %v9668_v23  ;;  %v10896_v23 = vld [vmem:[#allocation13 + $0x124] sm:$0xf]  ;;  %v9750_v25 = vld [vmem:[#allocation13 + $0x130] sm:$0xf0] }
 0x4d7   : > { %v5246_v21 = vadd.f32 %v5215_v17, %v5132_v9  ;;  %v10876_v9 = vld [vmem:[#allocation13 + $0x84] sm:$0xf]  ;;  %v9829_v17 = vor.u32 %v10918_v6, %v9828_v35 }
 0x4d8   : > { %v9673_v19 = vor.u32 %v10876_v9, %v9670_v39  ;;  %v9605_v9 = vor.u32 %v10862_v10, %v9604_v11  ;;  %v9609_v39 = vor.u32 %v10860_v45, %v9606_v62  ;;  %v9660_v11 = vld [vmem:[#allocation13 + $0x68] sm:$0xf]  ;;  %v10875_v10 = vld [vmem:[#allocation13 + $0x74] sm:$0xf0]  ;;  %v10873_v45 = vld [vmem:[#allocation13 + $0x6c] sm:$0xf] }
 0x4d9   : > { %v5250_v55 = vmul.f32 %v5246_v21, %v4683_v4  ;;  %v5253_v4 = vadd.f32 %v5249_v1, %v4695_v8  ;;  %v9721_v8 = vor.u32 %v10888_v47, %v9718_v32  ;;  %v9833_v21 = vor.u32 %v10916_v20, %v9830_v26  ;;  %v10872_v1 = vld [vmem:[#allocation13 + $0x64] sm:$0xf]  ;;  %v9638_v47 = vld [vmem:[#allocation13 + $0x50] sm:$0xf0]  ;;  %v10889_v20 = vld [vmem:[#allocation13 + $0xec] sm:$0xf] }
 0x4da   : > { %v10898_v26 = vld [vmem:[#allocation13 + $0x12c] sm:$0xf0]  ;;  %v9662_v62 = vld [vmem:[#allocation13 + $0x78] sm:$0xf0] }
 0x4db   : > { %v5254_v24 = vadd.f32 %v5250_v55, %v4696_v2  ;;  %v5227_v31 = vpop.f32.mrf.mxu2  ;;  %v5240_v12 = vpop.f32.mrf.mxu3  ;;  %v5257_v29 = vmax.f32 %v5253_v4, 0.0  ;;  %v10914_v55 = vld [vmem:[#allocation13 + $0x1ac] sm:$0xf0] }
 0x4dc   : > { %v5241_v36 = vadd.f32 %v5240_v12, %v5227_v31  ;;  %v5203_v60 = vpop.f32.mrf.mxu0  ;;  %v5216_v37 = vpop.f32.mrf.mxu1  ;;  %v9814_v31 = vld [vmem:[#allocation13 + $0x1b0] sm:$0xf0]  ;;  %v9652_v12 = vld [vmem:[#allocation13 + $0x60] sm:$0xf] }
 0x4dd   : > { %v5258_v58 = vmax.f32 %v5254_v24, 0.0  ;;  %v10912_v24 = vld [vmem:[#allocation13 + $0x1a4] sm:$0xf]  ;;  %v9813_v60 = vor.u32 %v10914_v55, %v9812_v59  ;;  %v9708_v59 = vld [vmem:[#allocation13 + $0xc8] sm:$0xf] }
 0x4de   : > { %v5247_v53 = vadd.f32 %v5241_v36, %v5133_v15  ;;  %v10874_v15 = vld [vmem:[#allocation13 + $0x6c] sm:$0xf0]  ;;  %v9654_v36 = vld [vmem:[#allocation13 + $0x70] sm:$0xf0]  ;;  %v9817_v37 = vor.u32 %v10912_v24, %v9814_v31  ;;  %v9753_v24 = vor.u32 %v10896_v23, %v9750_v25  ;;  %v9710_v31 = vld [vmem:[#allocation13 + $0xd8] sm:$0xf0] }
 0x4df   : > { %v5262_v14 = vmax.f32 %v5256_v42, %v5258_v58  ;;  %v9796_v42 = vld [vmem:[#allocation13 + $0x180] sm:$0xf]  ;;  %v10910_v58 = vld [vmem:[#allocation13 + $0x18c] sm:$0xf0]  ;;  %v9653_v4 = vor.u32 %v10874_v15, %v9652_v12  ;;  %v9644_v23 = vld [vmem:[#allocation13 + $0x48] sm:$0xf] }
 0x4e0   : > { %v5251_v2 = vmul.f32 %v5247_v53, %v4684_v49  ;;  %v10908_v53 = vld [vmem:[#allocation13 + $0x184] sm:$0xf]  ;;  %v9797_v32 = vor.u32 %v10910_v58, %v9796_v42  ;;  %v9732_v12 = vld [vmem:[#allocation13 + $0x100] sm:$0xf]  ;;  %v10894_v15 = vld [vmem:[#allocation13 + $0x10c] sm:$0xf0] }
 0x4e1   : > { %v5264_v18 = vmax.f32 %v13745_v3, %v5262_v14  ;;  %v10884_v3 = vld [vmem:[#allocation13 + $0xc4] sm:$0xf]  ;;  %v9798_v14 = vld [vmem:[#allocation13 + $0x190] sm:$0xf0]  ;;  %v10921_v42 = vld [vmem:[#allocation13 + $0x1ec] sm:$0xf] }
 0x4e2   : > { %v5255_v40 = vadd.f32 %v5251_v2, %v4697_v43  ;;  %v10922_v43 = vld [vmem:[#allocation13 + $0x1ec] sm:$0xf0]  ;;  %v9705_v7 = vor.u32 %v10884_v3, %v9702_v61  ;;  %v9657_v2 = vor.u32 %v10872_v1, %v9654_v36  ;;  %v10864_v3 = vld [vmem:[#allocation13 + $0x24] sm:$0xf]  ;;  %v9622_v61 = vld [vmem:[#allocation13 + $0x30] sm:$0xf0] }
 0x4e3   : > { %v14016_v13 = vpack.c.bf16 %v5264_v18, %v5264_v18  ;;  %v5229_v41 = vpop.f32.mrf.mxu2  ;;  %v5242_v44 = vpop.f32.mrf.mxu3  ;;  %v9845_v48 = vor.u32 %v10922_v43, %v9844_v52  ;;  %v10870_v18 = vld [vmem:[#allocation13 + $0x4c] sm:$0xf0]  ;;  %v9764_v43 = vld [vmem:[#allocation13 + $0x140] sm:$0xf]  ;;  %v9625_v30 = vor.u32 %v10864_v3, %v9622_v61  ;;  %v10892_v1 = vld [vmem:[#allocation13 + $0x104] sm:$0xf] }
 0x4e4   : > { %v5259_v5 = vmax.f32 %v5255_v40, 0.0  ;;  %v9801_v40 = vor.u32 %v10908_v53, %v9798_v14  ;;  %v9780_v41 = vld [vmem:[#allocation13 + $0x160] sm:$0xf]  ;;  %v10906_v44 = vld [vmem:[#allocation13 + $0x16c] sm:$0xf0] }
 0x4e5   : > { %v14019_v49 = vshrl.u32 %v14016_v13, 16  ;;  %v9734_v36 = vld [vmem:[#allocation13 + $0x110] sm:$0xf0]  ;;  %v9854_v58 = vld [vmem:[#allocation13 + $0x1f8] sm:$0xf0] }
 0x4e6   : > { %v5263_v33 = vmax.f32 %v5257_v29, %v5259_v5  ;;  %v10904_v29 = vld [vmem:[#allocation13 + $0x164] sm:$0xf]  ;;  %v9782_v5 = vld [vmem:[#allocation13 + $0x170] sm:$0xf0]  ;;  %v10877_v3 = vld [vmem:[#allocation13 + $0x8c] sm:$0xf] }
 0x4e7   : > { %5733 = vmatmul.bf16.vlgmr.msra.gmra.mxu0 %v14019_v49  ;;  %5759 = vmatmul.bf16.vlgmr.msra.gmra.mxu2 %v14019_v49  ;;  %v9785_v52 = vor.u32 %v10904_v29, %v9782_v5  ;;  %v10917_v29 = vld [vmem:[#allocation13 + $0x1cc] sm:$0xf]  ;;  %v9838_v5 = vld [vmem:[#allocation13 + $0x1d8] sm:$0xf0]  ;;  %v10871_v25 = vld [vmem:[#allocation13 + $0x54] sm:$0xf0] }
 0x4e8   : > { %v5265_v50 = vmax.f32 %v13759_v22, %v5263_v33  ;;  %6149 = vmatpush.bf16.msra.mxu0 %v9717_v46  ;;  %6175 = vmatpush.bf16.msra.mxu2 %v9721_v8  ;;  %v9637_v46 = vor.u32 %v10870_v18, %v9636_v27  ;;  %v9641_v8 = vor.u32 %v10868_v57, %v9638_v47  ;;  %v10883_v18 = vld [vmem:[#allocation13 + $0xb4] sm:$0xf0]  ;;  %v10881_v57 = vld [vmem:[#allocation13 + $0xac] sm:$0xf]  ;;  %v9694_v47 = vld [vmem:[#allocation13 + $0xb8] sm:$0xf0] }
 0x4e9   : > { %v9781_v33 = vor.u32 %v10906_v44, %v9780_v41  ;;  %v9737_v27 = vor.u32 %v10892_v1, %v9734_v36  ;;  %v9836_v41 = vld [vmem:[#allocation13 + $0x1c8] sm:$0xf]  ;;  %v10919_v44 = vld [vmem:[#allocation13 + $0x1d4] sm:$0xf0]  ;;  %v9678_v61 = vld [vmem:[#allocation13 + $0x98] sm:$0xf0] }
 0x4ea   : > { %v14024_v63 = vpack.c.bf16 %v5265_v50, %v5265_v50  ;;  %v10902_v50 = vld [vmem:[#allocation13 + $0x14c] sm:$0xf0]  ;;  %v10865_v1 = vld [vmem:[#allocation13 + $0x2c] sm:$0xf]  ;;  %v9630_v36 = vld [vmem:[#allocation13 + $0x38] sm:$0xf0] }
 0x4eb   : > { %v9765_v35 = vor.u32 %v10902_v50, %v9764_v43  ;;  %v9820_v43 = vld [vmem:[#allocation13 + $0x1a8] sm:$0xf]  ;;  %v10915_v50 = vld [vmem:[#allocation13 + $0x1b4] sm:$0xf0] }
 0x4ec   : > { %6150 = vmatpush.bf16.msra.mxu0 %v9701_v56  ;;  %6176 = vmatpush.bf16.msra.mxu2 %v9705_v7  ;;  %v14027_v22 = vshrl.u32 %v14024_v63, 16  ;;  %v10900_v56 = vld [vmem:[#allocation13 + $0x144] sm:$0xf]  ;;  %v9766_v7 = vld [vmem:[#allocation13 + $0x150] sm:$0xf0] }
 0x4ed   : > { %v9769_v6 = vor.u32 %v10900_v56, %v9766_v7  ;;  %v10913_v56 = vld [vmem:[#allocation13 + $0x1ac] sm:$0xf]  ;;  %v9822_v7 = vld [vmem:[#allocation13 + $0x1b8] sm:$0xf0] }
 0x4ee   : > { %5746 = vmatmul.bf16.vlgmr.msra.gmra.mxu1 %v14027_v22  ;;  %5772 = vmatmul.bf16.vlgmr.msra.gmra.mxu3 %v14027_v22 }
 0x4ef   : > { %6162 = vmatpush.bf16.msra.mxu1 %v9845_v48  ;;  %6188 = vmatpush.bf16.msra.mxu3 %v9849_v0  ;;  %v9724_v48 = vld [vmem:[#allocation13 + $0xe8] sm:$0xf]  ;;  %v10891_v0 = vld [vmem:[#allocation13 + $0xf4] sm:$0xf0] }
 0x4f0   : > { %6151 = vmatpush.bf16.msra.mxu0 %v9685_v54  ;;  %6177 = vmatpush.bf16.msra.mxu2 %v9689_v16  ;;  %v9726_v54 = vld [vmem:[#allocation13 + $0xf8] sm:$0xf0]  ;;  %v9748_v16 = vld [vmem:[#allocation13 + $0x120] sm:$0xf] }
 0x4f1   : > { %v9749_v55 = vor.u32 %v10898_v26, %v9748_v16  ;;  %v9661_v16 = vor.u32 %v10875_v10, %v9660_v11  ;;  %v9665_v26 = vor.u32 %v10873_v45, %v9662_v62  ;;  %v9740_v11 = vld [vmem:[#allocation13 + $0x108] sm:$0xf]  ;;  %v10895_v10 = vld [vmem:[#allocation13 + $0x114] sm:$0xf0]  ;;  %v10893_v45 = vld [vmem:[#allocation13 + $0x10c] sm:$0xf] }
 0x4f2   : > { %v9742_v62 = vld [vmem:[#allocation13 + $0x118] sm:$0xf0] }
 0x4f3   : > { %6163 = vmatpush.bf16.msra.mxu1 %v9829_v17  ;;  %6189 = vmatpush.bf16.msra.mxu3 %v9833_v21  ;;  %v9725_v17 = vor.u32 %v10891_v0, %v9724_v48  ;;  %v9729_v21 = vor.u32 %v10889_v20, %v9726_v54  ;;  %v9821_v48 = vor.u32 %v10915_v50, %v9820_v43  ;;  %v10909_v20 = vld [vmem:[#allocation13 + $0x18c] sm:$0xf]  ;;  %v9806_v54 = vld [vmem:[#allocation13 + $0x198] sm:$0xf0]  ;;  %v9956_v43 = vld [vmem:[#allocation13 + $0x4c0] sm:$0xf] }
 0x4f4   : > { %6152 = vmatpush.bf16.msra.mxu0 %v9669_v34  ;;  %6178 = vmatpush.bf16.msra.mxu2 %v9673_v19  ;;  %v10887_v34 = vld [vmem:[#allocation13 + $0xd4] sm:$0xf0]  ;;  %v10885_v19 = vld [vmem:[#allocation13 + $0xcc] sm:$0xf]  ;;  %v9825_v0 = vor.u32 %v10913_v56, %v9822_v7  ;;  %v11014_v50 = vld [vmem:[#allocation13 + $0x4cc] sm:$0xf0] }
 0x4f5   : > { %v9709_v53 = vor.u32 %v10887_v34, %v9708_v59  ;;  %v9713_v14 = vor.u32 %v10885_v19, %v9710_v31  ;;  %v9788_v59 = vld [vmem:[#allocation13 + $0x168] sm:$0xf]  ;;  %v10907_v34 = vld [vmem:[#allocation13 + $0x174] sm:$0xf0]  ;;  %v10905_v19 = vld [vmem:[#allocation13 + $0x16c] sm:$0xf] }
 0x4f6   : > { %v11012_v56 = vld [vmem:[#allocation13 + $0x4c4] sm:$0xf] }
 0x4f7   : > { %6164 = vmatpush.bf16.msra.mxu1 %v9813_v60  ;;  %6190 = vmatpush.bf16.msra.mxu3 %v9817_v37  ;;  %v9852_v60 = vld [vmem:[#allocation13 + $0x1e8] sm:$0xf]  ;;  %v10923_v37 = vld [vmem:[#allocation13 + $0x1f4] sm:$0xf0] }
 0x4f8   : > { %5785 = vmatmul.bf16.vlgmr.msrb.gmra.mxu0 %v14019_v49  ;;  %5811 = vmatmul.bf16.vlgmr.msrb.gmra.mxu2 %v14019_v49 }
 0x4f9   : > { %6153 = vmatpush.bf16.msra.mxu0 %v9653_v4  ;;  %6179 = vmatpush.bf16.msra.mxu2 %v9657_v2  ;;  %v9692_v4 = vld [vmem:[#allocation13 + $0xa8] sm:$0xf]  ;;  %v9733_v2 = vor.u32 %v10894_v15, %v9732_v12  ;;  %v10867_v15 = vld [vmem:[#allocation13 + $0x34] sm:$0xf0] }
 0x4fa   : > { %v9628_v12 = vld [vmem:[#allocation13 + $0x28] sm:$0xf] }
 0x4fb   : > { %6165 = vmatpush.bf16.msra.mxu1 %v9797_v32  ;;  %6191 = vmatpush.bf16.msra.mxu3 %v9801_v40  ;;  %v9853_v32 = vor.u32 %v10923_v37, %v9852_v60  ;;  %v9857_v40 = vor.u32 %v10921_v42, %v9854_v58  ;;  %v9789_v60 = vor.u32 %v10907_v34, %v9788_v59  ;;  %v9772_v42 = vld [vmem:[#allocation13 + $0x148] sm:$0xf]  ;;  %v10903_v58 = vld [vmem:[#allocation13 + $0x154] sm:$0xf0]  ;;  %v10084_v59 = vld [vmem:[#allocation13 + $0x5c0] sm:$0xf] }
 0x4fc   : > { %v11046_v34 = vld [vmem:[#allocation13 + $0x5cc] sm:$0xf0] }
 0x4fd   : > { %6154 = vmatpush.bf16.msra.mxu0 %v9637_v46  ;;  %6180 = vmatpush.bf16.msra.mxu2 %v9641_v8  ;;  %v9693_v46 = vor.u32 %v10883_v18, %v9692_v4  ;;  %v9697_v8 = vor.u32 %v10881_v57, %v9694_v47  ;;  %v9629_v4 = vor.u32 %v10867_v15, %v9628_v12  ;;  %v10863_v18 = vld [vmem:[#allocation13 + $0x14] sm:$0xf0]  ;;  %v10861_v57 = vld [vmem:[#allocation13 + $0xc] sm:$0xf]  ;;  %v9614_v47 = vld [vmem:[#allocation13 + $0x18] sm:$0xf0] }
 0x4fe   : > { %5798 = vmatmul.bf16.vlgmr.msrb.gmra.mxu1 %v14027_v22  ;;  %5824 = vmatmul.bf16.vlgmr.msrb.gmra.mxu3 %v14027_v22  ;;  %v9924_v12 = vld [vmem:[#allocation13 + $0x480] sm:$0xf]  ;;  %v11006_v15 = vld [vmem:[#allocation13 + $0x48c] sm:$0xf0] }
 0x4ff   : > { %6166 = vmatpush.bf16.msra.mxu1 %v9781_v33  ;;  %6192 = vmatpush.bf16.msra.mxu3 %v9785_v52  ;;  %v9837_v33 = vor.u32 %v10919_v44, %v9836_v41  ;;  %v9841_v52 = vor.u32 %v10917_v29, %v9838_v5  ;;  %v9773_v41 = vor.u32 %v10903_v58, %v9772_v42  ;;  %v11016_v29 = vld [vmem:[#allocation13 + $0x4e4] sm:$0xf]  ;;  %v9974_v5 = vld [vmem:[#allocation13 + $0x4f0] sm:$0xf0]  ;;  %v10068_v42 = vld [vmem:[#allocation13 + $0x5a0] sm:$0xf] }
 0x500   : > { %v11042_v58 = vld [vmem:[#allocation13 + $0x5ac] sm:$0xf0] }
 0x501   : > { %6155 = vmatpush.bf16.msra.mxu0 %v9621_v51  ;;  %6181 = vmatpush.bf16.msra.mxu2 %v9625_v30  ;;  %v9677_v51 = vor.u32 %v10879_v28, %v9676_v38  ;;  %v9681_v30 = vor.u32 %v10877_v3, %v9678_v61  ;;  %v10897_v38 = vld [vmem:[#allocation13 + $0x12c] sm:$0xf]  ;;  %v9758_v28 = vld [vmem:[#allocation13 + $0x138] sm:$0xf0]  ;;  %v9617_v61 = vor.u32 %v10861_v57, %v9614_v47 }
 0x502   : > { %v10069_v57 = vor.u32 %v11042_v58, %v10068_v42  ;;  %v9964_v42 = vld [vmem:[#allocation13 + $0x4c8] sm:$0xf]  ;;  %v11015_v58 = vld [vmem:[#allocation13 + $0x4d4] sm:$0xf0] }
 0x503   : > { %6167 = vmatpush.bf16.msra.mxu1 %v9765_v35  ;;  %6193 = vmatpush.bf16.msra.mxu3 %v9769_v6  ;;  %v9804_v35 = vld [vmem:[#allocation13 + $0x188] sm:$0xf]  ;;  %v10911_v6 = vld [vmem:[#allocation13 + $0x194] sm:$0xf0] }
 0x505   : > { %6156 = vmatpush.bf16.msra.mxu0 %v9605_v9  ;;  %6182 = vmatpush.bf16.msra.mxu2 %v9609_v39  ;;  %v10869_v9 = vld [vmem:[#allocation13 + $0x4c] sm:$0xf]  ;;  %v9646_v39 = vld [vmem:[#allocation13 + $0x58] sm:$0xf0] }
 0x506   : > { %v9649_v31 = vor.u32 %v10869_v9, %v9646_v39 }
 0x507   : > { %6168 = vmatpush.bf16.msra.mxu1 %v9749_v55  ;;  %6194 = vmatpush.bf16.msra.mxu3 %v9753_v24  ;;  %v9790_v55 = vld [vmem:[#allocation13 + $0x178] sm:$0xf0]  ;;  %v9645_v24 = vor.u32 %v10871_v25, %v9644_v23  ;;  %v9940_v23 = vld [vmem:[#allocation13 + $0x4a0] sm:$0xf]  ;;  %v11010_v25 = vld [vmem:[#allocation13 + $0x4ac] sm:$0xf0] }
 0x508   : > { %6157 = vmatmul.bf16.vlgmr.msra.gmra.mxu0 %v14016_v13  ;;  %6183 = vmatmul.bf16.vlgmr.msra.gmra.mxu2 %v14016_v13  ;;  %v9793_v37 = vor.u32 %v10905_v19, %v9790_v55  ;;  %v11044_v19 = vld [vmem:[#allocation13 + $0x5c4] sm:$0xf]  ;;  %v10086_v55 = vld [vmem:[#allocation13 + $0x5d0] sm:$0xf0] }
 0x509   : > { %6201 = vmatpush.bf16.msrb.mxu0 %v9725_v17  ;;  %6227 = vmatpush.bf16.msrb.mxu2 %v9729_v21  ;;  %v9805_v17 = vor.u32 %v10911_v6, %v9804_v35  ;;  %v9809_v21 = vor.u32 %v10909_v20, %v9806_v54  ;;  %v11048_v35 = vld [vmem:[#allocation13 + $0x5e4] sm:$0xf]  ;;  %v10102_v6 = vld [vmem:[#allocation13 + $0x5f0] sm:$0xf0]  ;;  %v9957_v20 = vor.u32 %v11014_v50, %v9956_v43  ;;  %v10036_v43 = vld [vmem:[#allocation13 + $0x560] sm:$0xf] }
 0x50a   : > { %v10105_v39 = vor.u32 %v11048_v35, %v10102_v6  ;;  %v11034_v50 = vld [vmem:[#allocation13 + $0x56c] sm:$0xf0]  ;;  %v10020_v35 = vld [vmem:[#allocation13 + $0x540] sm:$0xf] }
 0x50b   : > { %6169 = vmatpush.bf16.msra.mxu1 %v9733_v2  ;;  %6195 = vmatpush.bf16.msra.mxu3 %v9737_v27  ;;  %v9633_v2 = vor.u32 %v10865_v1, %v9630_v36  ;;  %v9612_v27 = vld [vmem:[#allocation13 + $0x8] sm:$0xf]  ;;  %v10085_v1 = vor.u32 %v11046_v34, %v10084_v59  ;;  %v10089_v36 = vor.u32 %v11044_v19, %v10086_v55  ;;  %v11030_v6 = vld [vmem:[#allocation13 + $0x54c] sm:$0xf0]  ;;  %v11019_v34 = vld [vmem:[#allocation13 + $0x4f4] sm:$0xf0] }
 0x50c   : > { %v9613_v3 = vor.u32 %v10863_v18, %v9612_v27  ;;  %v9908_v27 = vld [vmem:[#allocation13 + $0x460] sm:$0xf]  ;;  %v11002_v18 = vld [vmem:[#allocation13 + $0x46c] sm:$0xf0]  ;;  %v9980_v59 = vld [vmem:[#allocation13 + $0x4e8] sm:$0xf] }
 0x50d   : > { %6202 = vmatpush.bf16.msrb.mxu0 %v9709_v53  ;;  %6228 = vmatpush.bf16.msrb.mxu2 %v9713_v14  ;;  %v10901_v53 = vld [vmem:[#allocation13 + $0x14c] sm:$0xf]  ;;  %v9774_v14 = vld [vmem:[#allocation13 + $0x158] sm:$0xf0] }
 0x50e   : > { %6170 = vmatmul.bf16.vlgmr.msra.gmra.mxu1 %v14024_v63  ;;  %6196 = vmatmul.bf16.vlgmr.msra.gmra.mxu3 %v14024_v63  ;;  %v9777_v44 = vor.u32 %v10901_v53, %v9774_v14  ;;  %v11040_v53 = vld [vmem:[#allocation13 + $0x5a4] sm:$0xf]  ;;  %v10070_v14 = vld [vmem:[#allocation13 + $0x5b0] sm:$0xf0]  ;;  %v11017_v19 = vld [vmem:[#allocation13 + $0x4ec] sm:$0xf] }
 0x50f   : > { %6214 = vmatpush.bf16.msrb.mxu1 %v9853_v32  ;;  %6240 = vmatpush.bf16.msrb.mxu3 %v9857_v40  ;;  %v9972_v32 = vld [vmem:[#allocation13 + $0x4e0] sm:$0xf]  ;;  %v11018_v40 = vld [vmem:[#allocation13 + $0x4ec] sm:$0xf0]  ;;  %v10073_v47 = vor.u32 %v11040_v53, %v10070_v14  ;;  %v9982_v55 = vld [vmem:[#allocation13 + $0x4f8] sm:$0xf0] }
 0x510   : > { %v11013_v53 = vld [vmem:[#allocation13 + $0x4cc] sm:$0xf] }
 0x511   : > { %6203 = vmatpush.bf16.msrb.mxu0 %v9693_v46  ;;  %6229 = vmatpush.bf16.msrb.mxu2 %v9697_v8  ;;  %v9756_v46 = vld [vmem:[#allocation13 + $0x128] sm:$0xf]  ;;  %v10899_v8 = vld [vmem:[#allocation13 + $0x134] sm:$0xf0] }
 0x512   : > { %v9757_v7 = vor.u32 %v10899_v8, %v9756_v46  ;;  %v9909_v46 = vor.u32 %v11002_v18, %v9908_v27  ;;  %v9988_v27 = vld [vmem:[#allocation13 + $0x500] sm:$0xf]  ;;  %v11022_v18 = vld [vmem:[#allocation13 + $0x50c] sm:$0xf0] }
 0x513   : > { %6215 = vmatpush.bf16.msrb.mxu1 %v9837_v33  ;;  %6241 = vmatpush.bf16.msrb.mxu3 %v9841_v52  ;;  %v9973_v33 = vor.u32 %v11018_v40, %v9972_v32  ;;  %v9977_v52 = vor.u32 %v11016_v29, %v9974_v5  ;;  %v11000_v32 = vld [vmem:[#allocation13 + $0x464] sm:$0xf]  ;;  %v9910_v40 = vld [vmem:[#allocation13 + $0x470] sm:$0xf0] }
 0x514   : > { %v11036_v29 = vld [vmem:[#allocation13 + $0x584] sm:$0xf]  ;;  %v10054_v5 = vld [vmem:[#allocation13 + $0x590] sm:$0xf0]  ;;  %v9913_v8 = vor.u32 %v11000_v32, %v9910_v40  ;;  %v10108_v32 = vld [vmem:[#allocation13 + $0x5e8] sm:$0xf] }
 0x515   : > { %6204 = vmatpush.bf16.msrb.mxu0 %v9677_v51  ;;  %6230 = vmatpush.bf16.msrb.mxu2 %v9681_v30  ;;  %v9761_v51 = vor.u32 %v10897_v38, %v9758_v28  ;;  %v9958_v30 = vld [vmem:[#allocation13 + $0x4d0] sm:$0xf0]  ;;  %v9892_v38 = vld [vmem:[#allocation13 + $0x440] sm:$0xf]  ;;  %v10998_v28 = vld [vmem:[#allocation13 + $0x44c] sm:$0xf0] }
 0x516   : > { %v9961_v54 = vor.u32 %v11012_v56, %v9958_v30  ;;  %v11032_v56 = vld [vmem:[#allocation13 + $0x564] sm:$0xf]  ;;  %v11051_v40 = vld [vmem:[#allocation13 + $0x5f4] sm:$0xf0] }
 0x517   : > { %6216 = vmatpush.bf16.msrb.mxu1 %v9821_v48  ;;  %6242 = vmatpush.bf16.msrb.mxu3 %v9825_v0  ;;  %v10100_v48 = vld [vmem:[#allocation13 + $0x5e0] sm:$0xf]  ;;  %v11050_v0 = vld [vmem:[#allocation13 + $0x5ec] sm:$0xf0] }
 0x518   : > { %v10101_v9 = vor.u32 %v11050_v0, %v10100_v48  ;;  %v10992_v48 = vld [vmem:[#allocation13 + $0x424] sm:$0xf]  ;;  %v9878_v0 = vld [vmem:[#allocation13 + $0x430] sm:$0xf0] }
 0x519   : > { %6205 = vmatpush.bf16.msrb.mxu0 %v9661_v16  ;;  %6231 = vmatpush.bf16.msrb.mxu2 %v9665_v26  ;;  %v9741_v16 = vor.u32 %v10895_v10, %v9740_v11  ;;  %v9745_v26 = vor.u32 %v10893_v45, %v9742_v62  ;;  %v9876_v11 = vld [vmem:[#allocation13 + $0x420] sm:$0xf]  ;;  %v10994_v10 = vld [vmem:[#allocation13 + $0x42c] sm:$0xf0]  ;;  %v10037_v45 = vor.u32 %v11034_v50, %v10036_v43  ;;  %v9950_v43 = vld [vmem:[#allocation13 + $0x4b8] sm:$0xf0] }
 0x51a   : > { %v10092_v50 = vld [vmem:[#allocation13 + $0x5c8] sm:$0xf] }
 0x51b   : > { %6217 = vmatpush.bf16.msrb.mxu1 %v9805_v17  ;;  %6243 = vmatpush.bf16.msrb.mxu3 %v9809_v21  ;;  %v11008_v17 = vld [vmem:[#allocation13 + $0x4a4] sm:$0xf]  ;;  %v9942_v21 = vld [vmem:[#allocation13 + $0x4b0] sm:$0xf0] }
 0x51d   : > { %6206 = vmatpush.bf16.msrb.mxu0 %v9645_v24  ;;  %6232 = vmatpush.bf16.msrb.mxu2 %v9649_v31  ;;  %v9941_v24 = vor.u32 %v11010_v25, %v9940_v23  ;;  %v9945_v31 = vor.u32 %v11008_v17, %v9942_v21  ;;  %v9860_v23 = vld [vmem:[#allocation13 + $0x400] sm:$0xf]  ;;  %v10990_v25 = vld [vmem:[#allocation13 + $0x40c] sm:$0xf0]  ;;  %v9862_v21 = vld [vmem:[#allocation13 + $0x410] sm:$0xf0] }
 0x51f   : > { %6218 = vmatpush.bf16.msrb.mxu1 %v9789_v60  ;;  %6244 = vmatpush.bf16.msrb.mxu3 %v9793_v37  ;;  %v11004_v60 = vld [vmem:[#allocation13 + $0x484] sm:$0xf]  ;;  %v9926_v37 = vld [vmem:[#allocation13 + $0x490] sm:$0xf0] }
 0x521   : > { %6207 = vmatpush.bf16.msrb.mxu0 %v9629_v4  ;;  %6233 = vmatpush.bf16.msrb.mxu2 %v9633_v2  ;;  %v9925_v4 = vor.u32 %v11006_v15, %v9924_v12  ;;  %v9929_v2 = vor.u32 %v11004_v60, %v9926_v37  ;;  %v11024_v12 = vld [vmem:[#allocation13 + $0x524] sm:$0xf]  ;;  %v10006_v15 = vld [vmem:[#allocation13 + $0x530] sm:$0xf0]  ;;  %v9981_v60 = vor.u32 %v11019_v34, %v9980_v59  ;;  %v10060_v59 = vld [vmem:[#allocation13 + $0x588] sm:$0xf] }
 0x522   : > { %v9985_v37 = vor.u32 %v11017_v19, %v9982_v55  ;;  %v11039_v34 = vld [vmem:[#allocation13 + $0x594] sm:$0xf0]  ;;  %v11037_v19 = vld [vmem:[#allocation13 + $0x58c] sm:$0xf]  ;;  %v10062_v55 = vld [vmem:[#allocation13 + $0x598] sm:$0xf0] }
 0x523   : > { %6219 = vmatpush.bf16.msrb.mxu1 %v9773_v41  ;;  %6245 = vmatpush.bf16.msrb.mxu3 %v9777_v44  ;;  %v10052_v41 = vld [vmem:[#allocation13 + $0x580] sm:$0xf]  ;;  %v11038_v44 = vld [vmem:[#allocation13 + $0x58c] sm:$0xf0] }
 0x525   : > { %6208 = vmatpush.bf16.msrb.mxu0 %v9613_v3  ;;  %6234 = vmatpush.bf16.msrb.mxu2 %v9617_v61  ;;  %v10053_v3 = vor.u32 %v11038_v44, %v10052_v41  ;;  %v10057_v61 = vor.u32 %v11036_v29, %v10054_v5  ;;  %v11049_v41 = vld [vmem:[#allocation13 + $0x5ec] sm:$0xf]  ;;  %v10110_v44 = vld [vmem:[#allocation13 + $0x5f8] sm:$0xf0]  ;;  %v14044_v29 = vrot.slane %v14016_v13, 1  ;;  %v9965_v5 = vor.u32 %v11015_v58, %v9964_v42 }
 0x526   : > { %v10044_v42 = vld [vmem:[#allocation13 + $0x568] sm:$0xf]  ;;  %v11035_v58 = vld [vmem:[#allocation13 + $0x574] sm:$0xf0] }
 0x527   : > { %6220 = vmatpush.bf16.msrb.mxu1 %v9757_v7  ;;  %6246 = vmatpush.bf16.msrb.mxu3 %v9761_v51  ;;  %v10038_v7 = vld [vmem:[#allocation13 + $0x570] sm:$0xf0]  ;;  %v9893_v51 = vor.u32 %v10998_v28, %v9892_v38  ;;  %v9948_v28 = vld [vmem:[#allocation13 + $0x4a8] sm:$0xf] }
 0x528   : > { %6209 = vmatmul.bf16.vlgmr.msrb.gmra.mxu0 %v14016_v13  ;;  %6235 = vmatmul.bf16.vlgmr.msrb.gmra.mxu2 %v14016_v13  ;;  %v10041_v62 = vor.u32 %v11032_v56, %v10038_v7  ;;  %v11047_v56 = vld [vmem:[#allocation13 + $0x5d4] sm:$0xf0]  ;;  %v11045_v13 = vld [vmem:[#allocation13 + $0x5cc] sm:$0xf]  ;;  %v10094_v7 = vld [vmem:[#allocation13 + $0x5d8] sm:$0xf0] }
 0x529   : > { %6644 = vmatpush.bf16.msra.mxu0 %v9973_v33  ;;  %6670 = vmatpush.bf16.msra.mxu2 %v9977_v52  ;;  %v10996_v33 = vld [vmem:[#allocation13 + $0x444] sm:$0xf]  ;;  %v9894_v52 = vld [vmem:[#allocation13 + $0x450] sm:$0xf0] }
 0x52a   : > { %v9897_v30 = vor.u32 %v10996_v33, %v9894_v52  ;;  %v10113_v33 = vor.u32 %v11049_v41, %v10110_v44  ;;  %v11009_v52 = vld [vmem:[#allocation13 + $0x4ac] sm:$0xf]  ;;  %v10028_v41 = vld [vmem:[#allocation13 + $0x548] sm:$0xf]  ;;  %v11031_v44 = vld [vmem:[#allocation13 + $0x554] sm:$0xf0] }
 0x52b   : > { %6221 = vmatpush.bf16.msrb.mxu1 %v9741_v16  ;;  %6247 = vmatpush.bf16.msrb.mxu3 %v9745_v26  ;;  %v9877_v16 = vor.u32 %v10994_v10, %v9876_v11  ;;  %v9881_v26 = vor.u32 %v10992_v48, %v9878_v0  ;;  %v9953_v11 = vor.u32 %v11009_v52, %v9950_v43  ;;  %v9932_v10 = vld [vmem:[#allocation13 + $0x488] sm:$0xf]  ;;  %v11005_v0 = vld [vmem:[#allocation13 + $0x48c] sm:$0xf]  ;;  %v9870_v43 = vld [vmem:[#allocation13 + $0x418] sm:$0xf0] }
 0x52c   : > { %v10097_v48 = vor.u32 %v11045_v13, %v10094_v7  ;;  %v11080_v13 = vld [vmem:[#allocation13 + $0x6e4] sm:$0xf]  ;;  %v10230_v7 = vld [vmem:[#allocation13 + $0x6f0] sm:$0xf0] }
 0x52d   : > { %6645 = vmatpush.bf16.msra.mxu0 %v9957_v20  ;;  %6671 = vmatpush.bf16.msra.mxu2 %v9961_v54  ;;  %v11028_v20 = vld [vmem:[#allocation13 + $0x544] sm:$0xf]  ;;  %v10022_v54 = vld [vmem:[#allocation13 + $0x550] sm:$0xf0] }
 0x52e   : > { %6222 = vmatmul.bf16.vlgmr.msrb.gmra.mxu1 %v14024_v63  ;;  %6248 = vmatmul.bf16.vlgmr.msrb.gmra.mxu3 %v14024_v63  ;;  %v10025_v17 = vor.u32 %v11028_v20, %v10022_v54  ;;  %v11043_v20 = vld [vmem:[#allocation13 + $0x5b4] sm:$0xf0]  ;;  %v11041_v54 = vld [vmem:[#allocation13 + $0x5ac] sm:$0xf] }
 0x52f   : > { %6657 = vmatpush.bf16.msra.mxu1 %v10101_v9  ;;  %6683 = vmatpush.bf16.msra.mxu3 %v10105_v39  ;;  %v10988_v9 = vld [vmem:[#allocation13 + $0x404] sm:$0xf]  ;;  %v10021_v39 = vor.u32 %v11030_v6, %v10020_v35  ;;  %v9934_v35 = vld [vmem:[#allocation13 + $0x498] sm:$0xf0]  ;;  %v10076_v6 = vld [vmem:[#allocation13 + $0x5a8] sm:$0xf] }
 0x531   : > { %6646 = vmatpush.bf16.msra.mxu0 %v9941_v24  ;;  %6672 = vmatpush.bf16.msra.mxu2 %v9945_v31  ;;  %v10004_v24 = vld [vmem:[#allocation13 + $0x520] sm:$0xf]  ;;  %v11026_v31 = vld [vmem:[#allocation13 + $0x52c] sm:$0xf0] }
 0x532   : > { %v10005_v14 = vor.u32 %v11026_v31, %v10004_v24 }
 0x533   : > { %6658 = vmatpush.bf16.msra.mxu1 %v10085_v1  ;;  %6684 = vmatpush.bf16.msra.mxu3 %v10089_v36  ;;  %v9861_v1 = vor.u32 %v10990_v25, %v9860_v23  ;;  %v9865_v36 = vor.u32 %v10988_v9, %v9862_v21  ;;  %v9916_v23 = vld [vmem:[#allocation13 + $0x468] sm:$0xf]  ;;  %v11003_v25 = vld [vmem:[#allocation13 + $0x474] sm:$0xf0]  ;;  %v10077_v9 = vor.u32 %v11043_v20, %v10076_v6  ;;  %v9918_v21 = vld [vmem:[#allocation13 + $0x478] sm:$0xf0] }
 0x534   : > { %v9917_v24 = vor.u32 %v11003_v25, %v9916_v23  ;;  %v10212_v6 = vld [vmem:[#allocation13 + $0x6c0] sm:$0xf]  ;;  %v11078_v20 = vld [vmem:[#allocation13 + $0x6cc] sm:$0xf0]  ;;  %v9996_v23 = vld [vmem:[#allocation13 + $0x508] sm:$0xf] }
 0x535   : > { %6647 = vmatpush.bf16.msra.mxu0 %v9925_v4  ;;  %6673 = vmatpush.bf16.msra.mxu2 %v9929_v2  ;;  %v10009_v4 = vor.u32 %v11024_v12, %v10006_v15  ;;  %v9966_v2 = vld [vmem:[#allocation13 + $0x4d8] sm:$0xf0]  ;;  %v9900_v12 = vld [vmem:[#allocation13 + $0x448] sm:$0xf]  ;;  %v10999_v15 = vld [vmem:[#allocation13 + $0x454] sm:$0xf0] }
 0x536   : > { %v11023_v25 = vld [vmem:[#allocation13 + $0x514] sm:$0xf0] }
 0x537   : > { %6659 = vmatpush.bf16.msra.mxu1 %v10069_v57  ;;  %6685 = vmatpush.bf16.msra.mxu3 %v10073_v47  ;;  %v11020_v57 = vld [vmem:[#allocation13 + $0x504] sm:$0xf]  ;;  %v9990_v47 = vld [vmem:[#allocation13 + $0x510] sm:$0xf0] }
 0x538   : > { %v9993_v38 = vor.u32 %v11020_v57, %v9990_v47  ;;  %v10045_v57 = vor.u32 %v11035_v58, %v10044_v42  ;;  %v10340_v42 = vld [vmem:[#allocation13 + $0x7c0] sm:$0xf]  ;;  %v11110_v58 = vld [vmem:[#allocation13 + $0x7cc] sm:$0xf0] }
 0x539   : > { %6648 = vmatpush.bf16.msra.mxu0 %v9909_v46  ;;  %6674 = vmatpush.bf16.msra.mxu2 %v9913_v8  ;;  %v9969_v46 = vor.u32 %v11013_v53, %v9966_v2  ;;  %v9989_v8 = vor.u32 %v11022_v18, %v9988_v27  ;;  %v11033_v53 = vld [vmem:[#allocation13 + $0x56c] sm:$0xf]  ;;  %v9884_v27 = vld [vmem:[#allocation13 + $0x428] sm:$0xf]  ;;  %v10995_v18 = vld [vmem:[#allocation13 + $0x434] sm:$0xf0] }
 0x53b   : > { %6660 = vmatpush.bf16.msra.mxu1 %v10053_v3  ;;  %6686 = vmatpush.bf16.msra.mxu3 %v10057_v61  ;;  %v11011_v3 = vld [vmem:[#allocation13 + $0x4b4] sm:$0xf0]  ;;  %v10109_v61 = vor.u32 %v11051_v40, %v10108_v32  ;;  %v10993_v32 = vld [vmem:[#allocation13 + $0x42c] sm:$0xf]  ;;  %v9886_v40 = vld [vmem:[#allocation13 + $0x438] sm:$0xf0] }
 0x53d   : > { %6649 = vmatpush.bf16.msra.mxu0 %v9893_v51  ;;  %6675 = vmatpush.bf16.msra.mxu2 %v9897_v30  ;;  %v14049_v51 = vrot.slane %v14024_v63, 1  ;;  %v9949_v30 = vor.u32 %v11011_v3, %v9948_v28  ;;  %v9868_v28 = vld [vmem:[#allocation13 + $0x408] sm:$0xf]  ;;  %v10991_v3 = vld [vmem:[#allocation13 + $0x414] sm:$0xf0] }
 0x53f   : > { %6661 = vmatpush.bf16.msra.mxu1 %v10037_v45  ;;  %6687 = vmatpush.bf16.msra.mxu3 %v10041_v62  ;;  %v11007_v45 = vld [vmem:[#allocation13 + $0x494] sm:$0xf0]  ;;  %v10093_v62 = vor.u32 %v11047_v56, %v10092_v50  ;;  %v10228_v50 = vld [vmem:[#allocation13 + $0x6e0] sm:$0xf]  ;;  %v11082_v56 = vld [vmem:[#allocation13 + $0x6ec] sm:$0xf0] }
 0x540   : > { %v9933_v63 = vor.u32 %v11007_v45, %v9932_v10  ;;  %v11025_v10 = vld [vmem:[#allocation13 + $0x52c] sm:$0xf]  ;;  %v10014_v45 = vld [vmem:[#allocation13 + $0x538] sm:$0xf0] }
 0x541   : > { %6650 = vmatpush.bf16.msra.mxu0 %v9877_v16  ;;  %6676 = vmatpush.bf16.msra.mxu2 %v9881_v26  ;;  %v10078_v16 = vld [vmem:[#allocation13 + $0x5b8] sm:$0xf0]  ;;  %v9937_v26 = vor.u32 %v11005_v0, %v9934_v35  ;;  %v10229_v0 = vor.u32 %v11082_v56, %v10228_v50  ;;  %v10233_v35 = vor.u32 %v11080_v13, %v10230_v7  ;;  %v10308_v50 = vld [vmem:[#allocation13 + $0x780] sm:$0xf]  ;;  %v11102_v13 = vld [vmem:[#allocation13 + $0x78c] sm:$0xf0] }
 0x542   : > { %v11100_v7 = vld [vmem:[#allocation13 + $0x784] sm:$0xf] }
 0x543   : > { %6662 = vmatpush.bf16.msra.mxu1 %v10021_v39  ;;  %6688 = vmatpush.bf16.msra.mxu3 %v10025_v17  ;;  %v10081_v39 = vor.u32 %v11041_v54, %v10078_v16  ;;  %v11001_v17 = vld [vmem:[#allocation13 + $0x46c] sm:$0xf]  ;;  %v11076_v54 = vld [vmem:[#allocation13 + $0x6c4] sm:$0xf] }
 0x544   : > { %v9921_v31 = vor.u32 %v11001_v17, %v9918_v21  ;;  %v10356_v17 = vld [vmem:[#allocation13 + $0x7e0] sm:$0xf]  ;;  %v11114_v21 = vld [vmem:[#allocation13 + $0x7ec] sm:$0xf0] }
 0x545   : > { %6651 = vmatpush.bf16.msra.mxu0 %v9861_v1  ;;  %6677 = vmatpush.bf16.msra.mxu2 %v9865_v36  ;;  %v10061_v1 = vor.u32 %v11039_v34, %v10060_v59  ;;  %v10065_v36 = vor.u32 %v11037_v19, %v10062_v55  ;;  %v11112_v59 = vld [vmem:[#allocation13 + $0x7e4] sm:$0xf]  ;;  %v10358_v34 = vld [vmem:[#allocation13 + $0x7f0] sm:$0xf0]  ;;  %v10213_v19 = vor.u32 %v11078_v20, %v10212_v6 }
 0x546   : > { %v11060_v20 = vld [vmem:[#allocation13 + $0x644] sm:$0xf] }
 0x547   : > { %6663 = vmatpush.bf16.msra.mxu1 %v10005_v14  ;;  %6689 = vmatpush.bf16.msra.mxu3 %v10009_v4  ;;  %v10046_v14 = vld [vmem:[#allocation13 + $0x578] sm:$0xf0]  ;;  %v9901_v4 = vor.u32 %v10999_v15, %v9900_v12  ;;  %v10196_v12 = vld [vmem:[#allocation13 + $0x6a0] sm:$0xf]  ;;  %v11074_v15 = vld [vmem:[#allocation13 + $0x6ac] sm:$0xf0] }
 0x548   : > { %6652 = vmatmul.bf16.vlgmr.msra.gmra.mxu0 %v14044_v29  ;;  %6678 = vmatmul.bf16.vlgmr.msra.gmra.mxu2 %v14044_v29  ;;  %v10049_v47 = vor.u32 %v11033_v53, %v10046_v14  ;;  %v11108_v53 = vld [vmem:[#allocation13 + $0x7c4] sm:$0xf]  ;;  %v10342_v14 = vld [vmem:[#allocation13 + $0x7d0] sm:$0xf0] }
 0x549   : > { %6696 = vmatpush.bf16.msrb.mxu0 %v9981_v60  ;;  %6722 = vmatpush.bf16.msrb.mxu2 %v9985_v37  ;;  %v10997_v60 = vld [vmem:[#allocation13 + $0x44c] sm:$0xf]  ;;  %v9902_v37 = vld [vmem:[#allocation13 + $0x458] sm:$0xf0] }
 0x54a   : > { %v9905_v2 = vor.u32 %v10997_v60, %v9902_v37  ;;  %v11072_v60 = vld [vmem:[#allocation13 + $0x6a4] sm:$0xf]  ;;  %v10198_v37 = vld [vmem:[#allocation13 + $0x6b0] sm:$0xf0] }
 0x54b   : > { %6664 = vmatpush.bf16.msra.mxu1 %v9989_v8  ;;  %6690 = vmatpush.bf16.msra.mxu3 %v9993_v38  ;;  %v9885_v8 = vor.u32 %v10995_v18, %v9884_v27  ;;  %v9889_v38 = vor.u32 %v10993_v32, %v9886_v40  ;;  %v10180_v18 = vld [vmem:[#allocation13 + $0x680] sm:$0xf]  ;;  %v11068_v32 = vld [vmem:[#allocation13 + $0x684] sm:$0xf]  ;;  %v10182_v40 = vld [vmem:[#allocation13 + $0x690] sm:$0xf0] }
 0x54d   : > { %6697 = vmatpush.bf16.msrb.mxu0 %v9965_v5  ;;  %6723 = vmatpush.bf16.msrb.mxu2 %v9969_v46  ;;  %v11029_v5 = vld [vmem:[#allocation13 + $0x54c] sm:$0xf]  ;;  %v10030_v46 = vld [vmem:[#allocation13 + $0x558] sm:$0xf0] }
 0x54e   : > { %6665 = vmatmul.bf16.vlgmr.msra.gmra.mxu1 %v14049_v51  ;;  %6691 = vmatmul.bf16.vlgmr.msra.gmra.mxu3 %v14049_v51  ;;  %v10033_v52 = vor.u32 %v11029_v5, %v10030_v46  ;;  %v11104_v5 = vld [vmem:[#allocation13 + $0x7a4] sm:$0xf]  ;;  %v10326_v46 = vld [vmem:[#allocation13 + $0x7b0] sm:$0xf0] }
 0x54f   : > { %6709 = vmatpush.bf16.msrb.mxu1 %v10109_v61  ;;  %6735 = vmatpush.bf16.msrb.mxu3 %v10113_v33  ;;  %v10989_v61 = vld [vmem:[#allocation13 + $0x40c] sm:$0xf]  ;;  %v10029_v33 = vor.u32 %v11031_v44, %v10028_v41  ;;  %v10324_v41 = vld [vmem:[#allocation13 + $0x7a0] sm:$0xf]  ;;  %v11106_v44 = vld [vmem:[#allocation13 + $0x7ac] sm:$0xf0] }
 0x551   : > { %6698 = vmatpush.bf16.msrb.mxu0 %v9949_v30  ;;  %6724 = vmatpush.bf16.msrb.mxu2 %v9953_v11  ;;  %v10012_v30 = vld [vmem:[#allocation13 + $0x528] sm:$0xf]  ;;  %v11027_v11 = vld [vmem:[#allocation13 + $0x534] sm:$0xf0] }
 0x552   : > { %v10013_v16 = vor.u32 %v11027_v11, %v10012_v30  ;;  %v10310_v30 = vld [vmem:[#allocation13 + $0x790] sm:$0xf0] }
 0x553   : > { %6710 = vmatpush.bf16.msrb.mxu1 %v10093_v62  ;;  %6736 = vmatpush.bf16.msrb.mxu3 %v10097_v48  ;;  %v9869_v62 = vor.u32 %v10991_v3, %v9868_v28  ;;  %v9873_v48 = vor.u32 %v10989_v61, %v9870_v43  ;;  %v10164_v28 = vld [vmem:[#allocation13 + $0x660] sm:$0xf]  ;;  %v11066_v3 = vld [vmem:[#allocation13 + $0x66c] sm:$0xf0]  ;;  %v10325_v61 = vor.u32 %v11106_v44, %v10324_v41  ;;  %v10166_v43 = vld [vmem:[#allocation13 + $0x670] sm:$0xf0] }
 0x554   : > { %v10313_v6 = vor.u32 %v11100_v7, %v10310_v30  ;;  %v11090_v41 = vld [vmem:[#allocation13 + $0x72c] sm:$0xf0]  ;;  %v11088_v44 = vld [vmem:[#allocation13 + $0x724] sm:$0xf] }
 0x555   : > { %6699 = vmatpush.bf16.msrb.mxu0 %v9933_v63  ;;  %6725 = vmatpush.bf16.msrb.mxu2 %v9937_v26  ;;  %v10017_v63 = vor.u32 %v11025_v10, %v10014_v45  ;;  %v10214_v26 = vld [vmem:[#allocation13 + $0x6d0] sm:$0xf0]  ;;  %v10165_v10 = vor.u32 %v11066_v3, %v10164_v28  ;;  %v11086_v7 = vld [vmem:[#allocation13 + $0x70c] sm:$0xf0] }
 0x556   : > { %v10217_v55 = vor.u32 %v11076_v54, %v10214_v26  ;;  %v10150_v54 = vld [vmem:[#allocation13 + $0x650] sm:$0xf0]  ;;  %v11096_v26 = vld [vmem:[#allocation13 + $0x764] sm:$0xf] }
 0x557   : > { %6711 = vmatpush.bf16.msrb.mxu1 %v10077_v9  ;;  %6737 = vmatpush.bf16.msrb.mxu3 %v10081_v39  ;;  %v11021_v9 = vld [vmem:[#allocation13 + $0x50c] sm:$0xf]  ;;  %v9998_v39 = vld [vmem:[#allocation13 + $0x518] sm:$0xf0] }
 0x559   : > { %6700 = vmatpush.bf16.msrb.mxu0 %v9917_v24  ;;  %6726 = vmatpush.bf16.msrb.mxu2 %v9921_v31  ;;  %v9997_v24 = vor.u32 %v11023_v25, %v9996_v23  ;;  %v10001_v31 = vor.u32 %v11021_v9, %v9998_v39  ;;  %v10294_v23 = vld [vmem:[#allocation13 + $0x770] sm:$0xf0]  ;;  %v10153_v9 = vor.u32 %v11060_v20, %v10150_v54  ;;  %v10132_v39 = vld [vmem:[#allocation13 + $0x620] sm:$0xf]  ;;  %v14064_v20 = vrot.slane %v14019_v49, 1 }
 0x55a   : > { %v11111_v49 = vld [vmem:[#allocation13 + $0x7d4] sm:$0xf0] }
 0x55b   : > { %6712 = vmatpush.bf16.msrb.mxu1 %v10061_v1  ;;  %6738 = vmatpush.bf16.msrb.mxu3 %v10065_v36  ;;  %v10357_v1 = vor.u32 %v11114_v21, %v10356_v17  ;;  %v10361_v36 = vor.u32 %v11112_v59, %v10358_v34  ;;  %v11058_v17 = vld [vmem:[#allocation13 + $0x62c] sm:$0xf0]  ;;  %v10297_v34 = vor.u32 %v11096_v26, %v10294_v23 }
 0x55d   : > { %6701 = vmatpush.bf16.msrb.mxu0 %v9901_v4  ;;  %6727 = vmatpush.bf16.msrb.mxu2 %v9905_v2  ;;  %v10197_v4 = vor.u32 %v11074_v15, %v10196_v12  ;;  %v10201_v2 = vor.u32 %v11072_v60, %v10198_v37  ;;  %v11094_v15 = vld [vmem:[#allocation13 + $0x74c] sm:$0xf0]  ;;  %v10133_v37 = vor.u32 %v11058_v17, %v10132_v39 }
 0x55f   : > { %6713 = vmatpush.bf16.msrb.mxu1 %v10045_v57  ;;  %6739 = vmatpush.bf16.msrb.mxu3 %v10049_v47  ;;  %v11070_v57 = vld [vmem:[#allocation13 + $0x68c] sm:$0xf0]  ;;  %v10345_v47 = vor.u32 %v11108_v53, %v10342_v14  ;;  %v11052_v14 = vld [vmem:[#allocation13 + $0x604] sm:$0xf] }
 0x560   : > { %v11054_v53 = vld [vmem:[#allocation13 + $0x60c] sm:$0xf0] }
 0x561   : > { %6702 = vmatpush.bf16.msrb.mxu0 %v9885_v8  ;;  %6728 = vmatpush.bf16.msrb.mxu2 %v9889_v38  ;;  %v10181_v8 = vor.u32 %v11070_v57, %v10180_v18  ;;  %v10185_v38 = vor.u32 %v11068_v32, %v10182_v40  ;;  %v10118_v18 = vld [vmem:[#allocation13 + $0x610] sm:$0xf0]  ;;  %v10236_v57 = vld [vmem:[#allocation13 + $0x6e8] sm:$0xf]  ;;  %v10238_v32 = vld [vmem:[#allocation13 + $0x6f8] sm:$0xf0] }
 0x562   : > { %v10260_v40 = vld [vmem:[#allocation13 + $0x720] sm:$0xf] }
 0x563   : > { %6714 = vmatpush.bf16.msrb.mxu1 %v10029_v33  ;;  %6740 = vmatpush.bf16.msrb.mxu3 %v10033_v52  ;;  %v10329_v33 = vor.u32 %v11104_v5, %v10326_v46  ;;  %v11064_v52 = vld [vmem:[#allocation13 + $0x664] sm:$0xf]  ;;  %v10262_v5 = vld [vmem:[#allocation13 + $0x730] sm:$0xf0] }
 0x564   : > { %v5734_v27 = vpop.f32.mrf.mxu0  ;;  %v10169_v45 = vor.u32 %v11064_v52, %v10166_v43  ;;  %v11077_v52 = vld [vmem:[#allocation13 + $0x6cc] sm:$0xf]  ;;  %v10261_v43 = vor.u32 %v11090_v41, %v10260_v40  ;;  %v10172_v41 = vld [vmem:[#allocation13 + $0x668] sm:$0xf] }
 0x565   : > { %6703 = vmatpush.bf16.msrb.mxu0 %v9869_v62  ;;  %6729 = vmatpush.bf16.msrb.mxu2 %v9873_v48  ;;  %v10148_v48 = vld [vmem:[#allocation13 + $0x640] sm:$0xf] }
 0x567   : > { %6715 = vmatpush.bf16.msrb.mxu1 %v10013_v16  ;;  %6741 = vmatpush.bf16.msrb.mxu3 %v10017_v63  ;;  %v10292_v16 = vld [vmem:[#allocation13 + $0x760] sm:$0xf]  ;;  %v11098_v63 = vld [vmem:[#allocation13 + $0x76c] sm:$0xf0] }
 0x568   : > { %6704 = vmatmul.bf16.vlgmr.msrb.gmra.mxu0 %v14044_v29  ;;  %6730 = vmatmul.bf16.vlgmr.msrb.gmra.mxu2 %v14044_v29  ;;  %v10341_v29 = vor.u32 %v11110_v58, %v10340_v42  ;;  %v10293_v59 = vor.u32 %v11098_v63, %v10292_v16  ;;  %v10116_v58 = vld [vmem:[#allocation13 + $0x600] sm:$0xf] }
 0x569   : > { %7141 = vmatpush.bf16.msra.mxu0 %v10229_v0  ;;  %7167 = vmatpush.bf16.msra.mxu2 %v10233_v35  ;;  %v11062_v0 = vld [vmem:[#allocation13 + $0x64c] sm:$0xf0]  ;;  %v10309_v35 = vor.u32 %v11102_v13, %v10308_v50  ;;  %v10117_v46 = vor.u32 %v11054_v53, %v10116_v58  ;;  %v10265_v50 = vor.u32 %v11088_v44, %v10262_v5  ;;  %v10244_v13 = vld [vmem:[#allocation13 + $0x700] sm:$0xf]  ;;  %v11067_v44 = vld [vmem:[#allocation13 + $0x674] sm:$0xf0] }
 0x56a   : > { %v5760_v56 = vpop.f32.mrf.mxu2  ;;  %v10149_v25 = vor.u32 %v11062_v0, %v10148_v48  ;;  %v11115_v0 = vld [vmem:[#allocation13 + $0x7f4] sm:$0xf0]  ;;  %v10245_v26 = vor.u32 %v11086_v7, %v10244_v13 }
 0x56b   : > { %6716 = vmatpush.bf16.msrb.mxu1 %v9997_v24  ;;  %6742 = vmatpush.bf16.msrb.mxu3 %v10001_v31  ;;  %v5747_v11 = vpop.f32.mrf.mxu1  ;;  %v10276_v24 = vld [vmem:[#allocation13 + $0x740] sm:$0xf] }
 0x56c   : > { %v5736_v62 = vpop.f32.mrf.mxu0 }
 0x56d   : > { %7142 = vmatpush.bf16.msra.mxu0 %v10213_v19  ;;  %7168 = vmatpush.bf16.msra.mxu2 %v10217_v55  ;;  %v11056_v19 = vld [vmem:[#allocation13 + $0x624] sm:$0xf]  ;;  %v10134_v55 = vld [vmem:[#allocation13 + $0x630] sm:$0xf0]  ;;  %v10364_v62 = vld [vmem:[#allocation13 + $0x7e8] sm:$0xf] }
 0x56e   : > { %6717 = vmatmul.bf16.vlgmr.msrb.gmra.mxu1 %v14049_v51  ;;  %6743 = vmatmul.bf16.vlgmr.msrb.gmra.mxu3 %v14049_v51  ;;  %v14057_v51 = vadd.f32 %v5747_v11, %v5734_v27  ;;  %v10137_v42 = vor.u32 %v11056_v19, %v10134_v55  ;;  %v10365_v39 = vor.u32 %v11115_v0, %v10364_v62  ;;  %v11109_v19 = vld [vmem:[#allocation13 + $0x7cc] sm:$0xf]  ;;  %v10350_v55 = vld [vmem:[#allocation13 + $0x7d8] sm:$0xf0] }
 0x56f   : > { %7154 = vmatpush.bf16.msra.mxu1 %v10357_v1  ;;  %7180 = vmatpush.bf16.msra.mxu3 %v10361_v36  ;;  %v11092_v1 = vld [vmem:[#allocation13 + $0x744] sm:$0xf]  ;;  %v10278_v36 = vld [vmem:[#allocation13 + $0x750] sm:$0xf0] }
 0x570   : > { %v10281_v27 = vor.u32 %v11092_v1, %v10278_v36 }
 0x571   : > { %7143 = vmatpush.bf16.msra.mxu0 %v10197_v4  ;;  %7169 = vmatpush.bf16.msra.mxu2 %v10201_v2  ;;  %v5773_v21 = vpop.f32.mrf.mxu3  ;;  %v10277_v2 = vor.u32 %v11094_v15, %v10276_v24  ;;  %v14071_v15 = vrot.slane %v14027_v22, 1 }
 0x572   : > { %v14059_v31 = vadd.f32 %v5773_v21, %v5760_v56  ;;  %v5762_v12 = vpop.f32.mrf.mxu2  ;;  %v10222_v56 = vld [vmem:[#allocation13 + $0x6d8] sm:$0xf0]  ;;  %v11073_v21 = vld [vmem:[#allocation13 + $0x6ac] sm:$0xf] }
 0x573   : > { %7155 = vmatpush.bf16.msra.mxu1 %v10341_v29  ;;  %7181 = vmatpush.bf16.msra.mxu3 %v10345_v47  ;;  %v5749_v60 = vpop.f32.mrf.mxu1  ;;  %v11083_v29 = vld [vmem:[#allocation13 + $0x6f4] sm:$0xf0]  ;;  %v11081_v47 = vld [vmem:[#allocation13 + $0x6ec] sm:$0xf]  ;;  %v10225_v63 = vor.u32 %v11077_v52, %v10222_v56 }
 0x574   : > { %v10237_v28 = vor.u32 %v11083_v29, %v10236_v57  ;;  %v10241_v3 = vor.u32 %v11081_v47, %v10238_v32  ;;  %v10188_v60 = vld [vmem:[#allocation13 + $0x688] sm:$0xf]  ;;  %v11105_v57 = vld [vmem:[#allocation13 + $0x7ac] sm:$0xf]  ;;  %v10334_v29 = vld [vmem:[#allocation13 + $0x7b8] sm:$0xf0] }
 0x575   : > { %7144 = vmatpush.bf16.msra.mxu0 %v10181_v8  ;;  %7170 = vmatpush.bf16.msra.mxu2 %v10185_v38  ;;  %v5786_v4 = vpop.f32.mrf.mxu0  ;;  %v10121_v8 = vor.u32 %v11052_v14, %v10118_v18  ;;  %v10353_v14 = vor.u32 %v11109_v19, %v10350_v55  ;;  %v11107_v18 = vld [vmem:[#allocation13 + $0x7b4] sm:$0xf0]  ;;  %v10286_v19 = vld [vmem:[#allocation13 + $0x758] sm:$0xf0] }
 0x576   : > { %v11063_v56 = vld [vmem:[#allocation13 + $0x654] sm:$0xf0] }
 0x577   : > { %7156 = vmatpush.bf16.msra.mxu1 %v10325_v61  ;;  %7182 = vmatpush.bf16.msra.mxu3 %v10329_v33  ;;  %v10220_v61 = vld [vmem:[#allocation13 + $0x6c8] sm:$0xf]  ;;  %v11079_v33 = vld [vmem:[#allocation13 + $0x6d4] sm:$0xf0] }
 0x578   : > { %v10221_v16 = vor.u32 %v11079_v33, %v10220_v61  ;;  %v11101_v61 = vld [vmem:[#allocation13 + $0x78c] sm:$0xf]  ;;  %v10318_v33 = vld [vmem:[#allocation13 + $0x798] sm:$0xf0] }
 0x579   : > { %7145 = vmatpush.bf16.msra.mxu0 %v10165_v10  ;;  %7171 = vmatpush.bf16.msra.mxu2 %v10169_v45  ;;  %v5775_v38 = vpop.f32.mrf.mxu3  ;;  %v11084_v10 = vld [vmem:[#allocation13 + $0x704] sm:$0xf]  ;;  %v10246_v45 = vld [vmem:[#allocation13 + $0x710] sm:$0xf0] }
 0x57a   : > { %v10249_v23 = vor.u32 %v11084_v10, %v10246_v45  ;;  %v10174_v38 = vld [vmem:[#allocation13 + $0x678] sm:$0xf0]  ;;  %v10300_v45 = vld [vmem:[#allocation13 + $0x768] sm:$0xf] }
 0x57b   : > { %7157 = vmatpush.bf16.msra.mxu1 %v10309_v35  ;;  %7183 = vmatpush.bf16.msra.mxu3 %v10313_v6  ;;  %v5799_v30 = vpop.f32.mrf.mxu1  ;;  %v5812_v11 = vpop.f32.mrf.mxu2  ;;  %v11113_v35 = vld [vmem:[#allocation13 + $0x7ec] sm:$0xf]  ;;  %v10366_v6 = vld [vmem:[#allocation13 + $0x7f8] sm:$0xf0] }
 0x57c   : > { %v14061_v48 = vadd.f32 %v5799_v30, %v5786_v4  ;;  %v10369_v17 = vor.u32 %v11113_v35, %v10366_v6  ;;  %v11069_v4 = vld [vmem:[#allocation13 + $0x68c] sm:$0xf]  ;;  %v10321_v30 = vor.u32 %v11101_v61, %v10318_v33  ;;  %v10158_v10 = vld [vmem:[#allocation13 + $0x658] sm:$0xf0]  ;;  %v11099_v35 = vld [vmem:[#allocation13 + $0x774] sm:$0xf0] }
 0x57d   : > { %7146 = vmatpush.bf16.msra.mxu0 %v10149_v25  ;;  %7172 = vmatpush.bf16.msra.mxu2 %v10153_v9  ;;  %v5788_v54 = vpop.f32.mrf.mxu0  ;;  %v10204_v25 = vld [vmem:[#allocation13 + $0x6a8] sm:$0xf]  ;;  %v11075_v9 = vld [vmem:[#allocation13 + $0x6b4] sm:$0xf0]  ;;  %v11097_v6 = vld [vmem:[#allocation13 + $0x76c] sm:$0xf] }
 0x57e   : > { %v10205_v1 = vor.u32 %v11075_v9, %v10204_v25  ;;  %v10302_v54 = vld [vmem:[#allocation13 + $0x778] sm:$0xf0]  ;;  %v10140_v25 = vld [vmem:[#allocation13 + $0x628] sm:$0xf]  ;;  %v11059_v9 = vld [vmem:[#allocation13 + $0x634] sm:$0xf0] }
 0x57f   : > { %7158 = vmatpush.bf16.msra.mxu1 %v10293_v59  ;;  %7184 = vmatpush.bf16.msra.mxu3 %v10297_v34  ;;  %v10206_v59 = vld [vmem:[#allocation13 + $0x6b8] sm:$0xf0]  ;;  %v10348_v34 = vld [vmem:[#allocation13 + $0x7c8] sm:$0xf] }
 0x580   : > { %v10209_v36 = vor.u32 %v11073_v21, %v10206_v59  ;;  %v10349_v53 = vor.u32 %v11111_v49, %v10348_v34  ;;  %v11057_v21 = vld [vmem:[#allocation13 + $0x62c] sm:$0xf]  ;;  %v10142_v59 = vld [vmem:[#allocation13 + $0x638] sm:$0xf0]  ;;  %v10284_v34 = vld [vmem:[#allocation13 + $0x748] sm:$0xf] }
 0x581   : > { %7147 = vmatpush.bf16.msra.mxu0 %v10133_v37  ;;  %7173 = vmatpush.bf16.msra.mxu2 %v10137_v42  ;;  %v5825_v24 = vpop.f32.mrf.mxu3  ;;  %v11071_v37 = vld [vmem:[#allocation13 + $0x694] sm:$0xf0]  ;;  %v11093_v49 = vld [vmem:[#allocation13 + $0x74c] sm:$0xf] }
 0x582   : > { %v14068_v12 = vadd.f32 %v5825_v24, %v5812_v11  ;;  %v10189_v32 = vor.u32 %v11071_v37, %v10188_v60  ;;  %v11061_v11 = vld [vmem:[#allocation13 + $0x64c] sm:$0xf]  ;;  %v10141_v24 = vor.u32 %v11059_v9, %v10140_v25  ;;  %v11055_v60 = vld [vmem:[#allocation13 + $0x614] sm:$0xf0] }
 0x583   : > { %7159 = vmatpush.bf16.msra.mxu1 %v10277_v2  ;;  %7185 = vmatpush.bf16.msra.mxu3 %v10281_v27  ;;  %v5801_v42 = vpop.f32.mrf.mxu1  ;;  %v5814_v58 = vpop.f32.mrf.mxu2  ;;  %v10190_v2 = vld [vmem:[#allocation13 + $0x698] sm:$0xf0]  ;;  %v10332_v27 = vld [vmem:[#allocation13 + $0x7a8] sm:$0xf]  ;;  %v11121_v25 = vld [vmem:[#allocation16 + $0x28] sm:$0xff] }
 0x584   : > { %v10193_v40 = vor.u32 %v11069_v4, %v10190_v2  ;;  %v10333_v5 = vor.u32 %v11107_v18, %v10332_v27  ;;  %v10126_v4 = vld [vmem:[#allocation13 + $0x618] sm:$0xf0]  ;;  %v10268_v2 = vld [vmem:[#allocation13 + $0x728] sm:$0xf]  ;;  %v11091_v18 = vld [vmem:[#allocation13 + $0x734] sm:$0xf0] }
 0x585   : > { %7148 = vmatpush.bf16.msra.mxu0 %v10117_v46  ;;  %7174 = vmatpush.bf16.msra.mxu2 %v10121_v8  ;;  %v6158_v22 = vpop.f32.mrf.mxu0  ;;  %v10337_v46 = vor.u32 %v11105_v57, %v10334_v29  ;;  %v11065_v8 = vld [vmem:[#allocation13 + $0x66c] sm:$0xf]  ;;  %v10270_v29 = vld [vmem:[#allocation13 + $0x738] sm:$0xf0] }
 0x586   : > { %v6159_v47 = vadd.f32 %v6158_v22, %v14057_v51  ;;  %v10156_v51 = vld [vmem:[#allocation13 + $0x648] sm:$0xf]  ;;  %v11089_v57 = vld [vmem:[#allocation13 + $0x72c] sm:$0xf] }
 0x587   : > { %7160 = vmatpush.bf16.msra.mxu1 %v10261_v43  ;;  %7186 = vmatpush.bf16.msra.mxu3 %v10265_v50  ;;  %v10173_v43 = vor.u32 %v11067_v44, %v10172_v41  ;;  %v10177_v50 = vor.u32 %v11065_v8, %v10174_v38  ;;  %v10252_v41 = vld [vmem:[#allocation13 + $0x708] sm:$0xf]  ;;  %v11087_v44 = vld [vmem:[#allocation13 + $0x714] sm:$0xf0] }
 0x588   : > { %7149 = vmatmul.bf16.vlgmr.msra.gmra.mxu0 %v14064_v20  ;;  %7175 = vmatmul.bf16.vlgmr.msra.gmra.mxu2 %v14064_v20  ;;  %v10253_v38 = vor.u32 %v11087_v44, %v10252_v41  ;;  %v11134_v44 = vld [vmem:[#allocation16 + $0x90] sm:$0xff] }
 0x589   : > { %7193 = vmatpush.bf16.msrb.mxu0 %v10237_v28  ;;  %7219 = vmatpush.bf16.msrb.mxu2 %v10241_v3  ;;  %v10316_v28 = vld [vmem:[#allocation13 + $0x788] sm:$0xf]  ;;  %v11103_v3 = vld [vmem:[#allocation13 + $0x794] sm:$0xf0]  ;;  %v5827_v52 = vpop.f32.mrf.mxu3 }
 0x58a   : > { %v10317_v7 = vor.u32 %v11103_v3, %v10316_v28 }
 0x58b   : > { %7161 = vmatpush.bf16.msra.mxu1 %v10245_v26  ;;  %7187 = vmatpush.bf16.msra.mxu3 %v10249_v23  ;;  %v6184_v13 = vpop.f32.mrf.mxu2  ;;  %v6171_v62 = vpop.f32.mrf.mxu1  ;;  %v10157_v26 = vor.u32 %v11063_v56, %v10156_v51  ;;  %v10161_v23 = vor.u32 %v11061_v11, %v10158_v10 }
 0x58c   : > { %v6185_v0 = vadd.f32 %v6184_v13, %v14059_v31  ;;  %v11095_v31 = vld [vmem:[#allocation13 + $0x754] sm:$0xf0] }
 0x58d   : > { %7194 = vmatpush.bf16.msrb.mxu0 %v10221_v16  ;;  %7220 = vmatpush.bf16.msrb.mxu2 %v10225_v63  ;;  %v14077_v16 = vadd.f32 %v6171_v62, %v6159_v47  ;;  %v6160_v63 = vpop.f32.mrf.mxu0  ;;  %v10285_v58 = vor.u32 %v11095_v31, %v10284_v34  ;;  %v11118_v31 = vld [vmem:[#allocation16 + $0x10] sm:$0xff] }
 0x58e   : > { %7162 = vmatmul.bf16.vlgmr.msra.gmra.mxu1 %v14071_v15  ;;  %7188 = vmatmul.bf16.vlgmr.msra.gmra.mxu3 %v14071_v15 }
 0x58f   : > { %7206 = vmatpush.bf16.msrb.mxu1 %v10365_v39  ;;  %7232 = vmatpush.bf16.msrb.mxu3 %v10369_v17  ;;  %v10301_v39 = vor.u32 %v11099_v35, %v10300_v45  ;;  %v10305_v17 = vor.u32 %v11097_v6, %v10302_v54  ;;  %v11123_v6 = vld [vmem:[#allocation16 + $0x38] sm:$0xff] }
 0x591   : > { %7195 = vmatpush.bf16.msrb.mxu0 %v10205_v1  ;;  %7221 = vmatpush.bf16.msrb.mxu2 %v10209_v36  ;;  %v6197_v55 = vpop.f32.mrf.mxu3  ;;  %v10145_v1 = vor.u32 %v11057_v21, %v10142_v59  ;;  %v10124_v36 = vld [vmem:[#allocation13 + $0x608] sm:$0xf]  ;;  %v11119_v21 = vld [vmem:[#allocation16 + $0x18] sm:$0xff] }
 0x592   : > { %v6198_v37 = vadd.f32 %v6197_v55, %v6185_v0  ;;  %v10125_v22 = vor.u32 %v11055_v60, %v10124_v36  ;;  %v11128_v59 = vld [vmem:[#allocation16 + $0x60] sm:$0xff]  ;;  %v11126_v36 = vld [vmem:[#allocation16 + $0x50] sm:$0xff] }
 0x593   : > { %7207 = vmatpush.bf16.msrb.mxu1 %v10349_v53  ;;  %7233 = vmatpush.bf16.msrb.mxu3 %v10353_v14  ;;  %v6186_v42 = vpop.f32.mrf.mxu2  ;;  %v10289_v53 = vor.u32 %v11093_v49, %v10286_v19  ;;  %v11053_v14 = vld [vmem:[#allocation13 + $0x60c] sm:$0xf]  ;;  %v6173_v27 = vpop.f32.mrf.mxu1  ;;  %v11127_v49 = vld [vmem:[#allocation16 + $0x58] sm:$0xff]  ;;  %v11116_v60 = vld [vmem:[#allocation16] sm:$0xff] }
 0x594   : > { %v10129_v47 = vor.u32 %v11053_v14, %v10126_v4  ;;  %v11139_v42 = vld [vmem:[#allocation16 + $0xb8] sm:$0xff]  ;;  %v11138_v4 = vld [vmem:[#allocation16 + $0xb0] sm:$0xff] }
 0x595   : > { %7196 = vmatpush.bf16.msrb.mxu0 %v10189_v32  ;;  %7222 = vmatpush.bf16.msrb.mxu2 %v10193_v40  ;;  %v10269_v32 = vor.u32 %v11091_v18, %v10268_v2  ;;  %v10273_v40 = vor.u32 %v11089_v57, %v10270_v29  ;;  %v11124_v2 = vld [vmem:[#allocation16 + $0x40] sm:$0xff]  ;;  %v11147_v27 = vld [vmem:[#allocation16 + $0xf8] sm:$0xff]  ;;  %v11137_v57 = vld [vmem:[#allocation16 + $0xa8] sm:$0xff] }
 0x596   : > { %v11146_v29 = vld [vmem:[#allocation16 + $0xf0] sm:$0xff] }
 0x597   : > { %7208 = vmatpush.bf16.msrb.mxu1 %v10333_v5  ;;  %7234 = vmatpush.bf16.msrb.mxu3 %v10337_v46  ;;  %v11085_v5 = vld [vmem:[#allocation13 + $0x70c] sm:$0xf]  ;;  %v10254_v46 = vld [vmem:[#allocation13 + $0x718] sm:$0xf0] }
 0x598   : > { %v10257_v28 = vor.u32 %v11085_v5, %v10254_v46  ;;  %v672_v5 = vld [vmem:[#allocation14] sm:$0xf] }
 0x599   : > { %7197 = vmatpush.bf16.msrb.mxu0 %v10173_v43  ;;  %7223 = vmatpush.bf16.msrb.mxu2 %v10177_v50  ;;  %v6199_v8 = vpop.f32.mrf.mxu3  ;;  %v11143_v46 = vld [vmem:[#allocation16 + $0xd8] sm:$0xff] }
 0x59b   : > { %7209 = vmatpush.bf16.msrb.mxu1 %v10317_v7  ;;  %7235 = vmatpush.bf16.msrb.mxu3 %v10321_v30 }
 0x59d   : > { %7198 = vmatpush.bf16.msrb.mxu0 %v10157_v26  ;;  %7224 = vmatpush.bf16.msrb.mxu2 %v10161_v23  ;;  %v11122_v26 = vld [vmem:[#allocation16 + $0x30] sm:$0xff]  ;;  %v11131_v23 = vld [vmem:[#allocation16 + $0x78] sm:$0xff] }
 0x59f   : > { %7210 = vmatpush.bf16.msrb.mxu1 %v10301_v39  ;;  %7236 = vmatpush.bf16.msrb.mxu3 %v10305_v17  ;;  %v11130_v39 = vld [vmem:[#allocation16 + $0x70] sm:$0xff]  ;;  %v11120_v17 = vld [vmem:[#allocation16 + $0x20] sm:$0xff] }
 0x5a1   : > { %7199 = vmatpush.bf16.msrb.mxu0 %v10141_v24  ;;  %7225 = vmatpush.bf16.msrb.mxu2 %v10145_v1  ;;  %v11117_v24 = vld [vmem:[#allocation16 + $0x8] sm:$0xff] }
 0x5a3   : > { %7211 = vmatpush.bf16.msrb.mxu1 %v10285_v58  ;;  %7237 = vmatpush.bf16.msrb.mxu3 %v10289_v53  ;;  %v11125_v58 = vld [vmem:[#allocation16 + $0x48] sm:$0xff] }
 0x5a5   : > { %7200 = vmatpush.bf16.msrb.mxu0 %v10125_v22  ;;  %7226 = vmatpush.bf16.msrb.mxu2 %v10129_v47  ;;  %v6210_v3 = vpop.f32.mrf.mxu0  ;;  %v11136_v22 = vld [vmem:[#allocation16 + $0xa0] sm:$0xff]  ;;  %v11145_v47 = vld [vmem:[#allocation16 + $0xe8] sm:$0xff] }
 0x5a6   : > { %v6211_v61 = vadd.f32 %v6210_v3, %v14061_v48 }
 0x5a7   : > { %7212 = vmatpush.bf16.msrb.mxu1 %v10269_v32  ;;  %7238 = vmatpush.bf16.msrb.mxu3 %v10273_v40  ;;  %v11135_v32 = vld [vmem:[#allocation16 + $0x98] sm:$0xff]  ;;  %v11144_v40 = vld [vmem:[#allocation16 + $0xe0] sm:$0xff] }
 0x5a8   : > { %7201 = vmatmul.bf16.vlgmr.msrb.gmra.mxu0 %v14064_v20  ;;  %7227 = vmatmul.bf16.vlgmr.msrb.gmra.mxu2 %v14064_v20 }
 0x5a9   : > { %7526 = vmatpush.bf16.msra.mxu0 %v11123_v6  ;;  %7552 = vmatpush.bf16.msra.mxu2 %v11139_v42 }
 0x5ab   : > { %7213 = vmatpush.bf16.msrb.mxu1 %v10253_v38  ;;  %7239 = vmatpush.bf16.msrb.mxu3 %v10257_v28  ;;  %v6223_v33 = vpop.f32.mrf.mxu1  ;;  %v6236_v52 = vpop.f32.mrf.mxu2  ;;  %v11133_v28 = vld [vmem:[#allocation16 + $0x88] sm:$0xff] }
 0x5ac   : > { %v14084_v43 = vadd.f32 %v6223_v33, %v6211_v61  ;;  %v6237_v50 = vadd.f32 %v6236_v52, %v14068_v12  ;;  %v7250_v61 = vperm.slane %v672_v5, 0  ;;  %v11142_v52 = vld [vmem:[#allocation16 + $0xd0] sm:$0xff] }
 0x5ad   : > { %v6212_v51 = vpop.f32.mrf.mxu0  ;;  %7527 = vmatpush.bf16.msra.mxu0 %v11122_v26  ;;  %7553 = vmatpush.bf16.msra.mxu2 %v11138_v4 }
 0x5ae   : > { %7214 = vmatmul.bf16.vlgmr.msrb.gmra.mxu1 %v14071_v15  ;;  %7240 = vmatmul.bf16.vlgmr.msrb.gmra.mxu3 %v14071_v15  ;;  %v11132_v51 = vld [vmem:[#allocation16 + $0x80] sm:$0xff] }
 0x5af   : > { %7539 = vmatpush.bf16.msra.mxu1 %v11131_v23  ;;  %7565 = vmatpush.bf16.msra.mxu3 %v11147_v27 }
 0x5b1   : > { %v6249_v56 = vpop.f32.mrf.mxu3  ;;  %7528 = vmatpush.bf16.msra.mxu0 %v11121_v25  ;;  %7554 = vmatpush.bf16.msra.mxu2 %v11137_v57  ;;  %v7578_v57 = vlaneseq }
 0x5b2   : > { %v14087_v13 = vadd.f32 %v6249_v56, %v6237_v50 }
 0x5b3   : > { %v6225_v20 = vpop.f32.mrf.mxu1  ;;  %v6238_v7 = vpop.f32.mrf.mxu2  ;;  %7540 = vmatpush.bf16.msra.mxu1 %v11130_v39  ;;  %7566 = vmatpush.bf16.msra.mxu3 %v11146_v29 }
 0x5b4   : > { %v11141_v7 = vld [vmem:[#allocation16 + $0xc8] sm:$0xff] }
 0x5b5   : > { %7529 = vmatpush.bf16.msra.mxu0 %v11120_v17  ;;  %7555 = vmatpush.bf16.msra.mxu2 %v11136_v22  ;;  %v7252_v17 = vperm.slane %v672_v5, 2  ;;  %v7579_v22 = vand.u32 127, %v7578_v57 }
 0x5b7   : > { %7567 = vmatpush.bf16.msra.mxu3 %v11145_v47  ;;  %vm7580_vm2 = vcmp.lt.s32.totalorder %v7579_v22, 10 }
 0x5b9   : > { %v6251_v30 = vpop.f32.mrf.mxu3  ;;  %7530 = vmatpush.bf16.msra.mxu0 %v11119_v21  ;;  %7556 = vmatpush.bf16.msra.mxu2 %v11135_v32 }
 0x5bb   : > { %7568 = vmatpush.bf16.msra.mxu3 %v11144_v40 }
 0x5bd   : > { %7531 = vmatpush.bf16.msra.mxu0 %v11118_v31  ;;  %7557 = vmatpush.bf16.msra.mxu2 %v11134_v44 }
 0x5bf   : > { %7569 = vmatpush.bf16.msra.mxu3 %v11143_v46 }
 0x5c1   : > { %7532 = vmatpush.bf16.msra.mxu0 %v11117_v24  ;;  %7558 = vmatpush.bf16.msra.mxu2 %v11133_v28 }
 0x5c3   : > { %7570 = vmatpush.bf16.msra.mxu3 %v11142_v52 }
 0x5c5   : > { %v6653_v11 = vpop.f32.mrf.mxu0  ;;  %7533 = vmatpush.bf16.msra.mxu0 %v11116_v60  ;;  %7559 = vmatpush.bf16.msra.mxu2 %v11132_v51  ;;  %v7253_v60 = vperm.slane %v672_v5, 3 }
 0x5c7   : > { %7571 = vmatpush.bf16.msra.mxu3 %v11141_v7 }
 0x5cb   : > { %v6666_v10 = vpop.f32.mrf.mxu1  ;;  %v6679_v45 = vpop.f32.mrf.mxu2 }
 0x5cc   : > { %v6667_v15 = vadd.f32 %v6666_v10, %v6653_v11  ;;  %v7251_v10 = vperm.slane %v672_v5, 1 }
 0x5cd   : > { %v6655_v62 = vpop.f32.mrf.mxu0 }
 0x5ce   : > { %v14090_v48 = vadd.f32 %v6667_v15, %v14077_v16  ;;  %v11129_v16 = vld [vmem:[#allocation16 + $0x68] sm:$0xff] }
 0x5cf   : > { %7541 = vmatpush.bf16.msra.mxu1 %v11129_v16 }
 0x5d1   : > { %v6692_v0 = vpop.f32.mrf.mxu3 }
 0x5d2   : > { %v6693_v35 = vadd.f32 %v6692_v0, %v6679_v45 }
 0x5d3   : > { %v6668_v54 = vpop.f32.mrf.mxu1  ;;  %v6681_v12 = vpop.f32.mrf.mxu2  ;;  %7542 = vmatpush.bf16.msra.mxu1 %v11128_v59 }
 0x5d4   : > { %v14092_v63 = vadd.f32 %v6693_v35, %v6198_v37  ;;  %v11140_v35 = vld [vmem:[#allocation16 + $0xc0] sm:$0xff] }
 0x5d5   : > { %7572 = vmatpush.bf16.msra.mxu3 %v11140_v35 }
 0x5d7   : > { %7543 = vmatpush.bf16.msra.mxu1 %v11127_v49 }
 0x5d9   : > { %v6694_v9 = vpop.f32.mrf.mxu3 }
 0x5db   : > { %7544 = vmatpush.bf16.msra.mxu1 %v11126_v36 }
 0x5df   : > { %7545 = vmatpush.bf16.msra.mxu1 %v11125_v58 }
 0x5e3   : > { %7546 = vmatpush.bf16.msra.mxu1 %v11124_v2 }
 0x5e5   : > { %v14094_v34 = vpop.f32.mrf.mxu0 }
 0x5eb   : > { %v14096_v19 = vpop.f32.mrf.mxu1  ;;  %v14098_v55 = vpop.f32.mrf.mxu2 }
 0x5ec   : > { %v6719_v23 = vadd.f32 %v14096_v19, %v14094_v34 }
 0x5ed   : > { %v6707_v1 = vpop.f32.mrf.mxu0 }
 0x5ee   : > { %v6750_v9 = vadd.f32 %v6719_v23, %v14084_v43 }
 0x5f1   : > { %v14100_v37 = vpop.f32.mrf.mxu3 }
 0x5f3   : > { %v6720_v53 = vpop.f32.mrf.mxu1  ;;  %v6733_v14 = vpop.f32.mrf.mxu2 }
 0x5f9   : > { %v6746_v18 = vpop.f32.mrf.mxu3 }
 0x5fa   : > { %v673_v18 = vld [vmem:[#allocation17] sm:$0x1] }
 0x605   : > { %v7150_v41 = vpop.f32.mrf.mxu0 }
 0x60b   : > { %v7163_v8 = vpop.f32.mrf.mxu1  ;;  %v7176_v38 = vpop.f32.mrf.mxu2 }
 0x60c   : > { %v7164_v3 = vadd.f32 %v7163_v8, %v7150_v41 }
 0x60d   : > { %v7152_v33 = vpop.f32.mrf.mxu0 }
 0x60e   : > { %v7245_v50 = vadd.f32 %v7164_v3, %v14090_v48 }
 0x610   : > { %v7258_v56 = vadd.f32 %v7250_v61, %v7245_v50 }
 0x611   : > { %v7189_v20 = vpop.f32.mrf.mxu3 }
 0x612   : > { %v7262_v30 = vmax.f32 %v7258_v56, 0.0  ;;  %v7190_v11 = vadd.f32 %v7189_v20, %v7176_v38 }
 0x613   : > { %v7165_v45 = vpop.f32.mrf.mxu1  ;;  %v7178_v15 = vpop.f32.mrf.mxu2 }
 0x614   : > { %v7266_v62 = vpack.c.bf16 %v7262_v30, %v7262_v30  ;;  %v7246_v0 = vadd.f32 %v7190_v11, %v14092_v63  ;;  %v6745_v63 = vadd.f32 %v14100_v37, %v14098_v55 }
 0x616   : > { %v7259_v6 = vadd.f32 %v7251_v10, %v7246_v0  ;;  %7534 = vmatmul.bf16.vlgmr.msra.gmra.mxu0 %v7266_v62  ;;  %v6751_v24 = vadd.f32 %v6745_v63, %v14087_v13 }
 0x618   : > { %v7263_v48 = vmax.f32 %v7259_v6, 0.0 }
 0x619   : > { %v7191_v54 = vpop.f32.mrf.mxu3 }
 0x61a   : > { %v7267_v12 = vpack.c.bf16 %v7263_v48, %v7263_v48 }
 0x61c   : > { %7547 = vmatmul.bf16.vlgmr.msra.gmra.mxu1 %v7267_v12 }
 0x625   : > { %v7202_v26 = vpop.f32.mrf.mxu0 }
 0x62b   : > { %v7215_v25 = vpop.f32.mrf.mxu1  ;;  %v7228_v16 = vpop.f32.mrf.mxu2 }
 0x62c   : > { %v7216_v39 = vadd.f32 %v7215_v25, %v7202_v26 }
 0x62d   : > { %v7204_v59 = vpop.f32.mrf.mxu0 }
 0x62e   : > { %v7247_v21 = vadd.f32 %v7216_v39, %v6750_v9 }
 0x630   : > { %v7260_v31 = vadd.f32 %v7252_v17, %v7247_v21 }
 0x631   : > { %v7241_v49 = vpop.f32.mrf.mxu3 }
 0x632   : > { %v7264_v1 = vmax.f32 %v7260_v31, 0.0  ;;  %v7242_v36 = vadd.f32 %v7241_v49, %v7228_v16 }
 0x633   : > { %v7217_v42 = vpop.f32.mrf.mxu1  ;;  %v7230_v58 = vpop.f32.mrf.mxu2 }
 0x634   : > { %v7268_v34 = vpack.c.bf16 %v7264_v1, %v7264_v1  ;;  %v7248_v19 = vadd.f32 %v7242_v36, %v6751_v24 }
 0x636   : > { %v7261_v43 = vadd.f32 %v7253_v60, %v7248_v19  ;;  %7560 = vmatmul.bf16.vlgmr.msra.gmra.mxu2 %v7268_v34 }
 0x638   : > { %v7265_v53 = vmax.f32 %v7261_v43, 0.0 }
 0x639   : > { %v7243_v14 = vpop.f32.mrf.mxu3 }
 0x63a   : > { %v7269_v4 = vpack.c.bf16 %v7265_v53, %v7265_v53 }
 0x63c   : > { %7573 = vmatmul.bf16.vlgmr.msra.gmra.mxu3 %v7269_v4 }
 0x693   : > { %v7535_v55 = vpop.f32.mrf.mxu0 }
 0x694   : > { %v7536_v29 = vadd.f32 %v7535_v55, %v673_v18 }
 0x699   : > { %v7548_v37 = vpop.f32.mrf.mxu1 }
 0x69a   : > { %v7549_v47 = vadd.f32 %v7548_v37, %v7536_v29 }
 0x69b   : > { %v7537_v2 = vpop.f32.mrf.mxu0 }
 0x6a1   : > { %v7550_v27 = vpop.f32.mrf.mxu1 }
 0x6b9   : > { %v7561_v13 = vpop.f32.mrf.mxu2 }
 0x6ba   : > { %v7562_v32 = vadd.f32 %v7561_v13, %v7549_v47 }
 0x6bf   : > { %v7574_v40 = vpop.f32.mrf.mxu3 }
 0x6c0   : > { %v7575_v41 = vadd.f32 %v7574_v40, %v7562_v32 }
 0x6c1   : > { %v7563_v44 = vpop.f32.mrf.mxu2 }
 0x6c2   : > { %v7581_v5 = vsel %vm7580_vm2, %v7575_v41, -1e+30 }
 0x6c3   : > { %v7583_v46 = vsel %vm7582_vm3, %v7581_v5, -inf }
 0x6c4   : > { %7584 = vmax.xlane.f32.xlu0 %v7583_v46 }
 0x6c7   : > { %v7576_v8 = vpop.f32.mrf.mxu3 }
 0x737   : > { %v7585_v38 = vpop.xlane.xlu0 %7584 }
 0x738   : > { %v7586_v28 = vsub.f32 %v7581_v5, %v7585_v38 }
 0x73a   : > { %v7587_v3 = vmul.f32 1.442695, %v7586_v28 }
 0x73c   : > { %11292 = vpow2.f32 %v7587_v3 }
 0x742   : > { %v11293_v61 = vpop.eup %11292 }
 0x743   : > { %v7589_v33 = vsel %vm7582_vm3, %v11293_v61, 0.0 }
 0x744   : > { %7590 = vadd.xlane.f32.xlu0 %v7589_v33 }
 0x7b7   : > { %v7591_v52 = vpop.xlane.xlu0 %7590 }
 0x7b8   : > { %11294 = vlog2.f32 %v7591_v52 }
 0x7be   : > { %v11295_v50 = vpop.eup %11294 }
 0x7bf   : > { %v7593_v51 = vmul.f32 0.6931472, %v11295_v50 }
 0x7c1   : > { %v7594_v56 = vsub.f32 %v7586_v28, %v7593_v51 }
 0x7c3   : > { %7595 = vst [vmem:[%s650_s25] sm:$0x1] %v7594_v56 }
 0x7c4   : > { %11623 = shalt.err (!%p11620_p8)
}
 0x7c5   : > { %11188 = dma.vmem_to_hbm [thread:$0]  (%p11811_p5), %s7608_s21, 16, %s7610_s19, %s7597_s20  }
 0x7c6 PF: > { %s15040_s28 = sld [smem:[#allocation29_spill]] }
 0x7c7   : > { %s15041_s27 = sld [smem:[#allocation27_spill]] }
 0x7cc   : > { %p11245_p9 = scmp.ge.s32.totalorder %s15040_s28, 2 }
 0x7cd   : > { %s7621_s23 = sand.u32 1, %s15041_s27  }
 0x7ce   : > { %p11222_p10 = pnand %p11245_p9, %p11815_p6  ;;  %s7622_s7 = scalar_lea.sflag [#allocation4], %s7621_s23 }
 0x7d0   : > { %p11223_p11 = pneg %p11222_p10 }
 0x7d2   : > { %11665 = dma.done.wait (%p11223_p11), %s7622_s7, 16  }
 0x7d3   : > { %11667 = vsyncadd (%p11223_p11), %s7622_s7, 4294967280  ;;  %s15043_s16 = sld [smem:[#allocation30_spill]]  ;;  %s15046_s29 = smov %s11674_s30 }
 0x7d4   : > { %s15044_s25 = sld [smem:[#allocation28_spill]] }
 0x7d5   : > { %s15045_s15 = sld [smem:[#allocation31_spill]] }
 0x7d9   : > { %p30_p12 = scmp.ge.s32.totalorder %s15043_s16, 4  }
 0x7da   : > { %s15047_s30 = smov %s15044_s25 }
 0x7db   :  { %32 = sbr.rel (!%p30_p12) target bundleno = 13 (0xd), region = 172 }
 0x7e0   :  { %7627 = vsyncpa [#allocation3], 1 }
 0x7e1   :  { %7629 = vsyncpa [#allocation3 + $0x1], 1 }
 0x7e2   :  { %7630 = vsyncpa [#allocation6], 1 }
 0x7e3   :  { %7631 = vsyncpa [#allocation9], 1 }
 0x7e4   :  { %7632 = vsyncpa [#allocation12], 1 }
 0x7e5   :  { %7633 = vsyncpa [#allocation15], 1 }
 0x7e6   :  { %7634 = vsyncpa [#allocation18], 1 }
 0x7e7   :  { %7635 = vsyncpa [#allocation4], 1 }
 0x7e8   :  { %7637 = vsyncpa [#allocation4 + $0x1], 1 }

</bundles_post_ra>
